<compile_context>
chip_gen: v6e
topology: v6e:2x2x1
jax: 0.10.0
libtpu: 0.0.40
codegen_flags: <defaults>
</compile_context>

<pallas_src>
import math
from functools import partial

import jax
import jax.numpy as jnp
from jax.experimental import pallas as pl
from jax.experimental.pallas import tpu as pltpu

VMEM = pl.BlockSpec(memory_space=pltpu.MemorySpace.VMEM)
FF_DIM = 2048            # nn.TransformerEncoderLayer default dim_feedforward
LN_EPS = 1e-5            # nn.LayerNorm default eps
COS_EPS = 1e-6           # nn.CosineSimilarity eps from the module

# Encoder parameter order (weights (in,out) bf16; biases / LN affine (1,out) f32):
#   (wqkv, bqkv, wo, bo, w1, b1, w2, b2, gamma1, beta1, gamma2, beta2)
# Branch (answer / question) weight order (18 entries):
#   (*encoder(12), linear3_w, linear3_b, linear1_w, linear1_b, linear2_w, linear2_b)


# ----------------------------- in-kernel helpers ----------------------------

def _bf16(x):
    return x.astype(jnp.bfloat16)


def _matmul(x, w, b=None):
    """y = x @ w (+ b). x: (M, K) f32; w: (K, N) bf16 (pre-transposed nn.Linear)."""
    y = jnp.dot(_bf16(x), w, preferred_element_type=jnp.float32)
    if b is not None:
        y = y + b
    return y


def _layernorm(y, g, beta):
    mu = jnp.mean(y, axis=-1, keepdims=True)
    yc = y - mu
    var = jnp.mean(yc * yc, axis=-1, keepdims=True)
    return yc * jax.lax.rsqrt(var + LN_EPS) * g + beta


def _encoder_block(x, p, nheads):
    """Post-norm nn.TransformerEncoderLayer (ReLU FF, dropout = identity).

    x: (B, S, E) f32 — self-attention over axis 1 (S), independent over axis 0 (B).
    p: 12 refs / ref-views (read lazily at point of use).  Returns (B, S, E) f32.
    """
    (wqkv, bqkv, wo, bo, w1, b1, w2, b2, g1, be1, g2, be2) = p
    B, S, E = x.shape
    dh = E // nheads
    scale = 1.0 / math.sqrt(dh)

    xf = x.reshape(B * S, E)
    # One fused flat QKV projection (single MXU call), bias added once.
    qkv = _matmul(xf, wqkv[...], bqkv[...]).reshape(B, S, 3 * E)

    # Merged-head attention: stack the per-head slices along the LEADING axis
    # (cheap tile copies, no lane relayout, no 4-D transpose) so attention is
    # ONE batched scores einsum + ONE softmax + ONE context einsum, instead of
    # nheads of each.  Batch index is h*B + b.
    def heads(off):
        return jnp.concatenate(
            [qkv[:, :, off + h * dh: off + (h + 1) * dh] for h in range(nheads)],
            axis=0)                                            # (nheads*B, S, dh)

    q = heads(0) * scale
    k = heads(E)
    v = heads(2 * E)
    s = jnp.einsum('bsd,btd->bst', _bf16(q), _bf16(k),
                   preferred_element_type=jnp.float32)         # (nheads*B, S, S)
    s = s - jnp.max(s, axis=-1, keepdims=True)
    pr = jnp.exp(s)
    pr = pr * pl.reciprocal(jnp.sum(pr, axis=-1, keepdims=True), approx=True)
    ctx = jnp.einsum('bst,btd->bsd', _bf16(pr), _bf16(v),
                     preferred_element_type=jnp.float32)       # (nheads*B, S, dh)
    # Merge heads back to the feature dim (torch head-concat order).
    ctx = jnp.concatenate([ctx[h * B:(h + 1) * B] for h in range(nheads)],
                          axis=-1).reshape(B * S, E)

    attn = _matmul(ctx, wo[...], bo[...])                      # (B*S, E)
    x1 = _layernorm(xf + attn, g1[...], be1[...])
    hid = jnp.maximum(_matmul(x1, w1[...], b1[...]), 0.0)      # (B*S, FF_DIM)
    ff = _matmul(hid, w2[...], b2[...])                        # (B*S, E)
    return _layernorm(x1 + ff, g2[...], be2[...]).reshape(B, S, E)


def _fold_tokens(t):
    """(L, rows, H) -> (rows, L*H) via lane concat, matching torch's .view(bs, -1)."""
    L = t.shape[0]
    return jnp.concatenate([t[l] for l in range(L)], axis=-1)


# ------------------------------- Pallas kernels ------------------------------

def _neighbour_kernel(*refs, nheads):
    # One grid step == one neighbour (everything up to linear4 is per-neighbour
    # independent, so the grid axis is "parallel" and v7x can split it).
    # refs: emb (1,L,bs,H), pos (1,bs,2), 12x text_tf, w3, b3, wp1, bp1, wp2, bp2,
    #       12x nbr_tf, out (1,bs,2H)
    emb_ref, pos_ref = refs[0], refs[1]
    text_enc = refs[2:14]
    w3, b3, wp1, bp1, wp2, bp2 = refs[14:20]
    nbr_enc = refs[20:32]
    o_ref = refs[32]

    x = emb_ref[0]                                             # (L, bs, H)
    L, S, H = x.shape

    # Text transformer for this neighbour (attends over bs, independent per token).
    t = _encoder_block(x, text_enc, nheads)                    # (L, bs, H)

    # linear3 ((L*H) -> H) as ONE K=L*H matmul (lane-fold, no accumulation loop).
    text = jnp.maximum(_matmul(_fold_tokens(t), w3[...], b3[...]), 0.0)   # (bs, H)

    # Position MLP (dropout1/dropout2 = identity, eval mode).
    p1 = jnp.maximum(_matmul(pos_ref[0], wp1[...], bp1[...]), 0.0)
    p2 = jnp.maximum(_matmul(p1, wp2[...], bp2[...]), 0.0)     # (bs, H)

    nbr_in = jnp.concatenate([text, p2], axis=-1).reshape(1, S, 2 * H)
    # Neighbour transformer: attends over bs, independent per neighbour.
    a = _encoder_block(nbr_in, nbr_enc, nheads)                # (1, bs, 2H)
    o_ref[...] = a                                             # per-neighbour partial


def _qa_branch_kernel(*refs, nheads):
    # One grid step == one branch (i=0 answer, i=1 question); weights arrive
    # pre-stacked along a leading branch axis, .at[0] drops it at zero cost.
    # refs: emb (1,L,bs,H), pos (1,bs,4), 18x stacked weights, out (1,bs,2H)
    emb_ref, pos_ref = refs[0], refs[1]
    prm = [r.at[0] for r in refs[2:20]]        # zero-cost views, read lazily below
    o_ref = refs[20]
    enc = tuple(prm[0:12])
    w3, b3, wp1, bp1, wp2, bp2 = prm[12:18]

    x = emb_ref[0]                                             # (L, bs, H)
    t = _encoder_block(x, enc, nheads)                         # (L, bs, H)

    # linear3 ((L*H) -> H) as ONE K=L*H matmul; no ReLU (matches the module).
    text = _matmul(_fold_tokens(t), w3[...], b3[...])          # (bs, H)

    # Position MLP (dropouts = identity).
    p1 = jnp.maximum(_matmul(pos_ref[0], wp1[...], bp1[...]), 0.0)
    p2 = jnp.maximum(_matmul(p1, wp2[...], bp2[...]), 0.0)     # (bs, H)

    # TODO(synk): pad the last dim to a lane-dense 128 at production batch sizes.
    o_ref[0] = jnp.concatenate([text, p2], axis=-1)            # (bs, 2H)


def _tail_kernel(nbr_ref, qa_ref, w4_ref, b4_ref, wan_ref, ban_ref, o_ref):
    # linear4: fold the neighbours into the lane dim -> ONE K = N*2H matmul.
    N = nbr_ref.shape[0]
    nbr_flat = jnp.concatenate([nbr_ref[n] for n in range(N)], axis=-1)   # (bs, N*2H)
    nbr_result = jnp.maximum(_matmul(nbr_flat, w4_ref[...], b4_ref[...]), 0.0)

    ans_out = qa_ref[0]                                        # (bs, 2H)
    qn_out = qa_ref[1]                                         # (bs, 2H)
    ans_nbr = jnp.concatenate([ans_out, nbr_result], axis=-1)  # (bs, 4H)
    y = jnp.maximum(_matmul(ans_nbr, wan_ref[...], ban_ref[...]), 0.0)    # (bs, 2H)

    # nn.CosineSimilarity: each norm clamped at eps separately (current torch impl).
    qn = jnp.maximum(jnp.sqrt(jnp.sum(qn_out * qn_out, axis=-1, keepdims=True)), COS_EPS)
    yn = jnp.maximum(jnp.sqrt(jnp.sum(y * y, axis=-1, keepdims=True)), COS_EPS)
    sim = jnp.sum(qn_out * y, axis=-1, keepdims=True) / (qn * yn)
    # TODO(synk): (bs, 1) output is a masked store; pack/widen at production sizes.
    o_ref[...] = (sim + 1.0) * 0.5                             # (bs, 1)


# ----------------------------- BlockSpec helpers -----------------------------

def _full_spec(arr):
    """Whole array resident every grid step (constant block index)."""
    nd = arr.ndim

    def imap(i):
        return (0,) * nd
    return pl.BlockSpec(arr.shape, imap)


def _stacked_spec(arr):
    """Block out the leading (branch / neighbour) axis only."""
    nd = arr.ndim - 1

    def imap(i):
        return (i,) + (0,) * nd
    return pl.BlockSpec((1,) + tuple(arr.shape[1:]), imap)


# --------------------------------- forward ----------------------------------

@partial(jax.jit, static_argnames=("nheads",))
def score_model_forward(params, question_text, question_pos, answer_text,
                        answer_pos, neighbour_text, neighbour_pos, *, nheads):
    nb = params['nbr']
    H = nb['word_embed'].shape[1]
    bs, L = answer_text.shape
    N = neighbour_text.shape[1]

    # ----- NeighbourModel: one pallas_call, "parallel" grid over neighbours -----
    # Embedding gather stays outside (only tiny int32 index tensors are permuted).
    # TODO(synk): fuse the gather via PrefetchScalarGridSpec + pl.Element at scale.
    nbr_idx = jnp.transpose(neighbour_text, (1, 2, 0))                 # (N, L, bs)
    nbr_emb = jnp.take(nb['word_embed'], nbr_idx, axis=0)              # (N, L, bs, H)
    nbr_pos = jnp.transpose(neighbour_pos, (1, 0, 2))                  # (N, bs, 2)
    nbr_w = (*nb['text_tf'], nb['linear3_w'], nb['linear3_b'],
             nb['linear1_w'], nb['linear1_b'], nb['linear2_w'], nb['linear2_b'],
             *nb['nbr_tf'])
    nbr_part = pl.pallas_call(
        partial(_neighbour_kernel, nheads=nheads),
        grid=(N,),
        out_shape=jax.ShapeDtypeStruct((N, bs, 2 * H), jnp.float32),
        in_specs=[pl.BlockSpec((1, L, bs, H), lambda n: (n, 0, 0, 0)),
                  pl.BlockSpec((1, bs, 2), lambda n: (n, 0, 0)),
                  *[_full_spec(w) for w in nbr_w]],
        out_specs=pl.BlockSpec((1, bs, 2 * H), lambda n: (n, 0, 0)),
        compiler_params=pltpu.CompilerParams(dimension_semantics=("parallel",)),
    )(nbr_emb, nbr_pos, *nbr_w)

    # ----- answer (i=0) + question (i=1) branches fused in ONE pallas_call -----
    qa = params['qa']
    emb_a = jnp.take(qa['answer_embed'], answer_text.T, axis=0)        # (L, bs, H)
    emb_q = jnp.take(qa['question_embed'], question_text.T, axis=0)    # (L, bs, H)
    qa_emb = jnp.stack([emb_a, emb_q])                                  # (2, L, bs, H)
    qa_pos = jnp.stack([answer_pos, question_pos])                      # (2, bs, 4)
    qa_w = qa['weights']                                                # 18 stacked arrays
    qa_out = pl.pallas_call(
        partial(_qa_branch_kernel, nheads=nheads),
        grid=(2,),
        out_shape=jax.ShapeDtypeStruct((2, bs, 2 * H), jnp.float32),
        in_specs=[pl.BlockSpec((1, L, bs, H), lambda i: (i, 0, 0, 0)),
                  pl.BlockSpec((1, bs, 4), lambda i: (i, 0, 0)),
                  *[_stacked_spec(w) for w in qa_w]],
        out_specs=pl.BlockSpec((1, bs, 2 * H), lambda i: (i, 0, 0)),
        compiler_params=pltpu.CompilerParams(dimension_semantics=("parallel",)),
    )(qa_emb, qa_pos, *qa_w)

    # ----- tail: linear4 fold + ans_nbr linear + ReLU + cosine score (one tiny call) -----
    tail_args = (nbr_part, qa_out, nb['linear4_w'], nb['linear4_b'],
                 params['ans_nbr_w'], params['ans_nbr_b'])
    return pl.pallas_call(
        _tail_kernel,
        out_shape=jax.ShapeDtypeStruct((bs, 1), jnp.float32),
        in_specs=[VMEM] * len(tail_args),
        out_specs=VMEM,
    )(*tail_args)


# ------------------------------ parameter init ------------------------------

def _linear(key, in_d, out_d):
    """nn.Linear-style init, stored pre-transposed as (in, out) bf16; bias (1, out) f32."""
    kw, kb = jax.random.split(key)
    bound = 1.0 / math.sqrt(in_d)
    w = jax.random.uniform(kw, (in_d, out_d), jnp.float32, -bound, bound)
    b = jax.random.uniform(kb, (1, out_d), jnp.float32, -bound, bound)
    return w.astype(jnp.bfloat16), b


def _encoder_params(key, e, ff=FF_DIM):
    k = jax.random.split(key, 4)
    wqkv, bqkv = _linear(k[0], e, 3 * e)
    wo, bo = _linear(k[1], e, e)
    w1, b1 = _linear(k[2], e, ff)
    w2, b2 = _linear(k[3], ff, e)
    ones = jnp.ones((1, e), jnp.float32)
    zeros = jnp.zeros((1, e), jnp.float32)
    return (wqkv, bqkv, wo, bo, w1, b1, w2, b2, ones, zeros, ones, zeros)


def _branch_params(key, vocab, tmp_dim, hidden, max_len, ff):
    ks = jax.random.split(key, 5)
    emb = jax.random.normal(ks[0], (vocab, hidden), jnp.float32) * 0.05
    tf = _encoder_params(ks[1], hidden, ff)
    l3w, l3b = _linear(ks[2], hidden * max_len, hidden)
    l1w, l1b = _linear(ks[3], 4, tmp_dim)
    l2w, l2b = _linear(ks[4], tmp_dim, hidden)
    return emb, (*tf, l3w, l3b, l1w, l1b, l2w, l2b)


def init_params(key, vocab, tmp_dim, hidden, max_len, n_nbr, ff=FF_DIM):
    k = jax.random.split(key, 4)
    ans_emb, ans_w = _branch_params(k[0], vocab, tmp_dim, hidden, max_len, ff)
    qn_emb, qn_w = _branch_params(k[1], vocab, tmp_dim, hidden, max_len, ff)
    # Answer/question weights are pre-stacked along a leading branch axis so the
    # fused qa call can block them per grid step with zero per-call copies.
    qa = dict(answer_embed=ans_emb, question_embed=qn_emb,
              weights=tuple(jnp.stack([a, q]) for a, q in zip(ans_w, qn_w)))

    knb = jax.random.split(k[2], 7)
    nbr = dict(
        word_embed=jax.random.normal(knb[0], (vocab, hidden), jnp.float32) * 0.05,
        text_tf=_encoder_params(knb[1], hidden, ff),
        nbr_tf=_encoder_params(knb[2], hidden * 2, ff),
    )
    nbr['linear1_w'], nbr['linear1_b'] = _linear(knb[3], 2, tmp_dim)
    nbr['linear2_w'], nbr['linear2_b'] = _linear(knb[4], tmp_dim, hidden)
    nbr['linear3_w'], nbr['linear3_b'] = _linear(knb[5], hidden * max_len, hidden)
    nbr['linear4_w'], nbr['linear4_b'] = _linear(knb[6], hidden * n_nbr * 2, hidden * 2)

    aw, ab = _linear(k[3], hidden * 4, hidden * 2)
    return dict(qa=qa, nbr=nbr, ans_nbr_w=aw, ans_nbr_b=ab)


# ----------------------------------- main -----------------------------------

if __name__ == "__main__":
    VOCAB, TMP, HIDDEN, MAX_LEN, NHEADS, N_NBR, BS = 100, 16, 32, 8, 4, 3, 2

    root = jax.random.PRNGKey(0)
    k_params, kq, ka, kn, kp1, kp2, kp3 = jax.random.split(root, 7)

    params = init_params(k_params, VOCAB, TMP, HIDDEN, MAX_LEN, N_NBR)

    question_text = jax.random.randint(kq, (BS, MAX_LEN), 0, VOCAB, jnp.int32)
    answer_text = jax.random.randint(ka, (BS, MAX_LEN), 0, VOCAB, jnp.int32)
    neighbour_text = jax.random.randint(kn, (BS, N_NBR, MAX_LEN), 0, VOCAB, jnp.int32)
    question_pos = jax.random.normal(kp1, (BS, 4), jnp.float32)
    answer_pos = jax.random.normal(kp2, (BS, 4), jnp.float32)
    neighbour_pos = jax.random.normal(kp3, (BS, N_NBR, 2), jnp.float32)

    scores = score_model_forward(params, question_text, question_pos,
                                 answer_text, answer_pos,
                                 neighbour_text, neighbour_pos, nheads=NHEADS)
    scores = jax.block_until_ready(scores)
    assert scores.shape == (BS, 1)
    assert bool(jnp.all(jnp.isfinite(scores)))
    print("KERNEL_OK")
</pallas_src>

<mosaic_0001>
module attributes {stable_mosaic.version = 11 : i64} {
  func.func @_qa_branch_kernel(%arg0: i32, %arg1: memref<1x8x2x32xf32, #tpu.memory_space<vmem>>, %arg2: memref<1x2x4xf32, #tpu.memory_space<vmem>>, %arg3: memref<1x32x96xbf16, #tpu.memory_space<vmem>>, %arg4: memref<1x1x96xf32, #tpu.memory_space<vmem>>, %arg5: memref<1x32x32xbf16, #tpu.memory_space<vmem>>, %arg6: memref<1x1x32xf32, #tpu.memory_space<vmem>>, %arg7: memref<1x32x2048xbf16, #tpu.memory_space<vmem>>, %arg8: memref<1x1x2048xf32, #tpu.memory_space<vmem>>, %arg9: memref<1x2048x32xbf16, #tpu.memory_space<vmem>>, %arg10: memref<1x1x32xf32, #tpu.memory_space<vmem>>, %arg11: memref<1x1x32xf32, #tpu.memory_space<vmem>>, %arg12: memref<1x1x32xf32, #tpu.memory_space<vmem>>, %arg13: memref<1x1x32xf32, #tpu.memory_space<vmem>>, %arg14: memref<1x1x32xf32, #tpu.memory_space<vmem>>, %arg15: memref<1x256x32xbf16, #tpu.memory_space<vmem>>, %arg16: memref<1x1x32xf32, #tpu.memory_space<vmem>>, %arg17: memref<1x4x16xbf16, #tpu.memory_space<vmem>>, %arg18: memref<1x1x16xf32, #tpu.memory_space<vmem>>, %arg19: memref<1x16x32xbf16, #tpu.memory_space<vmem>>, %arg20: memref<1x1x32xf32, #tpu.memory_space<vmem>>, %arg21: memref<1x2x64xf32, #tpu.memory_space<vmem>>) attributes {dimension_semantics = [#tpu.dimension_semantics<parallel>], iteration_bounds = array<i64: 2>, scalar_prefetch = 0 : i64, scratch_operands = 0 : i64, tpu.core_type = #tpu.core_type<tc>, window_params = [{transform_indices = @transform_0, window_bounds = array<i64: 1, 8, 2, 32>}, {transform_indices = @transform_1, window_bounds = array<i64: 1, 2, 4>}, {transform_indices = @transform_2, window_bounds = array<i64: 1, 32, 96>}, {transform_indices = @transform_3, window_bounds = array<i64: 1, 1, 96>}, {transform_indices = @transform_4, window_bounds = array<i64: 1, 32, 32>}, {transform_indices = @transform_5, window_bounds = array<i64: 1, 1, 32>}, {transform_indices = @transform_6, window_bounds = array<i64: 1, 32, 2048>}, {transform_indices = @transform_7, window_bounds = array<i64: 1, 1, 2048>}, {transform_indices = @transform_8, window_bounds = array<i64: 1, 2048, 32>}, {transform_indices = @transform_9, window_bounds = array<i64: 1, 1, 32>}, {transform_indices = @transform_10, window_bounds = array<i64: 1, 1, 32>}, {transform_indices = @transform_11, window_bounds = array<i64: 1, 1, 32>}, {transform_indices = @transform_12, window_bounds = array<i64: 1, 1, 32>}, {transform_indices = @transform_13, window_bounds = array<i64: 1, 1, 32>}, {transform_indices = @transform_14, window_bounds = array<i64: 1, 256, 32>}, {transform_indices = @transform_15, window_bounds = array<i64: 1, 1, 32>}, {transform_indices = @transform_16, window_bounds = array<i64: 1, 4, 16>}, {transform_indices = @transform_17, window_bounds = array<i64: 1, 1, 16>}, {transform_indices = @transform_18, window_bounds = array<i64: 1, 16, 32>}, {transform_indices = @transform_19, window_bounds = array<i64: 1, 1, 32>}, {transform_indices = @transform_20, window_bounds = array<i64: 1, 2, 64>}]} {
    %c0 = arith.constant 0 : index
    %c0_0 = arith.constant 0 : index
    %c0_1 = arith.constant 0 : index
    %c0_2 = arith.constant 0 : index
    %0 = vector.load %arg1[%c0, %c0_0, %c0_1, %c0_2] : memref<1x8x2x32xf32, #tpu.memory_space<vmem>>, vector<1x8x2x32xf32>
    %1 = vector.shape_cast %0 : vector<1x8x2x32xf32> to vector<8x2x32xf32>
    %2 = vector.shape_cast %1 : vector<8x2x32xf32> to vector<16x32xf32>
    %c0_3 = arith.constant 0 : index
    %c0_4 = arith.constant 0 : index
    %c0_5 = arith.constant 0 : index
    %3 = vector.load %arg3[%c0_3, %c0_4, %c0_5] : memref<1x32x96xbf16, #tpu.memory_space<vmem>>, vector<1x32x96xbf16>
    %4 = vector.shape_cast %3 : vector<1x32x96xbf16> to vector<32x96xbf16>
    %c0_6 = arith.constant 0 : index
    %c0_7 = arith.constant 0 : index
    %c0_8 = arith.constant 0 : index
    %5 = vector.load %arg4[%c0_6, %c0_7, %c0_8] : memref<1x1x96xf32, #tpu.memory_space<vmem>>, vector<1x1x96xf32>
    %6 = vector.shape_cast %5 : vector<1x1x96xf32> to vector<1x96xf32>
    %7 = arith.truncf %2 : vector<16x32xf32> to vector<16x32xbf16>
    %cst = arith.constant dense<0.000000e+00> : vector<16x96xf32>
    %8 = tpu.matmul %7, %4, %cst {dimension_numbers = #tpu.dot_dimension_numbers<[1], [0], [0], [1], [0, 0, 1, 1], [], []>} : vector<16x32xbf16>, vector<32x96xbf16>, vector<16x96xf32> -> vector<16x96xf32>
    %9 = vector.broadcast %6 : vector<1x96xf32> to vector<16x96xf32>
    %10 = arith.addf %8, %9 : vector<16x96xf32>
    %11 = vector.shape_cast %10 : vector<16x96xf32> to vector<8x2x96xf32>
    %12 = vector.extract_strided_slice %11 {offsets = [0, 0, 0], sizes = [8, 2, 8], strides = [1, 1, 1]} : vector<8x2x96xf32> to vector<8x2x8xf32>
    %13 = vector.extract_strided_slice %11 {offsets = [0, 0, 8], sizes = [8, 2, 8], strides = [1, 1, 1]} : vector<8x2x96xf32> to vector<8x2x8xf32>
    %14 = vector.extract_strided_slice %11 {offsets = [0, 0, 16], sizes = [8, 2, 8], strides = [1, 1, 1]} : vector<8x2x96xf32> to vector<8x2x8xf32>
    %15 = vector.extract_strided_slice %11 {offsets = [0, 0, 24], sizes = [8, 2, 8], strides = [1, 1, 1]} : vector<8x2x96xf32> to vector<8x2x8xf32>
    %16 = tpu.concatenate %12, %13, %14, %15 in 0 : vector<8x2x8xf32>, vector<8x2x8xf32>, vector<8x2x8xf32>, vector<8x2x8xf32> -> vector<32x2x8xf32>
    %cst_9 = arith.constant 0.353553385 : f32
    %17 = vector.broadcast %cst_9 : f32 to vector<32x2x8xf32>
    %18 = arith.mulf %16, %17 : vector<32x2x8xf32>
    %19 = vector.extract_strided_slice %11 {offsets = [0, 0, 32], sizes = [8, 2, 8], strides = [1, 1, 1]} : vector<8x2x96xf32> to vector<8x2x8xf32>
    %20 = vector.extract_strided_slice %11 {offsets = [0, 0, 40], sizes = [8, 2, 8], strides = [1, 1, 1]} : vector<8x2x96xf32> to vector<8x2x8xf32>
    %21 = vector.extract_strided_slice %11 {offsets = [0, 0, 48], sizes = [8, 2, 8], strides = [1, 1, 1]} : vector<8x2x96xf32> to vector<8x2x8xf32>
    %22 = vector.extract_strided_slice %11 {offsets = [0, 0, 56], sizes = [8, 2, 8], strides = [1, 1, 1]} : vector<8x2x96xf32> to vector<8x2x8xf32>
    %23 = tpu.concatenate %19, %20, %21, %22 in 0 : vector<8x2x8xf32>, vector<8x2x8xf32>, vector<8x2x8xf32>, vector<8x2x8xf32> -> vector<32x2x8xf32>
    %24 = vector.extract_strided_slice %11 {offsets = [0, 0, 64], sizes = [8, 2, 8], strides = [1, 1, 1]} : vector<8x2x96xf32> to vector<8x2x8xf32>
    %25 = vector.extract_strided_slice %11 {offsets = [0, 0, 72], sizes = [8, 2, 8], strides = [1, 1, 1]} : vector<8x2x96xf32> to vector<8x2x8xf32>
    %26 = vector.extract_strided_slice %11 {offsets = [0, 0, 80], sizes = [8, 2, 8], strides = [1, 1, 1]} : vector<8x2x96xf32> to vector<8x2x8xf32>
    %27 = vector.extract_strided_slice %11 {offsets = [0, 0, 88], sizes = [8, 2, 8], strides = [1, 1, 1]} : vector<8x2x96xf32> to vector<8x2x8xf32>
    %28 = tpu.concatenate %24, %25, %26, %27 in 0 : vector<8x2x8xf32>, vector<8x2x8xf32>, vector<8x2x8xf32>, vector<8x2x8xf32> -> vector<32x2x8xf32>
    %29 = arith.truncf %18 : vector<32x2x8xf32> to vector<32x2x8xbf16>
    %30 = arith.truncf %23 : vector<32x2x8xf32> to vector<32x2x8xbf16>
    "tpu.trace_start"() <{level = 10 : i32, message = "bsd,btd->bst"}> : () -> ()
    %cst_10 = arith.constant dense<0.000000e+00> : vector<32x2x2xf32>
    %31 = tpu.matmul %29, %30, %cst_10 {dimension_numbers = #tpu.dot_dimension_numbers<[2], [2], [1], [1], [0, 0, 0, 1, 1, 1], [0], [0]>} : vector<32x2x8xbf16>, vector<32x2x8xbf16>, vector<32x2x2xf32> -> vector<32x2x2xf32>
    "tpu.trace_stop"() : () -> ()
    %cst_11 = arith.constant dense<0xFF800000> : vector<32x2xf32>
    %32 = vector.multi_reduction <maximumf>, %31, %cst_11 [2] : vector<32x2x2xf32> to vector<32x2xf32>
    %33 = vector.shape_cast %32 : vector<32x2xf32> to vector<32x2x1xf32>
    %34 = vector.broadcast %33 : vector<32x2x1xf32> to vector<32x2x2xf32>
    %35 = arith.subf %31, %34 : vector<32x2x2xf32>
    %36 = math.exp %35 : vector<32x2x2xf32>
    %cst_12 = arith.constant dense<0.000000e+00> : vector<32x2xf32>
    %37 = vector.multi_reduction <add>, %36, %cst_12 [2] : vector<32x2x2xf32> to vector<32x2xf32>
    %38 = vector.shape_cast %37 : vector<32x2xf32> to vector<32x2x1xf32>
    %39 = tpu.reciprocal %38 {approx = true} : vector<32x2x1xf32> -> vector<32x2x1xf32>
    %40 = vector.broadcast %39 : vector<32x2x1xf32> to vector<32x2x2xf32>
    %41 = arith.mulf %36, %40 : vector<32x2x2xf32>
    %42 = arith.truncf %41 : vector<32x2x2xf32> to vector<32x2x2xbf16>
    %43 = arith.truncf %28 : vector<32x2x8xf32> to vector<32x2x8xbf16>
    "tpu.trace_start"() <{level = 10 : i32, message = "bst,btd->bsd"}> : () -> ()
    %cst_13 = arith.constant dense<0.000000e+00> : vector<32x2x8xf32>
    %44 = tpu.matmul %42, %43, %cst_13 {dimension_numbers = #tpu.dot_dimension_numbers<[2], [1], [1], [2], [0, 0, 0, 1, 1, 2], [0], [0]>} : vector<32x2x2xbf16>, vector<32x2x8xbf16>, vector<32x2x8xf32> -> vector<32x2x8xf32>
    "tpu.trace_stop"() : () -> ()
    %45 = vector.extract_strided_slice %44 {offsets = [0, 0, 0], sizes = [8, 2, 8], strides = [1, 1, 1]} : vector<32x2x8xf32> to vector<8x2x8xf32>
    %46 = vector.extract_strided_slice %44 {offsets = [8, 0, 0], sizes = [8, 2, 8], strides = [1, 1, 1]} : vector<32x2x8xf32> to vector<8x2x8xf32>
    %47 = vector.extract_strided_slice %44 {offsets = [16, 0, 0], sizes = [8, 2, 8], strides = [1, 1, 1]} : vector<32x2x8xf32> to vector<8x2x8xf32>
    %48 = vector.extract_strided_slice %44 {offsets = [24, 0, 0], sizes = [8, 2, 8], strides = [1, 1, 1]} : vector<32x2x8xf32> to vector<8x2x8xf32>
    %49 = tpu.concatenate %45, %46, %47, %48 in 2 : vector<8x2x8xf32>, vector<8x2x8xf32>, vector<8x2x8xf32>, vector<8x2x8xf32> -> vector<8x2x32xf32>
    %50 = vector.shape_cast %49 : vector<8x2x32xf32> to vector<16x32xf32>
    %c0_14 = arith.constant 0 : index
    %c0_15 = arith.constant 0 : index
    %c0_16 = arith.constant 0 : index
    %51 = vector.load %arg5[%c0_14, %c0_15, %c0_16] : memref<1x32x32xbf16, #tpu.memory_space<vmem>>, vector<1x32x32xbf16>
    %52 = vector.shape_cast %51 : vector<1x32x32xbf16> to vector<32x32xbf16>
    %c0_17 = arith.constant 0 : index
    %c0_18 = arith.constant 0 : index
    %c0_19 = arith.constant 0 : index
    %53 = vector.load %arg6[%c0_17, %c0_18, %c0_19] : memref<1x1x32xf32, #tpu.memory_space<vmem>>, vector<1x1x32xf32>
    %54 = vector.shape_cast %53 : vector<1x1x32xf32> to vector<1x32xf32>
    %55 = arith.truncf %50 : vector<16x32xf32> to vector<16x32xbf16>
    %cst_20 = arith.constant dense<0.000000e+00> : vector<16x32xf32>
    %56 = tpu.matmul %55, %52, %cst_20 {dimension_numbers = #tpu.dot_dimension_numbers<[1], [0], [0], [1], [0, 0, 1, 1], [], []>} : vector<16x32xbf16>, vector<32x32xbf16>, vector<16x32xf32> -> vector<16x32xf32>
    %57 = vector.broadcast %54 : vector<1x32xf32> to vector<16x32xf32>
    %58 = arith.addf %56, %57 : vector<16x32xf32>
    %59 = arith.addf %2, %58 : vector<16x32xf32>
    %c0_21 = arith.constant 0 : index
    %c0_22 = arith.constant 0 : index
    %c0_23 = arith.constant 0 : index
    %60 = vector.load %arg11[%c0_21, %c0_22, %c0_23] : memref<1x1x32xf32, #tpu.memory_space<vmem>>, vector<1x1x32xf32>
    %61 = vector.shape_cast %60 : vector<1x1x32xf32> to vector<1x32xf32>
    %c0_24 = arith.constant 0 : index
    %c0_25 = arith.constant 0 : index
    %c0_26 = arith.constant 0 : index
    %62 = vector.load %arg12[%c0_24, %c0_25, %c0_26] : memref<1x1x32xf32, #tpu.memory_space<vmem>>, vector<1x1x32xf32>
    %63 = vector.shape_cast %62 : vector<1x1x32xf32> to vector<1x32xf32>
    %cst_27 = arith.constant dense<0.000000e+00> : vector<16xf32>
    %64 = vector.multi_reduction <add>, %59, %cst_27 [1] : vector<16x32xf32> to vector<16xf32>
    %65 = vector.shape_cast %64 : vector<16xf32> to vector<16x1xf32>
    %cst_28 = arith.constant 3.200000e+01 : f32
    %66 = vector.broadcast %cst_28 : f32 to vector<16x1xf32>
    %67 = arith.divf %65, %66 : vector<16x1xf32>
    %68 = vector.broadcast %67 : vector<16x1xf32> to vector<16x32xf32>
    %69 = arith.subf %59, %68 : vector<16x32xf32>
    %70 = arith.mulf %69, %69 : vector<16x32xf32>
    %cst_29 = arith.constant dense<0.000000e+00> : vector<16xf32>
    %71 = vector.multi_reduction <add>, %70, %cst_29 [1] : vector<16x32xf32> to vector<16xf32>
    %72 = vector.shape_cast %71 : vector<16xf32> to vector<16x1xf32>
    %cst_30 = arith.constant 3.200000e+01 : f32
    %73 = vector.broadcast %cst_30 : f32 to vector<16x1xf32>
    %74 = arith.divf %72, %73 : vector<16x1xf32>
    %cst_31 = arith.constant 9.99999974E-6 : f32
    %75 = vector.broadcast %cst_31 : f32 to vector<16x1xf32>
    %76 = arith.addf %74, %75 : vector<16x1xf32>
    %77 = math.rsqrt %76 : vector<16x1xf32>
    %78 = vector.broadcast %77 : vector<16x1xf32> to vector<16x32xf32>
    %79 = arith.mulf %69, %78 : vector<16x32xf32>
    %80 = vector.broadcast %61 : vector<1x32xf32> to vector<16x32xf32>
    %81 = arith.mulf %79, %80 : vector<16x32xf32>
    %82 = vector.broadcast %63 : vector<1x32xf32> to vector<16x32xf32>
    %83 = arith.addf %81, %82 : vector<16x32xf32>
    %c0_32 = arith.constant 0 : index
    %c0_33 = arith.constant 0 : index
    %c0_34 = arith.constant 0 : index
    %84 = vector.load %arg7[%c0_32, %c0_33, %c0_34] : memref<1x32x2048xbf16, #tpu.memory_space<vmem>>, vector<1x32x2048xbf16>
    %85 = vector.shape_cast %84 : vector<1x32x2048xbf16> to vector<32x2048xbf16>
    %c0_35 = arith.constant 0 : index
    %c0_36 = arith.constant 0 : index
    %c0_37 = arith.constant 0 : index
    %86 = vector.load %arg8[%c0_35, %c0_36, %c0_37] : memref<1x1x2048xf32, #tpu.memory_space<vmem>>, vector<1x1x2048xf32>
    %87 = vector.shape_cast %86 : vector<1x1x2048xf32> to vector<1x2048xf32>
    %88 = arith.truncf %83 : vector<16x32xf32> to vector<16x32xbf16>
    %cst_38 = arith.constant dense<0.000000e+00> : vector<16x2048xf32>
    %89 = tpu.matmul %88, %85, %cst_38 {dimension_numbers = #tpu.dot_dimension_numbers<[1], [0], [0], [1], [0, 0, 1, 1], [], []>} : vector<16x32xbf16>, vector<32x2048xbf16>, vector<16x2048xf32> -> vector<16x2048xf32>
    %90 = vector.broadcast %87 : vector<1x2048xf32> to vector<16x2048xf32>
    %91 = arith.addf %89, %90 : vector<16x2048xf32>
    %cst_39 = arith.constant 0.000000e+00 : f32
    %92 = vector.broadcast %cst_39 : f32 to vector<16x2048xf32>
    %93 = arith.maximumf %91, %92 : vector<16x2048xf32>
    %c0_40 = arith.constant 0 : index
    %c0_41 = arith.constant 0 : index
    %c0_42 = arith.constant 0 : index
    %94 = vector.load %arg9[%c0_40, %c0_41, %c0_42] : memref<1x2048x32xbf16, #tpu.memory_space<vmem>>, vector<1x2048x32xbf16>
    %95 = vector.shape_cast %94 : vector<1x2048x32xbf16> to vector<2048x32xbf16>
    %c0_43 = arith.constant 0 : index
    %c0_44 = arith.constant 0 : index
    %c0_45 = arith.constant 0 : index
    %96 = vector.load %arg10[%c0_43, %c0_44, %c0_45] : memref<1x1x32xf32, #tpu.memory_space<vmem>>, vector<1x1x32xf32>
    %97 = vector.shape_cast %96 : vector<1x1x32xf32> to vector<1x32xf32>
    %98 = arith.truncf %93 : vector<16x2048xf32> to vector<16x2048xbf16>
    %cst_46 = arith.constant dense<0.000000e+00> : vector<16x32xf32>
    %99 = tpu.matmul %98, %95, %cst_46 {dimension_numbers = #tpu.dot_dimension_numbers<[1], [0], [0], [1], [0, 0, 1, 1], [], []>} : vector<16x2048xbf16>, vector<2048x32xbf16>, vector<16x32xf32> -> vector<16x32xf32>
    %100 = vector.broadcast %97 : vector<1x32xf32> to vector<16x32xf32>
    %101 = arith.addf %99, %100 : vector<16x32xf32>
    %102 = arith.addf %83, %101 : vector<16x32xf32>
    %c0_47 = arith.constant 0 : index
    %c0_48 = arith.constant 0 : index
    %c0_49 = arith.constant 0 : index
    %103 = vector.load %arg13[%c0_47, %c0_48, %c0_49] : memref<1x1x32xf32, #tpu.memory_space<vmem>>, vector<1x1x32xf32>
    %104 = vector.shape_cast %103 : vector<1x1x32xf32> to vector<1x32xf32>
    %c0_50 = arith.constant 0 : index
    %c0_51 = arith.constant 0 : index
    %c0_52 = arith.constant 0 : index
    %105 = vector.load %arg14[%c0_50, %c0_51, %c0_52] : memref<1x1x32xf32, #tpu.memory_space<vmem>>, vector<1x1x32xf32>
    %106 = vector.shape_cast %105 : vector<1x1x32xf32> to vector<1x32xf32>
    %cst_53 = arith.constant dense<0.000000e+00> : vector<16xf32>
    %107 = vector.multi_reduction <add>, %102, %cst_53 [1] : vector<16x32xf32> to vector<16xf32>
    %108 = vector.shape_cast %107 : vector<16xf32> to vector<16x1xf32>
    %cst_54 = arith.constant 3.200000e+01 : f32
    %109 = vector.broadcast %cst_54 : f32 to vector<16x1xf32>
    %110 = arith.divf %108, %109 : vector<16x1xf32>
    %111 = vector.broadcast %110 : vector<16x1xf32> to vector<16x32xf32>
    %112 = arith.subf %102, %111 : vector<16x32xf32>
    %113 = arith.mulf %112, %112 : vector<16x32xf32>
    %cst_55 = arith.constant dense<0.000000e+00> : vector<16xf32>
    %114 = vector.multi_reduction <add>, %113, %cst_55 [1] : vector<16x32xf32> to vector<16xf32>
    %115 = vector.shape_cast %114 : vector<16xf32> to vector<16x1xf32>
    %cst_56 = arith.constant 3.200000e+01 : f32
    %116 = vector.broadcast %cst_56 : f32 to vector<16x1xf32>
    %117 = arith.divf %115, %116 : vector<16x1xf32>
    %cst_57 = arith.constant 9.99999974E-6 : f32
    %118 = vector.broadcast %cst_57 : f32 to vector<16x1xf32>
    %119 = arith.addf %117, %118 : vector<16x1xf32>
    %120 = math.rsqrt %119 : vector<16x1xf32>
    %121 = vector.broadcast %120 : vector<16x1xf32> to vector<16x32xf32>
    %122 = arith.mulf %112, %121 : vector<16x32xf32>
    %123 = vector.broadcast %104 : vector<1x32xf32> to vector<16x32xf32>
    %124 = arith.mulf %122, %123 : vector<16x32xf32>
    %125 = vector.broadcast %106 : vector<1x32xf32> to vector<16x32xf32>
    %126 = arith.addf %124, %125 : vector<16x32xf32>
    %127 = vector.shape_cast %126 : vector<16x32xf32> to vector<8x2x32xf32>
    %128 = vector.extract_strided_slice %127 {offsets = [0, 0, 0], sizes = [1, 2, 32], strides = [1, 1, 1]} : vector<8x2x32xf32> to vector<1x2x32xf32>
    %129 = vector.shape_cast %128 : vector<1x2x32xf32> to vector<2x32xf32>
    %130 = vector.extract_strided_slice %127 {offsets = [1, 0, 0], sizes = [1, 2, 32], strides = [1, 1, 1]} : vector<8x2x32xf32> to vector<1x2x32xf32>
    %131 = vector.shape_cast %130 : vector<1x2x32xf32> to vector<2x32xf32>
    %132 = vector.extract_strided_slice %127 {offsets = [2, 0, 0], sizes = [1, 2, 32], strides = [1, 1, 1]} : vector<8x2x32xf32> to vector<1x2x32xf32>
    %133 = vector.shape_cast %132 : vector<1x2x32xf32> to vector<2x32xf32>
    %134 = vector.extract_strided_slice %127 {offsets = [3, 0, 0], sizes = [1, 2, 32], strides = [1, 1, 1]} : vector<8x2x32xf32> to vector<1x2x32xf32>
    %135 = vector.shape_cast %134 : vector<1x2x32xf32> to vector<2x32xf32>
    %136 = vector.extract_strided_slice %127 {offsets = [4, 0, 0], sizes = [1, 2, 32], strides = [1, 1, 1]} : vector<8x2x32xf32> to vector<1x2x32xf32>
    %137 = vector.shape_cast %136 : vector<1x2x32xf32> to vector<2x32xf32>
    %138 = vector.extract_strided_slice %127 {offsets = [5, 0, 0], sizes = [1, 2, 32], strides = [1, 1, 1]} : vector<8x2x32xf32> to vector<1x2x32xf32>
    %139 = vector.shape_cast %138 : vector<1x2x32xf32> to vector<2x32xf32>
    %140 = vector.extract_strided_slice %127 {offsets = [6, 0, 0], sizes = [1, 2, 32], strides = [1, 1, 1]} : vector<8x2x32xf32> to vector<1x2x32xf32>
    %141 = vector.shape_cast %140 : vector<1x2x32xf32> to vector<2x32xf32>
    %142 = vector.extract_strided_slice %127 {offsets = [7, 0, 0], sizes = [1, 2, 32], strides = [1, 1, 1]} : vector<8x2x32xf32> to vector<1x2x32xf32>
    %143 = vector.shape_cast %142 : vector<1x2x32xf32> to vector<2x32xf32>
    %144 = tpu.concatenate %129, %131, %133, %135, %137, %139, %141, %143 in 1 : vector<2x32xf32>, vector<2x32xf32>, vector<2x32xf32>, vector<2x32xf32>, vector<2x32xf32>, vector<2x32xf32>, vector<2x32xf32>, vector<2x32xf32> -> vector<2x256xf32>
    %c0_58 = arith.constant 0 : index
    %c0_59 = arith.constant 0 : index
    %c0_60 = arith.constant 0 : index
    %145 = vector.load %arg15[%c0_58, %c0_59, %c0_60] : memref<1x256x32xbf16, #tpu.memory_space<vmem>>, vector<1x256x32xbf16>
    %146 = vector.shape_cast %145 : vector<1x256x32xbf16> to vector<256x32xbf16>
    %c0_61 = arith.constant 0 : index
    %c0_62 = arith.constant 0 : index
    %c0_63 = arith.constant 0 : index
    %147 = vector.load %arg16[%c0_61, %c0_62, %c0_63] : memref<1x1x32xf32, #tpu.memory_space<vmem>>, vector<1x1x32xf32>
    %148 = vector.shape_cast %147 : vector<1x1x32xf32> to vector<1x32xf32>
    %149 = arith.truncf %144 : vector<2x256xf32> to vector<2x256xbf16>
    %cst_64 = arith.constant dense<0.000000e+00> : vector<2x32xf32>
    %150 = tpu.matmul %149, %146, %cst_64 {dimension_numbers = #tpu.dot_dimension_numbers<[1], [0], [0], [1], [0, 0, 1, 1], [], []>} : vector<2x256xbf16>, vector<256x32xbf16>, vector<2x32xf32> -> vector<2x32xf32>
    %151 = vector.broadcast %148 : vector<1x32xf32> to vector<2x32xf32>
    %152 = arith.addf %150, %151 : vector<2x32xf32>
    %c0_65 = arith.constant 0 : index
    %c0_66 = arith.constant 0 : index
    %c0_67 = arith.constant 0 : index
    %153 = vector.load %arg2[%c0_65, %c0_66, %c0_67] : memref<1x2x4xf32, #tpu.memory_space<vmem>>, vector<1x2x4xf32>
    %154 = vector.shape_cast %153 : vector<1x2x4xf32> to vector<2x4xf32>
    %c0_68 = arith.constant 0 : index
    %c0_69 = arith.constant 0 : index
    %c0_70 = arith.constant 0 : index
    %155 = vector.load %arg17[%c0_68, %c0_69, %c0_70] : memref<1x4x16xbf16, #tpu.memory_space<vmem>>, vector<1x4x16xbf16>
    %156 = vector.shape_cast %155 : vector<1x4x16xbf16> to vector<4x16xbf16>
    %c0_71 = arith.constant 0 : index
    %c0_72 = arith.constant 0 : index
    %c0_73 = arith.constant 0 : index
    %157 = vector.load %arg18[%c0_71, %c0_72, %c0_73] : memref<1x1x16xf32, #tpu.memory_space<vmem>>, vector<1x1x16xf32>
    %158 = vector.shape_cast %157 : vector<1x1x16xf32> to vector<1x16xf32>
    %159 = arith.truncf %154 : vector<2x4xf32> to vector<2x4xbf16>
    %cst_74 = arith.constant dense<0.000000e+00> : vector<2x16xf32>
    %160 = tpu.matmul %159, %156, %cst_74 {dimension_numbers = #tpu.dot_dimension_numbers<[1], [0], [0], [1], [0, 0, 1, 1], [], []>} : vector<2x4xbf16>, vector<4x16xbf16>, vector<2x16xf32> -> vector<2x16xf32>
    %161 = vector.broadcast %158 : vector<1x16xf32> to vector<2x16xf32>
    %162 = arith.addf %160, %161 : vector<2x16xf32>
    %cst_75 = arith.constant 0.000000e+00 : f32
    %163 = vector.broadcast %cst_75 : f32 to vector<2x16xf32>
    %164 = arith.maximumf %162, %163 : vector<2x16xf32>
    %c0_76 = arith.constant 0 : index
    %c0_77 = arith.constant 0 : index
    %c0_78 = arith.constant 0 : index
    %165 = vector.load %arg19[%c0_76, %c0_77, %c0_78] : memref<1x16x32xbf16, #tpu.memory_space<vmem>>, vector<1x16x32xbf16>
    %166 = vector.shape_cast %165 : vector<1x16x32xbf16> to vector<16x32xbf16>
    %c0_79 = arith.constant 0 : index
    %c0_80 = arith.constant 0 : index
    %c0_81 = arith.constant 0 : index
    %167 = vector.load %arg20[%c0_79, %c0_80, %c0_81] : memref<1x1x32xf32, #tpu.memory_space<vmem>>, vector<1x1x32xf32>
    %168 = vector.shape_cast %167 : vector<1x1x32xf32> to vector<1x32xf32>
    %169 = arith.truncf %164 : vector<2x16xf32> to vector<2x16xbf16>
    %cst_82 = arith.constant dense<0.000000e+00> : vector<2x32xf32>
    %170 = tpu.matmul %169, %166, %cst_82 {dimension_numbers = #tpu.dot_dimension_numbers<[1], [0], [0], [1], [0, 0, 1, 1], [], []>} : vector<2x16xbf16>, vector<16x32xbf16>, vector<2x32xf32> -> vector<2x32xf32>
    %171 = vector.broadcast %168 : vector<1x32xf32> to vector<2x32xf32>
    %172 = arith.addf %170, %171 : vector<2x32xf32>
    %cst_83 = arith.constant 0.000000e+00 : f32
    %173 = vector.broadcast %cst_83 : f32 to vector<2x32xf32>
    %174 = arith.maximumf %172, %173 : vector<2x32xf32>
    %175 = tpu.concatenate %152, %174 in 1 : vector<2x32xf32>, vector<2x32xf32> -> vector<2x64xf32>
    %c0_84 = arith.constant 0 : index
    %c0_85 = arith.constant 0 : index
    %c0_86 = arith.constant 0 : index
    %176 = vector.load %arg21[%c0_84, %c0_85, %c0_86] : memref<1x2x64xf32, #tpu.memory_space<vmem>>, vector<1x2x64xf32>
    %177 = vector.shape_cast %176 : vector<1x2x64xf32> to vector<2x64xf32>
    %178 = vector.shape_cast %175 : vector<2x64xf32> to vector<1x2x64xf32>
    tpu.vector_store %arg21[%c0_84, %c0_85, %c0_86], %178 {strides = array<i32>} : memref<1x2x64xf32, #tpu.memory_space<vmem>>, vector<1x2x64xf32>,
    return
  }
  func.func @transform_0(%arg0: i32) -> (i32, i32, i32, i32) {
    %c0_i32 = arith.constant 0 : i32
    %c0_i32_0 = arith.constant 0 : i32
    %c0_i32_1 = arith.constant 0 : i32
    %c0_i32_2 = arith.constant 0 : i32
    return %arg0, %c0_i32, %c0_i32_0, %c0_i32_1 : i32, i32, i32, i32
  }
  func.func @transform_1(%arg0: i32) -> (i32, i32, i32) {
    %c0_i32 = arith.constant 0 : i32
    %c0_i32_0 = arith.constant 0 : i32
    %c0_i32_1 = arith.constant 0 : i32
    return %arg0, %c0_i32, %c0_i32_0 : i32, i32, i32
  }
  func.func @transform_2(%arg0: i32) -> (i32, i32, i32) {
    %c0_i32 = arith.constant 0 : i32
    %c0_i32_0 = arith.constant 0 : i32
    %c0_i32_1 = arith.constant 0 : i32
    return %arg0, %c0_i32, %c0_i32_0 : i32, i32, i32
  }
  func.func @transform_3(%arg0: i32) -> (i32, i32, i32) {
    %c0_i32 = arith.constant 0 : i32
    %c0_i32_0 = arith.constant 0 : i32
    %c0_i32_1 = arith.constant 0 : i32
    return %arg0, %c0_i32, %c0_i32_0 : i32, i32, i32
  }
  func.func @transform_4(%arg0: i32) -> (i32, i32, i32) {
    %c0_i32 = arith.constant 0 : i32
    %c0_i32_0 = arith.constant 0 : i32
    %c0_i32_1 = arith.constant 0 : i32
    return %arg0, %c0_i32, %c0_i32_0 : i32, i32, i32
  }
  func.func @transform_5(%arg0: i32) -> (i32, i32, i32) {
    %c0_i32 = arith.constant 0 : i32
    %c0_i32_0 = arith.constant 0 : i32
    %c0_i32_1 = arith.constant 0 : i32
    return %arg0, %c0_i32, %c0_i32_0 : i32, i32, i32
  }
  func.func @transform_6(%arg0: i32) -> (i32, i32, i32) {
    %c0_i32 = arith.constant 0 : i32
    %c0_i32_0 = arith.constant 0 : i32
    %c0_i32_1 = arith.constant 0 : i32
    return %arg0, %c0_i32, %c0_i32_0 : i32, i32, i32
  }
  func.func @transform_7(%arg0: i32) -> (i32, i32, i32) {
    %c0_i32 = arith.constant 0 : i32
    %c0_i32_0 = arith.constant 0 : i32
    %c0_i32_1 = arith.constant 0 : i32
    return %arg0, %c0_i32, %c0_i32_0 : i32, i32, i32
  }
  func.func @transform_8(%arg0: i32) -> (i32, i32, i32) {
    %c0_i32 = arith.constant 0 : i32
    %c0_i32_0 = arith.constant 0 : i32
    %c0_i32_1 = arith.constant 0 : i32
    return %arg0, %c0_i32, %c0_i32_0 : i32, i32, i32
  }
  func.func @transform_9(%arg0: i32) -> (i32, i32, i32) {
    %c0_i32 = arith.constant 0 : i32
    %c0_i32_0 = arith.constant 0 : i32
    %c0_i32_1 = arith.constant 0 : i32
    return %arg0, %c0_i32, %c0_i32_0 : i32, i32, i32
  }
  func.func @transform_10(%arg0: i32) -> (i32, i32, i32) {
    %c0_i32 = arith.constant 0 : i32
    %c0_i32_0 = arith.constant 0 : i32
    %c0_i32_1 = arith.constant 0 : i32
    return %arg0, %c0_i32, %c0_i32_0 : i32, i32, i32
  }
  func.func @transform_11(%arg0: i32) -> (i32, i32, i32) {
    %c0_i32 = arith.constant 0 : i32
    %c0_i32_0 = arith.constant 0 : i32
    %c0_i32_1 = arith.constant 0 : i32
    return %arg0, %c0_i32, %c0_i32_0 : i32, i32, i32
  }
  func.func @transform_12(%arg0: i32) -> (i32, i32, i32) {
    %c0_i32 = arith.constant 0 : i32
    %c0_i32_0 = arith.constant 0 : i32
    %c0_i32_1 = arith.constant 0 : i32
    return %arg0, %c0_i32, %c0_i32_0 : i32, i32, i32
  }
  func.func @transform_13(%arg0: i32) -> (i32, i32, i32) {
    %c0_i32 = arith.constant 0 : i32
    %c0_i32_0 = arith.constant 0 : i32
    %c0_i32_1 = arith.constant 0 : i32
    return %arg0, %c0_i32, %c0_i32_0 : i32, i32, i32
  }
  func.func @transform_14(%arg0: i32) -> (i32, i32, i32) {
    %c0_i32 = arith.constant 0 : i32
    %c0_i32_0 = arith.constant 0 : i32
    %c0_i32_1 = arith.constant 0 : i32
    return %arg0, %c0_i32, %c0_i32_0 : i32, i32, i32
  }
  func.func @transform_15(%arg0: i32) -> (i32, i32, i32) {
    %c0_i32 = arith.constant 0 : i32
    %c0_i32_0 = arith.constant 0 : i32
    %c0_i32_1 = arith.constant 0 : i32
    return %arg0, %c0_i32, %c0_i32_0 : i32, i32, i32
  }
  func.func @transform_16(%arg0: i32) -> (i32, i32, i32) {
    %c0_i32 = arith.constant 0 : i32
    %c0_i32_0 = arith.constant 0 : i32
    %c0_i32_1 = arith.constant 0 : i32
    return %arg0, %c0_i32, %c0_i32_0 : i32, i32, i32
  }
  func.func @transform_17(%arg0: i32) -> (i32, i32, i32) {
    %c0_i32 = arith.constant 0 : i32
    %c0_i32_0 = arith.constant 0 : i32
    %c0_i32_1 = arith.constant 0 : i32
    return %arg0, %c0_i32, %c0_i32_0 : i32, i32, i32
  }
  func.func @transform_18(%arg0: i32) -> (i32, i32, i32) {
    %c0_i32 = arith.constant 0 : i32
    %c0_i32_0 = arith.constant 0 : i32
    %c0_i32_1 = arith.constant 0 : i32
    return %arg0, %c0_i32, %c0_i32_0 : i32, i32, i32
  }
  func.func @transform_19(%arg0: i32) -> (i32, i32, i32) {
    %c0_i32 = arith.constant 0 : i32
    %c0_i32_0 = arith.constant 0 : i32
    %c0_i32_1 = arith.constant 0 : i32
    return %arg0, %c0_i32, %c0_i32_0 : i32, i32, i32
  }
  func.func @transform_20(%arg0: i32) -> (i32, i32, i32) {
    %c0_i32 = arith.constant 0 : i32
    %c0_i32_0 = arith.constant 0 : i32
    %c0_i32_1 = arith.constant 0 : i32
    return %arg0, %c0_i32, %c0_i32_0 : i32, i32, i32
  }
}

module attributes {stable_mosaic.version = 11 : i64} {
  func.func @_neighbour_kernel(%arg0: i32, %arg1: memref<1x8x2x32xf32, #tpu.memory_space<vmem>>, %arg2: memref<1x2x2xf32, #tpu.memory_space<vmem>>, %arg3: memref<32x96xbf16, #tpu.memory_space<vmem>>, %arg4: memref<1x96xf32, #tpu.memory_space<vmem>>, %arg5: memref<32x32xbf16, #tpu.memory_space<vmem>>, %arg6: memref<1x32xf32, #tpu.memory_space<vmem>>, %arg7: memref<32x2048xbf16, #tpu.memory_space<vmem>>, %arg8: memref<1x2048xf32, #tpu.memory_space<vmem>>, %arg9: memref<2048x32xbf16, #tpu.memory_space<vmem>>, %arg10: memref<1x32xf32, #tpu.memory_space<vmem>>, %arg11: memref<1x32xf32, #tpu.memory_space<vmem>>, %arg12: memref<1x32xf32, #tpu.memory_space<vmem>>, %arg13: memref<1x32xf32, #tpu.memory_space<vmem>>, %arg14: memref<1x32xf32, #tpu.memory_space<vmem>>, %arg15: memref<256x32xbf16, #tpu.memory_space<vmem>>, %arg16: memref<1x32xf32, #tpu.memory_space<vmem>>, %arg17: memref<2x16xbf16, #tpu.memory_space<vmem>>, %arg18: memref<1x16xf32, #tpu.memory_space<vmem>>, %arg19: memref<16x32xbf16, #tpu.memory_space<vmem>>, %arg20: memref<1x32xf32, #tpu.memory_space<vmem>>, %arg21: memref<64x192xbf16, #tpu.memory_space<vmem>>, %arg22: memref<1x192xf32, #tpu.memory_space<vmem>>, %arg23: memref<64x64xbf16, #tpu.memory_space<vmem>>, %arg24: memref<1x64xf32, #tpu.memory_space<vmem>>, %arg25: memref<64x2048xbf16, #tpu.memory_space<vmem>>, %arg26: memref<1x2048xf32, #tpu.memory_space<vmem>>, %arg27: memref<2048x64xbf16, #tpu.memory_space<vmem>>, %arg28: memref<1x64xf32, #tpu.memory_space<vmem>>, %arg29: memref<1x64xf32, #tpu.memory_space<vmem>>, %arg30: memref<1x64xf32, #tpu.memory_space<vmem>>, %arg31: memref<1x64xf32, #tpu.memory_space<vmem>>, %arg32: memref<1x64xf32, #tpu.memory_space<vmem>>, %arg33: memref<1x2x64xf32, #tpu.memory_space<vmem>>) attributes {dimension_semantics = [#tpu.dimension_semantics<parallel>], iteration_bounds = array<i64: 3>, scalar_prefetch = 0 : i64, scratch_operands = 0 : i64, tpu.core_type = #tpu.core_type<tc>, window_params = [{transform_indices = @transform_0, window_bounds = array<i64: 1, 8, 2, 32>}, {transform_indices = @transform_1, window_bounds = array<i64: 1, 2, 2>}, {pipeline_mode = #tpu.pipeline_mode<synchronous>, transform_indices = @transform_2, window_bounds = array<i64: 32, 96>}, {pipeline_mode = #tpu.pipeline_mode<synchronous>, transform_indices = @transform_3, window_bounds = array<i64: 1, 96>}, {pipeline_mode = #tpu.pipeline_mode<synchronous>, transform_indices = @transform_4, window_bounds = array<i64: 32, 32>}, {pipeline_mode = #tpu.pipeline_mode<synchronous>, transform_indices = @transform_5, window_bounds = array<i64: 1, 32>}, {pipeline_mode = #tpu.pipeline_mode<synchronous>, transform_indices = @transform_6, window_bounds = array<i64: 32, 2048>}, {pipeline_mode = #tpu.pipeline_mode<synchronous>, transform_indices = @transform_7, window_bounds = array<i64: 1, 2048>}, {pipeline_mode = #tpu.pipeline_mode<synchronous>, transform_indices = @transform_8, window_bounds = array<i64: 2048, 32>}, {pipeline_mode = #tpu.pipeline_mode<synchronous>, transform_indices = @transform_9, window_bounds = array<i64: 1, 32>}, {pipeline_mode = #tpu.pipeline_mode<synchronous>, transform_indices = @transform_10, window_bounds = array<i64: 1, 32>}, {pipeline_mode = #tpu.pipeline_mode<synchronous>, transform_indices = @transform_11, window_bounds = array<i64: 1, 32>}, {pipeline_mode = #tpu.pipeline_mode<synchronous>, transform_indices = @transform_12, window_bounds = array<i64: 1, 32>}, {pipeline_mode = #tpu.pipeline_mode<synchronous>, transform_indices = @transform_13, window_bounds = array<i64: 1, 32>}, {pipeline_mode = #tpu.pipeline_mode<synchronous>, transform_indices = @transform_14, window_bounds = array<i64: 256, 32>}, {pipeline_mode = #tpu.pipeline_mode<synchronous>, transform_indices = @transform_15, window_bounds = array<i64: 1, 32>}, {pipeline_mode = #tpu.pipeline_mode<synchronous>, transform_indices = @transform_16, window_bounds = array<i64: 2, 16>}, {pipeline_mode = #tpu.pipeline_mode<synchronous>, transform_indices = @transform_17, window_bounds = array<i64: 1, 16>}, {pipeline_mode = #tpu.pipeline_mode<synchronous>, transform_indices = @transform_18, window_bounds = array<i64: 16, 32>}, {pipeline_mode = #tpu.pipeline_mode<synchronous>, transform_indices = @transform_19, window_bounds = array<i64: 1, 32>}, {pipeline_mode = #tpu.pipeline_mode<synchronous>, transform_indices = @transform_20, window_bounds = array<i64: 64, 192>}, {pipeline_mode = #tpu.pipeline_mode<synchronous>, transform_indices = @transform_21, window_bounds = array<i64: 1, 192>}, {pipeline_mode = #tpu.pipeline_mode<synchronous>, transform_indices = @transform_22, window_bounds = array<i64: 64, 64>}, {pipeline_mode = #tpu.pipeline_mode<synchronous>, transform_indices = @transform_23, window_bounds = array<i64: 1, 64>}, {pipeline_mode = #tpu.pipeline_mode<synchronous>, transform_indices = @transform_24, window_bounds = array<i64: 64, 2048>}, {pipeline_mode = #tpu.pipeline_mode<synchronous>, transform_indices = @transform_25, window_bounds = array<i64: 1, 2048>}, {pipeline_mode = #tpu.pipeline_mode<synchronous>, transform_indices = @transform_26, window_bounds = array<i64: 2048, 64>}, {pipeline_mode = #tpu.pipeline_mode<synchronous>, transform_indices = @transform_27, window_bounds = array<i64: 1, 64>}, {pipeline_mode = #tpu.pipeline_mode<synchronous>, transform_indices = @transform_28, window_bounds = array<i64: 1, 64>}, {pipeline_mode = #tpu.pipeline_mode<synchronous>, transform_indices = @transform_29, window_bounds = array<i64: 1, 64>}, {pipeline_mode = #tpu.pipeline_mode<synchronous>, transform_indices = @transform_30, window_bounds = array<i64: 1, 64>}, {pipeline_mode = #tpu.pipeline_mode<synchronous>, transform_indices = @transform_31, window_bounds = array<i64: 1, 64>}, {transform_indices = @transform_32, window_bounds = array<i64: 1, 2, 64>}]} {
    %c0 = arith.constant 0 : index
    %c0_0 = arith.constant 0 : index
    %c0_1 = arith.constant 0 : index
    %c0_2 = arith.constant 0 : index
    %0 = vector.load %arg1[%c0, %c0_0, %c0_1, %c0_2] : memref<1x8x2x32xf32, #tpu.memory_space<vmem>>, vector<1x8x2x32xf32>
    %1 = vector.shape_cast %0 : vector<1x8x2x32xf32> to vector<8x2x32xf32>
    %2 = vector.shape_cast %1 : vector<8x2x32xf32> to vector<16x32xf32>
    %c0_3 = arith.constant 0 : index
    %c0_4 = arith.constant 0 : index
    %3 = vector.load %arg3[%c0_3, %c0_4] : memref<32x96xbf16, #tpu.memory_space<vmem>>, vector<32x96xbf16>
    %c0_5 = arith.constant 0 : index
    %c0_6 = arith.constant 0 : index
    %4 = vector.load %arg4[%c0_5, %c0_6] : memref<1x96xf32, #tpu.memory_space<vmem>>, vector<1x96xf32>
    %5 = arith.truncf %2 : vector<16x32xf32> to vector<16x32xbf16>
    %cst = arith.constant dense<0.000000e+00> : vector<16x96xf32>
    %6 = tpu.matmul %5, %3, %cst {dimension_numbers = #tpu.dot_dimension_numbers<[1], [0], [0], [1], [0, 0, 1, 1], [], []>} : vector<16x32xbf16>, vector<32x96xbf16>, vector<16x96xf32> -> vector<16x96xf32>
    %7 = vector.broadcast %4 : vector<1x96xf32> to vector<16x96xf32>
    %8 = arith.addf %6, %7 : vector<16x96xf32>
    %9 = vector.shape_cast %8 : vector<16x96xf32> to vector<8x2x96xf32>
    %10 = vector.extract_strided_slice %9 {offsets = [0, 0, 0], sizes = [8, 2, 8], strides = [1, 1, 1]} : vector<8x2x96xf32> to vector<8x2x8xf32>
    %11 = vector.extract_strided_slice %9 {offsets = [0, 0, 8], sizes = [8, 2, 8], strides = [1, 1, 1]} : vector<8x2x96xf32> to vector<8x2x8xf32>
    %12 = vector.extract_strided_slice %9 {offsets = [0, 0, 16], sizes = [8, 2, 8], strides = [1, 1, 1]} : vector<8x2x96xf32> to vector<8x2x8xf32>
    %13 = vector.extract_strided_slice %9 {offsets = [0, 0, 24], sizes = [8, 2, 8], strides = [1, 1, 1]} : vector<8x2x96xf32> to vector<8x2x8xf32>
    %14 = tpu.concatenate %10, %11, %12, %13 in 0 : vector<8x2x8xf32>, vector<8x2x8xf32>, vector<8x2x8xf32>, vector<8x2x8xf32> -> vector<32x2x8xf32>
    %cst_7 = arith.constant 0.353553385 : f32
    %15 = vector.broadcast %cst_7 : f32 to vector<32x2x8xf32>
    %16 = arith.mulf %14, %15 : vector<32x2x8xf32>
    %17 = vector.extract_strided_slice %9 {offsets = [0, 0, 32], sizes = [8, 2, 8], strides = [1, 1, 1]} : vector<8x2x96xf32> to vector<8x2x8xf32>
    %18 = vector.extract_strided_slice %9 {offsets = [0, 0, 40], sizes = [8, 2, 8], strides = [1, 1, 1]} : vector<8x2x96xf32> to vector<8x2x8xf32>
    %19 = vector.extract_strided_slice %9 {offsets = [0, 0, 48], sizes = [8, 2, 8], strides = [1, 1, 1]} : vector<8x2x96xf32> to vector<8x2x8xf32>
    %20 = vector.extract_strided_slice %9 {offsets = [0, 0, 56], sizes = [8, 2, 8], strides = [1, 1, 1]} : vector<8x2x96xf32> to vector<8x2x8xf32>
    %21 = tpu.concatenate %17, %18, %19, %20 in 0 : vector<8x2x8xf32>, vector<8x2x8xf32>, vector<8x2x8xf32>, vector<8x2x8xf32> -> vector<32x2x8xf32>
    %22 = vector.extract_strided_slice %9 {offsets = [0, 0, 64], sizes = [8, 2, 8], strides = [1, 1, 1]} : vector<8x2x96xf32> to vector<8x2x8xf32>
    %23 = vector.extract_strided_slice %9 {offsets = [0, 0, 72], sizes = [8, 2, 8], strides = [1, 1, 1]} : vector<8x2x96xf32> to vector<8x2x8xf32>
    %24 = vector.extract_strided_slice %9 {offsets = [0, 0, 80], sizes = [8, 2, 8], strides = [1, 1, 1]} : vector<8x2x96xf32> to vector<8x2x8xf32>
    %25 = vector.extract_strided_slice %9 {offsets = [0, 0, 88], sizes = [8, 2, 8], strides = [1, 1, 1]} : vector<8x2x96xf32> to vector<8x2x8xf32>
    %26 = tpu.concatenate %22, %23, %24, %25 in 0 : vector<8x2x8xf32>, vector<8x2x8xf32>, vector<8x2x8xf32>, vector<8x2x8xf32> -> vector<32x2x8xf32>
    %27 = arith.truncf %16 : vector<32x2x8xf32> to vector<32x2x8xbf16>
    %28 = arith.truncf %21 : vector<32x2x8xf32> to vector<32x2x8xbf16>
    "tpu.trace_start"() <{level = 10 : i32, message = "bsd,btd->bst"}> : () -> ()
    %cst_8 = arith.constant dense<0.000000e+00> : vector<32x2x2xf32>
    %29 = tpu.matmul %27, %28, %cst_8 {dimension_numbers = #tpu.dot_dimension_numbers<[2], [2], [1], [1], [0, 0, 0, 1, 1, 1], [0], [0]>} : vector<32x2x8xbf16>, vector<32x2x8xbf16>, vector<32x2x2xf32> -> vector<32x2x2xf32>
    "tpu.trace_stop"() : () -> ()
    %cst_9 = arith.constant dense<0xFF800000> : vector<32x2xf32>
    %30 = vector.multi_reduction <maximumf>, %29, %cst_9 [2] : vector<32x2x2xf32> to vector<32x2xf32>
    %31 = vector.shape_cast %30 : vector<32x2xf32> to vector<32x2x1xf32>
    %32 = vector.broadcast %31 : vector<32x2x1xf32> to vector<32x2x2xf32>
    %33 = arith.subf %29, %32 : vector<32x2x2xf32>
    %34 = math.exp %33 : vector<32x2x2xf32>
    %cst_10 = arith.constant dense<0.000000e+00> : vector<32x2xf32>
    %35 = vector.multi_reduction <add>, %34, %cst_10 [2] : vector<32x2x2xf32> to vector<32x2xf32>
    %36 = vector.shape_cast %35 : vector<32x2xf32> to vector<32x2x1xf32>
    %37 = tpu.reciprocal %36 {approx = true} : vector<32x2x1xf32> -> vector<32x2x1xf32>
    %38 = vector.broadcast %37 : vector<32x2x1xf32> to vector<32x2x2xf32>
    %39 = arith.mulf %34, %38 : vector<32x2x2xf32>
    %40 = arith.truncf %39 : vector<32x2x2xf32> to vector<32x2x2xbf16>
    %41 = arith.truncf %26 : vector<32x2x8xf32> to vector<32x2x8xbf16>
    "tpu.trace_start"() <{level = 10 : i32, message = "bst,btd->bsd"}> : () -> ()
    %cst_11 = arith.constant dense<0.000000e+00> : vector<32x2x8xf32>
    %42 = tpu.matmul %40, %41, %cst_11 {dimension_numbers = #tpu.dot_dimension_numbers<[2], [1], [1], [2], [0, 0, 0, 1, 1, 2], [0], [0]>} : vector<32x2x2xbf16>, vector<32x2x8xbf16>, vector<32x2x8xf32> -> vector<32x2x8xf32>
    "tpu.trace_stop"() : () -> ()
    %43 = vector.extract_strided_slice %42 {offsets = [0, 0, 0], sizes = [8, 2, 8], strides = [1, 1, 1]} : vector<32x2x8xf32> to vector<8x2x8xf32>
    %44 = vector.extract_strided_slice %42 {offsets = [8, 0, 0], sizes = [8, 2, 8], strides = [1, 1, 1]} : vector<32x2x8xf32> to vector<8x2x8xf32>
    %45 = vector.extract_strided_slice %42 {offsets = [16, 0, 0], sizes = [8, 2, 8], strides = [1, 1, 1]} : vector<32x2x8xf32> to vector<8x2x8xf32>
    %46 = vector.extract_strided_slice %42 {offsets = [24, 0, 0], sizes = [8, 2, 8], strides = [1, 1, 1]} : vector<32x2x8xf32> to vector<8x2x8xf32>
    %47 = tpu.concatenate %43, %44, %45, %46 in 2 : vector<8x2x8xf32>, vector<8x2x8xf32>, vector<8x2x8xf32>, vector<8x2x8xf32> -> vector<8x2x32xf32>
    %48 = vector.shape_cast %47 : vector<8x2x32xf32> to vector<16x32xf32>
    %c0_12 = arith.constant 0 : index
    %c0_13 = arith.constant 0 : index
    %49 = vector.load %arg5[%c0_12, %c0_13] : memref<32x32xbf16, #tpu.memory_space<vmem>>, vector<32x32xbf16>
    %c0_14 = arith.constant 0 : index
    %c0_15 = arith.constant 0 : index
    %50 = vector.load %arg6[%c0_14, %c0_15] : memref<1x32xf32, #tpu.memory_space<vmem>>, vector<1x32xf32>
    %51 = arith.truncf %48 : vector<16x32xf32> to vector<16x32xbf16>
    %cst_16 = arith.constant dense<0.000000e+00> : vector<16x32xf32>
    %52 = tpu.matmul %51, %49, %cst_16 {dimension_numbers = #tpu.dot_dimension_numbers<[1], [0], [0], [1], [0, 0, 1, 1], [], []>} : vector<16x32xbf16>, vector<32x32xbf16>, vector<16x32xf32> -> vector<16x32xf32>
    %53 = vector.broadcast %50 : vector<1x32xf32> to vector<16x32xf32>
    %54 = arith.addf %52, %53 : vector<16x32xf32>
    %55 = arith.addf %2, %54 : vector<16x32xf32>
    %c0_17 = arith.constant 0 : index
    %c0_18 = arith.constant 0 : index
    %56 = vector.load %arg11[%c0_17, %c0_18] : memref<1x32xf32, #tpu.memory_space<vmem>>, vector<1x32xf32>
    %c0_19 = arith.constant 0 : index
    %c0_20 = arith.constant 0 : index
    %57 = vector.load %arg12[%c0_19, %c0_20] : memref<1x32xf32, #tpu.memory_space<vmem>>, vector<1x32xf32>
    %cst_21 = arith.constant dense<0.000000e+00> : vector<16xf32>
    %58 = vector.multi_reduction <add>, %55, %cst_21 [1] : vector<16x32xf32> to vector<16xf32>
    %59 = vector.shape_cast %58 : vector<16xf32> to vector<16x1xf32>
    %cst_22 = arith.constant 3.200000e+01 : f32
    %60 = vector.broadcast %cst_22 : f32 to vector<16x1xf32>
    %61 = arith.divf %59, %60 : vector<16x1xf32>
    %62 = vector.broadcast %61 : vector<16x1xf32> to vector<16x32xf32>
    %63 = arith.subf %55, %62 : vector<16x32xf32>
    %64 = arith.mulf %63, %63 : vector<16x32xf32>
    %cst_23 = arith.constant dense<0.000000e+00> : vector<16xf32>
    %65 = vector.multi_reduction <add>, %64, %cst_23 [1] : vector<16x32xf32> to vector<16xf32>
    %66 = vector.shape_cast %65 : vector<16xf32> to vector<16x1xf32>
    %cst_24 = arith.constant 3.200000e+01 : f32
    %67 = vector.broadcast %cst_24 : f32 to vector<16x1xf32>
    %68 = arith.divf %66, %67 : vector<16x1xf32>
    %cst_25 = arith.constant 9.99999974E-6 : f32
    %69 = vector.broadcast %cst_25 : f32 to vector<16x1xf32>
    %70 = arith.addf %68, %69 : vector<16x1xf32>
    %71 = math.rsqrt %70 : vector<16x1xf32>
    %72 = vector.broadcast %71 : vector<16x1xf32> to vector<16x32xf32>
    %73 = arith.mulf %63, %72 : vector<16x32xf32>
    %74 = vector.broadcast %56 : vector<1x32xf32> to vector<16x32xf32>
    %75 = arith.mulf %73, %74 : vector<16x32xf32>
    %76 = vector.broadcast %57 : vector<1x32xf32> to vector<16x32xf32>
    %77 = arith.addf %75, %76 : vector<16x32xf32>
    %c0_26 = arith.constant 0 : index
    %c0_27 = arith.constant 0 : index
    %78 = vector.load %arg7[%c0_26, %c0_27] : memref<32x2048xbf16, #tpu.memory_space<vmem>>, vector<32x2048xbf16>
    %c0_28 = arith.constant 0 : index
    %c0_29 = arith.constant 0 : index
    %79 = vector.load %arg8[%c0_28, %c0_29] : memref<1x2048xf32, #tpu.memory_space<vmem>>, vector<1x2048xf32>
    %80 = arith.truncf %77 : vector<16x32xf32> to vector<16x32xbf16>
    %cst_30 = arith.constant dense<0.000000e+00> : vector<16x2048xf32>
    %81 = tpu.matmul %80, %78, %cst_30 {dimension_numbers = #tpu.dot_dimension_numbers<[1], [0], [0], [1], [0, 0, 1, 1], [], []>} : vector<16x32xbf16>, vector<32x2048xbf16>, vector<16x2048xf32> -> vector<16x2048xf32>
    %82 = vector.broadcast %79 : vector<1x2048xf32> to vector<16x2048xf32>
    %83 = arith.addf %81, %82 : vector<16x2048xf32>
    %cst_31 = arith.constant 0.000000e+00 : f32
    %84 = vector.broadcast %cst_31 : f32 to vector<16x2048xf32>
    %85 = arith.maximumf %83, %84 : vector<16x2048xf32>
    %c0_32 = arith.constant 0 : index
    %c0_33 = arith.constant 0 : index
    %86 = vector.load %arg9[%c0_32, %c0_33] : memref<2048x32xbf16, #tpu.memory_space<vmem>>, vector<2048x32xbf16>
    %c0_34 = arith.constant 0 : index
    %c0_35 = arith.constant 0 : index
    %87 = vector.load %arg10[%c0_34, %c0_35] : memref<1x32xf32, #tpu.memory_space<vmem>>, vector<1x32xf32>
    %88 = arith.truncf %85 : vector<16x2048xf32> to vector<16x2048xbf16>
    %cst_36 = arith.constant dense<0.000000e+00> : vector<16x32xf32>
    %89 = tpu.matmul %88, %86, %cst_36 {dimension_numbers = #tpu.dot_dimension_numbers<[1], [0], [0], [1], [0, 0, 1, 1], [], []>} : vector<16x2048xbf16>, vector<2048x32xbf16>, vector<16x32xf32> -> vector<16x32xf32>
    %90 = vector.broadcast %87 : vector<1x32xf32> to vector<16x32xf32>
    %91 = arith.addf %89, %90 : vector<16x32xf32>
    %92 = arith.addf %77, %91 : vector<16x32xf32>
    %c0_37 = arith.constant 0 : index
    %c0_38 = arith.constant 0 : index
    %93 = vector.load %arg13[%c0_37, %c0_38] : memref<1x32xf32, #tpu.memory_space<vmem>>, vector<1x32xf32>
    %c0_39 = arith.constant 0 : index
    %c0_40 = arith.constant 0 : index
    %94 = vector.load %arg14[%c0_39, %c0_40] : memref<1x32xf32, #tpu.memory_space<vmem>>, vector<1x32xf32>
    %cst_41 = arith.constant dense<0.000000e+00> : vector<16xf32>
    %95 = vector.multi_reduction <add>, %92, %cst_41 [1] : vector<16x32xf32> to vector<16xf32>
    %96 = vector.shape_cast %95 : vector<16xf32> to vector<16x1xf32>
    %cst_42 = arith.constant 3.200000e+01 : f32
    %97 = vector.broadcast %cst_42 : f32 to vector<16x1xf32>
    %98 = arith.divf %96, %97 : vector<16x1xf32>
    %99 = vector.broadcast %98 : vector<16x1xf32> to vector<16x32xf32>
    %100 = arith.subf %92, %99 : vector<16x32xf32>
    %101 = arith.mulf %100, %100 : vector<16x32xf32>
    %cst_43 = arith.constant dense<0.000000e+00> : vector<16xf32>
    %102 = vector.multi_reduction <add>, %101, %cst_43 [1] : vector<16x32xf32> to vector<16xf32>
    %103 = vector.shape_cast %102 : vector<16xf32> to vector<16x1xf32>
    %cst_44 = arith.constant 3.200000e+01 : f32
    %104 = vector.broadcast %cst_44 : f32 to vector<16x1xf32>
    %105 = arith.divf %103, %104 : vector<16x1xf32>
    %cst_45 = arith.constant 9.99999974E-6 : f32
    %106 = vector.broadcast %cst_45 : f32 to vector<16x1xf32>
    %107 = arith.addf %105, %106 : vector<16x1xf32>
    %108 = math.rsqrt %107 : vector<16x1xf32>
    %109 = vector.broadcast %108 : vector<16x1xf32> to vector<16x32xf32>
    %110 = arith.mulf %100, %109 : vector<16x32xf32>
    %111 = vector.broadcast %93 : vector<1x32xf32> to vector<16x32xf32>
    %112 = arith.mulf %110, %111 : vector<16x32xf32>
    %113 = vector.broadcast %94 : vector<1x32xf32> to vector<16x32xf32>
    %114 = arith.addf %112, %113 : vector<16x32xf32>
    %115 = vector.shape_cast %114 : vector<16x32xf32> to vector<8x2x32xf32>
    %116 = vector.extract_strided_slice %115 {offsets = [0, 0, 0], sizes = [1, 2, 32], strides = [1, 1, 1]} : vector<8x2x32xf32> to vector<1x2x32xf32>
    %117 = vector.shape_cast %116 : vector<1x2x32xf32> to vector<2x32xf32>
    %118 = vector.extract_strided_slice %115 {offsets = [1, 0, 0], sizes = [1, 2, 32], strides = [1, 1, 1]} : vector<8x2x32xf32> to vector<1x2x32xf32>
    %119 = vector.shape_cast %118 : vector<1x2x32xf32> to vector<2x32xf32>
    %120 = vector.extract_strided_slice %115 {offsets = [2, 0, 0], sizes = [1, 2, 32], strides = [1, 1, 1]} : vector<8x2x32xf32> to vector<1x2x32xf32>
    %121 = vector.shape_cast %120 : vector<1x2x32xf32> to vector<2x32xf32>
    %122 = vector.extract_strided_slice %115 {offsets = [3, 0, 0], sizes = [1, 2, 32], strides = [1, 1, 1]} : vector<8x2x32xf32> to vector<1x2x32xf32>
    %123 = vector.shape_cast %122 : vector<1x2x32xf32> to vector<2x32xf32>
    %124 = vector.extract_strided_slice %115 {offsets = [4, 0, 0], sizes = [1, 2, 32], strides = [1, 1, 1]} : vector<8x2x32xf32> to vector<1x2x32xf32>
    %125 = vector.shape_cast %124 : vector<1x2x32xf32> to vector<2x32xf32>
    %126 = vector.extract_strided_slice %115 {offsets = [5, 0, 0], sizes = [1, 2, 32], strides = [1, 1, 1]} : vector<8x2x32xf32> to vector<1x2x32xf32>
    %127 = vector.shape_cast %126 : vector<1x2x32xf32> to vector<2x32xf32>
    %128 = vector.extract_strided_slice %115 {offsets = [6, 0, 0], sizes = [1, 2, 32], strides = [1, 1, 1]} : vector<8x2x32xf32> to vector<1x2x32xf32>
    %129 = vector.shape_cast %128 : vector<1x2x32xf32> to vector<2x32xf32>
    %130 = vector.extract_strided_slice %115 {offsets = [7, 0, 0], sizes = [1, 2, 32], strides = [1, 1, 1]} : vector<8x2x32xf32> to vector<1x2x32xf32>
    %131 = vector.shape_cast %130 : vector<1x2x32xf32> to vector<2x32xf32>
    %132 = tpu.concatenate %117, %119, %121, %123, %125, %127, %129, %131 in 1 : vector<2x32xf32>, vector<2x32xf32>, vector<2x32xf32>, vector<2x32xf32>, vector<2x32xf32>, vector<2x32xf32>, vector<2x32xf32>, vector<2x32xf32> -> vector<2x256xf32>
    %c0_46 = arith.constant 0 : index
    %c0_47 = arith.constant 0 : index
    %133 = vector.load %arg15[%c0_46, %c0_47] : memref<256x32xbf16, #tpu.memory_space<vmem>>, vector<256x32xbf16>
    %c0_48 = arith.constant 0 : index
    %c0_49 = arith.constant 0 : index
    %134 = vector.load %arg16[%c0_48, %c0_49] : memref<1x32xf32, #tpu.memory_space<vmem>>, vector<1x32xf32>
    %135 = arith.truncf %132 : vector<2x256xf32> to vector<2x256xbf16>
    %cst_50 = arith.constant dense<0.000000e+00> : vector<2x32xf32>
    %136 = tpu.matmul %135, %133, %cst_50 {dimension_numbers = #tpu.dot_dimension_numbers<[1], [0], [0], [1], [0, 0, 1, 1], [], []>} : vector<2x256xbf16>, vector<256x32xbf16>, vector<2x32xf32> -> vector<2x32xf32>
    %137 = vector.broadcast %134 : vector<1x32xf32> to vector<2x32xf32>
    %138 = arith.addf %136, %137 : vector<2x32xf32>
    %cst_51 = arith.constant 0.000000e+00 : f32
    %139 = vector.broadcast %cst_51 : f32 to vector<2x32xf32>
    %140 = arith.maximumf %138, %139 : vector<2x32xf32>
    %c0_52 = arith.constant 0 : index
    %c0_53 = arith.constant 0 : index
    %c0_54 = arith.constant 0 : index
    %141 = vector.load %arg2[%c0_52, %c0_53, %c0_54] : memref<1x2x2xf32, #tpu.memory_space<vmem>>, vector<1x2x2xf32>
    %142 = vector.shape_cast %141 : vector<1x2x2xf32> to vector<2x2xf32>
    %c0_55 = arith.constant 0 : index
    %c0_56 = arith.constant 0 : index
    %143 = vector.load %arg17[%c0_55, %c0_56] : memref<2x16xbf16, #tpu.memory_space<vmem>>, vector<2x16xbf16>
    %c0_57 = arith.constant 0 : index
    %c0_58 = arith.constant 0 : index
    %144 = vector.load %arg18[%c0_57, %c0_58] : memref<1x16xf32, #tpu.memory_space<vmem>>, vector<1x16xf32>
    %145 = arith.truncf %142 : vector<2x2xf32> to vector<2x2xbf16>
    %cst_59 = arith.constant dense<0.000000e+00> : vector<2x16xf32>
    %146 = tpu.matmul %145, %143, %cst_59 {dimension_numbers = #tpu.dot_dimension_numbers<[1], [0], [0], [1], [0, 0, 1, 1], [], []>} : vector<2x2xbf16>, vector<2x16xbf16>, vector<2x16xf32> -> vector<2x16xf32>
    %147 = vector.broadcast %144 : vector<1x16xf32> to vector<2x16xf32>
    %148 = arith.addf %146, %147 : vector<2x16xf32>
    %cst_60 = arith.constant 0.000000e+00 : f32
    %149 = vector.broadcast %cst_60 : f32 to vector<2x16xf32>
    %150 = arith.maximumf %148, %149 : vector<2x16xf32>
    %c0_61 = arith.constant 0 : index
    %c0_62 = arith.constant 0 : index
    %151 = vector.load %arg19[%c0_61, %c0_62] : memref<16x32xbf16, #tpu.memory_space<vmem>>, vector<16x32xbf16>
    %c0_63 = arith.constant 0 : index
    %c0_64 = arith.constant 0 : index
    %152 = vector.load %arg20[%c0_63, %c0_64] : memref<1x32xf32, #tpu.memory_space<vmem>>, vector<1x32xf32>
    %153 = arith.truncf %150 : vector<2x16xf32> to vector<2x16xbf16>
    %cst_65 = arith.constant dense<0.000000e+00> : vector<2x32xf32>
    %154 = tpu.matmul %153, %151, %cst_65 {dimension_numbers = #tpu.dot_dimension_numbers<[1], [0], [0], [1], [0, 0, 1, 1], [], []>} : vector<2x16xbf16>, vector<16x32xbf16>, vector<2x32xf32> -> vector<2x32xf32>
    %155 = vector.broadcast %152 : vector<1x32xf32> to vector<2x32xf32>
    %156 = arith.addf %154, %155 : vector<2x32xf32>
    %cst_66 = arith.constant 0.000000e+00 : f32
    %157 = vector.broadcast %cst_66 : f32 to vector<2x32xf32>
    %158 = arith.maximumf %156, %157 : vector<2x32xf32>
    %159 = tpu.concatenate %140, %158 in 1 : vector<2x32xf32>, vector<2x32xf32> -> vector<2x64xf32>
    %160 = vector.shape_cast %159 : vector<2x64xf32> to vector<1x2x64xf32>
    %161 = vector.shape_cast %160 : vector<1x2x64xf32> to vector<2x64xf32>
    %c0_67 = arith.constant 0 : index
    %c0_68 = arith.constant 0 : index
    %162 = vector.load %arg21[%c0_67, %c0_68] : memref<64x192xbf16, #tpu.memory_space<vmem>>, vector<64x192xbf16>
    %c0_69 = arith.constant 0 : index
    %c0_70 = arith.constant 0 : index
    %163 = vector.load %arg22[%c0_69, %c0_70] : memref<1x192xf32, #tpu.memory_space<vmem>>, vector<1x192xf32>
    %164 = arith.truncf %161 : vector<2x64xf32> to vector<2x64xbf16>
    %cst_71 = arith.constant dense<0.000000e+00> : vector<2x192xf32>
    %165 = tpu.matmul %164, %162, %cst_71 {dimension_numbers = #tpu.dot_dimension_numbers<[1], [0], [0], [1], [0, 0, 1, 1], [], []>} : vector<2x64xbf16>, vector<64x192xbf16>, vector<2x192xf32> -> vector<2x192xf32>
    %166 = vector.broadcast %163 : vector<1x192xf32> to vector<2x192xf32>
    %167 = arith.addf %165, %166 : vector<2x192xf32>
    %168 = vector.shape_cast %167 : vector<2x192xf32> to vector<1x2x192xf32>
    %169 = vector.extract_strided_slice %168 {offsets = [0, 0, 0], sizes = [1, 2, 16], strides = [1, 1, 1]} : vector<1x2x192xf32> to vector<1x2x16xf32>
    %170 = vector.extract_strided_slice %168 {offsets = [0, 0, 16], sizes = [1, 2, 16], strides = [1, 1, 1]} : vector<1x2x192xf32> to vector<1x2x16xf32>
    %171 = vector.extract_strided_slice %168 {offsets = [0, 0, 32], sizes = [1, 2, 16], strides = [1, 1, 1]} : vector<1x2x192xf32> to vector<1x2x16xf32>
    %172 = vector.extract_strided_slice %168 {offsets = [0, 0, 48], sizes = [1, 2, 16], strides = [1, 1, 1]} : vector<1x2x192xf32> to vector<1x2x16xf32>
    %173 = tpu.concatenate %169, %170, %171, %172 in 0 : vector<1x2x16xf32>, vector<1x2x16xf32>, vector<1x2x16xf32>, vector<1x2x16xf32> -> vector<4x2x16xf32>
    %cst_72 = arith.constant 2.500000e-01 : f32
    %174 = vector.broadcast %cst_72 : f32 to vector<4x2x16xf32>
    %175 = arith.mulf %173, %174 : vector<4x2x16xf32>
    %176 = vector.extract_strided_slice %168 {offsets = [0, 0, 64], sizes = [1, 2, 16], strides = [1, 1, 1]} : vector<1x2x192xf32> to vector<1x2x16xf32>
    %177 = vector.extract_strided_slice %168 {offsets = [0, 0, 80], sizes = [1, 2, 16], strides = [1, 1, 1]} : vector<1x2x192xf32> to vector<1x2x16xf32>
    %178 = vector.extract_strided_slice %168 {offsets = [0, 0, 96], sizes = [1, 2, 16], strides = [1, 1, 1]} : vector<1x2x192xf32> to vector<1x2x16xf32>
    %179 = vector.extract_strided_slice %168 {offsets = [0, 0, 112], sizes = [1, 2, 16], strides = [1, 1, 1]} : vector<1x2x192xf32> to vector<1x2x16xf32>
    %180 = tpu.concatenate %176, %177, %178, %179 in 0 : vector<1x2x16xf32>, vector<1x2x16xf32>, vector<1x2x16xf32>, vector<1x2x16xf32> -> vector<4x2x16xf32>
    %181 = vector.extract_strided_slice %168 {offsets = [0, 0, 128], sizes = [1, 2, 16], strides = [1, 1, 1]} : vector<1x2x192xf32> to vector<1x2x16xf32>
    %182 = vector.extract_strided_slice %168 {offsets = [0, 0, 144], sizes = [1, 2, 16], strides = [1, 1, 1]} : vector<1x2x192xf32> to vector<1x2x16xf32>
    %183 = vector.extract_strided_slice %168 {offsets = [0, 0, 160], sizes = [1, 2, 16], strides = [1, 1, 1]} : vector<1x2x192xf32> to vector<1x2x16xf32>
    %184 = vector.extract_strided_slice %168 {offsets = [0, 0, 176], sizes = [1, 2, 16], strides = [1, 1, 1]} : vector<1x2x192xf32> to vector<1x2x16xf32>
    %185 = tpu.concatenate %181, %182, %183, %184 in 0 : vector<1x2x16xf32>, vector<1x2x16xf32>, vector<1x2x16xf32>, vector<1x2x16xf32> -> vector<4x2x16xf32>
    %186 = arith.truncf %175 : vector<4x2x16xf32> to vector<4x2x16xbf16>
    %187 = arith.truncf %180 : vector<4x2x16xf32> to vector<4x2x16xbf16>
    "tpu.trace_start"() <{level = 10 : i32, message = "bsd,btd->bst"}> : () -> ()
    %cst_73 = arith.constant dense<0.000000e+00> : vector<4x2x2xf32>
    %188 = tpu.matmul %186, %187, %cst_73 {dimension_numbers = #tpu.dot_dimension_numbers<[2], [2], [1], [1], [0, 0, 0, 1, 1, 1], [0], [0]>} : vector<4x2x16xbf16>, vector<4x2x16xbf16>, vector<4x2x2xf32> -> vector<4x2x2xf32>
    "tpu.trace_stop"() : () -> ()
    %cst_74 = arith.constant dense<0xFF800000> : vector<4x2xf32>
    %189 = vector.multi_reduction <maximumf>, %188, %cst_74 [2] : vector<4x2x2xf32> to vector<4x2xf32>
    %190 = vector.shape_cast %189 : vector<4x2xf32> to vector<4x2x1xf32>
    %191 = vector.broadcast %190 : vector<4x2x1xf32> to vector<4x2x2xf32>
    %192 = arith.subf %188, %191 : vector<4x2x2xf32>
    %193 = math.exp %192 : vector<4x2x2xf32>
    %cst_75 = arith.constant dense<0.000000e+00> : vector<4x2xf32>
    %194 = vector.multi_reduction <add>, %193, %cst_75 [2] : vector<4x2x2xf32> to vector<4x2xf32>
    %195 = vector.shape_cast %194 : vector<4x2xf32> to vector<4x2x1xf32>
    %196 = tpu.reciprocal %195 {approx = true} : vector<4x2x1xf32> -> vector<4x2x1xf32>
    %197 = vector.broadcast %196 : vector<4x2x1xf32> to vector<4x2x2xf32>
    %198 = arith.mulf %193, %197 : vector<4x2x2xf32>
    %199 = arith.truncf %198 : vector<4x2x2xf32> to vector<4x2x2xbf16>
    %200 = arith.truncf %185 : vector<4x2x16xf32> to vector<4x2x16xbf16>
    "tpu.trace_start"() <{level = 10 : i32, message = "bst,btd->bsd"}> : () -> ()
    %cst_76 = arith.constant dense<0.000000e+00> : vector<4x2x16xf32>
    %201 = tpu.matmul %199, %200, %cst_76 {dimension_numbers = #tpu.dot_dimension_numbers<[2], [1], [1], [2], [0, 0, 0, 1, 1, 2], [0], [0]>} : vector<4x2x2xbf16>, vector<4x2x16xbf16>, vector<4x2x16xf32> -> vector<4x2x16xf32>
    "tpu.trace_stop"() : () -> ()
    %202 = vector.extract_strided_slice %201 {offsets = [0, 0, 0], sizes = [1, 2, 16], strides = [1, 1, 1]} : vector<4x2x16xf32> to vector<1x2x16xf32>
    %203 = vector.extract_strided_slice %201 {offsets = [1, 0, 0], sizes = [1, 2, 16], strides = [1, 1, 1]} : vector<4x2x16xf32> to vector<1x2x16xf32>
    %204 = vector.extract_strided_slice %201 {offsets = [2, 0, 0], sizes = [1, 2, 16], strides = [1, 1, 1]} : vector<4x2x16xf32> to vector<1x2x16xf32>
    %205 = vector.extract_strided_slice %201 {offsets = [3, 0, 0], sizes = [1, 2, 16], strides = [1, 1, 1]} : vector<4x2x16xf32> to vector<1x2x16xf32>
    %206 = tpu.concatenate %202, %203, %204, %205 in 2 : vector<1x2x16xf32>, vector<1x2x16xf32>, vector<1x2x16xf32>, vector<1x2x16xf32> -> vector<1x2x64xf32>
    %207 = vector.shape_cast %206 : vector<1x2x64xf32> to vector<2x64xf32>
    %c0_77 = arith.constant 0 : index
    %c0_78 = arith.constant 0 : index
    %208 = vector.load %arg23[%c0_77, %c0_78] : memref<64x64xbf16, #tpu.memory_space<vmem>>, vector<64x64xbf16>
    %c0_79 = arith.constant 0 : index
    %c0_80 = arith.constant 0 : index
    %209 = vector.load %arg24[%c0_79, %c0_80] : memref<1x64xf32, #tpu.memory_space<vmem>>, vector<1x64xf32>
    %210 = arith.truncf %207 : vector<2x64xf32> to vector<2x64xbf16>
    %cst_81 = arith.constant dense<0.000000e+00> : vector<2x64xf32>
    %211 = tpu.matmul %210, %208, %cst_81 {dimension_numbers = #tpu.dot_dimension_numbers<[1], [0], [0], [1], [0, 0, 1, 1], [], []>} : vector<2x64xbf16>, vector<64x64xbf16>, vector<2x64xf32> -> vector<2x64xf32>
    %212 = vector.broadcast %209 : vector<1x64xf32> to vector<2x64xf32>
    %213 = arith.addf %211, %212 : vector<2x64xf32>
    %214 = arith.addf %161, %213 : vector<2x64xf32>
    %c0_82 = arith.constant 0 : index
    %c0_83 = arith.constant 0 : index
    %215 = vector.load %arg29[%c0_82, %c0_83] : memref<1x64xf32, #tpu.memory_space<vmem>>, vector<1x64xf32>
    %c0_84 = arith.constant 0 : index
    %c0_85 = arith.constant 0 : index
    %216 = vector.load %arg30[%c0_84, %c0_85] : memref<1x64xf32, #tpu.memory_space<vmem>>, vector<1x64xf32>
    %cst_86 = arith.constant dense<0.000000e+00> : vector<2xf32>
    %217 = vector.multi_reduction <add>, %214, %cst_86 [1] : vector<2x64xf32> to vector<2xf32>
    %218 = vector.shape_cast %217 : vector<2xf32> to vector<2x1xf32>
    %cst_87 = arith.constant 6.400000e+01 : f32
    %219 = vector.broadcast %cst_87 : f32 to vector<2x1xf32>
    %220 = arith.divf %218, %219 : vector<2x1xf32>
    %221 = vector.broadcast %220 : vector<2x1xf32> to vector<2x64xf32>
    %222 = arith.subf %214, %221 : vector<2x64xf32>
    %223 = arith.mulf %222, %222 : vector<2x64xf32>
    %cst_88 = arith.constant dense<0.000000e+00> : vector<2xf32>
    %224 = vector.multi_reduction <add>, %223, %cst_88 [1] : vector<2x64xf32> to vector<2xf32>
    %225 = vector.shape_cast %224 : vector<2xf32> to vector<2x1xf32>
    %cst_89 = arith.constant 6.400000e+01 : f32
    %226 = vector.broadcast %cst_89 : f32 to vector<2x1xf32>
    %227 = arith.divf %225, %226 : vector<2x1xf32>
    %cst_90 = arith.constant 9.99999974E-6 : f32
    %228 = vector.broadcast %cst_90 : f32 to vector<2x1xf32>
    %229 = arith.addf %227, %228 : vector<2x1xf32>
    %230 = math.rsqrt %229 : vector<2x1xf32>
    %231 = vector.broadcast %230 : vector<2x1xf32> to vector<2x64xf32>
    %232 = arith.mulf %222, %231 : vector<2x64xf32>
    %233 = vector.broadcast %215 : vector<1x64xf32> to vector<2x64xf32>
    %234 = arith.mulf %232, %233 : vector<2x64xf32>
    %235 = vector.broadcast %216 : vector<1x64xf32> to vector<2x64xf32>
    %236 = arith.addf %234, %235 : vector<2x64xf32>
    %c0_91 = arith.constant 0 : index
    %c0_92 = arith.constant 0 : index
    %237 = vector.load %arg25[%c0_91, %c0_92] : memref<64x2048xbf16, #tpu.memory_space<vmem>>, vector<64x2048xbf16>
    %c0_93 = arith.constant 0 : index
    %c0_94 = arith.constant 0 : index
    %238 = vector.load %arg26[%c0_93, %c0_94] : memref<1x2048xf32, #tpu.memory_space<vmem>>, vector<1x2048xf32>
    %239 = arith.truncf %236 : vector<2x64xf32> to vector<2x64xbf16>
    %cst_95 = arith.constant dense<0.000000e+00> : vector<2x2048xf32>
    %240 = tpu.matmul %239, %237, %cst_95 {dimension_numbers = #tpu.dot_dimension_numbers<[1], [0], [0], [1], [0, 0, 1, 1], [], []>} : vector<2x64xbf16>, vector<64x2048xbf16>, vector<2x2048xf32> -> vector<2x2048xf32>
    %241 = vector.broadcast %238 : vector<1x2048xf32> to vector<2x2048xf32>
    %242 = arith.addf %240, %241 : vector<2x2048xf32>
    %cst_96 = arith.constant 0.000000e+00 : f32
    %243 = vector.broadcast %cst_96 : f32 to vector<2x2048xf32>
    %244 = arith.maximumf %242, %243 : vector<2x2048xf32>
    %c0_97 = arith.constant 0 : index
    %c0_98 = arith.constant 0 : index
    %245 = vector.load %arg27[%c0_97, %c0_98] : memref<2048x64xbf16, #tpu.memory_space<vmem>>, vector<2048x64xbf16>
    %c0_99 = arith.constant 0 : index
    %c0_100 = arith.constant 0 : index
    %246 = vector.load %arg28[%c0_99, %c0_100] : memref<1x64xf32, #tpu.memory_space<vmem>>, vector<1x64xf32>
    %247 = arith.truncf %244 : vector<2x2048xf32> to vector<2x2048xbf16>
    %cst_101 = arith.constant dense<0.000000e+00> : vector<2x64xf32>
    %248 = tpu.matmul %247, %245, %cst_101 {dimension_numbers = #tpu.dot_dimension_numbers<[1], [0], [0], [1], [0, 0, 1, 1], [], []>} : vector<2x2048xbf16>, vector<2048x64xbf16>, vector<2x64xf32> -> vector<2x64xf32>
    %249 = vector.broadcast %246 : vector<1x64xf32> to vector<2x64xf32>
    %250 = arith.addf %248, %249 : vector<2x64xf32>
    %251 = arith.addf %236, %250 : vector<2x64xf32>
    %c0_102 = arith.constant 0 : index
    %c0_103 = arith.constant 0 : index
    %252 = vector.load %arg31[%c0_102, %c0_103] : memref<1x64xf32, #tpu.memory_space<vmem>>, vector<1x64xf32>
    %c0_104 = arith.constant 0 : index
    %c0_105 = arith.constant 0 : index
    %253 = vector.load %arg32[%c0_104, %c0_105] : memref<1x64xf32, #tpu.memory_space<vmem>>, vector<1x64xf32>
    %cst_106 = arith.constant dense<0.000000e+00> : vector<2xf32>
    %254 = vector.multi_reduction <add>, %251, %cst_106 [1] : vector<2x64xf32> to vector<2xf32>
    %255 = vector.shape_cast %254 : vector<2xf32> to vector<2x1xf32>
    %cst_107 = arith.constant 6.400000e+01 : f32
    %256 = vector.broadcast %cst_107 : f32 to vector<2x1xf32>
    %257 = arith.divf %255, %256 : vector<2x1xf32>
    %258 = vector.broadcast %257 : vector<2x1xf32> to vector<2x64xf32>
    %259 = arith.subf %251, %258 : vector<2x64xf32>
    %260 = arith.mulf %259, %259 : vector<2x64xf32>
    %cst_108 = arith.constant dense<0.000000e+00> : vector<2xf32>
    %261 = vector.multi_reduction <add>, %260, %cst_108 [1] : vector<2x64xf32> to vector<2xf32>
    %262 = vector.shape_cast %261 : vector<2xf32> to vector<2x1xf32>
    %cst_109 = arith.constant 6.400000e+01 : f32
    %263 = vector.broadcast %cst_109 : f32 to vector<2x1xf32>
    %264 = arith.divf %262, %263 : vector<2x1xf32>
    %cst_110 = arith.constant 9.99999974E-6 : f32
    %265 = vector.broadcast %cst_110 : f32 to vector<2x1xf32>
    %266 = arith.addf %264, %265 : vector<2x1xf32>
    %267 = math.rsqrt %266 : vector<2x1xf32>
    %268 = vector.broadcast %267 : vector<2x1xf32> to vector<2x64xf32>
    %269 = arith.mulf %259, %268 : vector<2x64xf32>
    %270 = vector.broadcast %252 : vector<1x64xf32> to vector<2x64xf32>
    %271 = arith.mulf %269, %270 : vector<2x64xf32>
    %272 = vector.broadcast %253 : vector<1x64xf32> to vector<2x64xf32>
    %273 = arith.addf %271, %272 : vector<2x64xf32>
    %274 = vector.shape_cast %273 : vector<2x64xf32> to vector<1x2x64xf32>
    %c0_111 = arith.constant 0 : index
    %c0_112 = arith.constant 0 : index
    %c0_113 = arith.constant 0 : index
    %275 = vector.load %arg33[%c0_111, %c0_112, %c0_113] : memref<1x2x64xf32, #tpu.memory_space<vmem>>, vector<1x2x64xf32>
    tpu.vector_store %arg33[%c0_111, %c0_112, %c0_113], %274 {strides = array<i32>} : memref<1x2x64xf32, #tpu.memory_space<vmem>>, vector<1x2x64xf32>,
    return
  }
  func.func @transform_0(%arg0: i32) -> (i32, i32, i32, i32) {
    %c0_i32 = arith.constant 0 : i32
    %c0_i32_0 = arith.constant 0 : i32
    %c0_i32_1 = arith.constant 0 : i32
    %c0_i32_2 = arith.constant 0 : i32
    return %arg0, %c0_i32, %c0_i32_0, %c0_i32_1 : i32, i32, i32, i32
  }
  func.func @transform_1(%arg0: i32) -> (i32, i32, i32) {
    %c0_i32 = arith.constant 0 : i32
    %c0_i32_0 = arith.constant 0 : i32
    %c0_i32_1 = arith.constant 0 : i32
    return %arg0, %c0_i32, %c0_i32_0 : i32, i32, i32
  }
  func.func @transform_2(%arg0: i32) -> (i32, i32) {
    %c0_i32 = arith.constant 0 : i32
    %c0_i32_0 = arith.constant 0 : i32
    %c0_i32_1 = arith.constant 0 : i32
    return %c0_i32, %c0_i32_0 : i32, i32
  }
  func.func @transform_3(%arg0: i32) -> (i32, i32) {
    %c0_i32 = arith.constant 0 : i32
    %c0_i32_0 = arith.constant 0 : i32
    %c0_i32_1 = arith.constant 0 : i32
    return %c0_i32, %c0_i32_0 : i32, i32
  }
  func.func @transform_4(%arg0: i32) -> (i32, i32) {
    %c0_i32 = arith.constant 0 : i32
    %c0_i32_0 = arith.constant 0 : i32
    %c0_i32_1 = arith.constant 0 : i32
    return %c0_i32, %c0_i32_0 : i32, i32
  }
  func.func @transform_5(%arg0: i32) -> (i32, i32) {
    %c0_i32 = arith.constant 0 : i32
    %c0_i32_0 = arith.constant 0 : i32
    %c0_i32_1 = arith.constant 0 : i32
    return %c0_i32, %c0_i32_0 : i32, i32
  }
  func.func @transform_6(%arg0: i32) -> (i32, i32) {
    %c0_i32 = arith.constant 0 : i32
    %c0_i32_0 = arith.constant 0 : i32
    %c0_i32_1 = arith.constant 0 : i32
    return %c0_i32, %c0_i32_0 : i32, i32
  }
  func.func @transform_7(%arg0: i32) -> (i32, i32) {
    %c0_i32 = arith.constant 0 : i32
    %c0_i32_0 = arith.constant 0 : i32
    %c0_i32_1 = arith.constant 0 : i32
    return %c0_i32, %c0_i32_0 : i32, i32
  }
  func.func @transform_8(%arg0: i32) -> (i32, i32) {
    %c0_i32 = arith.constant 0 : i32
    %c0_i32_0 = arith.constant 0 : i32
    %c0_i32_1 = arith.constant 0 : i32
    return %c0_i32, %c0_i32_0 : i32, i32
  }
  func.func @transform_9(%arg0: i32) -> (i32, i32) {
    %c0_i32 = arith.constant 0 : i32
    %c0_i32_0 = arith.constant 0 : i32
    %c0_i32_1 = arith.constant 0 : i32
    return %c0_i32, %c0_i32_0 : i32, i32
  }
  func.func @transform_10(%arg0: i32) -> (i32, i32) {
    %c0_i32 = arith.constant 0 : i32
    %c0_i32_0 = arith.constant 0 : i32
    %c0_i32_1 = arith.constant 0 : i32
    return %c0_i32, %c0_i32_0 : i32, i32
  }
  func.func @transform_11(%arg0: i32) -> (i32, i32) {
    %c0_i32 = arith.constant 0 : i32
    %c0_i32_0 = arith.constant 0 : i32
    %c0_i32_1 = arith.constant 0 : i32
    return %c0_i32, %c0_i32_0 : i32, i32
  }
  func.func @transform_12(%arg0: i32) -> (i32, i32) {
    %c0_i32 = arith.constant 0 : i32
    %c0_i32_0 = arith.constant 0 : i32
    %c0_i32_1 = arith.constant 0 : i32
    return %c0_i32, %c0_i32_0 : i32, i32
  }
  func.func @transform_13(%arg0: i32) -> (i32, i32) {
    %c0_i32 = arith.constant 0 : i32
    %c0_i32_0 = arith.constant 0 : i32
    %c0_i32_1 = arith.constant 0 : i32
    return %c0_i32, %c0_i32_0 : i32, i32
  }
  func.func @transform_14(%arg0: i32) -> (i32, i32) {
    %c0_i32 = arith.constant 0 : i32
    %c0_i32_0 = arith.constant 0 : i32
    %c0_i32_1 = arith.constant 0 : i32
    return %c0_i32, %c0_i32_0 : i32, i32
  }
  func.func @transform_15(%arg0: i32) -> (i32, i32) {
    %c0_i32 = arith.constant 0 : i32
    %c0_i32_0 = arith.constant 0 : i32
    %c0_i32_1 = arith.constant 0 : i32
    return %c0_i32, %c0_i32_0 : i32, i32
  }
  func.func @transform_16(%arg0: i32) -> (i32, i32) {
    %c0_i32 = arith.constant 0 : i32
    %c0_i32_0 = arith.constant 0 : i32
    %c0_i32_1 = arith.constant 0 : i32
    return %c0_i32, %c0_i32_0 : i32, i32
  }
  func.func @transform_17(%arg0: i32) -> (i32, i32) {
    %c0_i32 = arith.constant 0 : i32
    %c0_i32_0 = arith.constant 0 : i32
    %c0_i32_1 = arith.constant 0 : i32
    return %c0_i32, %c0_i32_0 : i32, i32
  }
  func.func @transform_18(%arg0: i32) -> (i32, i32) {
    %c0_i32 = arith.constant 0 : i32
    %c0_i32_0 = arith.constant 0 : i32
    %c0_i32_1 = arith.constant 0 : i32
    return %c0_i32, %c0_i32_0 : i32, i32
  }
  func.func @transform_19(%arg0: i32) -> (i32, i32) {
    %c0_i32 = arith.constant 0 : i32
    %c0_i32_0 = arith.constant 0 : i32
    %c0_i32_1 = arith.constant 0 : i32
    return %c0_i32, %c0_i32_0 : i32, i32
  }
  func.func @transform_20(%arg0: i32) -> (i32, i32) {
    %c0_i32 = arith.constant 0 : i32
    %c0_i32_0 = arith.constant 0 : i32
    %c0_i32_1 = arith.constant 0 : i32
    return %c0_i32, %c0_i32_0 : i32, i32
  }
  func.func @transform_21(%arg0: i32) -> (i32, i32) {
    %c0_i32 = arith.constant 0 : i32
    %c0_i32_0 = arith.constant 0 : i32
    %c0_i32_1 = arith.constant 0 : i32
    return %c0_i32, %c0_i32_0 : i32, i32
  }
  func.func @transform_22(%arg0: i32) -> (i32, i32) {
    %c0_i32 = arith.constant 0 : i32
    %c0_i32_0 = arith.constant 0 : i32
    %c0_i32_1 = arith.constant 0 : i32
    return %c0_i32, %c0_i32_0 : i32, i32
  }
  func.func @transform_23(%arg0: i32) -> (i32, i32) {
    %c0_i32 = arith.constant 0 : i32
    %c0_i32_0 = arith.constant 0 : i32
    %c0_i32_1 = arith.constant 0 : i32
    return %c0_i32, %c0_i32_0 : i32, i32
  }
  func.func @transform_24(%arg0: i32) -> (i32, i32) {
    %c0_i32 = arith.constant 0 : i32
    %c0_i32_0 = arith.constant 0 : i32
    %c0_i32_1 = arith.constant 0 : i32
    return %c0_i32, %c0_i32_0 : i32, i32
  }
  func.func @transform_25(%arg0: i32) -> (i32, i32) {
    %c0_i32 = arith.constant 0 : i32
    %c0_i32_0 = arith.constant 0 : i32
    %c0_i32_1 = arith.constant 0 : i32
    return %c0_i32, %c0_i32_0 : i32, i32
  }
  func.func @transform_26(%arg0: i32) -> (i32, i32) {
    %c0_i32 = arith.constant 0 : i32
    %c0_i32_0 = arith.constant 0 : i32
    %c0_i32_1 = arith.constant 0 : i32
    return %c0_i32, %c0_i32_0 : i32, i32
  }
  func.func @transform_27(%arg0: i32) -> (i32, i32) {
    %c0_i32 = arith.constant 0 : i32
    %c0_i32_0 = arith.constant 0 : i32
    %c0_i32_1 = arith.constant 0 : i32
    return %c0_i32, %c0_i32_0 : i32, i32
  }
  func.func @transform_28(%arg0: i32) -> (i32, i32) {
    %c0_i32 = arith.constant 0 : i32
    %c0_i32_0 = arith.constant 0 : i32
    %c0_i32_1 = arith.constant 0 : i32
    return %c0_i32, %c0_i32_0 : i32, i32
  }
  func.func @transform_29(%arg0: i32) -> (i32, i32) {
    %c0_i32 = arith.constant 0 : i32
    %c0_i32_0 = arith.constant 0 : i32
    %c0_i32_1 = arith.constant 0 : i32
    return %c0_i32, %c0_i32_0 : i32, i32
  }
  func.func @transform_30(%arg0: i32) -> (i32, i32) {
    %c0_i32 = arith.constant 0 : i32
    %c0_i32_0 = arith.constant 0 : i32
    %c0_i32_1 = arith.constant 0 : i32
    return %c0_i32, %c0_i32_0 : i32, i32
  }
  func.func @transform_31(%arg0: i32) -> (i32, i32) {
    %c0_i32 = arith.constant 0 : i32
    %c0_i32_0 = arith.constant 0 : i32
    %c0_i32_1 = arith.constant 0 : i32
    return %c0_i32, %c0_i32_0 : i32, i32
  }
  func.func @transform_32(%arg0: i32) -> (i32, i32, i32) {
    %c0_i32 = arith.constant 0 : i32
    %c0_i32_0 = arith.constant 0 : i32
    %c0_i32_1 = arith.constant 0 : i32
    return %arg0, %c0_i32, %c0_i32_0 : i32, i32, i32
  }
}

module attributes {stable_mosaic.version = 11 : i64} {
  func.func @_tail_kernel(%arg0: memref<3x2x64xf32, #tpu.memory_space<vmem>>, %arg1: memref<2x2x64xf32, #tpu.memory_space<vmem>>, %arg2: memref<192x64xbf16, #tpu.memory_space<vmem>>, %arg3: memref<1x64xf32, #tpu.memory_space<vmem>>, %arg4: memref<128x64xbf16, #tpu.memory_space<vmem>>, %arg5: memref<1x64xf32, #tpu.memory_space<vmem>>, %arg6: memref<2x1xf32, #tpu.memory_space<vmem>>) attributes {dimension_semantics = [], scalar_prefetch = 0 : i64, scratch_operands = 0 : i64, tpu.core_type = #tpu.core_type<tc>} {
    %c0 = arith.constant 0 : index
    %c0_0 = arith.constant 0 : index
    %c0_1 = arith.constant 0 : index
    %0 = vector.load %arg0[%c0, %c0_0, %c0_1] : memref<3x2x64xf32, #tpu.memory_space<vmem>>, vector<1x2x64xf32>
    %1 = vector.shape_cast %0 : vector<1x2x64xf32> to vector<2x64xf32>
    %c1 = arith.constant 1 : index
    %c0_2 = arith.constant 0 : index
    %c0_3 = arith.constant 0 : index
    %2 = vector.load %arg0[%c1, %c0_2, %c0_3] : memref<3x2x64xf32, #tpu.memory_space<vmem>>, vector<1x2x64xf32>
    %3 = vector.shape_cast %2 : vector<1x2x64xf32> to vector<2x64xf32>
    %c2 = arith.constant 2 : index
    %c0_4 = arith.constant 0 : index
    %c0_5 = arith.constant 0 : index
    %4 = vector.load %arg0[%c2, %c0_4, %c0_5] : memref<3x2x64xf32, #tpu.memory_space<vmem>>, vector<1x2x64xf32>
    %5 = vector.shape_cast %4 : vector<1x2x64xf32> to vector<2x64xf32>
    %6 = tpu.concatenate %1, %3, %5 in 1 : vector<2x64xf32>, vector<2x64xf32>, vector<2x64xf32> -> vector<2x192xf32>
    %c0_6 = arith.constant 0 : index
    %c0_7 = arith.constant 0 : index
    %7 = vector.load %arg2[%c0_6, %c0_7] : memref<192x64xbf16, #tpu.memory_space<vmem>>, vector<192x64xbf16>
    %c0_8 = arith.constant 0 : index
    %c0_9 = arith.constant 0 : index
    %8 = vector.load %arg3[%c0_8, %c0_9] : memref<1x64xf32, #tpu.memory_space<vmem>>, vector<1x64xf32>
    %9 = arith.truncf %6 : vector<2x192xf32> to vector<2x192xbf16>
    %cst = arith.constant dense<0.000000e+00> : vector<2x64xf32>
    %10 = tpu.matmul %9, %7, %cst {dimension_numbers = #tpu.dot_dimension_numbers<[1], [0], [0], [1], [0, 0, 1, 1], [], []>} : vector<2x192xbf16>, vector<192x64xbf16>, vector<2x64xf32> -> vector<2x64xf32>
    %11 = vector.broadcast %8 : vector<1x64xf32> to vector<2x64xf32>
    %12 = arith.addf %10, %11 : vector<2x64xf32>
    %cst_10 = arith.constant 0.000000e+00 : f32
    %13 = vector.broadcast %cst_10 : f32 to vector<2x64xf32>
    %14 = arith.maximumf %12, %13 : vector<2x64xf32>
    %c0_11 = arith.constant 0 : index
    %c0_12 = arith.constant 0 : index
    %c0_13 = arith.constant 0 : index
    %15 = vector.load %arg1[%c0_11, %c0_12, %c0_13] : memref<2x2x64xf32, #tpu.memory_space<vmem>>, vector<1x2x64xf32>
    %16 = vector.shape_cast %15 : vector<1x2x64xf32> to vector<2x64xf32>
    %c1_14 = arith.constant 1 : index
    %c0_15 = arith.constant 0 : index
    %c0_16 = arith.constant 0 : index
    %17 = vector.load %arg1[%c1_14, %c0_15, %c0_16] : memref<2x2x64xf32, #tpu.memory_space<vmem>>, vector<1x2x64xf32>
    %18 = vector.shape_cast %17 : vector<1x2x64xf32> to vector<2x64xf32>
    %19 = tpu.concatenate %16, %14 in 1 : vector<2x64xf32>, vector<2x64xf32> -> vector<2x128xf32>
    %c0_17 = arith.constant 0 : index
    %c0_18 = arith.constant 0 : index
    %20 = vector.load %arg4[%c0_17, %c0_18] : memref<128x64xbf16, #tpu.memory_space<vmem>>, vector<128x64xbf16>
    %c0_19 = arith.constant 0 : index
    %c0_20 = arith.constant 0 : index
    %21 = vector.load %arg5[%c0_19, %c0_20] : memref<1x64xf32, #tpu.memory_space<vmem>>, vector<1x64xf32>
    %22 = arith.truncf %19 : vector<2x128xf32> to vector<2x128xbf16>
    %cst_21 = arith.constant dense<0.000000e+00> : vector<2x64xf32>
    %23 = tpu.matmul %22, %20, %cst_21 {dimension_numbers = #tpu.dot_dimension_numbers<[1], [0], [0], [1], [0, 0, 1, 1], [], []>} : vector<2x128xbf16>, vector<128x64xbf16>, vector<2x64xf32> -> vector<2x64xf32>
    %24 = vector.broadcast %21 : vector<1x64xf32> to vector<2x64xf32>
    %25 = arith.addf %23, %24 : vector<2x64xf32>
    %cst_22 = arith.constant 0.000000e+00 : f32
    %26 = vector.broadcast %cst_22 : f32 to vector<2x64xf32>
    %27 = arith.maximumf %25, %26 : vector<2x64xf32>
    %28 = arith.mulf %18, %18 : vector<2x64xf32>
    %cst_23 = arith.constant dense<0.000000e+00> : vector<2xf32>
    %29 = vector.multi_reduction <add>, %28, %cst_23 [1] : vector<2x64xf32> to vector<2xf32>
    %30 = vector.shape_cast %29 : vector<2xf32> to vector<2x1xf32>
    %31 = math.sqrt %30 : vector<2x1xf32>
    %cst_24 = arith.constant 9.99999997E-7 : f32
    %32 = vector.broadcast %cst_24 : f32 to vector<2x1xf32>
    %33 = arith.maximumf %31, %32 : vector<2x1xf32>
    %34 = arith.mulf %27, %27 : vector<2x64xf32>
    %cst_25 = arith.constant dense<0.000000e+00> : vector<2xf32>
    %35 = vector.multi_reduction <add>, %34, %cst_25 [1] : vector<2x64xf32> to vector<2xf32>
    %36 = vector.shape_cast %35 : vector<2xf32> to vector<2x1xf32>
    %37 = math.sqrt %36 : vector<2x1xf32>
    %cst_26 = arith.constant 9.99999997E-7 : f32
    %38 = vector.broadcast %cst_26 : f32 to vector<2x1xf32>
    %39 = arith.maximumf %37, %38 : vector<2x1xf32>
    %40 = arith.mulf %18, %27 : vector<2x64xf32>
    %cst_27 = arith.constant dense<0.000000e+00> : vector<2xf32>
    %41 = vector.multi_reduction <add>, %40, %cst_27 [1] : vector<2x64xf32> to vector<2xf32>
    %42 = vector.shape_cast %41 : vector<2xf32> to vector<2x1xf32>
    %43 = arith.mulf %33, %39 : vector<2x1xf32>
    %44 = arith.divf %42, %43 : vector<2x1xf32>
    %cst_28 = arith.constant 1.000000e+00 : f32
    %45 = vector.broadcast %cst_28 : f32 to vector<2x1xf32>
    %46 = arith.addf %44, %45 : vector<2x1xf32>
    %cst_29 = arith.constant 5.000000e-01 : f32
    %47 = vector.broadcast %cst_29 : f32 to vector<2x1xf32>
    %48 = arith.mulf %46, %47 : vector<2x1xf32>
    %c0_30 = arith.constant 0 : index
    %c0_31 = arith.constant 0 : index
    %49 = vector.load %arg6[%c0_30, %c0_31] : memref<2x1xf32, #tpu.memory_space<vmem>>, vector<2x1xf32>
    tpu.vector_store %arg6[%c0_30, %c0_31], %48 {strides = array<i32>} : memref<2x1xf32, #tpu.memory_space<vmem>>, vector<2x1xf32>,
    return
  }
}

</mosaic_0001>

<bundles_post_ra>
// kernel: score_model_forward.5
= control target key start
LH: loop header
LB: loop body
LE: loop exit
PB: predicated region body
PF: predicated region fallthrough
CT: control target
= control target key end

     0   :  { %v430_v1 = vmov 0   ;;  %s431_s23 = smov 64   ;;  %vm33_vm0 = vcmask 523264   ;;  %v432_v20 = vmov 0.0   ;;  %vm433_vm1 = vmmov 0   ;;  %s561_s0 = inlined_call_operand.vmem [shape: f32[3,2,64], index: 0, kind: input, shape index: {}]   ;;  %s562_s2 = inlined_call_operand.vmem [shape: bf16[192,64], index: 2, kind: input, shape index: {}]   ;;  %s563_s4 = inlined_call_operand.vmem [shape: bf16[128,64], index: 4, kind: input, shape index: {}]   ;;  %s564_s1 = inlined_call_operand.vmem [shape: f32[2,2,64], index: 1, kind: input, shape index: {}]   ;;  %s565_s3 = inlined_call_operand.vmem [shape: f32[1,64], index: 3, kind: input, shape index: {}]   ;;  %s566_s5 = inlined_call_operand.vmem [shape: f32[1,64], index: 5, kind: input, shape index: {}]   ;;  %s567_s6 = inlined_call_operand.vmem [shape: f32[2,1], index: 6, kind: output, shape index: {}]  }
   0x1   :  { %v345_v0 = vld [vmem:[%s561_s0 + $0x2] sm:$0x3]  ;;  %143 = vmatprep.subr.bf16.mxu0 %v430_v1  ;;  %v404_v2 = vld [vmem:[%s562_s2 + $0x38] sm:$0xff]   ;;  %v405_v3 = vld [vmem:[%s562_s2 + $0x30] sm:$0xff]   ;;  %380 = vmatprep.subr.bf16.mxu1 %v432_v20  ;;  %vm306_vm2 = vcmask 517120   ;;  %vm339_vm7 = vcmask 1024  }
   0x2   :  { %30 = vrot.lane.b32.xlu0 %v345_v0, %s431_s23  ;;  %144 = vmatpush1.bf16.msra.mxu0 %v404_v2  ;;  %v406_v4 = vld [vmem:[%s562_s2 + $0x28] sm:$0xff]   ;;  %v407_v5 = vld [vmem:[%s562_s2 + $0x20] sm:$0xff]   ;;  %v408_v8 = vld [vmem:[%s562_s2 + $0x18] sm:$0xff]  }
   0x3   :  { %145 = vmatprep.subr.bf16.mxu0 %v430_v1  ;;  %v346_v6 = vld [vmem:[%s561_s0 + $0x4] sm:$0x3]  ;;  %v409_v9 = vld [vmem:[%s562_s2 + $0x10] sm:$0xff]   ;;  %v410_v10 = vld [vmem:[%s562_s2 + $0x8] sm:$0xff]   ;;  %396 = vmatprep.mubr.msk.bf16.mxu1 %vm433_vm1, %v432_v20 }
   0x4   :  { %v61_v7 = vpack.c.bf16 %v346_v6, %v346_v6  ;;  %v411_v11 = vld [vmem:[%s562_s2] sm:$0xff]   ;;  %v412_v12 = vld [vmem:[%s562_s2 + $0x58] sm:$0xff]   ;;  %v413_v13 = vld [vmem:[%s562_s2 + $0x50] sm:$0xff]  }
   0x5   :  { %v414_v14 = vld [vmem:[%s562_s2 + $0x48] sm:$0xff]   ;;  %v415_v15 = vld [vmem:[%s562_s2 + $0x40] sm:$0xff]   ;;  %v416_v21 = vld [vmem:[%s563_s4 + $0x38] sm:$0xff]  }
   0x6   :  { %146 = vmatpush1.bf16.msra.mxu0 %v405_v3  ;;  %360 = vmatprep.mubr.msk.bf16.mxu0 %vm33_vm0, %v61_v7  ;;  %v24_v16 = vld [vmem:[%s561_s0] sm:$0x3]  ;;  %v417_v22 = vld [vmem:[%s563_s4 + $0x30] sm:$0xff]   ;;  %v418_v23 = vld [vmem:[%s563_s4 + $0x28] sm:$0xff]  }
   0x7   :  { %147 = vmatprep.subr.bf16.mxu0 %v430_v1  ;;  %381 = vmatpush3.bf16.msra.mxu1 %v416_v21  ;;  %v419_v24 = vld [vmem:[%s563_s4 + $0x20] sm:$0xff]   ;;  %v420_v25 = vld [vmem:[%s563_s4 + $0x18] sm:$0xff]   ;;  %v421_v26 = vld [vmem:[%s563_s4 + $0x10] sm:$0xff]  }
   0x8   :  { %382 = vmatprep.subr.bf16.mxu1 %v432_v20  ;;  %v422_v27 = vld [vmem:[%s563_s4 + $0x8] sm:$0xff]   ;;  %v423_v28 = vld [vmem:[%s563_s4] sm:$0xff]  }
   0x9   :  { %v361_v29 = vld [vmem:[%s564_s1 + $0x2] sm:$0x3]  ;;  %v347_v31 = vld [vmem:[%s565_s3] ss:$0 sm:$0xff] }
   0xa   :  { %148 = vmatpush1.bf16.msra.mxu0 %v406_v4  ;;  %v305_v30 = vmul.f32 %v361_v29, %v361_v29  ;;  %v184_v39 = vld [vmem:[%s564_s1] sm:$0x3] }
   0xb   :  { %149 = vmatprep.subr.bf16.mxu0 %v430_v1  ;;  %383 = vmatpush3.bf16.msra.mxu1 %v417_v22  ;;  %v362_v43 = vld [vmem:[%s566_s5] ss:$0 sm:$0xff] }
   0xc   :  { %384 = vmatprep.subr.bf16.mxu1 %v432_v20  ;;  %v307_v32 = vsel %vm306_vm2, %v305_v30, 0.0 }
   0xd   :  { %308 = vadd.xlane.f32.xlu1 %v307_v32 }
   0xe   :  { %150 = vmatpush1.bf16.msra.mxu0 %v407_v5 }
   0xf   :  { %151 = vmatprep.subr.bf16.mxu0 %v430_v1  ;;  %385 = vmatpush3.bf16.msra.mxu1 %v418_v23 }
  0x10   :  { %386 = vmatprep.subr.bf16.mxu1 %v432_v20 }
  0x12   :  { %152 = vmatpush1.bf16.msra.mxu0 %v408_v8 }
  0x13   :  { %153 = vmatprep.subr.bf16.mxu0 %v430_v1  ;;  %387 = vmatpush3.bf16.msra.mxu1 %v419_v24 }
  0x14   :  { %388 = vmatprep.subr.bf16.mxu1 %v432_v20 }
  0x16   :  { %154 = vmatpush1.bf16.msra.mxu0 %v409_v9 }
  0x17   :  { %155 = vmatprep.subr.bf16.mxu0 %v430_v1  ;;  %389 = vmatpush3.bf16.msra.mxu1 %v420_v25 }
  0x18   :  { %390 = vmatprep.subr.bf16.mxu1 %v432_v20 }
  0x1a   :  { %156 = vmatpush1.bf16.msra.mxu0 %v410_v10 }
  0x1b   :  { %157 = vmatprep.subr.bf16.mxu0 %v430_v1  ;;  %391 = vmatpush3.bf16.msra.mxu1 %v421_v26 }
  0x1c   :  { %392 = vmatprep.subr.bf16.mxu1 %v432_v20 }
  0x1e   :  { %158 = vmatpush1.bf16.msra.mxu0 %v411_v11 }
  0x1f   :  { %167 = vmatprep.subr.bf16.mxu0 %v430_v1  ;;  %393 = vmatpush3.bf16.msra.mxu1 %v422_v27 }
  0x20   :  { %394 = vmatprep.subr.bf16.mxu1 %v432_v20 }
  0x22   :  { %168 = vmatpush2.bf16.msra.mxu0 %v412_v12 }
  0x23   :  { %169 = vmatprep.subr.bf16.mxu0 %v430_v1  ;;  %395 = vmatpush3.bf16.msra.mxu1 %v423_v28 }
  0x26   :  { %170 = vmatpush2.bf16.msra.mxu0 %v413_v13 }
  0x27   :  { %171 = vmatprep.subr.bf16.mxu0 %v430_v1 }
  0x2a   :  { %172 = vmatpush2.bf16.msra.mxu0 %v414_v14 }
  0x2b   :  { %173 = vmatprep.subr.bf16.mxu0 %v430_v1 }
  0x2e   :  { %174 = vmatpush2.bf16.msra.mxu0 %v415_v15 }
  0x74   :  { %v31_v17 = vpop.permute.xlu0 %30 }
  0x75   :  { %v34_v18 = vsel %vm33_vm0, %v24_v16, %v31_v17 }
  0x76   :  { %v60_v19 = vpack.c.bf16 %v34_v18, %v34_v18 }
  0x78   :  { %176 = vmatmul.mubr.bf16.vlgmr.msra.gmra.mxu0 %v60_v19 }
  0x96   :  { %v309_v54 = vpop.xlane.xlu1 %308 }
  0x97   :  { %424 = vrsqrt.f32 %v309_v54  ;;  %vm312_vm3 = vcmp.eq.f32.partialorder %v309_v54, inf  ;;  %v315_v58 = vand.u32 2147483648, %v309_v54  ;;  %vm314_vm4 = vcmp.eq.f32.partialorder %v309_v54, 0.0 }
  0xa4   :  { %v425_v56 = vpop.eup %424 }
  0xa5   :  { %v311_v57 = vmul.f32 %v425_v56, %v309_v54 }
  0xa7   :  { %v313_v59 = vsel %vm312_vm3, %v309_v54, %v311_v57 }
  0xa8   :  { %v316_v62 = vsel %vm314_vm4, %v315_v58, %v313_v59 }
  0xa9   :  { %v317_v2 = vmax.f32 %v316_v62, 1e-06 }
 0x138   :  { %v177_v33 = vpop.f32.mrf.mxu0 }
 0x139   :  { %v178_v34 = vadd.f32 %v347_v31, %v177_v33 }
 0x13a   :  { %v179_v35 = vpop.f32.mrf.mxu0 }
 0x13b   :  { %v183_v36 = vmax.f32 %v178_v34, 0.0 }
 0x13c   :  { %v180_v37 = vpop.f32.mrf.mxu0 }
 0x13d   :  { %188 = vrot.lane.b32.xlu0 %v183_v36, %s431_s23 }
 0x13e   :  { %v181_v38 = vpop.f32.mrf.mxu0 }
 0x1af   :  { %v189_v40 = vpop.permute.xlu0 %188 }
 0x1b0   :  { %v191_v41 = vsel %vm33_vm0, %v184_v39, %v189_v40 }
 0x1b1   :  { %v209_v42 = vpack.c.bf16 %v191_v41, %v191_v41 }
 0x1b3   :  { %397 = vmatmul.mubr.bf16.vlgmr.msra.gmra.mxu1 %v209_v42 }
 0x273   :  { %v298_v44 = vpop.f32.mrf.mxu1 }
 0x274   :  { %v299_v45 = vadd.f32 %v362_v43, %v298_v44 }
 0x275   :  { %v398_v46 = vpop.f32.mrf.mxu1 }
 0x276   :  { %v304_v47 = vmax.f32 %v299_v45, 0.0 }
 0x277   :  { %v301_v48 = vpop.f32.mrf.mxu1 }
 0x278   :  { %v330_v49 = vmul.f32 %v361_v29, %v304_v47  ;;  %v318_v50 = vmul.f32 %v304_v47, %v304_v47 }
 0x279   :  { %v399_v51 = vpop.f32.mrf.mxu1 }
 0x27a   :  { %v331_v52 = vsel %vm306_vm2, %v330_v49, 0.0  ;;  %v319_v53 = vsel %vm306_vm2, %v318_v50, 0.0 }
 0x27b   :  { %332 = vadd.xlane.f32.xlu0 %v331_v52  ;;  %320 = vadd.xlane.f32.xlu1 %v319_v53 }
 0x304   :  { %v321_v55 = vpop.xlane.xlu1 %320  ;;  %v333_v6 = vpop.xlane.xlu0 %332 }
 0x305   :  { %426 = vrsqrt.f32 %v321_v55  ;;  %vm324_vm5 = vcmp.eq.f32.partialorder %v321_v55, inf  ;;  %v327_v63 = vand.u32 2147483648, %v321_v55  ;;  %vm326_vm6 = vcmp.eq.f32.partialorder %v321_v55, 0.0 }
 0x312   :  { %v427_v60 = vpop.eup %426 }
 0x313   :  { %v323_v61 = vmul.f32 %v427_v60, %v321_v55 }
 0x315   :  { %v325_v0 = vsel %vm324_vm5, %v321_v55, %v323_v61 }
 0x316   :  { %v328_v1 = vsel %vm326_vm6, %v327_v63, %v325_v0 }
 0x317   :  { %v329_v3 = vmax.f32 %v328_v1, 1e-06 }
 0x319   :  { %v334_v4 = vmul.f32 %v329_v3, %v317_v2 }
 0x31b   :  { %428 = vrcp.f32 %v334_v4 }
 0x328   :  { %v429_v5 = vpop.eup %428 }
 0x329   :  { %v336_v7 = vmul.f32 %v429_v5, %v333_v6 }
 0x32b   :  { %v337_v8 = vadd.f32 1.0, %v336_v7 }
 0x32d   :  { %v338_v9 = vmul.f32 0.5, %v337_v8 }
 0x32f   :  { %340 = vst.msk [vmem:[%s567_s6] sm:$0x3] %vm339_vm7, %v338_v9 }

// kernel: score_model_forward.4
= control target key start
LH: loop header
LB: loop body
LE: loop exit
PB: predicated region body
PF: predicated region fallthrough
CT: control target
= control target key end

     0   :  { %s11881_s0 = inlined_call_operand.vmem [shape: f32[2,8,2,32], index: 0, kind: input, shape index: {}]   ;;  %s11882_s1 = inlined_call_operand.vmem [shape: f32[2,2,4], index: 1, kind: input, shape index: {}]   ;;  %s11883_s2 = inlined_call_operand.vmem [shape: bf16[2,32,96], index: 2, kind: input, shape index: {}]   ;;  %s11884_s3 = inlined_call_operand.vmem [shape: f32[2,1,96], index: 3, kind: input, shape index: {}]   ;;  %s11885_s4 = inlined_call_operand.vmem [shape: bf16[2,32,32], index: 4, kind: input, shape index: {}]   ;;  %s11886_s5 = inlined_call_operand.vmem [shape: f32[2,1,32], index: 5, kind: input, shape index: {}]   ;;  %s11887_s6 = inlined_call_operand.vmem [shape: bf16[2,32,2048], index: 6, kind: input, shape index: {}]   ;;  %s11888_s7 = inlined_call_operand.vmem [shape: f32[2,1,2048], index: 7, kind: input, shape index: {}]   ;;  %s11889_s8 = inlined_call_operand.vmem [shape: bf16[2,2048,32], index: 8, kind: input, shape index: {}]   ;;  %s11890_s9 = inlined_call_operand.vmem [shape: f32[2,1,32], index: 9, kind: input, shape index: {}]   ;;  %s11891_s10 = inlined_call_operand.vmem [shape: f32[2,1,32], index: 10, kind: input, shape index: {}]   ;;  %s11892_s11 = inlined_call_operand.vmem [shape: f32[2,1,32], index: 11, kind: input, shape index: {}]   ;;  %s11893_s12 = inlined_call_operand.vmem [shape: f32[2,1,32], index: 12, kind: input, shape index: {}]   ;;  %s11894_s13 = inlined_call_operand.vmem [shape: f32[2,1,32], index: 13, kind: input, shape index: {}]   ;;  %s11895_s14 = inlined_call_operand.vmem [shape: bf16[2,256,32], index: 14, kind: input, shape index: {}]   ;;  %s11896_s15 = inlined_call_operand.vmem [shape: f32[2,1,32], index: 15, kind: input, shape index: {}]   ;;  %s11897_s16 = inlined_call_operand.vmem [shape: bf16[2,4,16], index: 16, kind: input, shape index: {}]   ;;  %s11898_s17 = inlined_call_operand.vmem [shape: f32[2,1,16], index: 17, kind: input, shape index: {}]   ;;  %s11899_s18 = inlined_call_operand.vmem [shape: bf16[2,16,32], index: 18, kind: input, shape index: {}]   ;;  %s11900_s19 = inlined_call_operand.vmem [shape: f32[2,1,32], index: 19, kind: input, shape index: {}]   ;;  %s11901_s20 = inlined_call_operand.vmem [shape: f32[2,2,64], index: 20, kind: output, shape index: {}]  }
   0x1   :  { %11911 = sst [smem:[#allocation16_spill]] %s11881_s0 }
   0x2   :  { %11912 = sst [smem:[#allocation17_spill]] %s11882_s1  ;;  %s9985_s1 = smov 0  }
   0x3   :  { %11913 = sst [smem:[#allocation18_spill]] %s11883_s2 }
   0x4   :  { %11914 = sst [smem:[#allocation19_spill]] %s11884_s3 }
   0x5   :  { %11915 = sst [smem:[#allocation20_spill]] %s11885_s4 }
   0x6 LB: > { %s8475_s22 = sadd.s32 4294967295, %s9861_s1   ;;  %p8479_p0 = scmp.ge.s32.totalorder %s9861_s1, 1  ;;  %s9861_s1 = sphi %s9985_s1, %s30_s1  }
   0x7   : > { %p729_p1 = scmp.lt.s32.totalorder %s9861_s1, 3 }
   0x9   : > { %p730_p2 = pnand %p8479_p0, %p729_p1 }
   0xb   : > { %733 = sbr.rel (%p730_p2) target bundleno = 3201 (0xc81), region = 100 }
  0x10   : > { %p858_p3 = scmp.lt.s32.totalorder %s8475_s22, 1  ;;  %v966_v0 = vlaneseq  ;;  %v11902_v1 = vmov 0.0   ;;  %vm9864_vm0 = vmmov 0   ;;  %v9865_v2 = vmov 1983009808   ;;  %s11917_s25 = sld [smem:[#allocation16_spill]] }
  0x11   : > { %9110 = vmatprep.subr.bf16.mxu1 %v11902_v1  ;;  %9114 = vmatprep.mubr.msk.bf16.mxu1 %vm9864_vm0, %v11902_v1  ;;  %v964_v3 = vunpack.c.l.s4 %v9865_v2  ;;  %s11918_s28 = sld [smem:[#allocation18_spill]]  ;;  %vm1016_vm1 = vcmask 261120   ;;  %s9866_s24 = smov 120   ;;  %vm1276_vm2 = vcmask 64512   ;;  %vm2842_vm3 = vcmask 9216  }
  0x12   : > { %s11952_s22 = smov (!%p858_p3, %s8475_s22), 1  ;;  %9124 = vmatprep.subr.bf16.mxu0 %v11902_v1  ;;  %9126 = vmatprep.mubr.msk.bf16.mxu0 %vm9864_vm0, %v11902_v1  ;;  %v10004_v5 = vshrl.u32 %v966_v0, 7  ;;  %s11920_s0 = sld [smem:[#allocation19_spill]]  ;;  %vm3233_vm4 = vcmask 1040384   ;;  %vm3229_vm5 = vcmask 15360   ;;  %vm4869_vm6 = vcmask 130048  }
  0x13   : > { %s10002_s23 = sshll.u32 %s11952_s22, 4  ;;  %v965_v4 = vunpack.c.0.s8 %v964_v3  ;;  %s11910_s2 = smov 96   ;;  %vm4878_vm7 = vcmask 195584   ;;  %vm8112_vm8 = vcmask 1041408   ;;  %vm8108_vm9 = vcmask 31744  }
  0x14   : > { %11916 = vst [vmem:[#allocation2_spill] sm:$0xff] %v10004_v5  ;;  %s9869_s26 = smov 104   ;;  %s9870_s27 = smov 64   ;;  %vm7914_vm10 = vcmask 523264   ;;  %vm7916_vm11 = vcmask 785408   ;;  %vm8222_vm12 = vcmask 517120  }
  0x15   : > { %v10018_v9 = vsub.s32 %v965_v4, %v10004_v5  ;;  %s9873_s29 = smov 24  }
  0x16   : > { %s10010_s3 = scalar_lea.vmem %s11917_s25, %s10002_s23  ;;  %s9868_s25 = smov 112  }
  0x17   : > { %s871_s4 = scalar_lea.vmem %s11918_s28, %s10002_s23  ;;  %v940_v8 = vld [vmem:[%s10010_s3] sm:$0x3]  ;;  %11919 = vst [vmem:[#allocation3_spill] sm:$0xff] %v10018_v9  ;;  %v941_v10 = vld [vmem:[%s10010_s3 + $0x2] sm:$0x3]  ;;  %s9871_s28 = smov 8  }
  0x18   : > { %v9562_v6 = vld [vmem:[%s871_s4 + $0x8] sm:$0xff]   ;;  %v9563_v7 = vld [vmem:[%s871_s4] sm:$0xff]   ;;  %v961_v16 = vcombine.low %v940_v8, %v941_v10  ;;  %s874_s21 = scalar_lea.vmem %s11920_s0, %s11952_s22  ;;  %s9872_s4 = smov 16  }
  0x19   : > { %9111 = vmatpush3.bf16.msra.mxu1 %v9562_v6  ;;  %v942_v11 = vld [vmem:[%s10010_s3 + $0x4] sm:$0x3]  ;;  %v943_v12 = vld [vmem:[%s10010_s3 + $0x6] sm:$0x3]  ;;  %v944_v13 = vld [vmem:[%s10010_s3 + $0x8] sm:$0x3] }
  0x1a   : > { %9112 = vmatprep.subr.bf16.mxu1 %v11902_v1  ;;  %v945_v14 = vld [vmem:[%s10010_s3 + $0xa] sm:$0x3]  ;;  %v946_v15 = vld [vmem:[%s10010_s3 + $0xc] sm:$0x3]  ;;  %v962_v17 = vcombine.low %v942_v11, %v943_v12  ;;  %v947_v18 = vld [vmem:[%s10010_s3 + $0xe] sm:$0x3]  ;;  %v969_v20 = vrot.slane %v961_v16, %v10018_v9 }
  0x1b   : > { %v978_v19 = vcombine.low %v944_v13, %v945_v14  ;;  %v979_v22 = vcombine.low %v946_v15, %v947_v18  ;;  %v8498_v28 = vld [vmem:[%s874_s21] ss:$0 sm:$0xff]  ;;  %s11946_s21 = sld [smem:[#allocation20_spill]]  ;;  %s8771_s0 = sshll.u32 %s11952_s22, 10 }
  0x1c   : > { %v976_v21 = vrot.slane %v962_v17, %v10018_v9 }
  0x1d   : > { %9113 = vmatpush3.bf16.msra.mxu1 %v9563_v7  ;;  %v986_v23 = vrot.slane %v978_v19, %v10018_v9  ;;  %v993_v25 = vrot.slane %v979_v22, %v10018_v9 }
  0x1e   : > { %9118 = vmatprep.subr.bf16.mxu1 %v11902_v1  ;;  %v977_v24 = vcombine.low %v969_v20, %v976_v21 }
  0x1f   : > { %v994_v26 = vcombine.low %v986_v23, %v993_v25 }
  0x21   : > { %v997_v27 = vpack.c.bf16 %v994_v26, %v977_v24 }
  0x23   : > { %9115 = vmatmul.mubr.msk.bf16.vlgmr.msra.gmra.mxu1 %vm1016_vm1, %v997_v27 }
  0x24   : > { %9120 = vmatprep.mubr.msk.bf16.mxu1 %vm9864_vm0, %v11902_v1 }
  0xe3   : > { %v1054_v29 = vpop.f32.mrf.mxu1 }
  0xe4   : > { %v1055_v30 = vadd.f32 %v8498_v28, %v1054_v29 }
  0xe5   : > { %v9116_v31 = vpop.f32.mrf.mxu1 }
  0xe6   : > { %v1063_v32 = vcombine.high %v1055_v30, %v1055_v30  ;;  %v10041_v33 = vrot.slane %v1055_v30, %v10018_v9 }
  0xe7   : > { %v1057_v34 = vpop.f32.mrf.mxu1 }
  0xe8   : > { %v10044_v35 = vrot.slane %v1063_v32, %v10018_v9  ;;  %v1058_v36 = vadd.f32 %v8498_v28, %v1057_v34  ;;  %1105 = vrot.lane.b32.xlu0 %v10041_v33, %s9866_s24  ;;  %v10050_v38 = vcombine.high %v10041_v33, %v10041_v33  ;;  %v10078_v45 = vpack.c.bf16 %v10041_v33, %v10041_v33 }
  0xe9   : > { %v9117_v37 = vpop.f32.mrf.mxu1  ;;  %v1177_v8 = vmul.f32 0.35355338, %v10041_v33 }
  0xea   : > { %1109 = vrot.lane.b32.xlu1 %v10044_v35, %s9866_s24  ;;  %v1080_v39 = vcombine.high %v1058_v36, %v1058_v36  ;;  %v10053_v40 = vrot.slane %v1058_v36, %v10018_v9  ;;  %v10058_v41 = vcombine.high %v10044_v35, %v10044_v35  ;;  %v10084_v46 = vpack.c.bf16 %v10050_v38, %v10050_v38 }
  0xeb   : > { %v10092_v47 = vpack.c.bf16 %v10044_v35, %v10044_v35  ;;  %v1178_v12 = vmul.f32 0.35355338, %v10050_v38  ;;  %v1209_v14 = vpack.c.bf16 %v1177_v8, %v1177_v8  ;;  %v1179_v21 = vmul.f32 0.35355338, %v10044_v35 }
  0xec   : > { %1107 = vrot.lane.b32.xlu0 %v10050_v38, %s9866_s24  ;;  %v10062_v42 = vrot.slane %v1080_v39, %v10018_v9  ;;  %v10067_v43 = vcombine.high %v10053_v40, %v10053_v40  ;;  %v10098_v48 = vpack.c.bf16 %v10058_v41, %v10058_v41  ;;  %v10106_v49 = vpack.c.bf16 %v10053_v40, %v10053_v40 }
  0xed   : > { %v1210_v18 = vpack.c.bf16 %v1178_v12, %v1178_v12  ;;  %v1180_v23 = vmul.f32 0.35355338, %v10058_v41  ;;  %v1211_v26 = vpack.c.bf16 %v1179_v21, %v1179_v21 }
  0xee   : > { %1111 = vrot.lane.b32.xlu1 %v10058_v41, %s9866_s24  ;;  %v10073_v44 = vcombine.high %v10062_v42, %v10062_v42  ;;  %v10112_v50 = vpack.c.bf16 %v10067_v43, %v10067_v43  ;;  %v10120_v51 = vpack.c.bf16 %v10062_v42, %v10062_v42  ;;  %v1182_v36 = vmul.f32 0.35355338, %v10067_v43 }
  0xef   : > { %v1212_v30 = vpack.c.bf16 %v1180_v23, %v1180_v23  ;;  %v1183_v8 = vmul.f32 0.35355338, %v10062_v42 }
  0xf0   : > { %1113 = vrot.lane.b32.xlu0 %v10053_v40, %s9866_s24  ;;  %v10126_v52 = vpack.c.bf16 %v10073_v44, %v10073_v44 }
  0xf2   : > { %1115 = vrot.lane.b32.xlu1 %v10067_v43, %s9866_s24 }
  0xf4   : > { %1117 = vrot.lane.b32.xlu0 %v10062_v42, %s9866_s24 }
  0xf6   : > { %1119 = vrot.lane.b32.xlu1 %v10073_v44, %s9866_s24  ;;  %s879_s24 = scalar_lea.vmem %s11946_s21, %s10002_s23  ;;  %s919_s21 = scalar_lea.vmem %s11896_s15, %s11952_s22 }
  0xf8   : > { %1274 = vrot.lane.b32.xlu0 %v10078_v45, %s11910_s2 }
  0xfa   : > { %1324 = vrot.lane.b32.xlu1 %v10084_v46, %s11910_s2 }
  0xfc   : > { %1129 = vrot.lane.b32.xlu0 %v10041_v33, %s9868_s25 }
  0xfe   : > { %1131 = vrot.lane.b32.xlu1 %v10050_v38, %s9868_s25 }
 0x100   : > { %1373 = vrot.lane.b32.xlu0 %v10092_v47, %s11910_s2 }
 0x102   : > { %1422 = vrot.lane.b32.xlu1 %v10098_v48, %s11910_s2 }
 0x104   : > { %1133 = vrot.lane.b32.xlu0 %v10044_v35, %s9868_s25 }
 0x106   : > { %1135 = vrot.lane.b32.xlu1 %v10058_v41, %s9868_s25 }
 0x108   : > { %1471 = vrot.lane.b32.xlu0 %v10106_v49, %s11910_s2 }
 0x10a   : > { %1520 = vrot.lane.b32.xlu1 %v10112_v50, %s11910_s2 }
 0x10c   : > { %1137 = vrot.lane.b32.xlu0 %v10053_v40, %s9868_s25 }
 0x10e   : > { %1139 = vrot.lane.b32.xlu1 %v10067_v43, %s9868_s25 }
 0x110   : > { %1569 = vrot.lane.b32.xlu0 %v10120_v51, %s11910_s2 }
 0x112   : > { %1618 = vrot.lane.b32.xlu1 %v10126_v52, %s11910_s2 }
 0x114   : > { %1141 = vrot.lane.b32.xlu0 %v10062_v42, %s9868_s25 }
 0x116   : > { %1143 = vrot.lane.b32.xlu1 %v10073_v44, %s9868_s25  ;;  %s11353_s25 = scalar_lea.vmem %s11889_s8, %s8771_s0  ;;  %s11499_s0 = scalar_lea.vmem %s11888_s7, %s10002_s23 }
 0x117   : > { %s11697_s23 = sshll.u32 %s11952_s22, 1 }
 0x15a   : > { %v10132_v53 = vpop.permute.xlu0 %1105 }
 0x15b   : > { %v10136_v54 = vpack.c.bf16 %v10132_v53, %v10132_v53  ;;  %v1185_v23 = vmul.f32 0.35355338, %v10132_v53 }
 0x15c   : > { %v10138_v55 = vpop.permute.xlu1 %1109 }
 0x15d   : > { %1667 = vrot.lane.b32.xlu0 %v10136_v54, %s11910_s2  ;;  %v10158_v60 = vpack.c.bf16 %v10138_v55, %v10138_v55 }
 0x15e   : > { %v10142_v56 = vpop.permute.xlu0 %1107 }
 0x15f   : > { %v10146_v57 = vpack.c.bf16 %v10142_v56, %v10142_v56 }
 0x160   : > { %v10148_v58 = vpop.permute.xlu1 %1111 }
 0x161   : > { %1153 = vrot.lane.b32.xlu0 %v10041_v33, %s9869_s26  ;;  %1716 = vrot.lane.b32.xlu1 %v10146_v57, %s11910_s2  ;;  %v10170_v63 = vpack.c.bf16 %v10148_v58, %v10148_v58  ;;  %v1181_v33 = vmul.f32 0.35355338, %v10053_v40 }
 0x162   : > { %v10154_v59 = vpop.permute.xlu0 %1113 }
 0x163   : > { %v10180_v3 = vpack.c.bf16 %v10154_v59, %v10154_v59  ;;  %v1213_v39 = vpack.c.bf16 %v1181_v33, %v1181_v33 }
 0x164   : > { %v10160_v61 = vpop.permute.xlu1 %1115 }
 0x165   : > { %1765 = vrot.lane.b32.xlu0 %v10158_v60, %s11910_s2  ;;  %1155 = vrot.lane.b32.xlu1 %v10050_v38, %s9869_s26  ;;  %v10194_v11 = vpack.c.bf16 %v10160_v61, %v10160_v61 }
 0x166   : > { %v10166_v62 = vpop.permute.xlu0 %1117 }
 0x167   : > { %v10206_v16 = vpack.c.bf16 %v10166_v62, %v10166_v62 }
 0x168   : > { %v10172_v0 = vpop.permute.xlu1 %1119 }
 0x169   : > { %1157 = vrot.lane.b32.xlu0 %v10044_v35, %s9869_s26  ;;  %1814 = vrot.lane.b32.xlu1 %v10170_v63, %s11910_s2  ;;  %v10227_v24 = vpack.c.bf16 %v10172_v0, %v10172_v0 }
 0x16a   : > { %v1275_v2 = vpop.permute.xlu0 %1274 }
 0x16b   : > { %v1281_v4 = vsel %vm1276_vm2, %v1275_v2, 0  ;;  %v1214_v2 = vpack.c.bf16 %v1182_v36, %v1182_v36 }
 0x16c   : > { %9119 = vmatpush3.bf16.xpose.msra.mxu1 %v1281_v4  ;;  %v1325_v6 = vpop.permute.xlu1 %1324 }
 0x16d   : > { %1863 = vrot.lane.b32.xlu0 %v10180_v3, %s11910_s2  ;;  %1159 = vrot.lane.b32.xlu1 %v10058_v41, %s9869_s26  ;;  %v1330_v7 = vsel %vm1276_vm2, %v1325_v6, 0 }
 0x16e   : > { %v10189_v10 = vpop.permute.xlu0 %1129  ;;  %9125 = vmatpush3.bf16.xpose.msra.mxu0 %v1330_v7  ;;  %9130 = vmatprep.subr.bf16.mxu1 %v11902_v1 }
 0x16f   : > { %9136 = vmatprep.subr.bf16.mxu0 %v11902_v1  ;;  %v10238_v28 = vpack.c.bf16 %v10189_v10, %v10189_v10 }
 0x170   : > { %v10198_v13 = vpop.permute.xlu1 %1131 }
 0x171   : > { %1161 = vrot.lane.b32.xlu0 %v10053_v40, %s9869_s26  ;;  %1912 = vrot.lane.b32.xlu1 %v10194_v11, %s11910_s2  ;;  %v10263_v37 = vpack.c.bf16 %v10198_v13, %v10198_v13 }
 0x172   : > { %v1374_v15 = vpop.permute.xlu0 %1373 }
 0x173   : > { %v1379_v17 = vsel %vm1276_vm2, %v1374_v15, 0  ;;  %9121 = vmatmul.mubr.msk.bf16.vlgmr.msra.gmra.mxu1 %vm1276_vm2, %v1209_v14  ;;  %v1184_v15 = vmul.f32 0.35355338, %v10073_v44 }
 0x174   : > { %9131 = vmatpush3.bf16.xpose.msra.mxu1 %v1379_v17  ;;  %v1423_v19 = vpop.permute.xlu1 %1422  ;;  %9132 = vmatprep.mubr.msk.bf16.mxu1 %vm9864_vm0, %v11902_v1 }
 0x175   : > { %v1428_v20 = vsel %vm1276_vm2, %v1423_v19, 0  ;;  %1961 = vrot.lane.b32.xlu0 %v10206_v16, %s11910_s2  ;;  %9127 = vmatmul.mubr.msk.bf16.vlgmr.msra.gmra.mxu0 %vm1276_vm2, %v1210_v18  ;;  %v1215_v18 = vpack.c.bf16 %v1183_v8, %v1183_v8  ;;  %v1188_v8 = vmul.f32 0.35355338, %v10148_v58 }
 0x176   : > { %1163 = vrot.lane.b32.xlu1 %v10067_v43, %s9869_s26  ;;  %v10219_v22 = vpop.permute.xlu0 %1133  ;;  %9137 = vmatpush3.bf16.xpose.msra.mxu0 %v1428_v20 }
 0x177   : > { %9142 = vmatprep.subr.bf16.mxu1 %v11902_v1  ;;  %9138 = vmatprep.mubr.msk.bf16.mxu0 %vm9864_vm0, %v11902_v1  ;;  %v10255_v35 = vpack.c.bf16 %v10219_v22, %v10219_v22  ;;  %v1220_v58 = vpack.c.bf16 %v1188_v8, %v1188_v8 }
 0x178   : > { %v10229_v25 = vpop.permute.xlu1 %1135  ;;  %9148 = vmatprep.subr.bf16.mxu0 %v11902_v1 }
 0x179   : > { %1165 = vrot.lane.b32.xlu0 %v10062_v42, %s9869_s26  ;;  %v10280_v4 = vpack.c.bf16 %v10229_v25, %v10229_v25 }
 0x17a   : > { %2010 = vrot.lane.b32.xlu1 %v10227_v24, %s11910_s2  ;;  %v1472_v27 = vpop.permute.xlu0 %1471 }
 0x17b   : > { %v1477_v29 = vsel %vm1276_vm2, %v1472_v27, 0  ;;  %9133 = vmatmul.mubr.msk.bf16.vlgmr.msra.gmra.mxu1 %vm1276_vm2, %v1211_v26 }
 0x17c   : > { %9143 = vmatpush3.bf16.xpose.msra.mxu1 %v1477_v29  ;;  %v1521_v31 = vpop.permute.xlu1 %1520  ;;  %9144 = vmatprep.mubr.msk.bf16.mxu1 %vm9864_vm0, %v11902_v1 }
 0x17d   : > { %v1526_v32 = vsel %vm1276_vm2, %v1521_v31, 0  ;;  %2059 = vrot.lane.b32.xlu0 %v10238_v28, %s11910_s2  ;;  %9139 = vmatmul.mubr.msk.bf16.vlgmr.msra.gmra.mxu0 %vm1276_vm2, %v1212_v30  ;;  %v1217_v31 = vpack.c.bf16 %v1185_v23, %v1185_v23 }
 0x17e   : > { %1167 = vrot.lane.b32.xlu1 %v10073_v44, %s9869_s26  ;;  %v10251_v34 = vpop.permute.xlu0 %1137  ;;  %9149 = vmatpush3.bf16.xpose.msra.mxu0 %v1526_v32  ;;  %v1216_v44 = vpack.c.bf16 %v1184_v15, %v1184_v15  ;;  %v1186_v32 = vmul.f32 0.35355338, %v10142_v56  ;;  %v1187_v56 = vmul.f32 0.35355338, %v10138_v55 }
 0x17f   : > { %9154 = vmatprep.subr.bf16.mxu1 %v11902_v1  ;;  %9150 = vmatprep.mubr.msk.bf16.mxu0 %vm9864_vm0, %v11902_v1  ;;  %v10274_v41 = vpack.c.bf16 %v10251_v34, %v10251_v34 }
 0x180   : > { %v10265_v38 = vpop.permute.xlu1 %1139  ;;  %9160 = vmatprep.subr.bf16.mxu0 %v11902_v1  ;;  %v1219_v55 = vpack.c.bf16 %v1187_v56, %v1187_v56 }
 0x181   : > { %2157 = vrot.lane.b32.xlu0 %v10255_v35, %s11910_s2  ;;  %v10303_v42 = vpack.c.bf16 %v10265_v38, %v10265_v38 }
 0x182   : > { %2108 = vrot.lane.b32.xlu1 %v10263_v37, %s11910_s2  ;;  %v1570_v40 = vpop.permute.xlu0 %1569 }
 0x183   : > { %v1575_v43 = vsel %vm1276_vm2, %v1570_v40, 0  ;;  %9145 = vmatmul.mubr.msk.bf16.vlgmr.msra.gmra.mxu1 %vm1276_vm2, %v1213_v39  ;;  %v1218_v40 = vpack.c.bf16 %v1186_v32, %v1186_v32  ;;  %v1190_v32 = vmul.f32 0.35355338, %v10160_v61 }
 0x184   : > { %9155 = vmatpush3.bf16.xpose.msra.mxu1 %v1575_v43  ;;  %v1619_v6 = vpop.permute.xlu1 %1618  ;;  %9156 = vmatprep.mubr.msk.bf16.mxu1 %vm9864_vm0, %v11902_v1 }
 0x185   : > { %v1624_v7 = vsel %vm1276_vm2, %v1619_v6, 0  ;;  %2255 = vrot.lane.b32.xlu0 %v10274_v41, %s11910_s2  ;;  %9151 = vmatmul.mubr.msk.bf16.vlgmr.msra.gmra.mxu0 %vm1276_vm2, %v1214_v2  ;;  %v1222_v61 = vpack.c.bf16 %v1190_v32, %v1190_v32 }
 0x186   : > { %2206 = vrot.lane.b32.xlu1 %v10280_v4, %s11910_s2  ;;  %v10291_v12 = vpop.permute.xlu0 %1141  ;;  %9161 = vmatpush3.bf16.xpose.msra.mxu0 %v1624_v7 }
 0x187   : > { %v10295_v14 = vpack.c.bf16 %v10291_v12, %v10291_v12  ;;  %9162 = vmatprep.mubr.msk.bf16.mxu0 %vm9864_vm0, %v11902_v1  ;;  %9166 = vmatprep.subr.bf16.mxu1 %v11902_v1 }
 0x188   : > { %9172 = vmatprep.subr.bf16.mxu0 %v11902_v1  ;;  %v10306_v17 = vpop.permute.xlu1 %1143 }
 0x189   : > { %2353 = vrot.lane.b32.xlu0 %v10295_v14, %s11910_s2  ;;  %v10315_v19 = vpack.c.bf16 %v10306_v17, %v10306_v17 }
 0x18a   : > { %2304 = vrot.lane.b32.xlu1 %v10303_v42, %s11910_s2 }
 0x18b   : > { %9157 = vmatmul.mubr.msk.bf16.vlgmr.msra.gmra.mxu1 %vm1276_vm2, %v1215_v18 }
 0x18c   : > { %9168 = vmatprep.mubr.msk.bf16.mxu1 %vm9864_vm0, %v11902_v1 }
 0x18d   : > { %9163 = vmatmul.mubr.msk.bf16.vlgmr.msra.gmra.mxu0 %vm1276_vm2, %v1216_v44 }
 0x18e   : > { %2402 = vrot.lane.b32.xlu1 %v10315_v19, %s11910_s2  ;;  %9174 = vmatprep.mubr.msk.bf16.mxu0 %vm9864_vm0, %v11902_v1 }
 0x1cf   : > { %v1668_v20 = vpop.permute.xlu0 %1667 }
 0x1d0   : > { %v1673_v21 = vsel %vm1276_vm2, %v1668_v20, 0 }
 0x1d1   : > { %9167 = vmatpush3.bf16.xpose.msra.mxu1 %v1673_v21  ;;  %v1189_v21 = vmul.f32 0.35355338, %v10154_v59 }
 0x1d2   : > { %9178 = vmatprep.subr.bf16.mxu1 %v11902_v1 }
 0x1d3   : > { %v10327_v26 = vpop.permute.xlu0 %1153  ;;  %v1717_v27 = vpop.permute.xlu1 %1716  ;;  %v1221_v59 = vpack.c.bf16 %v1189_v21, %v1189_v21 }
 0x1d4   : > { %v10331_v29 = vpack.c.bf16 %v10327_v26, %v10327_v26  ;;  %v1722_v30 = vsel %vm1276_vm2, %v1717_v27, 0 }
 0x1d5   : > { %9173 = vmatpush3.bf16.xpose.msra.mxu0 %v1722_v30 }
 0x1d6   : > { %2451 = vrot.lane.b32.xlu0 %v10331_v29, %s11910_s2  ;;  %9184 = vmatprep.subr.bf16.mxu0 %v11902_v1 }
 0x1d7   : > { %v1766_v53 = vpop.permute.xlu0 %1765  ;;  %v10338_v33 = vpop.permute.xlu1 %1155 }
 0x1d8   : > { %v1771_v36 = vsel %vm1276_vm2, %v1766_v53, 0  ;;  %v10343_v39 = vpack.c.bf16 %v10338_v33, %v10338_v33  ;;  %9169 = vmatmul.mubr.msk.bf16.vlgmr.msra.gmra.mxu1 %vm1276_vm2, %v1217_v31 }
 0x1d9   : > { %9179 = vmatpush3.bf16.xpose.msra.mxu1 %v1771_v36  ;;  %9180 = vmatprep.mubr.msk.bf16.mxu1 %vm9864_vm0, %v11902_v1 }
 0x1da   : > { %2500 = vrot.lane.b32.xlu1 %v10343_v39, %s11910_s2  ;;  %9190 = vmatprep.subr.bf16.mxu1 %v11902_v1 }
 0x1db   : > { %v10352_v43 = vpop.permute.xlu0 %1157  ;;  %v1815_v2 = vpop.permute.xlu1 %1814 }
 0x1dc   : > { %v10356_v6 = vpack.c.bf16 %v10352_v43, %v10352_v43  ;;  %v1820_v7 = vsel %vm1276_vm2, %v1815_v2, 0  ;;  %9175 = vmatmul.mubr.msk.bf16.vlgmr.msra.gmra.mxu0 %vm1276_vm2, %v1218_v40  ;;  %v1191_v2 = vmul.f32 0.35355338, %v10166_v62 }
 0x1dd   : > { %9185 = vmatpush3.bf16.xpose.msra.mxu0 %v1820_v7  ;;  %9186 = vmatprep.mubr.msk.bf16.mxu0 %vm9864_vm0, %v11902_v1 }
 0x1de   : > { %2549 = vrot.lane.b32.xlu0 %v10356_v6, %s11910_s2  ;;  %9196 = vmatprep.subr.bf16.mxu0 %v11902_v1  ;;  %v1223_v62 = vpack.c.bf16 %v1191_v2, %v1191_v2 }
 0x1df   : > { %v1864_v15 = vpop.permute.xlu0 %1863  ;;  %v10366_v18 = vpop.permute.xlu1 %1159 }
 0x1e0   : > { %v1869_v44 = vsel %vm1276_vm2, %v1864_v15, 0  ;;  %v10371_v20 = vpack.c.bf16 %v10366_v18, %v10366_v18  ;;  %9181 = vmatmul.mubr.msk.bf16.vlgmr.msra.gmra.mxu1 %vm1276_vm2, %v1219_v55 }
 0x1e1   : > { %9191 = vmatpush3.bf16.xpose.msra.mxu1 %v1869_v44  ;;  %9192 = vmatprep.mubr.msk.bf16.mxu1 %vm9864_vm0, %v11902_v1  ;;  %v1192_v44 = vmul.f32 0.35355338, %v10172_v0 }
 0x1e2   : > { %2598 = vrot.lane.b32.xlu1 %v10371_v20, %s11910_s2  ;;  %9202 = vmatprep.subr.bf16.mxu1 %v11902_v1 }
 0x1e3   : > { %v10380_v23 = vpop.permute.xlu0 %1161  ;;  %v1913_v27 = vpop.permute.xlu1 %1912  ;;  %v1224_v0 = vpack.c.bf16 %v1192_v44, %v1192_v44 }
 0x1e4   : > { %v10384_v30 = vpack.c.bf16 %v10380_v23, %v10380_v23  ;;  %v1918_v31 = vsel %vm1276_vm2, %v1913_v27, 0  ;;  %9187 = vmatmul.mubr.msk.bf16.vlgmr.msra.gmra.mxu0 %vm1276_vm2, %v1220_v58 }
 0x1e5   : > { %9197 = vmatpush3.bf16.xpose.msra.mxu0 %v1918_v31  ;;  %9198 = vmatprep.mubr.msk.bf16.mxu0 %vm9864_vm0, %v11902_v1 }
 0x1e6   : > { %2647 = vrot.lane.b32.xlu0 %v10384_v30, %s11910_s2  ;;  %9208 = vmatprep.subr.bf16.mxu0 %v11902_v1 }
 0x1e7   : > { %v1962_v53 = vpop.permute.xlu0 %1961 }
 0x1e8   : > { %v1967_v36 = vsel %vm1276_vm2, %v1962_v53, 0  ;;  %v10395_v56 = vpop.permute.xlu1 %1163  ;;  %9193 = vmatmul.mubr.msk.bf16.vlgmr.msra.gmra.mxu1 %vm1276_vm2, %v1221_v59  ;;  %v1193_v59 = vmul.f32 0.35355338, %v10189_v10  ;;  %v1194_v10 = vmul.f32 0.35355338, %v10198_v13 }
 0x1e9   : > { %v10400_v40 = vpack.c.bf16 %v10395_v56, %v10395_v56  ;;  %9203 = vmatpush3.bf16.xpose.msra.mxu1 %v1967_v36  ;;  %9204 = vmatprep.mubr.msk.bf16.mxu1 %vm9864_vm0, %v11902_v1 }
 0x1ea   : > { %9214 = vmatprep.subr.bf16.mxu1 %v11902_v1 }
 0x1eb   : > { %2696 = vrot.lane.b32.xlu1 %v10400_v40, %s11910_s2  ;;  %v10408_v7 = vpop.permute.xlu0 %1165 }
 0x1ec   : > { %v10412_v55 = vpack.c.bf16 %v10408_v7, %v10408_v7  ;;  %v2011_v8 = vpop.permute.xlu1 %2010  ;;  %9199 = vmatmul.mubr.msk.bf16.vlgmr.msra.gmra.mxu0 %vm1276_vm2, %v1222_v61  ;;  %v1225_v61 = vpack.c.bf16 %v1193_v59, %v1193_v59 }
 0x1ed   : > { %v2016_v15 = vsel %vm1276_vm2, %v2011_v8, 0  ;;  %9210 = vmatprep.mubr.msk.bf16.mxu0 %vm9864_vm0, %v11902_v1 }
 0x1ee   : > { %11921 = vst [vmem:[#allocation4_spill] sm:$0xff] %v10412_v55  ;;  %9209 = vmatpush3.bf16.xpose.msra.mxu0 %v2016_v15  ;;  %2745 = vrot.lane.b32.xlu0 %v10412_v55, %s11910_s2 }
 0x1ef   : > { %v2060_v58 = vpop.permute.xlu0 %2059  ;;  %9220 = vmatprep.subr.bf16.mxu0 %v11902_v1 }
 0x1f0   : > { %v2065_v21 = vsel %vm1276_vm2, %v2060_v58, 0  ;;  %v10423_v27 = vpop.permute.xlu1 %1167  ;;  %9205 = vmatmul.mubr.msk.bf16.vlgmr.msra.gmra.mxu1 %vm1276_vm2, %v1223_v62 }
 0x1f1   : > { %v10428_v31 = vpack.c.bf16 %v10423_v27, %v10423_v27  ;;  %9215 = vmatpush3.bf16.xpose.msra.mxu1 %v2065_v21  ;;  %9216 = vmatprep.mubr.msk.bf16.mxu1 %vm9864_vm0, %v11902_v1 }
 0x1f2   : > { %3277 = vrot.lane.b32.xlu0 %v10084_v46, %s9870_s27  ;;  %9226 = vmatprep.subr.bf16.mxu1 %v11902_v1 }
 0x1f3   : > { %11922 = vst [vmem:[#allocation5_spill] sm:$0xff] %v10428_v31  ;;  %2794 = vrot.lane.b32.xlu1 %v10428_v31, %s11910_s2  ;;  %v2158_v53 = vpop.permute.xlu0 %2157  ;;  %s905_s2 = scalar_lea.vmem %s11892_s11, %s11952_s22 }
 0x1f4   : > { %v2109_v32 = vpop.permute.xlu1 %2108  ;;  %v2163_v46 = vsel %vm1276_vm2, %v2158_v53, 0 }
 0x1f5   : > { %v2114_v36 = vsel %vm1276_vm2, %v2109_v32, 0  ;;  %9211 = vmatmul.mubr.msk.bf16.vlgmr.msra.gmra.mxu0 %vm1276_vm2, %v1224_v0 }
 0x1f6   : > { %9221 = vmatpush3.bf16.xpose.msra.mxu0 %v2114_v36  ;;  %3373 = vrot.lane.b32.xlu0 %v10098_v48, %s9870_s27  ;;  %v1195_v48 = vmul.f32 0.35355338, %v10219_v22  ;;  %v1196_v22 = vmul.f32 0.35355338, %v10229_v25 }
 0x1f7   : > { %3227 = vrot.lane.b32.xlu1 %v10078_v45, %s9870_s27  ;;  %9222 = vmatprep.mubr.msk.bf16.mxu0 %vm9864_vm0, %v11902_v1  ;;  %v1226_v45 = vpack.c.bf16 %v1194_v10, %v1194_v10  ;;  %v2256_v13 = vpop.permute.xlu0 %2255 }
 0x1f8   : > { %9217 = vmatmul.mubr.msk.bf16.vlgmr.msra.gmra.mxu1 %vm1276_vm2, %v1225_v61  ;;  %9232 = vmatprep.subr.bf16.mxu0 %v11902_v1  ;;  %v2207_v2 = vpop.permute.xlu1 %2206  ;;  %v1227_v15 = vpack.c.bf16 %v1195_v48, %v1195_v48 }
 0x1f9   : > { %9227 = vmatpush3.bf16.xpose.msra.mxu1 %v2163_v46  ;;  %9228 = vmatprep.mubr.msk.bf16.mxu1 %vm9864_vm0, %v11902_v1  ;;  %v2212_v8 = vsel %vm1276_vm2, %v2207_v2, 0 }
 0x1fa   : > { %3469 = vrot.lane.b32.xlu0 %v10112_v50, %s9870_s27  ;;  %9238 = vmatprep.subr.bf16.mxu1 %v11902_v1  ;;  %v1197_v50 = vmul.f32 0.35355338, %v10251_v34  ;;  %v1198_v34 = vmul.f32 0.35355338, %v10265_v38 }
 0x1fb   : > { %3325 = vrot.lane.b32.xlu1 %v10092_v47, %s9870_s27  ;;  %v2261_v47 = vsel %vm1276_vm2, %v2256_v13, 0  ;;  %v2354_v25 = vpop.permute.xlu0 %2353 }
 0x1fc   : > { %v1229_v44 = vpack.c.bf16 %v1197_v50, %v1197_v50 }
 0x1fd   : > { %9223 = vmatmul.mubr.msk.bf16.vlgmr.msra.gmra.mxu0 %vm1276_vm2, %v1226_v45 }
 0x1fe   : > { %9233 = vmatpush3.bf16.xpose.msra.mxu0 %v2212_v8  ;;  %3565 = vrot.lane.b32.xlu0 %v10126_v52, %s9870_s27  ;;  %v2305_v52 = vpop.permute.xlu1 %2304 }
 0x1ff   : > { %3421 = vrot.lane.b32.xlu1 %v10106_v49, %s9870_s27  ;;  %9234 = vmatprep.mubr.msk.bf16.mxu0 %vm9864_vm0, %v11902_v1  ;;  %v1228_v49 = vpack.c.bf16 %v1196_v22, %v1196_v22  ;;  %v2310_v62 = vsel %vm1276_vm2, %v2305_v52, 0 }
 0x200   : > { %9229 = vmatmul.mubr.msk.bf16.vlgmr.msra.gmra.mxu1 %vm1276_vm2, %v1227_v15  ;;  %9244 = vmatprep.subr.bf16.mxu0 %v11902_v1 }
 0x201   : > { %9239 = vmatpush3.bf16.xpose.msra.mxu1 %v2261_v47  ;;  %9240 = vmatprep.mubr.msk.bf16.mxu1 %vm9864_vm0, %v11902_v1  ;;  %v1201_v47 = vmul.f32 0.35355338, %v10327_v26 }
 0x202   : > { %3661 = vrot.lane.b32.xlu0 %v10146_v57, %s9870_s27  ;;  %9250 = vmatprep.subr.bf16.mxu1 %v11902_v1  ;;  %v1199_v57 = vmul.f32 0.35355338, %v10291_v12  ;;  %v1200_v12 = vmul.f32 0.35355338, %v10306_v17 }
 0x203   : > { %3517 = vrot.lane.b32.xlu1 %v10120_v51, %s9870_s27  ;;  %v2359_v51 = vsel %vm1276_vm2, %v2354_v25, 0  ;;  %v1233_v26 = vpack.c.bf16 %v1201_v47, %v1201_v47 }
 0x204   : > { %v1231_v58 = vpack.c.bf16 %v1199_v57, %v1199_v57  ;;  %v1202_v57 = vmul.f32 0.35355338, %v10338_v33 }
 0x205   : > { %9235 = vmatmul.mubr.msk.bf16.vlgmr.msra.gmra.mxu0 %vm1276_vm2, %v1228_v49 }
 0x206   : > { %9245 = vmatpush3.bf16.xpose.msra.mxu0 %v2310_v62  ;;  %3757 = vrot.lane.b32.xlu0 %v10170_v63, %s9870_s27  ;;  %v2403_v63 = vpop.permute.xlu1 %2402  ;;  %v1234_v33 = vpack.c.bf16 %v1202_v57, %v1202_v57 }
 0x207   : > { %3613 = vrot.lane.b32.xlu1 %v10136_v54, %s9870_s27  ;;  %9246 = vmatprep.mubr.msk.bf16.mxu0 %vm9864_vm0, %v11902_v1  ;;  %v1230_v54 = vpack.c.bf16 %v1198_v34, %v1198_v34  ;;  %v2408_v38 = vsel %vm1276_vm2, %v2403_v63, 0 }
 0x208   : > { %9241 = vmatmul.mubr.msk.bf16.vlgmr.msra.gmra.mxu1 %vm1276_vm2, %v1229_v44  ;;  %9256 = vmatprep.subr.bf16.mxu0 %v11902_v1 }
 0x209   : > { %9251 = vmatpush3.bf16.xpose.msra.mxu1 %v2359_v51  ;;  %9252 = vmatprep.mubr.msk.bf16.mxu1 %vm9864_vm0, %v11902_v1 }
 0x20a   : > { %3853 = vrot.lane.b32.xlu0 %v10194_v11, %s9870_s27  ;;  %9262 = vmatprep.subr.bf16.mxu1 %v11902_v1 }
 0x20b   : > { %3709 = vrot.lane.b32.xlu1 %v10158_v60, %s9870_s27  ;;  %v1232_v60 = vpack.c.bf16 %v1200_v12, %v1200_v12 }
 0x20d   : > { %9247 = vmatmul.mubr.msk.bf16.vlgmr.msra.gmra.mxu0 %vm1276_vm2, %v1230_v54 }
 0x20e   : > { %9257 = vmatpush3.bf16.xpose.msra.mxu0 %v2408_v38  ;;  %4045 = vrot.lane.b32.xlu0 %v10263_v37, %s9870_s27 }
 0x20f   : > { %3805 = vrot.lane.b32.xlu1 %v10180_v3, %s9870_s27  ;;  %9258 = vmatprep.mubr.msk.bf16.mxu0 %vm9864_vm0, %v11902_v1 }
 0x210   : > { %9253 = vmatmul.mubr.msk.bf16.vlgmr.msra.gmra.mxu1 %vm1276_vm2, %v1231_v58  ;;  %9268 = vmatprep.subr.bf16.mxu0 %v11902_v1 }
 0x211   : > { %9264 = vmatprep.mubr.msk.bf16.mxu1 %vm9864_vm0, %v11902_v1 }
 0x212   : > { %4141 = vrot.lane.b32.xlu0 %v10280_v4, %s9870_s27 }
 0x213   : > { %3901 = vrot.lane.b32.xlu1 %v10206_v16, %s9870_s27 }
 0x215   : > { %9259 = vmatmul.mubr.msk.bf16.vlgmr.msra.gmra.mxu0 %vm1276_vm2, %v1232_v60 }
 0x216   : > { %3949 = vrot.lane.b32.xlu0 %v10227_v24, %s9870_s27  ;;  %9270 = vmatprep.mubr.msk.bf16.mxu0 %vm9864_vm0, %v11902_v1 }
 0x217   : > { %3997 = vrot.lane.b32.xlu1 %v10238_v28, %s9870_s27 }
 0x21a   : > { %4237 = vrot.lane.b32.xlu0 %v10303_v42, %s9870_s27 }
 0x21b   : > { %4093 = vrot.lane.b32.xlu1 %v10255_v35, %s9870_s27 }
 0x21e   : > { %4333 = vrot.lane.b32.xlu0 %v10315_v19, %s9870_s27 }
 0x21f   : > { %4189 = vrot.lane.b32.xlu1 %v10274_v41, %s9870_s27 }
 0x223   : > { %4285 = vrot.lane.b32.xlu1 %v10295_v14, %s9870_s27 }
 0x227   : > { %4381 = vrot.lane.b32.xlu1 %v10331_v29, %s9870_s27 }
 0x233   : > { %v10534_v3 = vpop.f32.mrf.mxu1 }
 0x234   : > { %v2843_v41 = vsel %vm2842_vm3, %v10534_v3, -inf }
 0x235   : > { %v9122_v11 = vpop.f32.mrf.mxu1  ;;  %v10536_v16 = vpop.f32.mrf.mxu0 }
 0x236   : > { %v2846_v22 = vsel %vm2842_vm3, %v10536_v16, -inf }
 0x237   : > { %v1320_v24 = vpop.f32.mrf.mxu1  ;;  %v9128_v28 = vpop.f32.mrf.mxu0 }
 0x238   : > { %v1203_v24 = vmul.f32 0.35355338, %v10352_v43 }
 0x239   : > { %v9123_v35 = vpop.f32.mrf.mxu1  ;;  %v1369_v37 = vpop.f32.mrf.mxu0 }
 0x23b   : > { %v9129_v4 = vpop.f32.mrf.mxu0  ;;  %v10538_v42 = vpop.f32.mrf.mxu1 }
 0x23c   : > { %v2849_v21 = vsel %vm2842_vm3, %v10538_v42, -inf  ;;  %v1235_v4 = vpack.c.bf16 %v1203_v24, %v1203_v24 }
 0x23d   : > { %v10542_v14 = vpop.f32.mrf.mxu0  ;;  %2844 = vmax.xlane.f32.xlu0 %v2843_v41  ;;  %v9134_v17 = vpop.f32.mrf.mxu1  ;;  %v1204_v41 = vmul.f32 0.35355338, %v10366_v18 }
 0x23e   : > { %v2852_v36 = vsel %vm2842_vm3, %v10542_v14, -inf }
 0x23f   : > { %v1418_v19 = vpop.f32.mrf.mxu1  ;;  %v9140_v29 = vpop.f32.mrf.mxu0 }
 0x240   : > { %v1236_v19 = vpack.c.bf16 %v1204_v41, %v1204_v41  ;;  %v1205_v29 = vmul.f32 0.35355338, %v10380_v23  ;;  %v1207_v23 = vmul.f32 0.35355338, %v10408_v7 }
 0x241   : > { %v1467_v59 = vpop.f32.mrf.mxu0  ;;  %2850 = vmax.xlane.f32.xlu0 %v2849_v21  ;;  %v9135_v0 = vpop.f32.mrf.mxu1 }
 0x242   : > { %v1237_v59 = vpack.c.bf16 %v1205_v29, %v1205_v29  ;;  %v1206_v0 = vmul.f32 0.35355338, %v10395_v56  ;;  %v1239_v56 = vpack.c.bf16 %v1207_v23, %v1207_v23 }
 0x243   : > { %v9141_v32 = vpop.f32.mrf.mxu0  ;;  %v10546_v53 = vpop.f32.mrf.mxu1 }
 0x244   : > { %v2855_v34 = vsel %vm2842_vm3, %v10546_v53, -inf }
 0x245   : > { %v10550_v61 = vpop.f32.mrf.mxu0  ;;  %2853 = vmax.xlane.f32.xlu0 %v2852_v36  ;;  %v9146_v10 = vpop.f32.mrf.mxu1 }
 0x246   : > { %v2858_v45 = vsel %vm2842_vm3, %v10550_v61, -inf  ;;  %v1238_v10 = vpack.c.bf16 %v1206_v0, %v1206_v0 }
 0x247   : > { %v1516_v46 = vpop.f32.mrf.mxu1  ;;  %v9152_v48 = vpop.f32.mrf.mxu0 }
 0x248   : > { %v2452_v2 = vpop.permute.xlu0 %2451 }
 0x249   : > { %v2457_v13 = vsel %vm1276_vm2, %v2452_v2, 0  ;;  %v1565_v8 = vpop.f32.mrf.mxu0  ;;  %2859 = vmax.xlane.f32.xlu0 %v2858_v45  ;;  %v9147_v15 = vpop.f32.mrf.mxu1  ;;  %v1208_v2 = vmul.f32 0.35355338, %v10423_v27 }
 0x24a   : > { %9263 = vmatpush3.bf16.xpose.msra.mxu1 %v2457_v13 }
 0x24b   : > { %2847 = vmax.xlane.f32.xlu1 %v2846_v22  ;;  %v9153_v50 = vpop.f32.mrf.mxu0  ;;  %v10558_v52 = vpop.f32.mrf.mxu1  ;;  %9274 = vmatprep.subr.bf16.mxu1 %v11902_v1  ;;  %v1240_v8 = vpack.c.bf16 %v1208_v2, %v1208_v2 }
 0x24c   : > { %v2501_v49 = vpop.permute.xlu1 %2500  ;;  %v2861_v11 = vsel %vm2842_vm3, %v10558_v52, -inf }
 0x24d   : > { %v2506_v25 = vsel %vm1276_vm2, %v2501_v49, 0  ;;  %v9158_v62 = vpop.f32.mrf.mxu1  ;;  %v10562_v44 = vpop.f32.mrf.mxu0 }
 0x24e   : > { %9269 = vmatpush3.bf16.xpose.msra.mxu0 %v2506_v25  ;;  %v2864_v51 = vsel %vm2842_vm3, %v10562_v44, -inf }
 0x24f   : > { %2856 = vmax.xlane.f32.xlu1 %v2855_v34  ;;  %v9164_v63 = vpop.f32.mrf.mxu0  ;;  %2865 = vmax.xlane.f32.xlu0 %v2864_v51  ;;  %v1614_v54 = vpop.f32.mrf.mxu1 }
 0x250   : > { %v2550_v38 = vpop.permute.xlu0 %2549  ;;  %9280 = vmatprep.subr.bf16.mxu0 %v11902_v1 }
 0x251   : > { %v2555_v58 = vsel %vm1276_vm2, %v2550_v38, 0  ;;  %v9159_v12 = vpop.f32.mrf.mxu1  ;;  %v1663_v60 = vpop.f32.mrf.mxu0  ;;  %9265 = vmatmul.mubr.msk.bf16.vlgmr.msra.gmra.mxu1 %vm1276_vm2, %v1233_v26 }
 0x252   : > { %9275 = vmatpush3.bf16.xpose.msra.mxu1 %v2555_v58  ;;  %9276 = vmatprep.mubr.msk.bf16.mxu1 %vm9864_vm0, %v11902_v1 }
 0x253   : > { %2862 = vmax.xlane.f32.xlu1 %v2861_v11  ;;  %v9165_v28 = vpop.f32.mrf.mxu0  ;;  %9286 = vmatprep.subr.bf16.mxu1 %v11902_v1 }
 0x254   : > { %v2599_v35 = vpop.permute.xlu1 %2598 }
 0x255   : > { %v2604_v37 = vsel %vm1276_vm2, %v2599_v35, 0  ;;  %9271 = vmatmul.mubr.msk.bf16.vlgmr.msra.gmra.mxu0 %vm1276_vm2, %v1234_v33 }
 0x256   : > { %9281 = vmatpush3.bf16.xpose.msra.mxu0 %v2604_v37  ;;  %9282 = vmatprep.mubr.msk.bf16.mxu0 %vm9864_vm0, %v11902_v1 }
 0x257   : > { %9292 = vmatprep.subr.bf16.mxu0 %v11902_v1 }
 0x258   : > { %v2648_v17 = vpop.permute.xlu0 %2647 }
 0x259   : > { %v2653_v43 = vsel %vm1276_vm2, %v2648_v17, 0  ;;  %9277 = vmatmul.mubr.msk.bf16.vlgmr.msra.gmra.mxu1 %vm1276_vm2, %v1235_v4 }
 0x25a   : > { %9287 = vmatpush3.bf16.xpose.msra.mxu1 %v2653_v43  ;;  %9288 = vmatprep.mubr.msk.bf16.mxu1 %vm9864_vm0, %v11902_v1 }
 0x25b   : > { %9298 = vmatprep.subr.bf16.mxu1 %v11902_v1 }
 0x25d   : > { %v2697_v21 = vpop.permute.xlu1 %2696  ;;  %9283 = vmatmul.mubr.msk.bf16.vlgmr.msra.gmra.mxu0 %vm1276_vm2, %v1236_v19 }
 0x25e   : > { %v2702_v18 = vsel %vm1276_vm2, %v2697_v21, 0  ;;  %9294 = vmatprep.mubr.msk.bf16.mxu0 %vm9864_vm0, %v11902_v1 }
 0x25f   : > { %9293 = vmatpush3.bf16.xpose.msra.mxu0 %v2702_v18 }
 0x260   : > { %v2746_v32 = vpop.permute.xlu0 %2745  ;;  %9304 = vmatprep.subr.bf16.mxu0 %v11902_v1 }
 0x261   : > { %v2751_v36 = vsel %vm1276_vm2, %v2746_v32, 0  ;;  %9289 = vmatmul.mubr.msk.bf16.vlgmr.msra.gmra.mxu1 %vm1276_vm2, %v1237_v59 }
 0x262   : > { %9299 = vmatpush3.bf16.xpose.msra.mxu1 %v2751_v36  ;;  %9300 = vmatprep.mubr.msk.bf16.mxu1 %vm9864_vm0, %v11902_v1 }
 0x263   : > { %9310 = vmatprep.subr.bf16.mxu1 %v11902_v1 }
 0x264   : > { %v3278_v13 = vpop.permute.xlu0 %3277 }
 0x265   : > { %v2795_v46 = vpop.permute.xlu1 %2794  ;;  %v3283_v15 = vsel %vm3233_vm4, %v3278_v13, 0 }
 0x266   : > { %v2800_v48 = vsel %vm1276_vm2, %v2795_v46, 0  ;;  %9295 = vmatmul.mubr.msk.bf16.vlgmr.msra.gmra.mxu0 %vm1276_vm2, %v1238_v10 }
 0x267   : > { %9305 = vmatpush3.bf16.xpose.msra.mxu0 %v2800_v48  ;;  %9306 = vmatprep.mubr.msk.bf16.mxu0 %vm9864_vm0, %v11902_v1 }
 0x268   : > { %9316 = vmatprep.subr.bf16.mxu0 %v11902_v1  ;;  %v10620_v22 = vpop.permute.xlu0 %3373 }
 0x269   : > { %v3228_v45 = vpop.permute.xlu1 %3227  ;;  %9301 = vmatmul.mubr.msk.bf16.vlgmr.msra.gmra.mxu1 %vm1276_vm2, %v1239_v56 }
 0x26a   : > { %v3235_v7 = vsel %vm3233_vm4, %v3228_v45, 0  ;;  %9312 = vmatprep.mubr.msk.bf16.mxu1 %vm9864_vm0, %v11902_v1 }
 0x26b   : > { %9311 = vmatpush3.bf16.msra.mxu1 %v3235_v7 }
 0x26c   : > { %9322 = vmatprep.subr.bf16.mxu1 %v11902_v1  ;;  %v10626_v49 = vpop.permute.xlu0 %3469 }
 0x26d   : > { %v10618_v27 = vpop.permute.xlu1 %3325 }
 0x26e   : > { %9307 = vmatmul.mubr.msk.bf16.vlgmr.msra.gmra.mxu0 %vm1276_vm2, %v1240_v8 }
 0x26f   : > { %9317 = vmatpush3.bf16.msra.mxu0 %v3283_v15  ;;  %9318 = vmatprep.mubr.msk.bf16.mxu0 %vm9864_vm0, %v11902_v1 }
 0x270   : > { %9328 = vmatprep.subr.bf16.mxu0 %v11902_v1  ;;  %v10636_v38 = vpop.permute.xlu0 %3565 }
 0x271   : > { %v10622_v47 = vpop.permute.xlu1 %3421 }
 0x274   : > { %v10646_v37 = vpop.permute.xlu0 %3661 }
 0x275   : > { %v10632_v26 = vpop.permute.xlu1 %3517 }
 0x278   : > { %v10656_v0 = vpop.permute.xlu0 %3757 }
 0x279   : > { %v10642_v24 = vpop.permute.xlu1 %3613 }
 0x27c   : > { %v10666_v45 = vpop.permute.xlu0 %3853 }
 0x27d   : > { %v10652_v29 = vpop.permute.xlu1 %3709 }
 0x281   : > { %v10662_v48 = vpop.permute.xlu1 %3805 }
 0x298   : > { %v10624_v50 = vpop.f32.mrf.mxu1 }
 0x299   : > { %v2867_v25 = vsel %vm2842_vm3, %v10624_v50, -inf }
 0x29a   : > { %2868 = vmax.xlane.f32.xlu1 %v2867_v25  ;;  %v9170_v62 = vpop.f32.mrf.mxu1  ;;  %v10670_v25 = vpop.permute.xlu1 %3901 }
 0x29c   : > { %v1712_v34 = vpop.f32.mrf.mxu1  ;;  %v10630_v51 = vpop.f32.mrf.mxu0 }
 0x29d   : > { %v2870_v57 = vsel %vm2842_vm3, %v10630_v51, -inf }
 0x29e   : > { %v9176_v63 = vpop.f32.mrf.mxu0  ;;  %2871 = vmax.xlane.f32.xlu0 %v2870_v57  ;;  %v9171_v54 = vpop.f32.mrf.mxu1 }
 0x29f   : > { %v10676_v54 = vpop.permute.xlu0 %4045 }
 0x2a0   : > { %v1761_v58 = vpop.f32.mrf.mxu0  ;;  %v10638_v12 = vpop.f32.mrf.mxu1 }
 0x2a1   : > { %v2873_v60 = vsel %vm2842_vm3, %v10638_v12, -inf }
 0x2a2   : > { %v9177_v11 = vpop.f32.mrf.mxu0  ;;  %2874 = vmax.xlane.f32.xlu1 %v2873_v60  ;;  %v9182_v33 = vpop.f32.mrf.mxu1 }
 0x2a3   : > { %v10680_v33 = vpop.permute.xlu1 %3997 }
 0x2a4   : > { %v1810_v28 = vpop.f32.mrf.mxu1  ;;  %v10644_v35 = vpop.f32.mrf.mxu0 }
 0x2a5   : > { %v2876_v4 = vsel %vm2842_vm3, %v10644_v35, -inf }
 0x2a6   : > { %v9188_v41 = vpop.f32.mrf.mxu0  ;;  %2877 = vmax.xlane.f32.xlu0 %v2876_v4  ;;  %v9183_v17 = vpop.f32.mrf.mxu1 }
 0x2a7   : > { %v10684_v17 = vpop.permute.xlu0 %4141 }
 0x2a8   : > { %v1859_v43 = vpop.f32.mrf.mxu0  ;;  %v10650_v19 = vpop.f32.mrf.mxu1  ;;  %11923 = vst [vmem:[#allocation6_spill] sm:$0xff] %v10684_v17 }
 0x2a9   : > { %v2879_v21 = vsel %vm2842_vm3, %v10650_v19, -inf }
 0x2aa   : > { %v9189_v18 = vpop.f32.mrf.mxu0  ;;  %2880 = vmax.xlane.f32.xlu1 %v2879_v21  ;;  %v9194_v59 = vpop.f32.mrf.mxu1 }
 0x2ab   : > { %v10688_v59 = vpop.permute.xlu1 %4093 }
 0x2ac   : > { %v1908_v32 = vpop.f32.mrf.mxu1  ;;  %v10658_v36 = vpop.f32.mrf.mxu0  ;;  %11924 = vst [vmem:[#allocation7_spill] sm:$0xff] %v10688_v59 }
 0x2ad   : > { %v2882_v23 = vsel %vm2842_vm3, %v10658_v36, -inf }
 0x2ae   : > { %v9200_v10 = vpop.f32.mrf.mxu0  ;;  %2883 = vmax.xlane.f32.xlu0 %v2882_v23  ;;  %v9195_v46 = vpop.f32.mrf.mxu1 }
 0x2af   : > { %v10692_v46 = vpop.permute.xlu0 %3949 }
 0x2b0   : > { %v1957_v56 = vpop.f32.mrf.mxu0  ;;  %v10664_v2 = vpop.f32.mrf.mxu1 }
 0x2b1   : > { %v2885_v7 = vsel %vm2842_vm3, %v10664_v2, -inf }
 0x2b2   : > { %v9201_v13 = vpop.f32.mrf.mxu0  ;;  %2886 = vmax.xlane.f32.xlu1 %v2885_v7  ;;  %v9206_v8 = vpop.f32.mrf.mxu1 }
 0x2b3   : > { %v10696_v8 = vpop.permute.xlu1 %4189 }
 0x2b4   : > { %v2006_v15 = vpop.f32.mrf.mxu1  ;;  %11925 = vst [vmem:[#allocation8_spill] sm:$0xff] %v10696_v8 }
 0x2b5   : > { %v10672_v62 = vpop.f32.mrf.mxu0 }
 0x2b6   : > { %v2888_v34 = vsel %vm2842_vm3, %v10672_v62, -inf  ;;  %v9207_v57 = vpop.f32.mrf.mxu1 }
 0x2b7   : > { %v9212_v63 = vpop.f32.mrf.mxu0  ;;  %2889 = vmax.xlane.f32.xlu0 %v2888_v34 }
 0x2b8   : > { %v10678_v58 = vpop.f32.mrf.mxu1  ;;  %v10702_v63 = vpop.permute.xlu0 %4237 }
 0x2b9   : > { %v2055_v60 = vpop.f32.mrf.mxu0  ;;  %11926 = vst [vmem:[#allocation9_spill] sm:$0xff] %v10702_v63 }
 0x2ba   : > { %v9218_v11 = vpop.f32.mrf.mxu1 }
 0x2bb   : > { %v9213_v28 = vpop.f32.mrf.mxu0 }
 0x2bc   : > { %v2104_v4 = vpop.f32.mrf.mxu1  ;;  %v10704_v28 = vpop.permute.xlu1 %4285 }
 0x2bd   : > { %v10682_v41 = vpop.f32.mrf.mxu0  ;;  %11927 = vst [vmem:[#allocation10_spill] sm:$0xff] %v10704_v28 }
 0x2be   : > { %v9219_v43 = vpop.f32.mrf.mxu1 }
 0x2bf   : > { %v9224_v21 = vpop.f32.mrf.mxu0 }
 0x2c0   : > { %v10686_v18 = vpop.f32.mrf.mxu1 }
 0x2c1   : > { %v2153_v32 = vpop.f32.mrf.mxu0 }
 0x2c2   : > { %v9230_v23 = vpop.f32.mrf.mxu1  ;;  %v10710_v32 = vpop.permute.xlu0 %4333 }
 0x2c3   : > { %v9225_v10 = vpop.f32.mrf.mxu0  ;;  %4477 = vrot.lane.b32.xlu1 %v10356_v6, %s9870_s27  ;;  %11928 = vst [vmem:[#allocation11_spill] sm:$0xff] %v10710_v32 }
 0x2c4   : > { %v2202_v56 = vpop.f32.mrf.mxu1 }
 0x2c5   : > { %v10694_v7 = vpop.f32.mrf.mxu0  ;;  %v10714_v56 = vpop.permute.xlu1 %4381 }
 0x2c6   : > { %v9231_v13 = vpop.f32.mrf.mxu1  ;;  %11929 = vst [vmem:[#allocation12_spill] sm:$0xff] %v10714_v56 }
 0x2c7   : > { %v9236_v15 = vpop.f32.mrf.mxu0  ;;  %4525 = vrot.lane.b32.xlu1 %v10371_v20, %s9870_s27 }
 0x2c8   : > { %v10700_v34 = vpop.f32.mrf.mxu1  ;;  %v2845_v15 = vpop.xlane.xlu0 %2844 }
 0x2c9   : > { %v2251_v57 = vpop.f32.mrf.mxu0 }
 0x2ca   : > { %v9242_v60 = vpop.f32.mrf.mxu1 }
 0x2cb   : > { %v9237_v11 = vpop.f32.mrf.mxu0 }
 0x2cc   : > { %v2300_v6 = vpop.f32.mrf.mxu1 }
 0x2cd   : > { %v10706_v4 = vpop.f32.mrf.mxu0  ;;  %4429 = vrot.lane.b32.xlu0 %v10343_v39, %s9870_s27  ;;  %v2939_v39 = vsub.f32 %v10534_v3, %v2845_v15  ;;  %v2894_v3 = vsel %vm2842_vm3, %v10682_v41, -inf  ;;  %v2903_v15 = vsel %vm2842_vm3, %v10700_v34, -inf }
 0x2ce   : > { %v9243_v43 = vpop.f32.mrf.mxu1 }
 0x2cf   : > { %v9248_v21 = vpop.f32.mrf.mxu0  ;;  %v2851_v43 = vpop.xlane.xlu0 %2850  ;;  %v2971_v32 = vmul.f32 1.442695, %v2939_v39 }
 0x2d0   : > { %v10712_v20 = vpop.f32.mrf.mxu1 }
 0x2d1   : > { %v2349_v23 = vpop.f32.mrf.mxu0  ;;  %9711 = vpow2.f32 %v2971_v32 }
 0x2d2   : > { %v9254_v10 = vpop.f32.mrf.mxu1 }
 0x2d3   : > { %v9249_v13 = vpop.f32.mrf.mxu0  ;;  %v2854_v10 = vpop.xlane.xlu0 %2853 }
 0x2d4   : > { %v2398_v57 = vpop.f32.mrf.mxu1  ;;  %v2848_v1 = vpop.xlane.xlu1 %2847  ;;  %v2941_v13 = vsub.f32 %v10538_v42, %v2851_v43  ;;  %v2897_v42 = vsel %vm2842_vm3, %v10686_v18, -inf  ;;  %v2906_v43 = vsel %vm2842_vm3, %v10706_v4, -inf }
 0x2d5   : > { %v10716_v60 = vpop.f32.mrf.mxu0  ;;  %v2940_v21 = vsub.f32 %v10536_v16, %v2848_v1  ;;  %v2942_v57 = vsub.f32 %v10542_v14, %v2854_v10  ;;  %v2891_v1 = vsel %vm2842_vm3, %v10678_v58, -inf }
 0x2d6   : > { %v9255_v11 = vpop.f32.mrf.mxu1  ;;  %v2975_v56 = vmul.f32 1.442695, %v2941_v13 }
 0x2d7   : > { %v9260_v6 = vpop.f32.mrf.mxu0  ;;  %v2973_v23 = vmul.f32 1.442695, %v2940_v21  ;;  %v2977_v11 = vmul.f32 1.442695, %v2942_v57  ;;  %v2860_v28 = vpop.xlane.xlu0 %2859 }
 0x2d8   : > { %v2857_v6 = vpop.xlane.xlu1 %2856 }
 0x2d9   : > { %v2447_v5 = vpop.f32.mrf.mxu0  ;;  %9713 = vpow2.f32 %v2973_v23 }
 0x2da   : > { %9715 = vpow2.f32 %v2975_v56  ;;  %v2943_v5 = vsub.f32 %v10546_v53, %v2857_v6  ;;  %v2900_v53 = vsel %vm2842_vm3, %v10694_v7, -inf }
 0x2db   : > { %v9261_v9 = vpop.f32.mrf.mxu0  ;;  %9717 = vpow2.f32 %v2977_v11  ;;  %v2909_v11 = vsel %vm2842_vm3, %v10712_v20, -inf }
 0x2dc   : > { %v2944_v9 = vsub.f32 %v10550_v61, %v2860_v28  ;;  %v2979_v16 = vmul.f32 1.442695, %v2943_v5  ;;  %v2863_v10 = vpop.xlane.xlu1 %2862  ;;  %v2866_v5 = vpop.xlane.xlu0 %2865 }
 0x2dd   : > { %v2945_v57 = vsub.f32 %v10558_v52, %v2863_v10 }
 0x2de   : > { %v10730_v14 = vpop.eup %9711  ;;  %v2981_v32 = vmul.f32 1.442695, %v2944_v9  ;;  %9719 = vpow2.f32 %v2979_v16 }
 0x2df   : > { %v3035_v61 = vsel %vm2842_vm3, %v10730_v14, 0.0  ;;  %v2983_v16 = vmul.f32 1.442695, %v2945_v57 }
 0x2e0   : > { %9721 = vpow2.f32 %v2981_v32 }
 0x2e1   : > { %9723 = vpow2.f32 %v2983_v16 }
 0x2e6   : > { %v10734_v56 = vpop.eup %9713 }
 0x2e7   : > { %v3038_v28 = vsel %vm2842_vm3, %v10734_v56, 0.0  ;;  %v10742_v39 = vpop.eup %9715 }
 0x2e8   : > { %v10746_v21 = vpop.eup %9717  ;;  %v3041_v23 = vsel %vm2842_vm3, %v10742_v39, 0.0 }
 0x2e9   : > { %v3044_v13 = vsel %vm2842_vm3, %v10746_v21, 0.0 }
 0x2eb   : > { %2892 = vmax.xlane.f32.xlu1 %v2891_v1  ;;  %v10755_v6 = vpop.eup %9719  ;;  %v2912_v1 = vsel %vm2842_vm3, %v10716_v60, -inf }
 0x2ec   : > { %2895 = vmax.xlane.f32.xlu0 %v2894_v3  ;;  %v2946_v3 = vsub.f32 %v10562_v44, %v2866_v5 }
 0x2ed   : > { %v10759_v9 = vpop.eup %9721 }
 0x2ee   : > { %v3050_v52 = vsel %vm2842_vm3, %v10759_v9, 0.0  ;;  %v2985_v32 = vmul.f32 1.442695, %v2946_v3 }
 0x2ef   : > { %2898 = vmax.xlane.f32.xlu1 %v2897_v42  ;;  %v3047_v42 = vsel %vm2842_vm3, %v10755_v6, 0.0 }
 0x2f0   : > { %2901 = vmax.xlane.f32.xlu0 %v2900_v53  ;;  %9725 = vpow2.f32 %v2985_v32 }
 0x2f3   : > { %3036 = vadd.xlane.f32.xlu1 %v3035_v61 }
 0x2f4   : > { %3039 = vadd.xlane.f32.xlu0 %v3038_v28  ;;  %v10770_v28 = vpop.eup %9723 }
 0x2f5   : > { %v3053_v10 = vsel %vm2842_vm3, %v10770_v28, 0.0 }
 0x2f7   : > { %2904 = vmax.xlane.f32.xlu1 %v2903_v15 }
 0x2f8   : > { %2907 = vmax.xlane.f32.xlu0 %v2906_v43 }
 0x2fb   : > { %3042 = vadd.xlane.f32.xlu1 %v3041_v23 }
 0x2fc   : > { %3045 = vadd.xlane.f32.xlu0 %v3044_v13 }
 0x2fd   : > { %v10778_v13 = vpop.eup %9725 }
 0x2fe   : > { %v3056_v3 = vsel %vm2842_vm3, %v10778_v13, 0.0 }
 0x2ff   : > { %2910 = vmax.xlane.f32.xlu1 %v2909_v11 }
 0x300   : > { %2913 = vmax.xlane.f32.xlu0 %v2912_v1 }
 0x303   : > { %3048 = vadd.xlane.f32.xlu1 %v3047_v42 }
 0x304   : > { %3051 = vadd.xlane.f32.xlu0 %v3050_v52 }
 0x311   : > { %v10766_v53 = vpop.f32.mrf.mxu1 }
 0x312   : > { %v2915_v61 = vsel %vm2842_vm3, %v10766_v53, -inf }
 0x313   : > { %2916 = vmax.xlane.f32.xlu1 %v2915_v61  ;;  %v9266_v44 = vpop.f32.mrf.mxu1 }
 0x315   : > { %v2496_v15 = vpop.f32.mrf.mxu1  ;;  %v10772_v43 = vpop.f32.mrf.mxu0 }
 0x316   : > { %v2918_v23 = vsel %vm2842_vm3, %v10772_v43, -inf }
 0x317   : > { %v9272_v57 = vpop.f32.mrf.mxu0  ;;  %2919 = vmax.xlane.f32.xlu0 %v2918_v23  ;;  %3054 = vadd.xlane.f32.xlu1 %v3053_v10  ;;  %v9267_v11 = vpop.f32.mrf.mxu1 }
 0x319   : > { %v2545_v5 = vpop.f32.mrf.mxu0  ;;  %v10780_v1 = vpop.f32.mrf.mxu1 }
 0x31a   : > { %v2921_v16 = vsel %vm2842_vm3, %v10780_v1, -inf }
 0x31b   : > { %v9273_v42 = vpop.f32.mrf.mxu0  ;;  %3057 = vadd.xlane.f32.xlu0 %v3056_v3  ;;  %2922 = vmax.xlane.f32.xlu1 %v2921_v16  ;;  %v9278_v52 = vpop.f32.mrf.mxu1 }
 0x31d   : > { %v2594_v32 = vpop.f32.mrf.mxu1  ;;  %v10786_v61 = vpop.f32.mrf.mxu0 }
 0x31e   : > { %v2924_v44 = vsel %vm2842_vm3, %v10786_v61, -inf }
 0x31f   : > { %v9284_v15 = vpop.f32.mrf.mxu0  ;;  %2925 = vmax.xlane.f32.xlu0 %v2924_v44  ;;  %v9279_v23 = vpop.f32.mrf.mxu1 }
 0x321   : > { %v2643_v10 = vpop.f32.mrf.mxu0  ;;  %v10790_v57 = vpop.f32.mrf.mxu1 }
 0x322   : > { %v2927_v11 = vsel %vm2842_vm3, %v10790_v57, -inf }
 0x323   : > { %v9285_v5 = vpop.f32.mrf.mxu0  ;;  %v2869_v42 = vpop.xlane.xlu1 %2868  ;;  %2928 = vmax.xlane.f32.xlu1 %v2927_v11 }
 0x324   : > { %v2947_v3 = vsub.f32 %v10624_v50, %v2869_v42  ;;  %v9290_v16 = vpop.f32.mrf.mxu1 }
 0x326   : > { %v2987_v52 = vmul.f32 1.442695, %v2947_v3  ;;  %v2692_v32 = vpop.f32.mrf.mxu1  ;;  %v10795_v63 = vpop.f32.mrf.mxu0 }
 0x327   : > { %v2930_v44 = vsel %vm2842_vm3, %v10795_v63, -inf  ;;  %v2872_v15 = vpop.xlane.xlu0 %2871 }
 0x328   : > { %9727 = vpow2.f32 %v2987_v52  ;;  %v9296_v23 = vpop.f32.mrf.mxu0  ;;  %2931 = vmax.xlane.f32.xlu0 %v2930_v44  ;;  %v2948_v10 = vsub.f32 %v10630_v51, %v2872_v15  ;;  %v9291_v8 = vpop.f32.mrf.mxu1 }
 0x32a   : > { %v2989_v5 = vmul.f32 1.442695, %v2948_v10  ;;  %v2741_v17 = vpop.f32.mrf.mxu0  ;;  %v10800_v11 = vpop.f32.mrf.mxu1 }
 0x32b   : > { %v2875_v50 = vpop.xlane.xlu1 %2874  ;;  %v2933_v42 = vsel %vm2842_vm3, %v10800_v11, -inf }
 0x32c   : > { %9729 = vpow2.f32 %v2989_v5  ;;  %v9297_v3 = vpop.f32.mrf.mxu0  ;;  %v2949_v16 = vsub.f32 %v10638_v12, %v2875_v50  ;;  %2934 = vmax.xlane.f32.xlu1 %v2933_v42  ;;  %v9302_v32 = vpop.f32.mrf.mxu1 }
 0x32e   : > { %v2991_v52 = vmul.f32 1.442695, %v2949_v16  ;;  %v2790_v23 = vpop.f32.mrf.mxu1  ;;  %v10805_v44 = vpop.f32.mrf.mxu0 }
 0x32f   : > { %v2936_v51 = vsel %vm2842_vm3, %v10805_v44, -inf  ;;  %v2878_v17 = vpop.xlane.xlu0 %2877 }
 0x330   : > { %9731 = vpow2.f32 %v2991_v52  ;;  %v9308_v8 = vpop.f32.mrf.mxu0  ;;  %2937 = vmax.xlane.f32.xlu0 %v2936_v51  ;;  %v2950_v15 = vsub.f32 %v10644_v35, %v2878_v17  ;;  %v9303_v10 = vpop.f32.mrf.mxu1 }
 0x332   : > { %v2993_v5 = vmul.f32 1.442695, %v2950_v15  ;;  %v2839_v3 = vpop.f32.mrf.mxu0 }
 0x333   : > { %v2881_v59 = vpop.xlane.xlu1 %2880 }
 0x334   : > { %9733 = vpow2.f32 %v2993_v5  ;;  %v9309_v12 = vpop.f32.mrf.mxu0  ;;  %v2951_v50 = vsub.f32 %v10650_v19, %v2881_v59 }
 0x335   : > { %v10811_v42 = vpop.eup %9727 }
 0x336   : > { %v2995_v16 = vmul.f32 1.442695, %v2951_v50  ;;  %v3059_v32 = vsel %vm2842_vm3, %v10811_v42, 0.0 }
 0x337   : > { %v2884_v23 = vpop.xlane.xlu0 %2883  ;;  %3060 = vadd.xlane.f32.xlu1 %v3059_v32 }
 0x338   : > { %9735 = vpow2.f32 %v2995_v16  ;;  %v2952_v52 = vsub.f32 %v10658_v36, %v2884_v23 }
 0x339   : > { %v10816_v35 = vpop.eup %9729 }
 0x33a   : > { %v2997_v51 = vmul.f32 1.442695, %v2952_v52  ;;  %v3062_v17 = vsel %vm2842_vm3, %v10816_v35, 0.0 }
 0x33b   : > { %3063 = vadd.xlane.f32.xlu0 %v3062_v17  ;;  %v2887_v8 = vpop.xlane.xlu1 %2886 }
 0x33c   : > { %9737 = vpow2.f32 %v2997_v51  ;;  %v2953_v19 = vsub.f32 %v10664_v2, %v2887_v8 }
 0x33d   : > { %v10821_v59 = vpop.eup %9731 }
 0x33e   : > { %v2999_v15 = vmul.f32 1.442695, %v2953_v19  ;;  %v3065_v10 = vsel %vm2842_vm3, %v10821_v59, 0.0 }
 0x33f   : > { %3066 = vadd.xlane.f32.xlu1 %v3065_v10  ;;  %v10846_v8 = vpop.permute.xlu1 %4477 }
 0x340   : > { %9739 = vpow2.f32 %v2999_v15  ;;  %v2890_v36 = vpop.xlane.xlu0 %2889  ;;  %11930 = vst [vmem:[#allocation13_spill] sm:$0xff] %v10846_v8 }
 0x341   : > { %v10825_v5 = vpop.eup %9733  ;;  %v2954_v3 = vsub.f32 %v10672_v62, %v2890_v36 }
 0x342   : > { %v3068_v12 = vsel %vm2842_vm3, %v10825_v5, 0.0 }
 0x343   : > { %v3001_v50 = vmul.f32 1.442695, %v2954_v3  ;;  %3069 = vadd.xlane.f32.xlu0 %v3068_v12  ;;  %v10848_v19 = vpop.permute.xlu1 %4525 }
 0x344   : > { %11931 = vst [vmem:[#allocation14_spill] sm:$0xff] %v10848_v19  ;;  %v10850_v15 = vpop.permute.xlu0 %4429 }
 0x345   : > { %v10830_v16 = vpop.eup %9735  ;;  %9741 = vpow2.f32 %v3001_v50  ;;  %11932 = vst [vmem:[#allocation15_spill] sm:$0xff] %v10850_v15 }
 0x346   : > { %v3071_v2 = vsel %vm2842_vm3, %v10830_v16, 0.0 }
 0x347   : > { %3072 = vadd.xlane.f32.xlu1 %v3071_v2 }
 0x349   : > { %v10834_v32 = vpop.eup %9737 }
 0x34a   : > { %v3074_v23 = vsel %vm2842_vm3, %v10834_v32, 0.0 }
 0x34b   : > { %3075 = vadd.xlane.f32.xlu0 %v3074_v23 }
 0x34d   : > { %v10838_v52 = vpop.eup %9739 }
 0x34e   : > { %v3077_v62 = vsel %vm2842_vm3, %v10838_v52, 0.0 }
 0x34f   : > { %3078 = vadd.xlane.f32.xlu1 %v3077_v62 }
 0x352   : > { %v10842_v51 = vpop.eup %9741 }
 0x353   : > { %v3080_v17 = vsel %vm2842_vm3, %v10842_v51, 0.0 }
 0x354   : > { %3081 = vadd.xlane.f32.xlu0 %v3080_v17 }
 0x374   : > { %v2893_v10 = vpop.xlane.xlu1 %2892 }
 0x375   : > { %v2896_v36 = vpop.xlane.xlu0 %2895  ;;  %v2955_v3 = vsub.f32 %v10678_v58, %v2893_v10 }
 0x376   : > { %v2956_v12 = vsub.f32 %v10682_v41, %v2896_v36 }
 0x377   : > { %v3003_v50 = vmul.f32 1.442695, %v2955_v3 }
 0x378   : > { %v3005_v2 = vmul.f32 1.442695, %v2956_v12  ;;  %v2899_v23 = vpop.xlane.xlu1 %2898 }
 0x379   : > { %9743 = vpow2.f32 %v3003_v50  ;;  %v2902_v62 = vpop.xlane.xlu0 %2901  ;;  %v2957_v55 = vsub.f32 %v10686_v18, %v2899_v23 }
 0x37a   : > { %9745 = vpow2.f32 %v3005_v2  ;;  %v2958_v17 = vsub.f32 %v10694_v7, %v2902_v62 }
 0x37b   : > { %v3007_v8 = vmul.f32 1.442695, %v2957_v55 }
 0x37c   : > { %v3009_v19 = vmul.f32 1.442695, %v2958_v17  ;;  %v3037_v31 = vpop.xlane.xlu1 %3036 }
 0x37d   : > { %9747 = vpow2.f32 %v3007_v8  ;;  %v3040_v15 = vpop.xlane.xlu0 %3039 }
 0x37e   : > { %9749 = vpow2.f32 %v3009_v19 }
 0x37f   : > { %9751 = vrcp.f32 %v3040_v15 }
 0x380   : > { %9753 = vrcp.f32 %v3037_v31  ;;  %v2905_v58 = vpop.xlane.xlu1 %2904 }
 0x381   : > { %v2908_v41 = vpop.xlane.xlu0 %2907  ;;  %v2959_v10 = vsub.f32 %v10700_v34, %v2905_v58 }
 0x382   : > { %v2960_v36 = vsub.f32 %v10706_v4, %v2908_v41 }
 0x383   : > { %v3011_v3 = vmul.f32 1.442695, %v2959_v10 }
 0x384   : > { %v3013_v12 = vmul.f32 1.442695, %v2960_v36  ;;  %v3043_v18 = vpop.xlane.xlu1 %3042 }
 0x385   : > { %9755 = vpow2.f32 %v3011_v3  ;;  %v3046_v50 = vpop.xlane.xlu0 %3045 }
 0x386   : > { %v10858_v7 = vpop.eup %9743  ;;  %9757 = vpow2.f32 %v3013_v12 }
 0x387   : > { %v10860_v55 = vpop.eup %9745  ;;  %9759 = vrcp.f32 %v3046_v50  ;;  %v3083_v31 = vsel %vm2842_vm3, %v10858_v7, 0.0 }
 0x388   : > { %9761 = vrcp.f32 %v3043_v18  ;;  %v3086_v34 = vsel %vm2842_vm3, %v10860_v55, 0.0  ;;  %v2911_v8 = vpop.xlane.xlu1 %2910  ;;  %3084 = vadd.xlane.f32.xlu1 %v3083_v31  ;;  %v3379_v31 = vsel %vm3233_vm4, %v10620_v22, 0 }
 0x389   : > { %3087 = vadd.xlane.f32.xlu0 %v3086_v34  ;;  %v2914_v4 = vpop.xlane.xlu0 %2913  ;;  %v2961_v19 = vsub.f32 %v10712_v20, %v2911_v8  ;;  %v3331_v8 = vsel %vm3233_vm4, %v10618_v27, 0 }
 0x38a   : > { %v10867_v15 = vpop.eup %9747  ;;  %v2962_v2 = vsub.f32 %v10716_v60, %v2914_v4  ;;  %v11933_v4 = vmov 0.0  }
 0x38b   : > { %v10870_v23 = vpop.eup %9749  ;;  %v3015_v62 = vmul.f32 1.442695, %v2961_v19  ;;  %v3089_v17 = vsel %vm2842_vm3, %v10867_v15, 0.0 }
 0x38c   : > { %v9752_v58 = vpop.eup %9751  ;;  %v3017_v41 = vmul.f32 1.442695, %v2962_v2  ;;  %v3092_v10 = vsel %vm2842_vm3, %v10870_v23, 0.0  ;;  %3090 = vadd.xlane.f32.xlu1 %v3089_v17  ;;  %v3049_v3 = vpop.xlane.xlu1 %3048 }
 0x38d   : > { %v9754_v36 = vpop.eup %9753  ;;  %9763 = vpow2.f32 %v3015_v62  ;;  %3093 = vadd.xlane.f32.xlu0 %v3092_v10  ;;  %v3052_v20 = vpop.xlane.xlu0 %3051  ;;  %v3164_v12 = vmul.f32 %v9752_v58, %v10734_v56 }
 0x38e   : > { %9765 = vpow2.f32 %v3017_v41  ;;  %v3163_v60 = vmul.f32 %v9754_v36, %v10730_v14  ;;  %v3475_v41 = vsel %vm3233_vm4, %v10626_v49, 0  ;;  %v3427_v36 = vsel %vm3233_vm4, %v10622_v47, 0 }
 0x38f   : > { %9767 = vrcp.f32 %v3052_v20  ;;  %v3196_v18 = vpack.c.bf16 %v3164_v12, %v3164_v12 }
 0x390   : > { %9769 = vrcp.f32 %v3049_v3  ;;  %v3195_v50 = vpack.c.bf16 %v3163_v60, %v3163_v60 }
 0x391   : > { %9319 = vmatmul.mubr.msk.bf16.vlgmr.msra.gmra.mxu0 %vm3229_vm5, %v3196_v18 }
 0x392   : > { %v10881_v34 = vpop.eup %9755  ;;  %9313 = vmatmul.mubr.msk.bf16.vlgmr.msra.gmra.mxu1 %vm3229_vm5, %v3195_v50  ;;  %9329 = vmatpush3.bf16.msra.mxu0 %v3379_v31 }
 0x393   : > { %v10886_v56 = vpop.eup %9757  ;;  %9323 = vmatpush3.bf16.msra.mxu1 %v3331_v8  ;;  %v3095_v14 = vsel %vm2842_vm3, %v10881_v34, 0.0  ;;  %9324 = vmatprep.mubr.msk.bf16.mxu1 %vm9864_vm0, %v11933_v4 }
 0x394   : > { %v9760_v22 = vpop.eup %9759  ;;  %v3098_v19 = vsel %vm2842_vm3, %v10886_v56, 0.0  ;;  %3096 = vadd.xlane.f32.xlu1 %v3095_v14  ;;  %9330 = vmatprep.mubr.msk.bf16.mxu0 %vm9864_vm0, %v11933_v4 }
 0x395   : > { %v9762_v27 = vpop.eup %9761  ;;  %3099 = vadd.xlane.f32.xlu0 %v3098_v19  ;;  %9334 = vmatprep.subr.bf16.mxu1 %v11933_v4  ;;  %v3166_v2 = vmul.f32 %v9760_v22, %v10746_v21  ;;  %v3571_v19 = vsel %vm3233_vm4, %v10636_v38, 0 }
 0x396   : > { %9340 = vmatprep.subr.bf16.mxu0 %v11933_v4  ;;  %v3165_v62 = vmul.f32 %v9762_v27, %v10742_v39 }
 0x397   : > { %v3198_v17 = vpack.c.bf16 %v3166_v2, %v3166_v2 }
 0x398   : > { %v3197_v58 = vpack.c.bf16 %v3165_v62, %v3165_v62 }
 0x399   : > { %9331 = vmatmul.mubr.msk.bf16.vlgmr.msra.gmra.mxu0 %vm3229_vm5, %v3198_v17 }
 0x39a   : > { %v10903_v10 = vpop.eup %9763  ;;  %9325 = vmatmul.mubr.msk.bf16.vlgmr.msra.gmra.mxu1 %vm3229_vm5, %v3197_v58  ;;  %9341 = vmatpush3.bf16.msra.mxu0 %v3475_v41 }
 0x39b   : > { %v10908_v21 = vpop.eup %9765  ;;  %9335 = vmatpush3.bf16.msra.mxu1 %v3427_v36  ;;  %v3101_v39 = vsel %vm2842_vm3, %v10903_v10, 0.0  ;;  %9336 = vmatprep.mubr.msk.bf16.mxu1 %vm9864_vm0, %v11933_v4 }
 0x39c   : > { %v9768_v49 = vpop.eup %9767  ;;  %v3104_v20 = vsel %vm2842_vm3, %v10908_v21, 0.0  ;;  %v2917_v3 = vpop.xlane.xlu1 %2916  ;;  %3102 = vadd.xlane.f32.xlu1 %v3101_v39  ;;  %9342 = vmatprep.mubr.msk.bf16.mxu0 %vm9864_vm0, %v11933_v4 }
 0x39d   : > { %v9770_v47 = vpop.eup %9769  ;;  %3105 = vadd.xlane.f32.xlu0 %v3104_v20  ;;  %v2963_v12 = vsub.f32 %v10766_v53, %v2917_v3  ;;  %9346 = vmatprep.subr.bf16.mxu1 %v11933_v4  ;;  %v3168_v60 = vmul.f32 %v9768_v49, %v10759_v9  ;;  %v3523_v9 = vsel %vm3233_vm4, %v10632_v26, 0 }
 0x39e   : > { %9352 = vmatprep.subr.bf16.mxu0 %v11933_v4  ;;  %v3167_v18 = vmul.f32 %v9770_v47, %v10755_v6 }
 0x39f   : > { %v3019_v50 = vmul.f32 1.442695, %v2963_v12  ;;  %v3200_v31 = vpack.c.bf16 %v3168_v60, %v3168_v60 }
 0x3a0   : > { %v3199_v8 = vpack.c.bf16 %v3167_v18, %v3167_v18  ;;  %v2920_v14 = vpop.xlane.xlu0 %2919  ;;  %v3055_v22 = vpop.xlane.xlu1 %3054 }
 0x3a1   : > { %9771 = vpow2.f32 %v3019_v50  ;;  %9343 = vmatmul.mubr.msk.bf16.vlgmr.msra.gmra.mxu0 %vm3229_vm5, %v3200_v31  ;;  %v2964_v53 = vsub.f32 %v10772_v43, %v2920_v14 }
 0x3a2   : > { %9337 = vmatmul.mubr.msk.bf16.vlgmr.msra.gmra.mxu1 %vm3229_vm5, %v3199_v8  ;;  %9353 = vmatpush3.bf16.msra.mxu0 %v3571_v19  ;;  %9773 = vrcp.f32 %v3055_v22 }
 0x3a3   : > { %9347 = vmatpush3.bf16.msra.mxu1 %v3523_v9  ;;  %v3021_v6 = vmul.f32 1.442695, %v2964_v53  ;;  %9348 = vmatprep.mubr.msk.bf16.mxu1 %vm9864_vm0, %v11933_v4 }
 0x3a4   : > { %v3058_v27 = vpop.xlane.xlu0 %3057  ;;  %v2923_v2 = vpop.xlane.xlu1 %2922  ;;  %9358 = vmatprep.subr.bf16.mxu1 %v11933_v4  ;;  %9354 = vmatprep.mubr.msk.bf16.mxu0 %vm9864_vm0, %v11933_v4 }
 0x3a5   : > { %9775 = vpow2.f32 %v3021_v6  ;;  %v2965_v38 = vsub.f32 %v10780_v1, %v2923_v2  ;;  %9364 = vmatprep.subr.bf16.mxu0 %v11933_v4 }
 0x3a6   : > { %9777 = vrcp.f32 %v3058_v27 }
 0x3a7   : > { %v3023_v26 = vmul.f32 1.442695, %v2965_v38 }
 0x3a8   : > { %v2926_v43 = vpop.xlane.xlu0 %2925 }
 0x3a9   : > { %9779 = vpow2.f32 %v3023_v26  ;;  %v2966_v62 = vsub.f32 %v10786_v61, %v2926_v43  ;;  %v3619_v61 = vsel %vm3233_vm4, %v10642_v24, 0  ;;  %v3667_v24 = vsel %vm3233_vm4, %v10646_v37, 0 }
 0x3aa   : > { %v3715_v26 = vsel %vm3233_vm4, %v10652_v29, 0 }
 0x3ab   : > { %v3025_v17 = vmul.f32 1.442695, %v2966_v62 }
 0x3ac   : > { %v2929_v18 = vpop.xlane.xlu1 %2928 }
 0x3ad   : > { %9781 = vpow2.f32 %v3025_v17 }
 0x3ae   : > { %v10938_v58 = vpop.eup %9771 }
 0x3af   : > { %v9774_v41 = vpop.eup %9773  ;;  %v3107_v36 = vsel %vm2842_vm3, %v10938_v58, 0.0 }
 0x3b0   : > { %3108 = vadd.xlane.f32.xlu1 %v3107_v36  ;;  %v3169_v39 = vmul.f32 %v9774_v41, %v10770_v28 }
 0x3b1   : > { %v2932_v31 = vpop.xlane.xlu0 %2931 }
 0x3b2   : > { %v10943_v1 = vpop.eup %9775  ;;  %v3201_v49 = vpack.c.bf16 %v3169_v39, %v3169_v39 }
 0x3b3   : > { %v9778_v20 = vpop.eup %9777  ;;  %v3110_v3 = vsel %vm2842_vm3, %v10943_v1, 0.0 }
 0x3b4   : > { %9349 = vmatmul.mubr.msk.bf16.vlgmr.msra.gmra.mxu1 %vm3229_vm5, %v3201_v49  ;;  %3111 = vadd.xlane.f32.xlu0 %v3110_v3  ;;  %v3170_v47 = vmul.f32 %v9778_v20, %v10778_v13 }
 0x3b5   : > { %9359 = vmatpush3.bf16.msra.mxu1 %v3619_v61  ;;  %9360 = vmatprep.mubr.msk.bf16.mxu1 %vm9864_vm0, %v11933_v4  ;;  %v2935_v8 = vpop.xlane.xlu1 %2934 }
 0x3b6   : > { %v10953_v28 = vpop.eup %9779  ;;  %v3202_v12 = vpack.c.bf16 %v3170_v47, %v3170_v47  ;;  %9370 = vmatprep.subr.bf16.mxu1 %v11933_v4  ;;  %v2969_v36 = vsub.f32 %v10800_v11, %v2935_v8 }
 0x3b7   : > { %v3113_v60 = vsel %vm2842_vm3, %v10953_v28, 0.0 }
 0x3b8   : > { %9355 = vmatmul.mubr.msk.bf16.vlgmr.msra.gmra.mxu0 %vm3229_vm5, %v3202_v12  ;;  %3114 = vadd.xlane.f32.xlu1 %v3113_v60  ;;  %v3031_v11 = vmul.f32 1.442695, %v2969_v36 }
 0x3b9   : > { %9365 = vmatpush3.bf16.msra.mxu0 %v3667_v24  ;;  %9366 = vmatprep.mubr.msk.bf16.mxu0 %vm9864_vm0, %v11933_v4  ;;  %v2938_v14 = vpop.xlane.xlu0 %2937  ;;  %v3907_v24 = vsel %vm3233_vm4, %v10670_v25, 0 }
 0x3ba   : > { %v10963_v13 = vpop.eup %9781  ;;  %9376 = vmatprep.subr.bf16.mxu0 %v11933_v4  ;;  %v2970_v20 = vsub.f32 %v10805_v44, %v2938_v14  ;;  %v4003_v14 = vsel %vm3233_vm4, %v10680_v33, 0  ;;  %v4051_v33 = vsel %vm3233_vm4, %v10676_v54, 0 }
 0x3bb   : > { %v3116_v50 = vsel %vm2842_vm3, %v10963_v13, 0.0 }
 0x3bc   : > { %3117 = vadd.xlane.f32.xlu0 %v3116_v50  ;;  %v3033_v44 = vmul.f32 1.442695, %v2970_v20  ;;  %v3955_v50 = vsel %vm3233_vm4, %v10692_v46, 0 }
 0x3c0   : > { %v3061_v37 = vpop.xlane.xlu1 %3060 }
 0x3c1   : > { %9783 = vrcp.f32 %v3061_v37 }
 0x3c4   : > { %v3064_v22 = vpop.xlane.xlu0 %3063 }
 0x3c5   : > { %9785 = vrcp.f32 %v3064_v22 }
 0x3c8   : > { %v3067_v19 = vpop.xlane.xlu1 %3066 }
 0x3c9   : > { %9787 = vrcp.f32 %v3067_v19  ;;  %4621 = vrot.lane.b32.xlu1 %v10400_v40, %s9870_s27  ;;  %v2967_v40 = vsub.f32 %v10790_v57, %v2929_v18  ;;  %v2968_v57 = vsub.f32 %v10795_v63, %v2932_v31 }
 0x3cb   : > { %v3029_v63 = vmul.f32 1.442695, %v2968_v57 }
 0x3cc   : > { %v3070_v53 = vpop.xlane.xlu0 %3069 }
 0x3cd   : > { %9789 = vrcp.f32 %v3070_v53 }
 0x3ce   : > { %v9784_v9 = vpop.eup %9783 }
 0x3cf   : > { %v3171_v6 = vmul.f32 %v9784_v9, %v10811_v42 }
 0x3d0   : > { %v3073_v27 = vpop.xlane.xlu1 %3072 }
 0x3d1   : > { %9791 = vrcp.f32 %v3073_v27  ;;  %v3203_v2 = vpack.c.bf16 %v3171_v6, %v3171_v6  ;;  %v11934_v6 = vld [vmem:[#allocation5_spill] sm:$0xff]  ;;  %v11935_v27 = vld [vmem:[#allocation4_spill] sm:$0xff] }
 0x3d2   : > { %v9786_v38 = vpop.eup %9785  ;;  %4573 = vrot.lane.b32.xlu0 %v10384_v30, %s9870_s27  ;;  %v3763_v30 = vsel %vm3233_vm4, %v10656_v0, 0  ;;  %v3811_v0 = vsel %vm3233_vm4, %v10662_v48, 0  ;;  %v3859_v48 = vsel %vm3233_vm4, %v10666_v45, 0 }
 0x3d3   : > { %9361 = vmatmul.mubr.msk.bf16.vlgmr.msra.gmra.mxu1 %vm3229_vm5, %v3203_v2  ;;  %v3172_v43 = vmul.f32 %v9786_v38, %v10816_v35  ;;  %v3027_v35 = vmul.f32 1.442695, %v2967_v40 }
 0x3d4   : > { %9371 = vmatpush3.bf16.msra.mxu1 %v3715_v26  ;;  %v3076_v62 = vpop.xlane.xlu0 %3075  ;;  %9372 = vmatprep.mubr.msk.bf16.mxu1 %vm9864_vm0, %v11933_v4 }
 0x3d5   : > { %9793 = vrcp.f32 %v3076_v62  ;;  %v3204_v42 = vpack.c.bf16 %v3172_v43, %v3172_v43  ;;  %9382 = vmatprep.subr.bf16.mxu1 %v11933_v4 }
 0x3d6   : > { %v9788_v17 = vpop.eup %9787 }
 0x3d7   : > { %9367 = vmatmul.mubr.msk.bf16.vlgmr.msra.gmra.mxu0 %vm3229_vm5, %v3204_v42  ;;  %v3173_v29 = vmul.f32 %v9788_v17, %v10821_v59 }
 0x3d8   : > { %9377 = vmatpush3.bf16.msra.mxu0 %v3763_v30  ;;  %v3079_v41 = vpop.xlane.xlu1 %3078  ;;  %9378 = vmatprep.mubr.msk.bf16.mxu0 %vm9864_vm0, %v11933_v4 }
 0x3d9   : > { %9795 = vrcp.f32 %v3079_v41  ;;  %v3205_v39 = vpack.c.bf16 %v3173_v29, %v3173_v29  ;;  %9388 = vmatprep.subr.bf16.mxu0 %v11933_v4 }
 0x3da   : > { %v9790_v49 = vpop.eup %9789  ;;  %9797 = vpow2.f32 %v3027_v35 }
 0x3db   : > { %9373 = vmatmul.mubr.msk.bf16.vlgmr.msra.gmra.mxu1 %vm3229_vm5, %v3205_v39  ;;  %v3174_v59 = vmul.f32 %v9790_v49, %v10825_v5  ;;  %v11936_v39 = vld [vmem:[#allocation7_spill] sm:$0xff] }
 0x3dc   : > { %9383 = vmatpush3.bf16.msra.mxu1 %v3811_v0  ;;  %9384 = vmatprep.mubr.msk.bf16.mxu1 %vm9864_vm0, %v11933_v4  ;;  %v4099_v49 = vsel %vm3233_vm4, %v11936_v39, 0  ;;  %v11937_v0 = vld [vmem:[#allocation6_spill] sm:$0xff] }
 0x3dd   : > { %v3082_v3 = vpop.xlane.xlu0 %3081  ;;  %v3206_v61 = vpack.c.bf16 %v3174_v59, %v3174_v59  ;;  %9394 = vmatprep.subr.bf16.mxu1 %v11933_v4  ;;  %v4147_v59 = vsel %vm3233_vm4, %v11937_v0, 0 }
 0x3de   : > { %v9792_v47 = vpop.eup %9791  ;;  %9799 = vrcp.f32 %v3082_v3 }
 0x3df   : > { %9379 = vmatmul.mubr.msk.bf16.vlgmr.msra.gmra.mxu0 %vm3229_vm5, %v3206_v61  ;;  %v3175_v5 = vmul.f32 %v9792_v47, %v10830_v16  ;;  %9801 = vpow2.f32 %v3029_v63 }
 0x3e0   : > { %9389 = vmatpush3.bf16.msra.mxu0 %v3859_v48  ;;  %9390 = vmatprep.mubr.msk.bf16.mxu0 %vm9864_vm0, %v11933_v4  ;;  %9803 = vpow2.f32 %v3031_v11  ;;  %v11938_v48 = vld [vmem:[#allocation8_spill] sm:$0xff] }
 0x3e1   : > { %v3207_v12 = vpack.c.bf16 %v3175_v5, %v3175_v5  ;;  %9400 = vmatprep.subr.bf16.mxu0 %v11933_v4  ;;  %9805 = vpow2.f32 %v3033_v44  ;;  %v4195_v5 = vsel %vm3233_vm4, %v11938_v48, 0 }
 0x3e2   : > { %v9794_v60 = vpop.eup %9793 }
 0x3e3   : > { %9385 = vmatmul.mubr.msk.bf16.vlgmr.msra.gmra.mxu1 %vm3229_vm5, %v3207_v12  ;;  %v3176_v45 = vmul.f32 %v9794_v60, %v10834_v32 }
 0x3e4   : > { %9395 = vmatpush3.bf16.msra.mxu1 %v3907_v24  ;;  %9396 = vmatprep.mubr.msk.bf16.mxu1 %vm9864_vm0, %v11933_v4 }
 0x3e5   : > { %v3208_v16 = vpack.c.bf16 %v3176_v45, %v3176_v45  ;;  %9406 = vmatprep.subr.bf16.mxu1 %v11933_v4 }
 0x3e6   : > { %v9796_v18 = vpop.eup %9795 }
 0x3e7   : > { %9391 = vmatmul.mubr.msk.bf16.vlgmr.msra.gmra.mxu0 %vm3229_vm5, %v3208_v16  ;;  %v3177_v25 = vmul.f32 %v9796_v18, %v10838_v52  ;;  %v11018_v32 = vpop.eup %9797  ;;  %v11940_v18 = vld [vmem:[#allocation10_spill] sm:$0xff] }
 0x3e8   : > { %9401 = vmatpush3.bf16.msra.mxu0 %v3955_v50  ;;  %9402 = vmatprep.mubr.msk.bf16.mxu0 %vm9864_vm0, %v11933_v4  ;;  %v3119_v46 = vsel %vm2842_vm3, %v11018_v32, 0.0  ;;  %v4291_v50 = vsel %vm3233_vm4, %v11940_v18, 0 }
 0x3e9   : > { %v3209_v31 = vpack.c.bf16 %v3177_v25, %v3177_v25  ;;  %9412 = vmatprep.subr.bf16.mxu0 %v11933_v4  ;;  %v11941_v25 = vld [vmem:[#allocation11_spill] sm:$0xff] }
 0x3eb   : > { %v9800_v8 = vpop.eup %9799  ;;  %9397 = vmatmul.mubr.msk.bf16.vlgmr.msra.gmra.mxu1 %vm3229_vm5, %v3209_v31 }
 0x3ec   : > { %9407 = vmatpush3.bf16.msra.mxu1 %v4003_v14  ;;  %v3178_v52 = vmul.f32 %v9800_v8, %v10842_v51  ;;  %9408 = vmatprep.mubr.msk.bf16.mxu1 %vm9864_vm0, %v11933_v4  ;;  %v11029_v37 = vpop.eup %9801 }
 0x3ed   : > { %3120 = vadd.xlane.f32.xlu1 %v3119_v46  ;;  %9418 = vmatprep.subr.bf16.mxu1 %v11933_v4  ;;  %v11032_v22 = vpop.eup %9803  ;;  %v3122_v53 = vsel %vm2842_vm3, %v11029_v37, 0.0 }
 0x3ee   : > { %v3210_v19 = vpack.c.bf16 %v3178_v52, %v3178_v52  ;;  %v11039_v51 = vpop.eup %9805  ;;  %v3125_v9 = vsel %vm2842_vm3, %v11032_v22, 0.0  ;;  %v11942_v52 = vld [vmem:[#allocation12_spill] sm:$0xff] }
 0x3ef   : > { %v3128_v54 = vsel %vm2842_vm3, %v11039_v51, 0.0 }
 0x3f0   : > { %9403 = vmatmul.mubr.msk.bf16.vlgmr.msra.gmra.mxu0 %vm3229_vm5, %v3210_v19  ;;  %v11943_v19 = vld [vmem:[#allocation15_spill] sm:$0xff] }
 0x3f1   : > { %9413 = vmatpush3.bf16.msra.mxu0 %v4051_v33  ;;  %3123 = vadd.xlane.f32.xlu0 %v3122_v53  ;;  %v4435_v33 = vsel %vm3233_vm4, %v11943_v19, 0 }
 0x3f2   : > { %3126 = vadd.xlane.f32.xlu1 %v3125_v9  ;;  %9414 = vmatprep.mubr.msk.bf16.mxu0 %vm9864_vm0, %v11933_v4 }
 0x3f3   : > { %9424 = vmatprep.subr.bf16.mxu0 %v11933_v4 }
 0x3f5   : > { %3129 = vadd.xlane.f32.xlu0 %v3128_v54 }
 0x403   : > { %4717 = vrot.lane.b32.xlu1 %v11934_v6, %s9870_s27 }
 0x40b   : > { %4669 = vrot.lane.b32.xlu0 %v11935_v27, %s9870_s27 }
 0x411   : > { %v3085_v2 = vpop.xlane.xlu1 %3084 }
 0x412   : > { %v3088_v38 = vpop.xlane.xlu0 %3087  ;;  %9807 = vrcp.f32 %v3085_v2 }
 0x413   : > { %9809 = vrcp.f32 %v3088_v38  ;;  %v11944_v38 = vld [vmem:[#allocation13_spill] sm:$0xff] }
 0x415   : > { %v3091_v26 = vpop.xlane.xlu1 %3090 }
 0x416   : > { %v3094_v43 = vpop.xlane.xlu0 %3093  ;;  %9811 = vrcp.f32 %v3091_v26  ;;  %v4483_v26 = vsel %vm3233_vm4, %v11944_v38, 0 }
 0x417   : > { %9813 = vrcp.f32 %v3094_v43 }
 0x41d   : > { %v3097_v40 = vpop.xlane.xlu1 %3096 }
 0x41e   : > { %v3100_v62 = vpop.xlane.xlu0 %3099  ;;  %9815 = vrcp.f32 %v3097_v40 }
 0x41f   : > { %v9808_v42 = vpop.eup %9807  ;;  %9817 = vrcp.f32 %v3100_v62 }
 0x420   : > { %v9810_v17 = vpop.eup %9809  ;;  %v3179_v30 = vmul.f32 %v9808_v42, %v10858_v7  ;;  %v11945_v42 = vld [vmem:[#allocation14_spill] sm:$0xff] }
 0x421   : > { %v3180_v29 = vmul.f32 %v9810_v17, %v10860_v55 }
 0x422   : > { %v3211_v35 = vpack.c.bf16 %v3179_v30, %v3179_v30 }
 0x423   : > { %v9812_v57 = vpop.eup %9811  ;;  %v3212_v41 = vpack.c.bf16 %v3180_v29, %v3180_v29 }
 0x424   : > { %v9814_v36 = vpop.eup %9813  ;;  %9409 = vmatmul.mubr.msk.bf16.vlgmr.msra.gmra.mxu1 %vm3229_vm5, %v3211_v35  ;;  %v3181_v55 = vmul.f32 %v9812_v57, %v10867_v15  ;;  %v11939_v15 = vld [vmem:[#allocation9_spill] sm:$0xff] }
 0x425   : > { %9415 = vmatmul.mubr.msk.bf16.vlgmr.msra.gmra.mxu0 %vm3229_vm5, %v3212_v41  ;;  %9419 = vmatpush3.bf16.msra.mxu1 %v4099_v49  ;;  %v3103_v63 = vpop.xlane.xlu1 %3102  ;;  %v3182_v20 = vmul.f32 %v9814_v36, %v10870_v23  ;;  %v4243_v44 = vsel %vm3233_vm4, %v11939_v15, 0 }
 0x426   : > { %9425 = vmatpush3.bf16.msra.mxu0 %v4147_v59  ;;  %v3106_v7 = vpop.xlane.xlu0 %3105  ;;  %9819 = vrcp.f32 %v3103_v63  ;;  %9420 = vmatprep.mubr.msk.bf16.mxu1 %vm9864_vm0, %v11933_v4  ;;  %v3213_v11 = vpack.c.bf16 %v3181_v55, %v3181_v55 }
 0x427   : > { %9821 = vrcp.f32 %v3106_v7  ;;  %9426 = vmatprep.mubr.msk.bf16.mxu0 %vm9864_vm0, %v11933_v4  ;;  %9430 = vmatprep.subr.bf16.mxu1 %v11933_v4  ;;  %v3214_v61 = vpack.c.bf16 %v3182_v20, %v3182_v20 }
 0x428   : > { %9436 = vmatprep.subr.bf16.mxu0 %v11933_v4 }
 0x42b   : > { %v9816_v3 = vpop.eup %9815 }
 0x42c   : > { %v9818_v47 = vpop.eup %9817  ;;  %9421 = vmatmul.mubr.msk.bf16.vlgmr.msra.gmra.mxu1 %vm3229_vm5, %v3213_v11  ;;  %v3183_v23 = vmul.f32 %v9816_v3, %v10881_v34  ;;  %v4339_v34 = vsel %vm3233_vm4, %v11941_v25, 0 }
 0x42d   : > { %9427 = vmatmul.mubr.msk.bf16.vlgmr.msra.gmra.mxu0 %vm3229_vm5, %v3214_v61  ;;  %9431 = vmatpush3.bf16.msra.mxu1 %v4195_v5  ;;  %v3184_v12 = vmul.f32 %v9818_v47, %v10886_v56 }
 0x42e   : > { %9437 = vmatpush3.bf16.msra.mxu0 %v4243_v44  ;;  %9432 = vmatprep.mubr.msk.bf16.mxu1 %vm9864_vm0, %v11933_v4  ;;  %v3215_v60 = vpack.c.bf16 %v3183_v23, %v3183_v23 }
 0x42f   : > { %9438 = vmatprep.mubr.msk.bf16.mxu0 %vm9864_vm0, %v11933_v4  ;;  %9442 = vmatprep.subr.bf16.mxu1 %v11933_v4  ;;  %v3216_v45 = vpack.c.bf16 %v3184_v12, %v3184_v12 }
 0x430   : > { %9448 = vmatprep.subr.bf16.mxu0 %v11933_v4 }
 0x433   : > { %v9820_v24 = vpop.eup %9819 }
 0x434   : > { %v9822_v16 = vpop.eup %9821  ;;  %9433 = vmatmul.mubr.msk.bf16.vlgmr.msra.gmra.mxu1 %vm3229_vm5, %v3215_v60  ;;  %v3185_v31 = vmul.f32 %v9820_v24, %v10903_v10  ;;  %v4387_v10 = vsel %vm3233_vm4, %v11942_v52, 0 }
 0x435   : > { %9439 = vmatmul.mubr.msk.bf16.vlgmr.msra.gmra.mxu0 %vm3229_vm5, %v3216_v45  ;;  %9443 = vmatpush3.bf16.msra.mxu1 %v4291_v50  ;;  %v3186_v56 = vmul.f32 %v9822_v16, %v10908_v21 }
 0x436   : > { %9449 = vmatpush3.bf16.msra.mxu0 %v4339_v34  ;;  %9444 = vmatprep.mubr.msk.bf16.mxu1 %vm9864_vm0, %v11933_v4  ;;  %v3217_v14 = vpack.c.bf16 %v3185_v31, %v3185_v31 }
 0x437   : > { %9450 = vmatprep.mubr.msk.bf16.mxu0 %vm9864_vm0, %v11933_v4  ;;  %9454 = vmatprep.subr.bf16.mxu1 %v11933_v4  ;;  %v3218_v46 = vpack.c.bf16 %v3186_v56, %v3186_v56 }
 0x438   : > { %9460 = vmatprep.subr.bf16.mxu0 %v11933_v4 }
 0x439   : > { %v3109_v8 = vpop.xlane.xlu1 %3108 }
 0x43a   : > { %9823 = vrcp.f32 %v3109_v8 }
 0x43c   : > { %9445 = vmatmul.mubr.msk.bf16.vlgmr.msra.gmra.mxu1 %vm3229_vm5, %v3217_v14 }
 0x43d   : > { %9451 = vmatmul.mubr.msk.bf16.vlgmr.msra.gmra.mxu0 %vm3229_vm5, %v3218_v46  ;;  %9455 = vmatpush3.bf16.msra.mxu1 %v4387_v10  ;;  %v3112_v53 = vpop.xlane.xlu0 %3111 }
 0x43e   : > { %9461 = vmatpush3.bf16.msra.mxu0 %v4435_v33  ;;  %9825 = vrcp.f32 %v3112_v53  ;;  %9456 = vmatprep.mubr.msk.bf16.mxu1 %vm9864_vm0, %v11933_v4 }
 0x43f   : > { %9466 = vmatprep.subr.bf16.mxu1 %v11933_v4  ;;  %9462 = vmatprep.mubr.msk.bf16.mxu0 %vm9864_vm0, %v11933_v4 }
 0x440   : > { %9472 = vmatprep.subr.bf16.mxu0 %v11933_v4 }
 0x441   : > { %v3115_v21 = vpop.xlane.xlu1 %3114 }
 0x442   : > { %9827 = vrcp.f32 %v3115_v21 }
 0x445   : > { %v3118_v9 = vpop.xlane.xlu0 %3117  ;;  %v4622_v49 = vpop.permute.xlu1 %4621 }
 0x446   : > { %9829 = vrcp.f32 %v3118_v9  ;;  %v4627_v55 = vsel %vm3233_vm4, %v4622_v49, 0 }
 0x447   : > { %v9824_v54 = vpop.eup %9823 }
 0x448   : > { %v3187_v6 = vmul.f32 %v9824_v54, %v10938_v58  ;;  %v4531_v58 = vsel %vm3233_vm4, %v11945_v42, 0 }
 0x449   : > { %v4574_v30 = vpop.permute.xlu0 %4573 }
 0x44a   : > { %v3219_v27 = vpack.c.bf16 %v3187_v6, %v3187_v6 }
 0x44b   : > { %v9826_v2 = vpop.eup %9825 }
 0x44c   : > { %v3188_v43 = vmul.f32 %v9826_v2, %v10943_v1  ;;  %9457 = vmatmul.mubr.msk.bf16.vlgmr.msra.gmra.mxu1 %vm3229_vm5, %v3219_v27 }
 0x44d   : > { %9467 = vmatpush3.bf16.msra.mxu1 %v4483_v26  ;;  %9468 = vmatprep.mubr.msk.bf16.mxu1 %vm9864_vm0, %v11933_v4 }
 0x44e   : > { %v3220_v40 = vpack.c.bf16 %v3188_v43, %v3188_v43  ;;  %9478 = vmatprep.subr.bf16.mxu1 %v11933_v4 }
 0x44f   : > { %v9828_v62 = vpop.eup %9827 }
 0x450   : > { %v3189_v17 = vmul.f32 %v9828_v62, %v10953_v28  ;;  %9463 = vmatmul.mubr.msk.bf16.vlgmr.msra.gmra.mxu0 %vm3229_vm5, %v3220_v40  ;;  %v4579_v28 = vsel %vm3233_vm4, %v4574_v30, 0 }
 0x451   : > { %v11120_v29 = vpop.f32.mrf.mxu0  ;;  %9473 = vmatpush3.bf16.msra.mxu0 %v4531_v58  ;;  %9474 = vmatprep.mubr.msk.bf16.mxu0 %vm9864_vm0, %v11933_v4 }
 0x452   : > { %v3221_v1 = vpack.c.bf16 %v3189_v17, %v3189_v17  ;;  %v11124_v35 = vpop.f32.mrf.mxu1  ;;  %9484 = vmatprep.subr.bf16.mxu0 %v11933_v4 }
 0x453   : > { %v9830_v57 = vpop.eup %9829  ;;  %v9320_v41 = vpop.f32.mrf.mxu0 }
 0x454   : > { %v3190_v36 = vmul.f32 %v9830_v57, %v10963_v13  ;;  %v9314_v39 = vpop.f32.mrf.mxu1  ;;  %9469 = vmatmul.mubr.msk.bf16.vlgmr.msra.gmra.mxu1 %vm3229_vm5, %v3221_v1 }
 0x455   : > { %v3322_v0 = vpop.f32.mrf.mxu0  ;;  %9479 = vmatpush3.bf16.msra.mxu1 %v4579_v28  ;;  %9480 = vmatprep.mubr.msk.bf16.mxu1 %vm9864_vm0, %v11933_v4 }
 0x456   : > { %v3222_v59 = vpack.c.bf16 %v3190_v36, %v3190_v36  ;;  %v3274_v63 = vpop.f32.mrf.mxu1  ;;  %9490 = vmatprep.subr.bf16.mxu1 %v11933_v4 }
 0x457   : > { %v9321_v7 = vpop.f32.mrf.mxu0 }
 0x458   : > { %v9315_v20 = vpop.f32.mrf.mxu1  ;;  %9475 = vmatmul.mubr.msk.bf16.vlgmr.msra.gmra.mxu0 %vm3229_vm5, %v3222_v59 }
 0x459   : > { %v11135_v13 = vpop.f32.mrf.mxu0  ;;  %9485 = vmatpush3.bf16.msra.mxu0 %v4627_v55  ;;  %9486 = vmatprep.mubr.msk.bf16.mxu0 %vm9864_vm0, %v11933_v4 }
 0x45a   : > { %v11139_v11 = vpop.f32.mrf.mxu1  ;;  %9496 = vmatprep.subr.bf16.mxu0 %v11933_v4 }
 0x45b   : > { %v9332_v3 = vpop.f32.mrf.mxu0 }
 0x45c   : > { %v9326_v61 = vpop.f32.mrf.mxu1 }
 0x45d   : > { %v3418_v47 = vpop.f32.mrf.mxu0 }
 0x45e   : > { %v3370_v48 = vpop.f32.mrf.mxu1 }
 0x45f   : > { %v9333_v5 = vpop.f32.mrf.mxu0 }
 0x460   : > { %v9327_v15 = vpop.f32.mrf.mxu1 }
 0x461   : > { %v11142_v44 = vpop.f32.mrf.mxu0 }
 0x462   : > { %v11144_v23 = vpop.f32.mrf.mxu1 }
 0x463   : > { %v9344_v12 = vpop.f32.mrf.mxu0 }
 0x464   : > { %v9338_v60 = vpop.f32.mrf.mxu1 }
 0x465   : > { %v3514_v24 = vpop.f32.mrf.mxu0 }
 0x466   : > { %v3466_v45 = vpop.f32.mrf.mxu1 }
 0x467   : > { %v9345_v16 = vpop.f32.mrf.mxu0 }
 0x468   : > { %v9339_v18 = vpop.f32.mrf.mxu1 }
 0x474   : > { %v11146_v50 = vpop.f32.mrf.mxu1 }
 0x476   : > { %v9350_v25 = vpop.f32.mrf.mxu1  ;;  %v3121_v34 = vpop.xlane.xlu1 %3120 }
 0x477   : > { %9831 = vrcp.f32 %v3121_v34 }
 0x478   : > { %v3562_v31 = vpop.f32.mrf.mxu1  ;;  %v11148_v56 = vpop.f32.mrf.mxu0 }
 0x47a   : > { %v9351_v8 = vpop.f32.mrf.mxu1  ;;  %v9356_v14 = vpop.f32.mrf.mxu0 }
 0x47b   : > { %v3124_v46 = vpop.xlane.xlu0 %3123  ;;  %v3127_v52 = vpop.xlane.xlu1 %3126 }
 0x47c   : > { %9833 = vrcp.f32 %v3124_v46  ;;  %v3610_v10 = vpop.f32.mrf.mxu0 }
 0x47d   : > { %9835 = vrcp.f32 %v3127_v52 }
 0x47e   : > { %v9357_v19 = vpop.f32.mrf.mxu0 }
 0x47f   : > { %v3130_v33 = vpop.xlane.xlu0 %3129  ;;  %v4718_v43 = vpop.permute.xlu1 %4717 }
 0x480   : > { %9837 = vrcp.f32 %v3130_v33  ;;  %v4723_v62 = vsel %vm3233_vm4, %v4718_v43, 0 }
 0x483   : > { %v4670_v9 = vpop.permute.xlu0 %4669 }
 0x484   : > { %v9832_v53 = vpop.eup %9831  ;;  %v4675_v27 = vsel %vm3233_vm4, %v4670_v9, 0 }
 0x485   : > { %v3191_v21 = vmul.f32 %v9832_v53, %v11018_v32 }
 0x487   : > { %v3223_v54 = vpack.c.bf16 %v3191_v21, %v3191_v21 }
 0x489   : > { %v9834_v6 = vpop.eup %9833  ;;  %9481 = vmatmul.mubr.msk.bf16.vlgmr.msra.gmra.mxu1 %vm3229_vm5, %v3223_v54 }
 0x48a   : > { %v9836_v2 = vpop.eup %9835  ;;  %v3192_v38 = vmul.f32 %v9834_v6, %v11029_v37  ;;  %9491 = vmatpush3.bf16.msra.mxu1 %v4675_v27  ;;  %9492 = vmatprep.mubr.msk.bf16.mxu1 %vm9864_vm0, %v11933_v4 }
 0x48b   : > { %v3193_v26 = vmul.f32 %v9836_v2, %v11032_v22  ;;  %9502 = vmatprep.subr.bf16.mxu1 %v11933_v4 }
 0x48c   : > { %v3224_v32 = vpack.c.bf16 %v3192_v38, %v3192_v38 }
 0x48d   : > { %v9838_v40 = vpop.eup %9837  ;;  %v3225_v42 = vpack.c.bf16 %v3193_v26, %v3193_v26 }
 0x48e   : > { %9487 = vmatmul.mubr.msk.bf16.vlgmr.msra.gmra.mxu0 %vm3229_vm5, %v3224_v32  ;;  %v3194_v37 = vmul.f32 %v9838_v40, %v11039_v51 }
 0x48f   : > { %9497 = vmatpush3.bf16.msra.mxu0 %v4723_v62  ;;  %9498 = vmatprep.mubr.msk.bf16.mxu0 %vm9864_vm0, %v11933_v4 }
 0x490   : > { %v3226_v58 = vpack.c.bf16 %v3194_v37, %v3194_v37 }
 0x491   : > { %9493 = vmatmul.mubr.msk.bf16.vlgmr.msra.gmra.mxu1 %vm3229_vm5, %v3225_v42 }
 0x492   : > { %9506 = vmatprep.mubr.msk.bf16.mxu1 %vm9864_vm0, %v11933_v4 }
 0x493   : > { %v3655_v22 = vpop.f32.mrf.mxu1 }
 0x494   : > { %4773 = vrot.lane.b32.xlu0 %v3655_v22, %s9871_s28 }
 0x495   : > { %v9362_v17 = vpop.f32.mrf.mxu1 }
 0x496   : > { %9499 = vmatmul.mubr.msk.bf16.vlgmr.msra.gmra.mxu0 %vm3229_vm5, %v3226_v58 }
 0x497   : > { %v3658_v30 = vpop.f32.mrf.mxu1  ;;  %v3703_v1 = vpop.f32.mrf.mxu0 }
 0x498   : > { %4775 = vrot.lane.b32.xlu1 %v3703_v1, %s9871_s28 }
 0x499   : > { %v9363_v57 = vpop.f32.mrf.mxu1  ;;  %v9368_v41 = vpop.f32.mrf.mxu0 }
 0x49b   : > { %v3706_v51 = vpop.f32.mrf.mxu0  ;;  %v3751_v36 = vpop.f32.mrf.mxu1 }
 0x49c   : > { %4777 = vrot.lane.b32.xlu0 %v3751_v36, %s9871_s28 }
 0x49d   : > { %v9369_v28 = vpop.f32.mrf.mxu0  ;;  %v9374_v39 = vpop.f32.mrf.mxu1 }
 0x49f   : > { %v3754_v49 = vpop.f32.mrf.mxu1  ;;  %v3799_v0 = vpop.f32.mrf.mxu0 }
 0x4a0   : > { %4779 = vrot.lane.b32.xlu1 %v3799_v0, %s9871_s28 }
 0x4a1   : > { %v9375_v59 = vpop.f32.mrf.mxu1  ;;  %v9380_v63 = vpop.f32.mrf.mxu0 }
 0x4a3   : > { %v3802_v7 = vpop.f32.mrf.mxu0  ;;  %v3847_v55 = vpop.f32.mrf.mxu1 }
 0x4a4   : > { %4781 = vrot.lane.b32.xlu0 %v3847_v55, %s9871_s28 }
 0x4a5   : > { %v9381_v20 = vpop.f32.mrf.mxu0  ;;  %v9386_v3 = vpop.f32.mrf.mxu1 }
 0x4a7   : > { %v3850_v61 = vpop.f32.mrf.mxu1  ;;  %v3895_v47 = vpop.f32.mrf.mxu0 }
 0x4a8   : > { %4783 = vrot.lane.b32.xlu1 %v3895_v47, %s9871_s28 }
 0x4a9   : > { %v9387_v48 = vpop.f32.mrf.mxu1  ;;  %v9392_v5 = vpop.f32.mrf.mxu0 }
 0x4ab   : > { %v3898_v15 = vpop.f32.mrf.mxu0  ;;  %v3943_v12 = vpop.f32.mrf.mxu1 }
 0x4ac   : > { %4785 = vrot.lane.b32.xlu0 %v3943_v12, %s9871_s28 }
 0x4ad   : > { %v9393_v60 = vpop.f32.mrf.mxu0  ;;  %v9398_v24 = vpop.f32.mrf.mxu1 }
 0x4af   : > { %v3946_v45 = vpop.f32.mrf.mxu1 }
 0x4b0   : > { %v3991_v16 = vpop.f32.mrf.mxu0 }
 0x4b1   : > { %4787 = vrot.lane.b32.xlu1 %v3991_v16, %s9871_s28  ;;  %v9399_v18 = vpop.f32.mrf.mxu1  ;;  %s882_s28 = scalar_lea.vmem %s11886_s5, %s11952_s22 }
 0x4b2   : > { %v9404_v25 = vpop.f32.mrf.mxu0  ;;  %v9564_v18 = vld [vmem:[%s879_s24 + $0x8] sm:$0xff]  }
 0x4b3   : > { %9503 = vmatpush3.bf16.msra.mxu1 %v9564_v18 }
 0x4b4   : > { %v3994_v34 = vpop.f32.mrf.mxu0  ;;  %9504 = vmatprep.subr.bf16.mxu1 %v11933_v4 }
 0x4b6   : > { %v9405_v31 = vpop.f32.mrf.mxu0 }
 0x4e4   : > { %v4039_v8 = vpop.f32.mrf.mxu1 }
 0x4e5   : > { %v4087_v14 = vpop.f32.mrf.mxu0  ;;  %4805 = vrot.lane.b32.xlu0 %v4039_v8, %s9872_s4 }
 0x4e6   : > { %4807 = vrot.lane.b32.xlu1 %v4087_v14, %s9872_s4  ;;  %v9410_v46 = vpop.f32.mrf.mxu1  ;;  %v9565_v14 = vld [vmem:[%s879_s24] sm:$0xff]   ;;  %s926_s24 = scalar_lea.vmem %s11898_s17, %s11952_s22 }
 0x4e7   : > { %v9416_v52 = vpop.f32.mrf.mxu0  ;;  %9505 = vmatpush3.bf16.msra.mxu1 %v9565_v14 }
 0x4e8   : > { %v4042_v10 = vpop.f32.mrf.mxu1 }
 0x4e9   : > { %v4090_v19 = vpop.f32.mrf.mxu0 }
 0x4ea   : > { %v9411_v33 = vpop.f32.mrf.mxu1 }
 0x4eb   : > { %v9417_v53 = vpop.f32.mrf.mxu0 }
 0x4ec   : > { %v4135_v21 = vpop.f32.mrf.mxu1 }
 0x4ed   : > { %v4183_v9 = vpop.f32.mrf.mxu0  ;;  %4809 = vrot.lane.b32.xlu0 %v4135_v21, %s9872_s4 }
 0x4ee   : > { %4811 = vrot.lane.b32.xlu1 %v4183_v9, %s9872_s4  ;;  %v9422_v54 = vpop.f32.mrf.mxu1 }
 0x4ef   : > { %v9428_v6 = vpop.f32.mrf.mxu0 }
 0x4f0   : > { %v4138_v27 = vpop.f32.mrf.mxu1 }
 0x4f1   : > { %v4186_v2 = vpop.f32.mrf.mxu0 }
 0x4f2   : > { %v9423_v38 = vpop.f32.mrf.mxu1 }
 0x4f3   : > { %v9429_v26 = vpop.f32.mrf.mxu0 }
 0x4f4   : > { %v4231_v43 = vpop.f32.mrf.mxu1 }
 0x4f5   : > { %v4279_v32 = vpop.f32.mrf.mxu0  ;;  %4813 = vrot.lane.b32.xlu0 %v4231_v43, %s9872_s4 }
 0x4f6   : > { %4815 = vrot.lane.b32.xlu1 %v4279_v32, %s9872_s4  ;;  %v9434_v40 = vpop.f32.mrf.mxu1 }
 0x4f7   : > { %v9440_v62 = vpop.f32.mrf.mxu0 }
 0x4f8   : > { %v4234_v42 = vpop.f32.mrf.mxu1 }
 0x4f9   : > { %v4282_v37 = vpop.f32.mrf.mxu0 }
 0x4fa   : > { %v9435_v22 = vpop.f32.mrf.mxu1 }
 0x4fb   : > { %v9441_v58 = vpop.f32.mrf.mxu0 }
 0x4fc   : > { %v4327_v17 = vpop.f32.mrf.mxu1 }
 0x4fd   : > { %v4375_v30 = vpop.f32.mrf.mxu0  ;;  %4817 = vrot.lane.b32.xlu0 %v4327_v17, %s9872_s4 }
 0x4fe   : > { %4819 = vrot.lane.b32.xlu1 %v4375_v30, %s9872_s4  ;;  %v9446_v1 = vpop.f32.mrf.mxu1  ;;  %s923_s4 = scalar_lea.vmem %s11897_s16, %s11697_s23 }
 0x4ff   : > { %v9452_v57 = vpop.f32.mrf.mxu0 }
 0x500   : > { %v4330_v41 = vpop.f32.mrf.mxu1 }
 0x501   : > { %v4378_v51 = vpop.f32.mrf.mxu0 }
 0x502   : > { %v9447_v36 = vpop.f32.mrf.mxu1 }
 0x503   : > { %v9453_v28 = vpop.f32.mrf.mxu0 }
 0x506   : > { %v4774_v6 = vpop.permute.xlu0 %4773 }
 0x50a   : > { %v4776_v27 = vpop.permute.xlu1 %4775 }
 0x50c   : > { %v4423_v39 = vpop.f32.mrf.mxu1 }
 0x50d   : > { %4837 = vrot.lane.b32.xlu0 %v4423_v39, %s9873_s29 }
 0x50e   : > { %v9458_v49 = vpop.f32.mrf.mxu1  ;;  %v4778_v2 = vpop.permute.xlu0 %4777 }
 0x510   : > { %v4426_v0 = vpop.f32.mrf.mxu1  ;;  %v4471_v59 = vpop.f32.mrf.mxu0 }
 0x511   : > { %4839 = vrot.lane.b32.xlu1 %v4471_v59, %s9873_s29  ;;  %v4862_v59 = vsel %vm1276_vm2, %v11120_v29, %v4776_v27 }
 0x512   : > { %v9464_v63 = vpop.f32.mrf.mxu0  ;;  %v9459_v7 = vpop.f32.mrf.mxu1 }
 0x513   : > { %v4780_v38 = vpop.permute.xlu1 %4779  ;;  %v4863_v63 = vsel %vm1276_vm2, %v11139_v11, %v4778_v2 }
 0x514   : > { %v4474_v55 = vpop.f32.mrf.mxu0  ;;  %v4519_v20 = vpop.f32.mrf.mxu1  ;;  %v4864_v28 = vsel %vm1276_vm2, %v11135_v13, %v4780_v38  ;;  %v4861_v13 = vsel %vm1276_vm2, %v11124_v35, %v4774_v6 }
 0x515   : > { %4841 = vrot.lane.b32.xlu0 %v4519_v20, %s9873_s29 }
 0x516   : > { %v9465_v3 = vpop.f32.mrf.mxu0  ;;  %v9470_v61 = vpop.f32.mrf.mxu1 }
 0x517   : > { %v4782_v26 = vpop.permute.xlu0 %4781 }
 0x518   : > { %v4567_v47 = vpop.f32.mrf.mxu0  ;;  %v4522_v48 = vpop.f32.mrf.mxu1  ;;  %v4865_v29 = vsel %vm1276_vm2, %v11144_v23, %v4782_v26 }
 0x519   : > { %4843 = vrot.lane.b32.xlu1 %v4567_v47, %s9873_s29 }
 0x51a   : > { %v9476_v5 = vpop.f32.mrf.mxu0  ;;  %v9471_v15 = vpop.f32.mrf.mxu1 }
 0x51b   : > { %v4784_v43 = vpop.permute.xlu1 %4783 }
 0x51c   : > { %v4570_v12 = vpop.f32.mrf.mxu0  ;;  %v4866_v7 = vsel %vm1276_vm2, %v11142_v44, %v4784_v43 }
 0x51e   : > { %v9477_v60 = vpop.f32.mrf.mxu0  ;;  %v4786_v32 = vpop.permute.xlu0 %4785 }
 0x51f   : > { %v4867_v12 = vsel %vm1276_vm2, %v11146_v50, %v4786_v32  ;;  %v11947_v50 = vld [vmem:[#allocation3_spill] sm:$0xff] }
 0x523   : > { %v4788_v40 = vpop.permute.xlu1 %4787 }
 0x524   : > { %v4868_v60 = vsel %vm1276_vm2, %v11148_v56, %v4788_v40 }
 0x549   : > { %v4615_v24 = vpop.f32.mrf.mxu1 }
 0x54a   : > { %4845 = vrot.lane.b32.xlu0 %v4615_v24, %s9873_s29 }
 0x54b   : > { %v9482_v45 = vpop.f32.mrf.mxu1 }
 0x54d   : > { %v4618_v16 = vpop.f32.mrf.mxu1 }
 0x54e   : > { %v4663_v25 = vpop.f32.mrf.mxu0 }
 0x54f   : > { %4847 = vrot.lane.b32.xlu1 %v4663_v25, %s9873_s29  ;;  %v9483_v34 = vpop.f32.mrf.mxu1 }
 0x550   : > { %v9488_v31 = vpop.f32.mrf.mxu0 }
 0x551   : > { %v4711_v8 = vpop.f32.mrf.mxu1 }
 0x552   : > { %v4666_v46 = vpop.f32.mrf.mxu0  ;;  %4849 = vrot.lane.b32.xlu0 %v4711_v8, %s9873_s29 }
 0x553   : > { %v9494_v52 = vpop.f32.mrf.mxu1 }
 0x554   : > { %v9489_v10 = vpop.f32.mrf.mxu0 }
 0x555   : > { %v4714_v19 = vpop.f32.mrf.mxu1 }
 0x556   : > { %v4759_v33 = vpop.f32.mrf.mxu0 }
 0x557   : > { %4851 = vrot.lane.b32.xlu1 %v4759_v33, %s9873_s29  ;;  %v9495_v53 = vpop.f32.mrf.mxu1  ;;  %v4806_v42 = vpop.permute.xlu0 %4805 }
 0x558   : > { %v9500_v21 = vpop.f32.mrf.mxu0  ;;  %v4808_v62 = vpop.permute.xlu1 %4807  ;;  %v4870_v48 = vsel %vm4869_vm6, %v4861_v13, %v4806_v42  ;;  %v9847_v42 = vld [vmem:[%s10010_s3] sm:$0x3]  ;;  %v9853_v13 = vld [vmem:[%s10010_s3 + $0xc] sm:$0x3] }
 0x559   : > { %v4871_v20 = vsel %vm4869_vm6, %v4862_v59, %v4808_v62  ;;  %v8566_v21 = vld [vmem:[%s882_s28] ss:$0 sm:$0xff]  ;;  %v9851_v59 = vld [vmem:[%s10010_s3 + $0x8] sm:$0x3]  ;;  %s911_s28 = scalar_lea.vmem %s11894_s13, %s11952_s22 }
 0x55a   : > { %v4762_v9 = vpop.f32.mrf.mxu0 }
 0x55c   : > { %v9501_v54 = vpop.f32.mrf.mxu0 }
 0x55f   : > { %v4810_v22 = vpop.permute.xlu0 %4809 }
 0x560   : > { %v4812_v37 = vpop.permute.xlu1 %4811  ;;  %v4872_v3 = vsel %vm4869_vm6, %v4863_v63, %v4810_v22  ;;  %v9848_v22 = vld [vmem:[%s10010_s3 + $0x2] sm:$0x3] }
 0x561   : > { %v4873_v39 = vsel %vm4869_vm6, %v4864_v28, %v4812_v37 }
 0x567   : > { %v4814_v17 = vpop.permute.xlu0 %4813 }
 0x568   : > { %v4816_v58 = vpop.permute.xlu1 %4815  ;;  %v4874_v5 = vsel %vm4869_vm6, %v4865_v29, %v4814_v17 }
 0x569   : > { %v4875_v61 = vsel %vm4869_vm6, %v4866_v7, %v4816_v58  ;;  %v9852_v7 = vld [vmem:[%s10010_s3 + $0xa] sm:$0x3] }
 0x56f   : > { %v4818_v1 = vpop.permute.xlu0 %4817 }
 0x570   : > { %v4820_v30 = vpop.permute.xlu1 %4819  ;;  %v4876_v16 = vsel %vm4869_vm6, %v4867_v12, %v4818_v1  ;;  %v9849_v1 = vld [vmem:[%s10010_s3 + $0x4] sm:$0x3] }
 0x571   : > { %v4877_v45 = vsel %vm4869_vm6, %v4868_v60, %v4820_v30 }
 0x57f   : > { %v4838_v57 = vpop.permute.xlu0 %4837 }
 0x580   : > { %v4879_v23 = vsel %vm4878_vm7, %v4870_v48, %v4838_v57 }
 0x583   : > { %v4840_v41 = vpop.permute.xlu1 %4839 }
 0x584   : > { %v4880_v47 = vsel %vm4878_vm7, %v4871_v20, %v4840_v41  ;;  %v9850_v41 = vld [vmem:[%s10010_s3 + $0x6] sm:$0x3] }
 0x585   : > { %v4900_v18 = vcombine.low %v4879_v23, %v4880_v47  ;;  %v9874_v23 = vmov 269488144  }
 0x587   : > { %v4842_v51 = vpop.permute.xlu0 %4841  ;;  %v4908_v56 = vrot.slane %v4900_v18, %v11947_v50  ;;  %v9876_v18 = vmov 1414812756  }
 0x588   : > { %v4881_v11 = vsel %vm4878_vm7, %v4872_v3, %v4842_v51  ;;  %v9854_v3 = vld [vmem:[%s10010_s3 + $0xe] sm:$0x3]  ;;  %s8770_s3 = sshll.u32 %s11952_s22, 8 }
 0x589   : > { %s11317_s30 = scalar_lea.vmem %s11887_s6, %s8770_s3  ;;  %s902_s3 = scalar_lea.vmem %s11891_s10, %s11952_s22 }
 0x58b   : > { %v4844_v36 = vpop.permute.xlu1 %4843 }
 0x58c   : > { %v4882_v55 = vsel %vm4878_vm7, %v4873_v39, %v4844_v36 }
 0x58d   : > { %v4901_v35 = vcombine.low %v4881_v11, %v4882_v55 }
 0x58f   : > { %v4915_v14 = vrot.slane %v4901_v35, %v11947_v50 }
 0x591   : > { %v4916_v19 = vcombine.low %v4908_v56, %v4915_v14 }
 0x5bc   : > { %v4846_v49 = vpop.permute.xlu0 %4845 }
 0x5bd   : > { %v4883_v24 = vsel %vm4878_vm7, %v4874_v5, %v4846_v49 }
 0x5c1   : > { %v4848_v0 = vpop.permute.xlu1 %4847 }
 0x5c2   : > { %v4884_v44 = vsel %vm4878_vm7, %v4875_v61, %v4848_v0 }
 0x5c3   : > { %v4917_v25 = vcombine.low %v4883_v24, %v4884_v44  ;;  %v5109_v24 = vunpack.c.l.s4 %v9874_v23 }
 0x5c4   : > { %v4850_v15 = vpop.permute.xlu0 %4849 }
 0x5c5   : > { %v4885_v31 = vsel %vm4878_vm7, %v4876_v16, %v4850_v15  ;;  %v4925_v52 = vrot.slane %v4917_v25, %v11947_v50  ;;  %v5123_v25 = vunpack.c.l.s4 %v9876_v18 }
 0x5c9   : > { %v4852_v34 = vpop.permute.xlu1 %4851 }
 0x5ca   : > { %v4886_v8 = vsel %vm4878_vm7, %v4877_v45, %v4852_v34  ;;  %v9875_v45 = vmov 842150450   ;;  %v9877_v34 = vmov 1987475062  }
 0x5cb   : > { %v4918_v46 = vcombine.low %v4885_v31, %v4886_v8  ;;  %v5116_v16 = vunpack.c.l.s4 %v9875_v45  ;;  %v5130_v31 = vunpack.c.l.s4 %v9877_v34  ;;  %v5110_v8 = vunpack.c.0.s8 %v5109_v24  ;;  %v5411_v24 = vld [vmem:[%s11317_s30 + $0xc8] sm:$0xff]  ;;  %v5386_v45 = vld [vmem:[%s11317_s30] sm:$0xff] }
 0x5cd   : > { %v4932_v10 = vrot.slane %v4918_v46, %v11947_v50  ;;  %v5117_v14 = vunpack.c.0.s8 %v5116_v16  ;;  %v5124_v46 = vunpack.c.0.s8 %v5123_v25  ;;  %v5131_v56 = vunpack.c.0.s8 %v5130_v31  ;;  %v5394_v16 = vld [vmem:[%s11317_s30 + $0x40] sm:$0xff]  ;;  %v5387_v31 = vld [vmem:[%s11317_s30 + $0x8] sm:$0xff] }
 0x5ce   : > { %v8573_v34 = vcombine.high %v5386_v45, %v5394_v16 }
 0x5cf   : > { %v4933_v33 = vcombine.low %v4925_v52, %v4932_v10  ;;  %v11948_v52 = vld [vmem:[#allocation2_spill] sm:$0xff] }
 0x5d0   : > { %v11256_v10 = vsub.s32 %v5110_v8, %v11948_v52  ;;  %v5395_v8 = vld [vmem:[%s11317_s30 + $0x48] sm:$0xff] }
 0x5d1   : > { %v4936_v53 = vpack.c.bf16 %v4933_v33, %v4916_v19  ;;  %v11259_v19 = vsub.s32 %v5117_v14, %v11948_v52  ;;  %v11262_v33 = vsub.s32 %v5124_v46, %v11948_v52  ;;  %v8575_v14 = vcombine.high %v5387_v31, %v5395_v8 }
 0x5d2   : > { %v8572_v46 = vcombine.low %v5386_v45, %v5394_v16 }
 0x5d3   : > { %9507 = vmatmul.mubr.msk.bf16.vlgmr.msra.gmra.mxu1 %vm1016_vm1, %v4936_v53  ;;  %v11265_v53 = vsub.s32 %v5131_v56, %v11948_v52  ;;  %v8574_v56 = vcombine.low %v5387_v31, %v5395_v8 }
 0x693   : > { %v4992_v9 = vpop.f32.mrf.mxu1 }
 0x694   : > { %v4993_v54 = vadd.f32 %v8566_v21, %v4992_v9 }
 0x695   : > { %v9508_v6 = vpop.f32.mrf.mxu1 }
 0x696   : > { %v5001_v27 = vcombine.high %v4993_v54, %v4993_v54  ;;  %v5008_v2 = vrot.slane %v4993_v54, %v11947_v50 }
 0x697   : > { %v4995_v38 = vpop.f32.mrf.mxu1 }
 0x698   : > { %v5015_v26 = vrot.slane %v5001_v27, %v11947_v50  ;;  %v5016_v43 = vcombine.high %v5008_v2, %v5008_v2  ;;  %v4996_v32 = vadd.f32 %v8566_v21, %v4995_v38  ;;  %v5043_v37 = vadd.f32 %v9847_v42, %v5008_v2 }
 0x699   : > { %v9509_v40 = vpop.f32.mrf.mxu1 }
 0x69a   : > { %v5017_v62 = vcombine.high %v5015_v26, %v5015_v26  ;;  %v5044_v58 = vadd.f32 %v9848_v22, %v5016_v43  ;;  %v5018_v17 = vcombine.high %v4996_v32, %v4996_v32  ;;  %v5025_v30 = vrot.slane %v4996_v32, %v11947_v50 }
 0x69b   : > { %v5045_v57 = vadd.f32 %v9849_v1, %v5015_v26 }
 0x69c   : > { %v5046_v51 = vadd.f32 %v9850_v41, %v5017_v62  ;;  %v5061_v36 = vcombine.low %v5043_v37, %v5044_v58  ;;  %v5032_v28 = vrot.slane %v5018_v17, %v11947_v50  ;;  %v5033_v39 = vcombine.high %v5025_v30, %v5025_v30 }
 0x69d   : > { %v5047_v63 = vadd.f32 %v9851_v59, %v5025_v30 }
 0x69e   : > { %v5034_v49 = vcombine.high %v5032_v28, %v5032_v28  ;;  %v5062_v0 = vcombine.low %v5045_v57, %v5046_v51  ;;  %v5048_v55 = vadd.f32 %v9852_v7, %v5033_v39  ;;  %v5049_v20 = vadd.f32 %v9853_v13, %v5032_v28 }
 0x69f   : > { %v5069_v29 = vrot.slane %v5061_v36, %v11947_v50 }
 0x6a0   : > { %v5050_v61 = vadd.f32 %v9854_v3, %v5034_v49  ;;  %v5076_v47 = vrot.slane %v5062_v0, %v11947_v50  ;;  %v5078_v11 = vcombine.low %v5047_v63, %v5048_v55 }
 0x6a2   : > { %v5077_v44 = vcombine.low %v5069_v29, %v5076_v47  ;;  %v5079_v48 = vcombine.low %v5049_v20, %v5050_v61  ;;  %v5086_v35 = vrot.slane %v5078_v11, %v11947_v50 }
 0x6a4   : > { %v5097_v5 = vsel %vm1016_vm1, %v5077_v44, 0.0  ;;  %v5093_v15 = vrot.slane %v5079_v48, %v11947_v50 }
 0x6a5   : > { %5098 = vadd.xlane.f32.xlu0 %v5097_v5  ;;  %v9878_v5 = vmov 0  }
 0x6a6   : > { %v5094_v12 = vcombine.low %v5086_v35, %v5093_v15  ;;  %5742 = vmatprep.mubr.bf16.mxu0 %v9878_v5  ;;  %5785 = vmatprep.mubr.bf16.mxu1 %v9878_v5  ;;  %v5402_v35 = vld [vmem:[%s11317_s30 + $0x80] sm:$0xff] }
 0x6a7   : > { %v5410_v15 = vld [vmem:[%s11317_s30 + $0xc0] sm:$0xff] }
 0x6a8   : > { %v5100_v60 = vsel %vm1016_vm1, %v5094_v12, 0.0  ;;  %v5403_v12 = vld [vmem:[%s11317_s30 + $0x88] sm:$0xff]  ;;  %v8589_v23 = vcombine.high %v5402_v35, %v5410_v15 }
 0x6a9   : > { %5101 = vadd.xlane.f32.xlu1 %v5100_v60  ;;  %v8588_v60 = vcombine.low %v5402_v35, %v5410_v15  ;;  %v8590_v18 = vcombine.low %v5403_v12, %v5411_v24  ;;  %v8591_v25 = vcombine.high %v5403_v12, %v5411_v24 }
 0x6aa   : > { %5722 = vmatprep.subr.bf16.mxu0 %v8589_v23 }
 0x6ab   : > { %5765 = vmatprep.subr.bf16.mxu1 %v8591_v25  ;;  %5723 = vmatpush1.bf16.msra.mxu0 %v8588_v60 }
 0x6ac   : > { %5766 = vmatpush1.bf16.msra.mxu1 %v8590_v18  ;;  %5724 = vmatprep.subr.bf16.mxu0 %v8573_v34 }
 0x6ad   : > { %5767 = vmatprep.subr.bf16.mxu1 %v8575_v14 }
 0x6af   : > { %5725 = vmatpush1.bf16.msra.mxu0 %v8572_v46 }
 0x6b0   : > { %5768 = vmatpush1.bf16.msra.mxu1 %v8574_v56 }
 0x72e   : > { %v5099_v21 = vpop.xlane.xlu0 %5098 }
 0x72f   : > { %v5104_v9 = vmul.f32 0.03125, %v5099_v21  ;;  %v11330_v21 = vld [vmem:[%s11317_s30 + $0x90] sm:$0xff] }
 0x731   : > { %v5114_v54 = vrot.slane %v5104_v9, %v11256_v10  ;;  %v5121_v6 = vrot.slane %v5104_v9, %v11259_v19  ;;  %v5128_v27 = vrot.slane %v5104_v9, %v11262_v33  ;;  %v5135_v2 = vrot.slane %v5104_v9, %v11265_v53  ;;  %v11333_v9 = vld [vmem:[%s11317_s30 + $0xd0] sm:$0xff] }
 0x732   : > { %v5102_v38 = vpop.xlane.xlu1 %5101 }
 0x733   : > { %v11271_v26 = vsub.f32 %v5043_v37, %v5114_v54  ;;  %v11273_v43 = vsub.f32 %v5044_v58, %v5121_v6  ;;  %v11275_v32 = vsub.f32 %v5045_v57, %v5128_v27  ;;  %v11277_v40 = vsub.f32 %v5046_v51, %v5135_v2  ;;  %v11336_v54 = vld [vmem:[%s11317_s30 + $0x98] sm:$0xff] }
 0x734   : > { %v5105_v62 = vmul.f32 0.03125, %v5102_v38  ;;  %v8592_v6 = vcombine.low %v11330_v21, %v11333_v9  ;;  %v8593_v27 = vcombine.high %v11330_v21, %v11333_v9  ;;  %v11343_v2 = vld [vmem:[%s11317_s30 + $0xd8] sm:$0xff]  ;;  %v5398_v21 = vld [vmem:[%s11317_s30 + $0x60] sm:$0xff]  ;;  %v5391_v9 = vld [vmem:[%s11317_s30 + $0x28] sm:$0xff] }
 0x735   : > { %v5180_v42 = vmul.f32 %v11271_v26, %v11271_v26  ;;  %v5181_v22 = vmul.f32 %v11273_v43, %v11273_v43  ;;  %v5182_v17 = vmul.f32 %v11275_v32, %v11275_v32  ;;  %v5183_v37 = vmul.f32 %v11277_v40, %v11277_v40 }
 0x736   : > { %v5142_v58 = vrot.slane %v5105_v62, %v11256_v10  ;;  %v5149_v30 = vrot.slane %v5105_v62, %v11259_v19  ;;  %v5156_v1 = vrot.slane %v5105_v62, %v11262_v33  ;;  %v5163_v57 = vrot.slane %v5105_v62, %v11265_v53  ;;  %5808 = vmatprep.subr.bf16.mxu0 %v8593_v27 }
 0x737   : > { %v5196_v41 = vcombine.low %v5180_v42, %v5181_v22  ;;  %v5197_v51 = vcombine.low %v5182_v17, %v5183_v37  ;;  %v8594_v38 = vcombine.low %v11336_v54, %v11343_v2  ;;  %v8595_v62 = vcombine.high %v11336_v54, %v11343_v2 }
 0x738   : > { %v11291_v36 = vsub.f32 %v5047_v63, %v5142_v58  ;;  %v11293_v28 = vsub.f32 %v5048_v55, %v5149_v30  ;;  %v11295_v39 = vsub.f32 %v5049_v20, %v5156_v1  ;;  %v11297_v49 = vsub.f32 %v5050_v61, %v5163_v57  ;;  %v8570_v58 = vld [vmem:[%s902_s3] ss:$0 sm:$0xff] }
 0x739   : > { %v5204_v0 = vrot.slane %v5196_v41, %v11947_v50  ;;  %v5211_v59 = vrot.slane %v5197_v51, %v11947_v50  ;;  %5851 = vmatprep.subr.bf16.mxu1 %v8595_v62  ;;  %v8571_v1 = vld [vmem:[%s905_s2] ss:$0 sm:$0xff]  ;;  %v5323_v41 = vcombine.high %v8570_v58, %v8570_v58 }
 0x73a   : > { %v5184_v7 = vmul.f32 %v11291_v36, %v11291_v36  ;;  %v5185_v13 = vmul.f32 %v11293_v28, %v11293_v28  ;;  %v5186_v63 = vmul.f32 %v11295_v39, %v11295_v39  ;;  %v5187_v55 = vmul.f32 %v11297_v49, %v11297_v49 }
 0x73b   : > { %v5212_v20 = vcombine.low %v5204_v0, %v5211_v59  ;;  %v5357_v51 = vcombine.high %v8571_v1, %v8571_v1  ;;  %v5330_v0 = vrot.slane %v8570_v58, %v11947_v50  ;;  %v5337_v59 = vrot.slane %v5323_v41, %v11947_v50 }
 0x73c   : > { %v5213_v3 = vcombine.low %v5184_v7, %v5185_v13  ;;  %v5214_v61 = vcombine.low %v5186_v63, %v5187_v55  ;;  %v5364_v7 = vrot.slane %v8571_v1, %v11947_v50 }
 0x73d   : > { %v5232_v29 = vsel %vm1016_vm1, %v5212_v20, 0.0  ;;  %v5371_v13 = vrot.slane %v5357_v51, %v11947_v50  ;;  %v5338_v55 = vcombine.high %v5330_v0, %v5330_v0  ;;  %v5339_v20 = vcombine.high %v5337_v59, %v5337_v59 }
 0x73e   : > { %5233 = vadd.xlane.f32.xlu0 %v5232_v29  ;;  %v5221_v47 = vrot.slane %v5213_v3, %v11947_v50  ;;  %v5228_v11 = vrot.slane %v5214_v61, %v11947_v50 }
 0x740   : > { %v5229_v44 = vcombine.low %v5221_v47, %v5228_v11  ;;  %v5372_v11 = vcombine.high %v5364_v7, %v5364_v7 }
 0x742   : > { %v5235_v48 = vsel %vm1016_vm1, %v5229_v44, 0.0  ;;  %v5373_v44 = vcombine.high %v5371_v13, %v5371_v13 }
 0x743   : > { %5236 = vadd.xlane.f32.xlu0 %v5235_v48 }
 0x7c7   : > { %v5234_v42 = vpop.xlane.xlu0 %5233 }
 0x7c8   : > { %v5238_v22 = vmul.f32 0.03125, %v5234_v42 }
 0x7ca   : > { %v5240_v17 = vadd.f32 1e-05, %v5238_v22 }
 0x7cc   : > { %9839 = vrsqrt.f32 %v5240_v17  ;;  %v5237_v37 = vpop.xlane.xlu0 %5236 }
 0x7cd   : > { %v5239_v30 = vmul.f32 0.03125, %v5237_v37 }
 0x7cf   : > { %v5241_v57 = vadd.f32 1e-05, %v5239_v30 }
 0x7d1   : > { %9841 = vrsqrt.f32 %v5241_v57 }
 0x7d9   : > { %v9840_v63 = vpop.eup %9839 }
 0x7da   : > { %v5252_v3 = vrot.slane %v9840_v63, %v11256_v10  ;;  %v5259_v61 = vrot.slane %v9840_v63, %v11259_v19  ;;  %v5266_v29 = vrot.slane %v9840_v63, %v11262_v33  ;;  %v5273_v47 = vrot.slane %v9840_v63, %v11265_v53 }
 0x7dc   : > { %v5310_v48 = vmul.f32 %v5252_v3, %v11271_v26  ;;  %v5311_v35 = vmul.f32 %v5259_v61, %v11273_v43  ;;  %v5312_v15 = vmul.f32 %v5266_v29, %v11275_v32  ;;  %v5313_v12 = vmul.f32 %v5273_v47, %v11277_v40  ;;  %v5406_v29 = vld [vmem:[%s11317_s30 + $0xa0] sm:$0xff] }
 0x7dd   : > { %v5414_v47 = vld [vmem:[%s11317_s30 + $0xe0] sm:$0xff] }
 0x7de   : > { %v9842_v60 = vpop.eup %9841  ;;  %v5344_v23 = vmul.f32 %v5330_v0, %v5310_v48  ;;  %v5345_v24 = vmul.f32 %v5338_v55, %v5311_v35  ;;  %v5346_v45 = vmul.f32 %v5337_v59, %v5312_v15  ;;  %v5347_v16 = vmul.f32 %v5339_v20, %v5313_v12 }
 0x7df   : > { %v5280_v18 = vrot.slane %v9842_v60, %v11256_v10  ;;  %v5287_v25 = vrot.slane %v9842_v60, %v11259_v19  ;;  %v5294_v34 = vrot.slane %v9842_v60, %v11262_v33  ;;  %v5301_v31 = vrot.slane %v9842_v60, %v11265_v53  ;;  %v5390_v60 = vld [vmem:[%s11317_s30 + $0x20] sm:$0xff] }
 0x7e0   : > { %v11379_v26 = vadd.f32 %v5364_v7, %v5344_v23  ;;  %v11381_v43 = vadd.f32 %v5372_v11, %v5345_v24  ;;  %v11383_v32 = vadd.f32 %v5371_v13, %v5346_v45  ;;  %v11385_v40 = vadd.f32 %v5373_v44, %v5347_v16  ;;  %v5408_v24 = vld [vmem:[%s11317_s30 + $0xb0] sm:$0xff]  ;;  %v5409_v16 = vld [vmem:[%s11317_s30 + $0xb8] sm:$0xff] }
 0x7e1   : > { %v5314_v8 = vmul.f32 %v5280_v18, %v11291_v36  ;;  %v5315_v14 = vmul.f32 %v5287_v25, %v11293_v28  ;;  %v5316_v46 = vmul.f32 %v5294_v34, %v11295_v39  ;;  %v5317_v56 = vmul.f32 %v5301_v31, %v11297_v49  ;;  %v5416_v45 = vld [vmem:[%s11317_s30 + $0xf0] sm:$0xff]  ;;  %v5417_v18 = vld [vmem:[%s11317_s30 + $0xf8] sm:$0xff] }
 0x7e2   : > { %v5428_v27 = vcombine.low %v11379_v26, %v11381_v43  ;;  %v5429_v62 = vcombine.low %v11383_v32, %v11385_v40  ;;  %v8597_v15 = vcombine.high %v5406_v29, %v5414_v47  ;;  %v8596_v54 = vcombine.low %v5406_v29, %v5414_v47  ;;  %v9581_v29 = vld [vmem:[%s11353_s25 + $0xa0] sm:$0xff]   ;;  %v9582_v47 = vld [vmem:[%s11353_s25 + $0x58] sm:$0xff]  }
 0x7e3   : > { %v5348_v42 = vmul.f32 %v5330_v0, %v5314_v8  ;;  %v5349_v22 = vmul.f32 %v5338_v55, %v5315_v14  ;;  %v5350_v17 = vmul.f32 %v5337_v59, %v5316_v46  ;;  %v5351_v36 = vmul.f32 %v5339_v20, %v5317_v56  ;;  %v5388_v0 = vld [vmem:[%s11317_s30 + $0x10] sm:$0xff]  ;;  %v5393_v56 = vld [vmem:[%s11317_s30 + $0x38] sm:$0xff] }
 0x7e4   : > { %v5436_v58 = vrot.slane %v5428_v27, %v11947_v50  ;;  %v5443_v30 = vrot.slane %v5429_v62, %v11947_v50  ;;  %v5396_v59 = vld [vmem:[%s11317_s30 + $0x50] sm:$0xff]  ;;  %v8580_v25 = vcombine.low %v5390_v60, %v5398_v21  ;;  %v8601_v31 = vcombine.high %v5408_v24, %v5416_v45  ;;  %v5401_v27 = vld [vmem:[%s11317_s30 + $0x78] sm:$0xff] }
 0x7e5   : > { %v11395_v37 = vadd.f32 %v5364_v7, %v5348_v42  ;;  %v11397_v28 = vadd.f32 %v5372_v11, %v5349_v22  ;;  %v11399_v39 = vadd.f32 %v5371_v13, %v5350_v17  ;;  %v11401_v49 = vadd.f32 %v5373_v44, %v5351_v36  ;;  %v5389_v7 = vld [vmem:[%s11317_s30 + $0x18] sm:$0xff]  ;;  %v5407_v11 = vld [vmem:[%s11317_s30 + $0xa8] sm:$0xff]  ;;  %v5392_v14 = vld [vmem:[%s11317_s30 + $0x30] sm:$0xff] }
 0x7e6   : > { %v5397_v13 = vld [vmem:[%s11317_s30 + $0x58] sm:$0xff]  ;;  %v5444_v63 = vcombine.low %v5436_v58, %v5443_v30  ;;  %v8577_v3 = vcombine.high %v5388_v0, %v5396_v59  ;;  %v5415_v44 = vld [vmem:[%s11317_s30 + $0xe8] sm:$0xff]  ;;  %v8576_v48 = vcombine.low %v5388_v0, %v5396_v59  ;;  %v8603_v8 = vcombine.high %v5409_v16, %v5417_v18  ;;  %v5400_v46 = vld [vmem:[%s11317_s30 + $0x70] sm:$0xff] }
 0x7e7   : > { %v5445_v1 = vcombine.low %v11395_v37, %v11397_v28  ;;  %v5446_v57 = vcombine.low %v11399_v39, %v11401_v49  ;;  %v8579_v61 = vcombine.high %v5389_v7, %v5397_v13  ;;  %v8578_v35 = vcombine.low %v5389_v7, %v5397_v13  ;;  %v9566_v30 = vld [vmem:[%s11353_s25 + $0x78] sm:$0xff]   ;;  %v9571_v0 = vld [vmem:[%s11353_s25 + $0xf0] sm:$0xff]   ;;  %v9574_v7 = vld [vmem:[%s11353_s25 + $0x68] sm:$0xff]  }
 0x7e8   : > { %v8599_v12 = vcombine.high %v5407_v11, %v5415_v44  ;;  %v8598_v2 = vcombine.low %v5407_v11, %v5415_v44  ;;  %v8600_v62 = vcombine.low %v5408_v24, %v5416_v45  ;;  %v8602_v42 = vcombine.low %v5409_v16, %v5417_v18  ;;  %v9573_v59 = vld [vmem:[%s11353_s25 + $0xb0] sm:$0xff]   ;;  %v9575_v13 = vld [vmem:[%s11353_s25 + $0xe8] sm:$0xff]   ;;  %v9583_v11 = vld [vmem:[%s11353_s25 + $0xd8] sm:$0xff]  }
 0x7e9   : > { %v5453_v41 = vrot.slane %v5445_v1, %v11947_v50  ;;  %v5460_v51 = vrot.slane %v5446_v57, %v11947_v50  ;;  %v8585_v22 = vcombine.high %v5392_v14, %v5400_v46  ;;  %v8587_v17 = vcombine.high %v5393_v56, %v5401_v27  ;;  %v9567_v1 = vld [vmem:[%s11353_s25 + $0xf8] sm:$0xff]   ;;  %v9597_v24 = vld [vmem:[%s11353_s25 + $0x80] sm:$0xff]  }
 0x7ea   : > { %v8584_v36 = vcombine.low %v5392_v14, %v5400_v46  ;;  %v8586_v58 = vcombine.low %v5393_v56, %v5401_v27  ;;  %v9568_v57 = vld [vmem:[%s11353_s25 + $0x38] sm:$0xff]   ;;  %v5473_v18 = vsub.s32 1, %v11948_v52 }
 0x7eb   : > { %v5461_v55 = vcombine.low %v5453_v41, %v5460_v51  ;;  %v9569_v41 = vld [vmem:[%s11353_s25 + $0xb8] sm:$0xff]   ;;  %v9570_v51 = vld [vmem:[%s11353_s25 + $0x70] sm:$0xff]  }
 0x7ec   : > { %v9584_v44 = vld [vmem:[%s11353_s25 + $0x18] sm:$0xff]  }
 0x7ed   : > { %v11415_v20 = vpack.c.bf16 %v5461_v55, %v5444_v63  ;;  %v9576_v63 = vld [vmem:[%s11353_s25 + $0x28] sm:$0xff]   ;;  %v9598_v45 = vld [vmem:[%s11353_s25 + $0x178] sm:$0xff]  }
 0x7ee   : > { %v9577_v55 = vld [vmem:[%s11353_s25 + $0xa8] sm:$0xff]   ;;  %v9599_v16 = vld [vmem:[%s11353_s25 + $0x1f8] sm:$0xff]  }
 0x7ef   : > { %8604 = vmatmul.mubr.msk.bf16.vlgmr.msra.gmra.mxu0 %vm1016_vm1, %v11415_v20  ;;  %8605 = vmatmul.mubr.msk.bf16.vlgmr.msra.gmra.mxu1 %vm1016_vm1, %v11415_v20 }
 0x7f0   : > { %5809 = vmatpush1.bf16.msra.mxu0 %v8592_v6  ;;  %5852 = vmatpush1.bf16.msra.mxu1 %v8594_v38  ;;  %v5399_v6 = vld [vmem:[%s11317_s30 + $0x68] sm:$0xff]  ;;  %v8581_v38 = vcombine.high %v5390_v60, %v5398_v21  ;;  %v9589_v60 = vld [vmem:[%s11353_s25 + $0x90] sm:$0xff]   ;;  %s899_s30 = scalar_lea.vmem %s11890_s9, %s11952_s22 }
 0x7f1   : > { %5810 = vmatprep.subr.bf16.mxu0 %v8577_v3  ;;  %5853 = vmatprep.subr.bf16.mxu1 %v8579_v61  ;;  %v8583_v23 = vcombine.high %v5391_v9, %v5399_v6  ;;  %v8582_v34 = vcombine.low %v5391_v9, %v5399_v6  ;;  %v9579_v3 = vld [vmem:[%s11353_s25 + $0xe0] sm:$0xff]   ;;  %v9590_v21 = vld [vmem:[%s11353_s25 + $0x48] sm:$0xff]  }
 0x7f2   : > { %5828 = vmatprep.mubr.bf16.mxu0 %v9878_v5  ;;  %5871 = vmatprep.mubr.bf16.mxu1 %v9878_v5  ;;  %v9580_v61 = vld [vmem:[%s11353_s25 + $0x20] sm:$0xff]   ;;  %v9591_v9 = vld [vmem:[%s11353_s25 + $0xc8] sm:$0xff]  }
 0x7f3   : > { %v9592_v6 = vld [vmem:[%s11353_s25 + $0x8] sm:$0xff]  }
 0x7f4   : > { %5811 = vmatpush1.bf16.msra.mxu0 %v8576_v48  ;;  %5854 = vmatpush1.bf16.msra.mxu1 %v8578_v35  ;;  %v9585_v48 = vld [vmem:[%s11353_s25 + $0x98] sm:$0xff]   ;;  %v9586_v35 = vld [vmem:[%s11353_s25 + $0x50] sm:$0xff]  }
 0x7f5   : > { %5894 = vmatprep.subr.bf16.mxu0 %v8597_v15  ;;  %5937 = vmatprep.subr.bf16.mxu1 %v8599_v12  ;;  %v9587_v15 = vld [vmem:[%s11353_s25 + $0xd0] sm:$0xff]  }
 0x7f6   : > { %v9588_v12 = vld [vmem:[%s11353_s25 + $0x10] sm:$0xff]  }
 0x7f7   : > { %8606 = vmatmul.mubr.msk.bf16.vlgmr.msra.gmra.mxu0 %vm1016_vm1, %v11415_v20  ;;  %8607 = vmatmul.mubr.msk.bf16.vlgmr.msra.gmra.mxu1 %vm1016_vm1, %v11415_v20 }
 0x7f8   : > { %5895 = vmatpush1.bf16.msra.mxu0 %v8596_v54  ;;  %5938 = vmatpush1.bf16.msra.mxu1 %v8598_v2  ;;  %v9593_v54 = vld [vmem:[%s11353_s25 + $0x88] sm:$0xff]   ;;  %v9594_v2 = vld [vmem:[%s11353_s25 + $0x40] sm:$0xff]  }
 0x7f9   : > { %5896 = vmatprep.subr.bf16.mxu0 %v8581_v38  ;;  %5939 = vmatprep.subr.bf16.mxu1 %v8583_v23  ;;  %v9595_v38 = vld [vmem:[%s11353_s25 + $0xc0] sm:$0xff]  }
 0x7fa   : > { %5914 = vmatprep.mubr.bf16.mxu0 %v9878_v5  ;;  %5957 = vmatprep.mubr.bf16.mxu1 %v9878_v5  ;;  %v9596_v23 = vld [vmem:[%s11353_s25] sm:$0xff]  }
 0x7fc   : > { %5897 = vmatpush1.bf16.msra.mxu0 %v8580_v25  ;;  %5940 = vmatpush1.bf16.msra.mxu1 %v8582_v34  ;;  %v5481_v25 = vsub.s32 3, %v11948_v52  ;;  %v5469_v34 = vsub.s32 0, %v11948_v52 }
 0x7fd   : > { %5980 = vmatprep.subr.bf16.mxu0 %v8601_v31  ;;  %6023 = vmatprep.subr.bf16.mxu1 %v8603_v8  ;;  %v5477_v31 = vsub.s32 2, %v11948_v52  ;;  %v11506_v8 = vld [vmem:[%s11499_s0] sm:$0xff] }
 0x7fe   : > { %v5474_v56 = vrot.slane %v11506_v8, %v5473_v18  ;;  %v5482_v27 = vrot.slane %v11506_v8, %v5481_v25 }
 0x7ff   : > { %8608 = vmatmul.mubr.msk.bf16.vlgmr.msra.gmra.mxu0 %vm1016_vm1, %v11415_v20  ;;  %8609 = vmatmul.mubr.msk.bf16.vlgmr.msra.gmra.mxu1 %vm1016_vm1, %v11415_v20 }
 0x800   : > { %5981 = vmatpush1.bf16.msra.mxu0 %v8600_v62  ;;  %6024 = vmatpush1.bf16.msra.mxu1 %v8602_v42  ;;  %v5470_v62 = vrot.slane %v11506_v8, %v5469_v34  ;;  %v5478_v42 = vrot.slane %v11506_v8, %v5477_v31 }
 0x801   : > { %5982 = vmatprep.subr.bf16.mxu0 %v8585_v22  ;;  %6025 = vmatprep.subr.bf16.mxu1 %v8587_v17 }
 0x802   : > { %6000 = vmatprep.mubr.bf16.mxu0 %v9878_v5  ;;  %6043 = vmatprep.mubr.bf16.mxu1 %v9878_v5  ;;  %v9572_v5 = vld [vmem:[%s11353_s25 + $0x30] sm:$0xff]  }
 0x804   : > { %5983 = vmatpush1.bf16.msra.mxu0 %v8584_v36  ;;  %6026 = vmatpush1.bf16.msra.mxu1 %v8586_v58 }
 0x805   : > { %8908 = vmatprep.subr.bf16.mxu0 %v9566_v30  ;;  %8930 = vmatprep.subr.bf16.mxu1 %v9567_v1  ;;  %v5489_v30 = vsub.s32 5, %v11948_v52  ;;  %v5497_v1 = vsub.s32 7, %v11948_v52 }
 0x807   : > { %8610 = vmatmul.mubr.msk.bf16.vlgmr.msra.gmra.mxu0 %vm1016_vm1, %v11415_v20  ;;  %8611 = vmatmul.mubr.msk.bf16.vlgmr.msra.gmra.mxu1 %vm1016_vm1, %v11415_v20  ;;  %v9578_v20 = vld [vmem:[%s11353_s25 + $0x60] sm:$0xff]  }
 0x808   : > { %8909 = vmatpush3.bf16.msra.mxu0 %v9568_v57  ;;  %8931 = vmatpush3.bf16.msra.mxu1 %v9569_v41 }
 0x809   : > { %8910 = vmatprep.subr.bf16.mxu0 %v9570_v51  ;;  %8932 = vmatprep.subr.bf16.mxu1 %v9571_v0 }
 0x80c   : > { %8911 = vmatpush3.bf16.msra.mxu0 %v9572_v5  ;;  %8933 = vmatpush3.bf16.msra.mxu1 %v9573_v59 }
 0x80d   : > { %8912 = vmatprep.subr.bf16.mxu0 %v9574_v7  ;;  %8934 = vmatprep.subr.bf16.mxu1 %v9575_v13 }
 0x810   : > { %8913 = vmatpush3.bf16.msra.mxu0 %v9576_v63  ;;  %8935 = vmatpush3.bf16.msra.mxu1 %v9577_v55 }
 0x811   : > { %8914 = vmatprep.subr.bf16.mxu0 %v9578_v20  ;;  %8936 = vmatprep.subr.bf16.mxu1 %v9579_v3 }
 0x814   : > { %8915 = vmatpush3.bf16.msra.mxu0 %v9580_v61  ;;  %8937 = vmatpush3.bf16.msra.mxu1 %v9581_v29 }
 0x815   : > { %8916 = vmatprep.subr.bf16.mxu0 %v9582_v47  ;;  %8938 = vmatprep.subr.bf16.mxu1 %v9583_v11  ;;  %v5490_v47 = vrot.slane %v11506_v8, %v5489_v30  ;;  %v5498_v11 = vrot.slane %v11506_v8, %v5497_v1 }
 0x818   : > { %8917 = vmatpush3.bf16.msra.mxu0 %v9584_v44  ;;  %8939 = vmatpush3.bf16.msra.mxu1 %v9585_v48 }
 0x819   : > { %8918 = vmatprep.subr.bf16.mxu0 %v9586_v35  ;;  %8940 = vmatprep.subr.bf16.mxu1 %v9587_v15 }
 0x81c   : > { %8919 = vmatpush3.bf16.msra.mxu0 %v9588_v12  ;;  %8941 = vmatpush3.bf16.msra.mxu1 %v9589_v60 }
 0x81d   : > { %8920 = vmatprep.subr.bf16.mxu0 %v9590_v21  ;;  %8942 = vmatprep.subr.bf16.mxu1 %v9591_v9 }
 0x820   : > { %8921 = vmatpush3.bf16.msra.mxu0 %v9592_v6  ;;  %8943 = vmatpush3.bf16.msra.mxu1 %v9593_v54 }
 0x821   : > { %8922 = vmatprep.subr.bf16.mxu0 %v9594_v2  ;;  %8944 = vmatprep.subr.bf16.mxu1 %v9595_v38  ;;  %v9600_v2 = vld [vmem:[%s11353_s25 + $0x138] sm:$0xff]  }
 0x822   : > { %v9601_v38 = vld [vmem:[%s11353_s25 + $0x1b8] sm:$0xff]  }
 0x824   : > { %8923 = vmatpush3.bf16.msra.mxu0 %v9596_v23  ;;  %8945 = vmatpush3.bf16.msra.mxu1 %v9597_v24 }
 0x825   : > { %8952 = vmatprep.subr.bf16.mxu0 %v9598_v45  ;;  %8974 = vmatprep.subr.bf16.mxu1 %v9599_v16 }
 0x8af   : > { %v5744_v14 = vpop.f32.mrf.mxu0  ;;  %v5787_v46 = vpop.f32.mrf.mxu1 }
 0x8b0   : > { %v5745_v5 = vadd.f32 %v5744_v14, %v5470_v62  ;;  %v5788_v59 = vadd.f32 %v5787_v46, %v5478_v42  ;;  %v9602_v14 = vld [vmem:[%s11353_s25 + $0x170] sm:$0xff]  }
 0x8b1   : > { %v5746_v22 = vpop.f32.mrf.mxu0  ;;  %v5789_v17 = vpop.f32.mrf.mxu1  ;;  %v9603_v46 = vld [vmem:[%s11353_s25 + $0x1f0] sm:$0xff]  }
 0x8b2   : > { %v5747_v57 = vadd.f32 %v5746_v22, %v5474_v56  ;;  %v5790_v41 = vadd.f32 %v5789_v17, %v5482_v27  ;;  %v6054_v12 = vmax.f32 %v5745_v5, 0.0  ;;  %v6056_v60 = vmax.f32 %v5788_v59, 0.0  ;;  %v9607_v59 = vld [vmem:[%s11353_s25 + $0x1e8] sm:$0xff]  }
 0x8b3   : > { %v5748_v36 = vpop.f32.mrf.mxu0  ;;  %v5791_v58 = vpop.f32.mrf.mxu1 }
 0x8b4   : > { %v5749_v51 = vadd.f32 %v5748_v36, %v5470_v62  ;;  %v5792_v0 = vadd.f32 %v5791_v58, %v5478_v42  ;;  %v6055_v44 = vmax.f32 %v5747_v57, 0.0  ;;  %v6057_v48 = vmax.f32 %v5790_v41, 0.0  ;;  %v9604_v36 = vld [vmem:[%s11353_s25 + $0x130] sm:$0xff]   ;;  %v9606_v57 = vld [vmem:[%s11353_s25 + $0x168] sm:$0xff]  }
 0x8b5   : > { %v5750_v7 = vpop.f32.mrf.mxu0  ;;  %v5793_v13 = vpop.f32.mrf.mxu1  ;;  %v9605_v58 = vld [vmem:[%s11353_s25 + $0x1b0] sm:$0xff]  }
 0x8b6   : > { %v5751_v63 = vadd.f32 %v5750_v7, %v5474_v56  ;;  %v5794_v55 = vadd.f32 %v5793_v13, %v5482_v27  ;;  %v6070_v20 = vmax.f32 %v5749_v51, 0.0  ;;  %v6072_v3 = vmax.f32 %v5792_v0, 0.0 }
 0x8b7   : > { %v11522_v61 = vpop.f32.mrf.mxu0  ;;  %v11524_v29 = vpop.f32.mrf.mxu1 }
 0x8b8   : > { %v6071_v35 = vmax.f32 %v5751_v63, 0.0  ;;  %v6073_v15 = vmax.f32 %v5794_v55, 0.0  ;;  %v6343_v23 = vpack.c.bf16 %v6070_v20, %v6054_v12  ;;  %v6345_v24 = vpack.c.bf16 %v6072_v3, %v6056_v60  ;;  %v9608_v63 = vld [vmem:[%s11353_s25 + $0x128] sm:$0xff]   ;;  %v9610_v20 = vld [vmem:[%s11353_s25 + $0x160] sm:$0xff]   ;;  %v9616_v60 = vld [vmem:[%s11353_s25 + $0x118] sm:$0xff]  }
 0x8b9   : > { %v5832_v21 = vpop.f32.mrf.mxu0  ;;  %v5875_v9 = vpop.f32.mrf.mxu1  ;;  %v9609_v55 = vld [vmem:[%s11353_s25 + $0x1a8] sm:$0xff]   ;;  %v9611_v3 = vld [vmem:[%s11353_s25 + $0x1e0] sm:$0xff]  }
 0x8ba   : > { %v6344_v6 = vpack.c.bf16 %v6071_v35, %v6055_v44  ;;  %v6346_v54 = vpack.c.bf16 %v6073_v15, %v6057_v48  ;;  %v5833_v56 = vadd.f32 %v5832_v21, %v5490_v47  ;;  %v5876_v27 = vadd.f32 %v5875_v9, %v5498_v11  ;;  %v9613_v48 = vld [vmem:[%s11353_s25 + $0x1a0] sm:$0xff]   ;;  %v9614_v35 = vld [vmem:[%s11353_s25 + $0x158] sm:$0xff]  }
 0x8bb   : > { %v11534_v45 = vpop.f32.mrf.mxu0  ;;  %v11536_v16 = vpop.f32.mrf.mxu1  ;;  %v9615_v15 = vld [vmem:[%s11353_s25 + $0x1d8] sm:$0xff]  }
 0x8bc   : > { %7165 = vmatprep.mubr.bf16.mxu0 %v6344_v6  ;;  %7206 = vmatprep.mubr.bf16.mxu1 %v6346_v54  ;;  %v6059_v41 = vmax.f32 %v5833_v56, 0.0  ;;  %v6061_v51 = vmax.f32 %v5876_v27, 0.0  ;;  %v9617_v9 = vld [vmem:[%s11353_s25 + $0x198] sm:$0xff]   ;;  %v9618_v6 = vld [vmem:[%s11353_s25 + $0x150] sm:$0xff]   ;;  %v9622_v56 = vld [vmem:[%s11353_s25 + $0x148] sm:$0xff]  }
 0x8bd   : > { %v5836_v62 = vpop.f32.mrf.mxu0  ;;  %v5879_v42 = vpop.f32.mrf.mxu1  ;;  %7166 = vmatmul.mubr.bf16.vlgmr.msra.gmra.mxu0 %v6343_v23  ;;  %7207 = vmatmul.mubr.bf16.vlgmr.msra.gmra.mxu1 %v6345_v24  ;;  %v9619_v54 = vld [vmem:[%s11353_s25 + $0x1d0] sm:$0xff]   ;;  %v9623_v27 = vld [vmem:[%s11353_s25 + $0x1c8] sm:$0xff]  }
 0x8be   : > { %v5837_v22 = vadd.f32 %v5836_v62, %v5490_v47  ;;  %v5880_v17 = vadd.f32 %v5879_v42, %v5498_v11  ;;  %8953 = vmatpush3.bf16.msra.mxu0 %v9600_v2  ;;  %8975 = vmatpush3.bf16.msra.mxu1 %v9601_v38  ;;  %v9612_v11 = vld [vmem:[%s11353_s25 + $0x120] sm:$0xff]   ;;  %v5485_v2 = vsub.s32 4, %v11948_v52  ;;  %v5493_v38 = vsub.s32 6, %v11948_v52  ;;  %v9620_v24 = vld [vmem:[%s11353_s25 + $0x110] sm:$0xff]   ;;  %v11574_v42 = vld [vmem:[%s11499_s0 + $0x8] sm:$0xff] }
 0x8bf   : > { %8954 = vmatprep.subr.bf16.mxu0 %v9602_v14  ;;  %8976 = vmatprep.subr.bf16.mxu1 %v9603_v46  ;;  %v11548_v47 = vpop.f32.mrf.mxu0  ;;  %v11551_v44 = vpop.f32.mrf.mxu1  ;;  %v9621_v46 = vld [vmem:[%s11353_s25 + $0x190] sm:$0xff]   ;;  %v9692_v52 = vld [vmem:[%s11353_s25 + $0x300] sm:$0xff]  }
 0x8c0   : > { %v6075_v0 = vmax.f32 %v5837_v22, 0.0  ;;  %v6077_v5 = vmax.f32 %v5880_v17, 0.0  ;;  %v5486_v62 = vrot.slane %v11506_v8, %v5485_v2  ;;  %v5494_v22 = vrot.slane %v11506_v8, %v5493_v38 }
 0x8c1   : > { %v5918_v12 = vpop.f32.mrf.mxu0  ;;  %v5961_v21 = vpop.f32.mrf.mxu1  ;;  %v5514_v8 = vrot.slane %v11574_v42, %v5481_v25 }
 0x8c2   : > { %v6348_v7 = vpack.c.bf16 %v6075_v0, %v6059_v41  ;;  %v6350_v13 = vpack.c.bf16 %v6077_v5, %v6061_v51  ;;  %8955 = vmatpush3.bf16.msra.mxu0 %v9604_v36  ;;  %8977 = vmatpush3.bf16.msra.mxu1 %v9605_v58  ;;  %v9624_v36 = vld [vmem:[%s11353_s25 + $0x108] sm:$0xff]   ;;  %v5835_v58 = vadd.f32 %v11534_v45, %v5486_v62  ;;  %v9626_v0 = vld [vmem:[%s11353_s25 + $0x140] sm:$0xff]  }
 0x8c3   : > { %8956 = vmatprep.subr.bf16.mxu0 %v9606_v57  ;;  %8978 = vmatprep.subr.bf16.mxu1 %v9607_v59  ;;  %v11562_v23 = vpop.f32.mrf.mxu0  ;;  %v11565_v14 = vpop.f32.mrf.mxu1  ;;  %v5506_v57 = vrot.slane %v11574_v42, %v5473_v18  ;;  %v9625_v51 = vld [vmem:[%s11353_s25 + $0x188] sm:$0xff]   ;;  %v5878_v5 = vadd.f32 %v11536_v16, %v5494_v22  ;;  %v9627_v45 = vld [vmem:[%s11353_s25 + $0x1c0] sm:$0xff]   ;;  %v5831_v59 = vadd.f32 %v11522_v61, %v5486_v62  ;;  %v9636_v62 = vld [vmem:[%s11353_s25 + $0x230] sm:$0xff]  }
 0x8c4   : > { %7247 = vmatprep.mubr.bf16.mxu0 %v6348_v7  ;;  %7288 = vmatprep.mubr.bf16.mxu1 %v6350_v13  ;;  %v5874_v18 = vadd.f32 %v11524_v29, %v5494_v22  ;;  %v9629_v16 = vld [vmem:[%s11353_s25 + $0x180] sm:$0xff]   ;;  %v9637_v22 = vld [vmem:[%s11353_s25 + $0x2b0] sm:$0xff]  }
 0x8c5   : > { %v5922_v17 = vpop.f32.mrf.mxu0  ;;  %v5965_v41 = vpop.f32.mrf.mxu1  ;;  %v6076_v25 = vmax.f32 %v5878_v5, 0.0  ;;  %v6058_v61 = vmax.f32 %v5831_v59, 0.0  ;;  %v9644_v5 = vld [vmem:[%s11353_s25 + $0x220] sm:$0xff]   ;;  %v9646_v59 = vld [vmem:[%s11353_s25 + $0x258] sm:$0xff]  }
 0x8c6   : > { %8957 = vmatpush3.bf16.msra.mxu0 %v9608_v63  ;;  %8979 = vmatpush3.bf16.msra.mxu1 %v9609_v55  ;;  %v5923_v7 = vadd.f32 %v5922_v17, %v5506_v57  ;;  %v5966_v13 = vadd.f32 %v5965_v41, %v5514_v8  ;;  %v9628_v63 = vld [vmem:[%s11353_s25 + $0x100] sm:$0xff]   ;;  %v6074_v55 = vmax.f32 %v5835_v58, 0.0  ;;  %v6060_v29 = vmax.f32 %v5874_v18, 0.0  ;;  %v9638_v17 = vld [vmem:[%s11353_s25 + $0x268] sm:$0xff]  }
 0x8c7   : > { %8958 = vmatprep.subr.bf16.mxu0 %v9610_v20  ;;  %8980 = vmatprep.subr.bf16.mxu1 %v9611_v3  ;;  %v5919_v20 = vadd.f32 %v5918_v12, %v5506_v57  ;;  %v9630_v3 = vld [vmem:[%s11353_s25 + $0x278] sm:$0xff]   ;;  %v9640_v58 = vld [vmem:[%s11353_s25 + $0x228] sm:$0xff]   ;;  %v9642_v41 = vld [vmem:[%s11353_s25 + $0x260] sm:$0xff]  }
 0x8c8   : > { %v9641_v57 = vld [vmem:[%s11353_s25 + $0x2a8] sm:$0xff]  }
 0x8c9   : > { %v6063_v12 = vmax.f32 %v5919_v20, 0.0  ;;  %v9650_v20 = vld [vmem:[%s11353_s25 + $0x250] sm:$0xff]  }
 0x8ca   : > { %8959 = vmatpush3.bf16.msra.mxu0 %v9612_v11  ;;  %8981 = vmatpush3.bf16.msra.mxu1 %v9613_v48  ;;  %v5962_v11 = vadd.f32 %v5961_v21, %v5514_v8  ;;  %v9631_v48 = vld [vmem:[%s11353_s25 + $0x2f8] sm:$0xff]   ;;  %v11612_v8 = vpop.f32.mrf.mxu1 }
 0x8cb   : > { %8960 = vmatprep.subr.bf16.mxu0 %v9614_v35  ;;  %8982 = vmatprep.subr.bf16.mxu1 %v9615_v15  ;;  %v6079_v35 = vmax.f32 %v5923_v7, 0.0  ;;  %v6081_v15 = vmax.f32 %v5966_v13, 0.0  ;;  %v9647_v7 = vld [vmem:[%s11353_s25 + $0x2d8] sm:$0xff]  }
 0x8cc   : > { %v6065_v21 = vmax.f32 %v5962_v11, 0.0  ;;  %v9648_v13 = vld [vmem:[%s11353_s25 + $0x218] sm:$0xff]  }
 0x8ce   : > { %8961 = vmatpush3.bf16.msra.mxu0 %v9616_v60  ;;  %8983 = vmatpush3.bf16.msra.mxu1 %v9617_v9  ;;  %v9632_v60 = vld [vmem:[%s11353_s25 + $0x238] sm:$0xff]   ;;  %v6347_v9 = vpack.c.bf16 %v6074_v55, %v6058_v61  ;;  %v9654_v61 = vld [vmem:[%s11353_s25 + $0x248] sm:$0xff]  }
 0x8cf   : > { %8962 = vmatprep.subr.bf16.mxu0 %v9618_v6  ;;  %8984 = vmatprep.subr.bf16.mxu1 %v9619_v54  ;;  %v9633_v6 = vld [vmem:[%s11353_s25 + $0x2b8] sm:$0xff]   ;;  %v6349_v54 = vpack.c.bf16 %v6076_v25, %v6060_v29  ;;  %v9652_v25 = vld [vmem:[%s11353_s25 + $0x210] sm:$0xff]   ;;  %v5502_v29 = vrot.slane %v11574_v42, %v5469_v34  ;;  %v9658_v34 = vld [vmem:[%s11353_s25 + $0x240] sm:$0xff]  }
 0x8d0   : > { %v9649_v55 = vld [vmem:[%s11353_s25 + $0x298] sm:$0xff]  }
 0x8d2   : > { %8963 = vmatpush3.bf16.msra.mxu0 %v9620_v24  ;;  %8985 = vmatpush3.bf16.msra.mxu1 %v9621_v46  ;;  %v9634_v24 = vld [vmem:[%s11353_s25 + $0x270] sm:$0xff]   ;;  %v6352_v46 = vpack.c.bf16 %v6079_v35, %v6063_v12  ;;  %v9655_v35 = vld [vmem:[%s11353_s25 + $0x2c8] sm:$0xff]   ;;  %v5921_v12 = vadd.f32 %v11562_v23, %v5502_v29  ;;  %v9659_v23 = vld [vmem:[%s11353_s25 + $0x2c0] sm:$0xff]  }
 0x8d3   : > { %8964 = vmatprep.subr.bf16.mxu0 %v9622_v56  ;;  %8986 = vmatprep.subr.bf16.mxu1 %v9623_v27  ;;  %v9635_v56 = vld [vmem:[%s11353_s25 + $0x2f0] sm:$0xff]   ;;  %v6354_v27 = vpack.c.bf16 %v6081_v15, %v6065_v21  ;;  %v5510_v15 = vrot.slane %v11574_v42, %v5477_v31  ;;  %v9657_v21 = vld [vmem:[%s11353_s25 + $0x288] sm:$0xff]   ;;  %v5530_v31 = vrot.slane %v11574_v42, %v5497_v1 }
 0x8d6   : > { %8965 = vmatpush3.bf16.msra.mxu0 %v9624_v36  ;;  %8987 = vmatpush3.bf16.msra.mxu1 %v9625_v51  ;;  %v9639_v36 = vld [vmem:[%s11353_s25 + $0x2e8] sm:$0xff]   ;;  %v9643_v51 = vld [vmem:[%s11353_s25 + $0x2e0] sm:$0xff]  }
 0x8d7   : > { %8966 = vmatprep.subr.bf16.mxu0 %v9626_v0  ;;  %8988 = vmatprep.subr.bf16.mxu1 %v9627_v45  ;;  %v11609_v0 = vpop.f32.mrf.mxu0  ;;  %v9645_v45 = vld [vmem:[%s11353_s25 + $0x2a0] sm:$0xff]  }
 0x8d9   : > { %v6004_v18 = vpop.f32.mrf.mxu0 }
 0x8da   : > { %8967 = vmatpush3.bf16.msra.mxu0 %v9628_v63  ;;  %8989 = vmatpush3.bf16.msra.mxu1 %v9629_v16  ;;  %v6047_v63 = vpop.f32.mrf.mxu1  ;;  %v9651_v16 = vld [vmem:[%s11353_s25 + $0x2d0] sm:$0xff]  }
 0x8db   : > { %8996 = vmatprep.subr.bf16.mxu0 %v9630_v3  ;;  %9018 = vmatprep.subr.bf16.mxu1 %v9631_v48  ;;  %v11621_v3 = vpop.f32.mrf.mxu0  ;;  %v9653_v48 = vld [vmem:[%s11353_s25 + $0x290] sm:$0xff]  }
 0x8dc   : > { %v11624_v11 = vpop.f32.mrf.mxu1 }
 0x8dd   : > { %7248 = vmatmul.mubr.bf16.vlgmr.msra.gmra.mxu0 %v6347_v9  ;;  %7289 = vmatmul.mubr.bf16.vlgmr.msra.gmra.mxu1 %v6349_v54  ;;  %v9656_v9 = vld [vmem:[%s11353_s25 + $0x208] sm:$0xff]  }
 0x8de   : > { %8997 = vmatpush3.bf16.msra.mxu0 %v9632_v60  ;;  %7329 = vmatprep.mubr.bf16.mxu0 %v6352_v46  ;;  %v6008_v60 = vpop.f32.mrf.mxu0  ;;  %v6051_v54 = vpop.f32.mrf.mxu1  ;;  %v5917_v46 = vadd.f32 %v11548_v47, %v5502_v29  ;;  %v9672_v29 = vld [vmem:[%s11353_s25 + $0x328] sm:$0xff]  }
 0x8df   : > { %9019 = vmatpush3.bf16.msra.mxu1 %v9633_v6  ;;  %7370 = vmatprep.mubr.bf16.mxu1 %v6354_v27  ;;  %v5522_v6 = vrot.slane %v11574_v42, %v5489_v30  ;;  %v5960_v30 = vadd.f32 %v11551_v44, %v5510_v15  ;;  %v6052_v27 = vadd.f32 %v6051_v54, %v5530_v31  ;;  %v9678_v54 = vld [vmem:[%s11353_s25 + $0x358] sm:$0xff]  }
 0x8e0   : > { %8998 = vmatprep.subr.bf16.mxu0 %v9634_v24  ;;  %9020 = vmatprep.subr.bf16.mxu1 %v9635_v56  ;;  %v5964_v24 = vadd.f32 %v11565_v14, %v5510_v15  ;;  %v9661_v14 = vld [vmem:[%s11353_s25 + $0x280] sm:$0xff]   ;;  %v6062_v47 = vmax.f32 %v5917_v46, 0.0  ;;  %v9673_v15 = vld [vmem:[%s11353_s25 + $0x3a8] sm:$0xff]   ;;  %v9684_v46 = vld [vmem:[%s11353_s25 + $0x310] sm:$0xff]  }
 0x8e1   : > { %v6009_v56 = vadd.f32 %v6008_v60, %v5522_v6  ;;  %v6064_v44 = vmax.f32 %v5960_v30, 0.0  ;;  %v9674_v60 = vld [vmem:[%s11353_s25 + $0x360] sm:$0xff]   ;;  %v9686_v30 = vld [vmem:[%s11353_s25 + $0x348] sm:$0xff]  }
 0x8e2   : > { %8999 = vmatpush3.bf16.msra.mxu0 %v9636_v62  ;;  %v9660_v62 = vld [vmem:[%s11353_s25 + $0x200] sm:$0xff]   ;;  %v6080_v1 = vmax.f32 %v5964_v24, 0.0  ;;  %v9681_v24 = vld [vmem:[%s11353_s25 + $0x398] sm:$0xff]  }
 0x8e3   : > { %9021 = vmatpush3.bf16.msra.mxu1 %v9637_v22  ;;  %9000 = vmatprep.subr.bf16.mxu0 %v9638_v17  ;;  %v6078_v22 = vmax.f32 %v5921_v12, 0.0  ;;  %v6005_v17 = vadd.f32 %v6004_v18, %v5522_v6  ;;  %v9676_v12 = vld [vmem:[%s11353_s25 + $0x320] sm:$0xff]  }
 0x8e4   : > { %9022 = vmatprep.subr.bf16.mxu1 %v9639_v36  ;;  %v9662_v36 = vld [vmem:[%s11353_s25 + $0x378] sm:$0xff]   ;;  %v6353_v18 = vpack.c.bf16 %v6080_v1, %v6064_v44  ;;  %v9677_v6 = vld [vmem:[%s11353_s25 + $0x3a0] sm:$0xff]  }
 0x8e5   : > { %v9690_v1 = vld [vmem:[%s11353_s25 + $0x340] sm:$0xff]  }
 0x8e6   : > { %9001 = vmatpush3.bf16.msra.mxu0 %v9640_v58  ;;  %v6048_v58 = vadd.f32 %v6047_v63, %v5530_v31  ;;  %v9666_v63 = vld [vmem:[%s11353_s25 + $0x370] sm:$0xff]  }
 0x8e7   : > { %9023 = vmatpush3.bf16.msra.mxu1 %v9641_v57  ;;  %9002 = vmatprep.subr.bf16.mxu0 %v9642_v41  ;;  %v9663_v57 = vld [vmem:[%s11353_s25 + $0x3f8] sm:$0xff]   ;;  %v6083_v41 = vmax.f32 %v6009_v56, 0.0  ;;  %v9682_v31 = vld [vmem:[%s11353_s25 + $0x350] sm:$0xff]  }
 0x8e8   : > { %9024 = vmatprep.subr.bf16.mxu1 %v9643_v51  ;;  %v6085_v51 = vmax.f32 %v6052_v27, 0.0  ;;  %v9685_v56 = vld [vmem:[%s11353_s25 + $0x390] sm:$0xff]   ;;  %v9687_v27 = vld [vmem:[%s11353_s25 + $0x3c8] sm:$0xff]  }
 0x8ea   : > { %9003 = vmatpush3.bf16.msra.mxu0 %v9644_v5  ;;  %v9664_v5 = vld [vmem:[%s11353_s25 + $0x338] sm:$0xff]  }
 0x8eb   : > { %9025 = vmatpush3.bf16.msra.mxu1 %v9645_v45  ;;  %9004 = vmatprep.subr.bf16.mxu0 %v9646_v59  ;;  %v6351_v45 = vpack.c.bf16 %v6078_v22, %v6062_v47  ;;  %v6067_v59 = vmax.f32 %v6005_v17, 0.0  ;;  %v5526_v22 = vrot.slane %v11574_v42, %v5493_v38  ;;  %v9688_v17 = vld [vmem:[%s11353_s25 + $0x308] sm:$0xff]  }
 0x8ec   : > { %9026 = vmatprep.subr.bf16.mxu1 %v9647_v7  ;;  %v9665_v7 = vld [vmem:[%s11353_s25 + $0x3b8] sm:$0xff]  }
 0x8ee   : > { %9005 = vmatpush3.bf16.msra.mxu0 %v9648_v13  ;;  %v6069_v13 = vmax.f32 %v6048_v58, 0.0  ;;  %v6050_v58 = vadd.f32 %v11624_v11, %v5526_v22 }
 0x8ef   : > { %9027 = vmatpush3.bf16.msra.mxu1 %v9649_v55  ;;  %9006 = vmatprep.subr.bf16.mxu0 %v9650_v20  ;;  %v6356_v55 = vpack.c.bf16 %v6083_v41, %v6067_v59  ;;  %v9667_v20 = vld [vmem:[%s11353_s25 + $0x3f0] sm:$0xff]  }
 0x8f0   : > { %9028 = vmatprep.subr.bf16.mxu1 %v9651_v16  ;;  %v6358_v16 = vpack.c.bf16 %v6085_v51, %v6069_v13 }
 0x8f2   : > { %9007 = vmatpush3.bf16.msra.mxu0 %v9652_v25  ;;  %v9668_v25 = vld [vmem:[%s11353_s25 + $0x330] sm:$0xff]  }
 0x8f3   : > { %9029 = vmatpush3.bf16.msra.mxu1 %v9653_v48  ;;  %9008 = vmatprep.subr.bf16.mxu0 %v9654_v61  ;;  %v9669_v48 = vld [vmem:[%s11353_s25 + $0x3b0] sm:$0xff]   ;;  %v9670_v61 = vld [vmem:[%s11353_s25 + $0x368] sm:$0xff]  }
 0x8f4   : > { %9030 = vmatprep.subr.bf16.mxu1 %v9655_v35  ;;  %v9671_v35 = vld [vmem:[%s11353_s25 + $0x3e8] sm:$0xff]  }
 0x8f6   : > { %9009 = vmatpush3.bf16.msra.mxu0 %v9656_v9  ;;  %v9675_v9 = vld [vmem:[%s11353_s25 + $0x3e0] sm:$0xff]  }
 0x8f7   : > { %9031 = vmatpush3.bf16.msra.mxu1 %v9657_v21  ;;  %9010 = vmatprep.subr.bf16.mxu0 %v9658_v34  ;;  %v9679_v21 = vld [vmem:[%s11353_s25 + $0x3d8] sm:$0xff]  }
 0x8f8   : > { %9032 = vmatprep.subr.bf16.mxu1 %v9659_v23  ;;  %v9680_v34 = vld [vmem:[%s11353_s25 + $0x318] sm:$0xff]   ;;  %v9683_v23 = vld [vmem:[%s11353_s25 + $0x3d0] sm:$0xff]  }
 0x8fa   : > { %9011 = vmatpush3.bf16.msra.mxu0 %v9660_v62  ;;  %v5518_v62 = vrot.slane %v11574_v42, %v5485_v2  ;;  %v6046_v2 = vadd.f32 %v11612_v8, %v5526_v22  ;;  %v9693_v42 = vld [vmem:[%s11353_s25 + $0x380] sm:$0xff]  }
 0x8fb   : > { %9033 = vmatpush3.bf16.msra.mxu1 %v9661_v14  ;;  %9040 = vmatprep.subr.bf16.mxu0 %v9662_v36  ;;  %v9689_v36 = vld [vmem:[%s11353_s25 + $0x388] sm:$0xff]   ;;  %v8099_v8 = vld [vmem:[%s923_s4] sm:$0x3]  ;;  %s8772_s4 = sshll.u32 %s11952_s22, 7 }
 0x8fc   : > { %9062 = vmatprep.subr.bf16.mxu1 %v9663_v57  ;;  %v6007_v14 = vadd.f32 %v11621_v3, %v5518_v62  ;;  %v9691_v57 = vld [vmem:[%s11353_s25 + $0x3c0] sm:$0xff]   ;;  %v6003_v47 = vadd.f32 %v11609_v0, %v5518_v62  ;;  %v6084_v3 = vmax.f32 %v6050_v58, 0.0  ;;  %v6068_v44 = vmax.f32 %v6046_v2, 0.0  ;;  %s11949_s25 = sld [smem:[#allocation17_spill]] }
 0x8fd   : > { %7330 = vmatmul.mubr.bf16.vlgmr.msra.gmra.mxu0 %v6351_v45  ;;  %v8114_v45 = vsel %vm8112_vm8, %v8099_v8, 0 }
 0x8fe   : > { %7371 = vmatmul.mubr.bf16.vlgmr.msra.gmra.mxu1 %v6353_v18  ;;  %9041 = vmatpush3.bf16.msra.mxu0 %v9664_v5  ;;  %v6082_v38 = vmax.f32 %v6007_v14, 0.0  ;;  %v6066_v41 = vmax.f32 %v6003_v47, 0.0  ;;  %v6357_v11 = vpack.c.bf16 %v6084_v3, %v6068_v44 }
 0x8ff   : > { %7411 = vmatprep.mubr.bf16.mxu0 %v6356_v55  ;;  %9063 = vmatpush3.bf16.msra.mxu1 %v9665_v7 }
 0x900   : > { %7452 = vmatprep.mubr.bf16.mxu1 %v6358_v16  ;;  %9042 = vmatprep.subr.bf16.mxu0 %v9666_v63  ;;  %v6355_v51 = vpack.c.bf16 %v6082_v38, %v6066_v41 }
 0x901   : > { %9064 = vmatprep.subr.bf16.mxu1 %v9667_v20 }
 0x902   : > { %9043 = vmatpush3.bf16.msra.mxu0 %v9668_v25  ;;  %s866_s26 = scalar_lea.vmem %s11949_s25, %s11697_s23  ;;  %s8773_s25 = sshll.u32 %s11952_s22, 3 }
 0x903   : > { %9065 = vmatpush3.bf16.msra.mxu1 %v9669_v48  ;;  %9044 = vmatprep.subr.bf16.mxu0 %v9670_v61  ;;  %v8098_v0 = vld [vmem:[%s866_s26] sm:$0x3]  ;;  %s931_s3 = scalar_lea.vmem %s11899_s18, %s8773_s25  ;;  %s938_s26 = scalar_lea.vmem %s11901_s20, %s11697_s23 }
 0x904   : > { %9066 = vmatprep.subr.bf16.mxu1 %v9671_v35  ;;  %v8101_v5 = vpack.c.bf16 %v8098_v0, %v8098_v0 }
 0x906   : > { %9045 = vmatpush3.bf16.msra.mxu0 %v9672_v29 }
 0x907   : > { %9067 = vmatpush3.bf16.msra.mxu1 %v9673_v15  ;;  %9046 = vmatprep.subr.bf16.mxu0 %v9674_v60 }
 0x908   : > { %9068 = vmatprep.subr.bf16.mxu1 %v9675_v9  ;;  %v8612_v9 = vld [vmem:[%s899_s30] ss:$0 sm:$0xff]  ;;  %s11790_s30 = scalar_lea.vmem %s11895_s14, %s8772_s4  ;;  %s11950_s4 = smov 96  }
 0x90a   : > { %9047 = vmatpush3.bf16.msra.mxu0 %v9676_v12 }
 0x90b   : > { %9069 = vmatpush3.bf16.msra.mxu1 %v9677_v6  ;;  %9048 = vmatprep.subr.bf16.mxu0 %v9678_v54 }
 0x90c   : > { %9070 = vmatprep.subr.bf16.mxu1 %v9679_v21 }
 0x90e   : > { %9049 = vmatpush3.bf16.msra.mxu0 %v9680_v34 }
 0x90f   : > { %9071 = vmatpush3.bf16.msra.mxu1 %v9681_v24  ;;  %9050 = vmatprep.subr.bf16.mxu0 %v9682_v31 }
 0x910   : > { %9072 = vmatprep.subr.bf16.mxu1 %v9683_v23 }
 0x912   : > { %9051 = vmatpush3.bf16.msra.mxu0 %v9684_v46 }
 0x913   : > { %9073 = vmatpush3.bf16.msra.mxu1 %v9685_v56  ;;  %9052 = vmatprep.subr.bf16.mxu0 %v9686_v30 }
 0x914   : > { %9074 = vmatprep.subr.bf16.mxu1 %v9687_v27 }
 0x916   : > { %9053 = vmatpush3.bf16.msra.mxu0 %v9688_v17 }
 0x917   : > { %9075 = vmatpush3.bf16.msra.mxu1 %v9689_v36  ;;  %9054 = vmatprep.subr.bf16.mxu0 %v9690_v1 }
 0x918   : > { %9076 = vmatprep.subr.bf16.mxu1 %v9691_v57 }
 0x91a   : > { %9055 = vmatpush3.bf16.msra.mxu0 %v9692_v52 }
 0x91b   : > { %9077 = vmatpush3.bf16.msra.mxu1 %v9693_v42 }
 0x91c   : > { %9510 = vmatprep.subr.bf16.mxu1 %v11933_v4 }
 0x91d   : > { %7412 = vmatmul.mubr.bf16.vlgmr.msra.gmra.mxu0 %v6355_v51 }
 0x91e   : > { %7453 = vmatmul.mubr.bf16.vlgmr.msra.gmra.mxu1 %v6357_v11 }
 0x91f   : > { %9512 = vmatprep.mubr.msk.bf16.mxu1 %vm9864_vm0, %v11933_v4  ;;  %9511 = vmatpush3.bf16.msra.mxu1 %v8114_v45 }
 0x920   : > { %9516 = vmatprep.subr.bf16.mxu1 %v11933_v4 }
 0x926   : > { %9513 = vmatmul.mubr.msk.bf16.vlgmr.msra.gmra.mxu1 %vm8108_vm9, %v8101_v5 }
 0x927   : > { %9518 = vmatprep.mubr.msk.bf16.mxu1 %vm9864_vm0, %v11933_v4 }
 0x97d   : > { %v8924_v59 = vpop.f32.mrf.mxu0  ;;  %v8946_v7 = vpop.f32.mrf.mxu1 }
 0x97f   : > { %v8925_v18 = vpop.f32.mrf.mxu0  ;;  %v8947_v13 = vpop.f32.mrf.mxu1 }
 0x980   : > { %v8926_v4 = vadd.f32 %v8925_v18, %v8924_v59  ;;  %v8948_v31 = vadd.f32 %v8947_v13, %v8946_v7 }
 0x981   : > { %v8927_v63 = vpop.f32.mrf.mxu0  ;;  %v8949_v55 = vpop.f32.mrf.mxu1 }
 0x982   : > { %v7168_v54 = vadd.f32 %v8926_v4, %v8612_v9 }
 0x983   : > { %v8928_v20 = vpop.f32.mrf.mxu0  ;;  %v8950_v25 = vpop.f32.mrf.mxu1 }
 0x984   : > { %v8929_v21 = vadd.f32 %v8928_v20, %v8927_v63  ;;  %v7209_v46 = vadd.f32 %v8948_v31, %v7168_v54  ;;  %v8951_v62 = vadd.f32 %v8950_v25, %v8949_v55 }
 0x986   : > { %v7171_v56 = vadd.f32 %v8929_v21, %v8612_v9 }
 0x988   : > { %v7212_v14 = vadd.f32 %v8951_v62, %v7171_v56 }
 0x99d   : > { %v8968_v16 = vpop.f32.mrf.mxu0  ;;  %v8990_v48 = vpop.f32.mrf.mxu1 }
 0x99f   : > { %v8969_v61 = vpop.f32.mrf.mxu0  ;;  %v8991_v35 = vpop.f32.mrf.mxu1 }
 0x9a0   : > { %v8970_v23 = vadd.f32 %v8969_v61, %v8968_v16  ;;  %v8992_v36 = vadd.f32 %v8991_v35, %v8990_v48 }
 0x9a1   : > { %v8971_v29 = vpop.f32.mrf.mxu0  ;;  %v8993_v15 = vpop.f32.mrf.mxu1 }
 0x9a2   : > { %v7250_v22 = vadd.f32 %v8970_v23, %v7209_v46 }
 0x9a3   : > { %v8972_v60 = vpop.f32.mrf.mxu0  ;;  %v8994_v6 = vpop.f32.mrf.mxu1 }
 0x9a4   : > { %v8973_v17 = vadd.f32 %v8972_v60, %v8971_v29  ;;  %v7291_v47 = vadd.f32 %v8992_v36, %v7250_v22  ;;  %v8995_v52 = vadd.f32 %v8994_v6, %v8993_v15 }
 0x9a6   : > { %v7253_v2 = vadd.f32 %v8973_v17, %v7212_v14 }
 0x9a8   : > { %v7294_v44 = vadd.f32 %v8995_v52, %v7253_v2 }
 0x9bd   : > { %v9012_v12 = vpop.f32.mrf.mxu0 }
 0x9be   : > { %v9034_v34 = vpop.f32.mrf.mxu1 }
 0x9bf   : > { %v9013_v24 = vpop.f32.mrf.mxu0 }
 0x9c0   : > { %v9035_v30 = vpop.f32.mrf.mxu1  ;;  %v9014_v1 = vadd.f32 %v9013_v24, %v9012_v12 }
 0x9c1   : > { %v9015_v27 = vpop.f32.mrf.mxu0  ;;  %v9036_v51 = vadd.f32 %v9035_v30, %v9034_v34 }
 0x9c2   : > { %v9037_v58 = vpop.f32.mrf.mxu1  ;;  %v7332_v38 = vadd.f32 %v9014_v1, %v7291_v47 }
 0x9c3   : > { %v9016_v57 = vpop.f32.mrf.mxu0 }
 0x9c4   : > { %v9017_v42 = vadd.f32 %v9016_v57, %v9015_v27  ;;  %v9038_v3 = vpop.f32.mrf.mxu1  ;;  %v7373_v8 = vadd.f32 %v9036_v51, %v7332_v38 }
 0x9c5   : > { %v9039_v18 = vadd.f32 %v9038_v3, %v9037_v58 }
 0x9c6   : > { %v7335_v5 = vadd.f32 %v9017_v42, %v7294_v44 }
 0x9c8   : > { %v7376_v16 = vadd.f32 %v9039_v18, %v7335_v5 }
 0x9dd   : > { %v9056_v41 = vpop.f32.mrf.mxu0 }
 0x9de   : > { %v9078_v11 = vpop.f32.mrf.mxu1 }
 0x9df   : > { %v9057_v0 = vpop.f32.mrf.mxu0 }
 0x9e0   : > { %v9058_v45 = vadd.f32 %v9057_v0, %v9056_v41  ;;  %v9079_v59 = vpop.f32.mrf.mxu1 }
 0x9e1   : > { %v9059_v7 = vpop.f32.mrf.mxu0  ;;  %v9080_v63 = vadd.f32 %v9079_v59, %v9078_v11 }
 0x9e2   : > { %v7414_v13 = vadd.f32 %v9058_v45, %v7373_v8  ;;  %v9081_v55 = vpop.f32.mrf.mxu1 }
 0x9e3   : > { %v9060_v20 = vpop.f32.mrf.mxu0 }
 0x9e4   : > { %v7455_v25 = vadd.f32 %v9080_v63, %v7414_v13  ;;  %v9061_v48 = vadd.f32 %v9060_v20, %v9059_v7  ;;  %v9082_v61 = vpop.f32.mrf.mxu1 }
 0x9e5   : > { %v9083_v60 = vadd.f32 %v9082_v61, %v9081_v55 }
 0x9e6   : > { %v7463_v35 = vcombine.high %v7455_v25, %v7455_v25  ;;  %v7470_v29 = vrot.slane %v7455_v25, %v11947_v50  ;;  %v7417_v15 = vadd.f32 %v9061_v48, %v7376_v16 }
 0x9e8   : > { %v7477_v4 = vrot.slane %v7463_v35, %v11947_v50  ;;  %v7478_v9 = vcombine.high %v7470_v29, %v7470_v29  ;;  %v7458_v12 = vadd.f32 %v9083_v60, %v7417_v15  ;;  %v7505_v54 = vadd.f32 %v7470_v29, %v11379_v26 }
 0x9ea   : > { %v7479_v6 = vcombine.high %v7477_v4, %v7477_v4  ;;  %v7506_v21 = vadd.f32 %v7478_v9, %v11381_v43  ;;  %v7480_v34 = vcombine.high %v7458_v12, %v7458_v12  ;;  %v7487_v24 = vrot.slane %v7458_v12, %v11947_v50 }
 0x9eb   : > { %v7507_v31 = vadd.f32 %v7477_v4, %v11383_v32 }
 0x9ec   : > { %v7494_v23 = vrot.slane %v7480_v34, %v11947_v50  ;;  %v7508_v46 = vadd.f32 %v7479_v6, %v11385_v40  ;;  %v7523_v56 = vcombine.low %v7505_v54, %v7506_v21  ;;  %v7495_v30 = vcombine.high %v7487_v24, %v7487_v24 }
 0x9ed   : > { %v7509_v22 = vadd.f32 %v7487_v24, %v11395_v37 }
 0x9ee   : > { %v7496_v27 = vcombine.high %v7494_v23, %v7494_v23  ;;  %v7524_v62 = vcombine.low %v7507_v31, %v7508_v46  ;;  %v7510_v17 = vadd.f32 %v7495_v30, %v11397_v28  ;;  %v7511_v26 = vadd.f32 %v7494_v23, %v11399_v39 }
 0x9ef   : > { %v7531_v43 = vrot.slane %v7523_v56, %v11947_v50 }
 0x9f0   : > { %v7538_v14 = vrot.slane %v7524_v62, %v11947_v50  ;;  %v7512_v32 = vadd.f32 %v7496_v27, %v11401_v49  ;;  %v7540_v36 = vcombine.low %v7509_v22, %v7510_v17  ;;  %v8760_v62 = vld [vmem:[%s926_s24] ss:$0 sm:$0xff]  ;;  %s908_s24 = scalar_lea.vmem %s11893_s12, %s11952_s22 }
 0x9f2   : > { %v7539_v1 = vcombine.low %v7531_v43, %v7538_v14  ;;  %v7541_v58 = vcombine.low %v7511_v26, %v7512_v32  ;;  %v7548_v57 = vrot.slane %v7540_v36, %v11947_v50  ;;  %v9695_v14 = vld [vmem:[%s11790_s30 + $0x78] sm:$0xff]   ;;  %v9697_v36 = vld [vmem:[%s11790_s30 + $0x70] sm:$0xff]  }
 0x9f3   : > { %9084 = vmatprep.subr.bf16.mxu0 %v9695_v14 }
 0x9f4   : > { %v7559_v40 = vsel %vm1016_vm1, %v7539_v1, 0.0  ;;  %v7555_v47 = vrot.slane %v7541_v58, %v11947_v50  ;;  %v9698_v1 = vld [vmem:[%s11790_s30 + $0x30] sm:$0xff]   ;;  %v9699_v58 = vld [vmem:[%s11790_s30 + $0x68] sm:$0xff]  }
 0x9f5   : > { %7560 = vadd.xlane.f32.xlu0 %v7559_v40  ;;  %v9700_v40 = vld [vmem:[%s11790_s30 + $0x28] sm:$0xff]  }
 0x9f6   : > { %v7556_v37 = vcombine.low %v7548_v57, %v7555_v47  ;;  %v9701_v57 = vld [vmem:[%s11790_s30 + $0x60] sm:$0xff]  }
 0x9f7   : > { %v9702_v47 = vld [vmem:[%s11790_s30 + $0x20] sm:$0xff]  }
 0x9f8   : > { %v7562_v28 = vsel %vm1016_vm1, %v7556_v37, 0.0  ;;  %v9703_v37 = vld [vmem:[%s11790_s30 + $0x58] sm:$0xff]  }
 0x9f9   : > { %7563 = vadd.xlane.f32.xlu1 %v7562_v28  ;;  %v9704_v28 = vld [vmem:[%s11790_s30 + $0x18] sm:$0xff]  }
 0xa7e   : > { %v7561_v39 = vpop.xlane.xlu0 %7560 }
 0xa7f   : > { %v7565_v2 = vmul.f32 0.03125, %v7561_v39  ;;  %v9705_v39 = vld [vmem:[%s11790_s30 + $0x50] sm:$0xff]  }
 0xa81   : > { %v7575_v52 = vrot.slane %v7565_v2, %v11256_v10  ;;  %v7582_v49 = vrot.slane %v7565_v2, %v11259_v19  ;;  %v7589_v38 = vrot.slane %v7565_v2, %v11262_v33  ;;  %v7596_v42 = vrot.slane %v7565_v2, %v11265_v53  ;;  %v9706_v2 = vld [vmem:[%s11790_s30 + $0x10] sm:$0xff]  }
 0xa82   : > { %v7564_v3 = vpop.xlane.xlu1 %7563 }
 0xa83   : > { %v11736_v41 = vsub.f32 %v7505_v54, %v7575_v52  ;;  %v11738_v44 = vsub.f32 %v7506_v21, %v7582_v49  ;;  %v11740_v51 = vsub.f32 %v7507_v31, %v7589_v38  ;;  %v11742_v11 = vsub.f32 %v7508_v46, %v7596_v42  ;;  %v8150_v46 = vpop.f32.mrf.mxu1 }
 0xa84   : > { %v7566_v0 = vmul.f32 0.03125, %v7564_v3 }
 0xa85   : > { %v7641_v8 = vmul.f32 %v11736_v41, %v11736_v41  ;;  %v7642_v5 = vmul.f32 %v11738_v44, %v11738_v44  ;;  %v7643_v45 = vmul.f32 %v11740_v51, %v11740_v51  ;;  %v7644_v59 = vmul.f32 %v11742_v11, %v11742_v11  ;;  %v9514_v56 = vpop.f32.mrf.mxu1 }
 0xa86   : > { %v7603_v7 = vrot.slane %v7566_v0, %v11256_v10  ;;  %v7610_v18 = vrot.slane %v7566_v0, %v11259_v19  ;;  %v7617_v13 = vrot.slane %v7566_v0, %v11262_v33  ;;  %v7624_v63 = vrot.slane %v7566_v0, %v11265_v53 }
 0xa87   : > { %v7657_v55 = vcombine.low %v7641_v8, %v7642_v5  ;;  %v7658_v20 = vcombine.low %v7643_v45, %v7644_v59  ;;  %v8153_v30 = vpop.f32.mrf.mxu1  ;;  %v8741_v8 = vld [vmem:[%s908_s24] ss:$0 sm:$0xff] }
 0xa88   : > { %v11756_v16 = vsub.f32 %v7509_v22, %v7603_v7  ;;  %v11758_v25 = vsub.f32 %v7510_v17, %v7610_v18  ;;  %v11760_v48 = vsub.f32 %v7511_v26, %v7617_v13  ;;  %v11762_v61 = vsub.f32 %v7512_v32, %v7624_v63  ;;  %v9694_v26 = vld [vmem:[%s931_s3] sm:$0xff]   ;;  %v9696_v32 = vld [vmem:[%s11790_s30 + $0x38] sm:$0xff]   ;;  %s9879_s3 = smov 32  }
 0xa89   : > { %v7665_v35 = vrot.slane %v7657_v55, %v11947_v50  ;;  %v7672_v29 = vrot.slane %v7658_v20, %v11947_v50  ;;  %v9515_v27 = vpop.f32.mrf.mxu1  ;;  %v8151_v22 = vadd.f32 %v8760_v62, %v8150_v46  ;;  %9517 = vmatpush3.bf16.msra.mxu1 %v9694_v26  ;;  %9085 = vmatpush3.bf16.msra.mxu0 %v9696_v32  ;;  %v8742_v45 = vld [vmem:[%s911_s28] ss:$0 sm:$0xff] }
 0xa8a   : > { %v7645_v15 = vmul.f32 %v11756_v16, %v11756_v16  ;;  %v7646_v60 = vmul.f32 %v11758_v25, %v11758_v25  ;;  %v7647_v4 = vmul.f32 %v11760_v48, %v11760_v48  ;;  %v7648_v9 = vmul.f32 %v11762_v61, %v11762_v61  ;;  %9086 = vmatprep.subr.bf16.mxu0 %v9697_v36  ;;  %v9709_v26 = vld [vmem:[%s11790_s30 + $0x40] sm:$0xff]  }
 0xa8b   : > { %v7673_v12 = vcombine.low %v7665_v35, %v7672_v29  ;;  %v8156_v17 = vmax.f32 %v8151_v22, 0.0  ;;  %v7784_v5 = vcombine.high %v8741_v8, %v8741_v8  ;;  %v11814_v59 = vrot.slane %v8741_v8, %v11947_v50 }
 0xa8c   : > { %v7674_v6 = vcombine.low %v7645_v15, %v7646_v60  ;;  %v7675_v54 = vcombine.low %v7647_v4, %v7648_v9  ;;  %v7818_v13 = vcombine.high %v8742_v45, %v8742_v45  ;;  %v11824_v20 = vrot.slane %v8742_v45, %v11947_v50 }
 0xa8d   : > { %v7693_v21 = vsel %vm1016_vm1, %v7673_v12, 0.0  ;;  %v8160_v43 = vpack.c.bf16 %v8156_v17, %v8156_v17  ;;  %9087 = vmatpush3.bf16.msra.mxu0 %v9698_v1  ;;  %v7798_v18 = vrot.slane %v7784_v5, %v11947_v50  ;;  %v7799_v29 = vcombine.high %v11814_v59, %v11814_v59 }
 0xa8e   : > { %7694 = vadd.xlane.f32.xlu0 %v7693_v21  ;;  %v7682_v34 = vrot.slane %v7674_v6, %v11947_v50  ;;  %v7689_v24 = vrot.slane %v7675_v54, %v11947_v50  ;;  %9088 = vmatprep.subr.bf16.mxu0 %v9699_v58  ;;  %v7832_v4 = vrot.slane %v7818_v13, %v11947_v50 }
 0xa8f   : > { %9519 = vmatmul.mubr.msk.bf16.vlgmr.msra.gmra.mxu1 %vm4869_vm6, %v8160_v43  ;;  %v7833_v6 = vcombine.high %v11824_v20, %v11824_v20  ;;  %v7800_v21 = vcombine.high %v7798_v18, %v7798_v18 }
 0xa90   : > { %v7690_v31 = vcombine.low %v7682_v34, %v7689_v24  ;;  %v7834_v62 = vcombine.high %v7832_v4, %v7832_v4 }
 0xa91   : > { %9089 = vmatpush3.bf16.msra.mxu0 %v9700_v40 }
 0xa92   : > { %v7696_v23 = vsel %vm1016_vm1, %v7690_v31, 0.0  ;;  %9090 = vmatprep.subr.bf16.mxu0 %v9701_v57 }
 0xa93   : > { %7697 = vadd.xlane.f32.xlu1 %v7696_v23  ;;  %v9708_v23 = vld [vmem:[%s11790_s30 + $0x8] sm:$0xff]  }
 0xa95   : > { %9091 = vmatpush3.bf16.msra.mxu0 %v9702_v47 }
 0xa96   : > { %9092 = vmatprep.subr.bf16.mxu0 %v9703_v37 }
 0xa99   : > { %9093 = vmatpush3.bf16.msra.mxu0 %v9704_v28 }
 0xa9a   : > { %9094 = vmatprep.subr.bf16.mxu0 %v9705_v39 }
 0xa9d   : > { %9095 = vmatpush3.bf16.msra.mxu0 %v9706_v2 }
 0xb17   : > { %v7695_v52 = vpop.xlane.xlu0 %7694 }
 0xb18   : > { %v7699_v49 = vmul.f32 0.03125, %v7695_v52 }
 0xb1a   : > { %v7701_v38 = vadd.f32 1e-05, %v7699_v49 }
 0xb1c   : > { %9843 = vrsqrt.f32 %v7701_v38  ;;  %v7698_v42 = vpop.xlane.xlu1 %7697 }
 0xb1d   : > { %v7700_v3 = vmul.f32 0.03125, %v7698_v42 }
 0xb1f   : > { %v7702_v0 = vadd.f32 1e-05, %v7700_v3 }
 0xb21   : > { %9845 = vrsqrt.f32 %v7702_v0 }
 0xb29   : > { %v11816_v7 = vpop.eup %9843 }
 0xb2a   : > { %v7727_v63 = vrot.slane %v11816_v7, %v11262_v33  ;;  %v7720_v55 = vrot.slane %v11816_v7, %v11259_v19  ;;  %v7734_v35 = vrot.slane %v11816_v7, %v11265_v53 }
 0xb2c   : > { %v7773_v15 = vmul.f32 %v7727_v63, %v11740_v51  ;;  %v7772_v60 = vmul.f32 %v7720_v55, %v11738_v44  ;;  %v7774_v54 = vmul.f32 %v7734_v35, %v11742_v11  ;;  %v9707_v44 = vld [vmem:[%s11790_s30 + $0x48] sm:$0xff]  }
 0xb2d   : > { %9096 = vmatprep.subr.bf16.mxu0 %v9707_v44 }
 0xb2e   : > { %v9846_v9 = vpop.eup %9845  ;;  %v7807_v12 = vmul.f32 %v7798_v18, %v7773_v15  ;;  %v7806_v31 = vmul.f32 %v7799_v29, %v7772_v60  ;;  %v7808_v27 = vmul.f32 %v7800_v21, %v7774_v54  ;;  %9097 = vmatpush3.bf16.msra.mxu0 %v9708_v23 }
 0xb2f   : > { %v7755_v34 = vrot.slane %v9846_v9, %v11262_v33  ;;  %v7748_v24 = vrot.slane %v9846_v9, %v11259_v19  ;;  %v7762_v51 = vrot.slane %v9846_v9, %v11265_v53  ;;  %v9710_v53 = vld [vmem:[%s11790_s30] sm:$0xff]   ;;  %9098 = vmatprep.subr.bf16.mxu0 %v9709_v26  ;;  %s934_s30 = scalar_lea.vmem %s11900_s19, %s11952_s22  ;;  %v7741_v3 = vrot.slane %v9846_v9, %v11256_v10 }
 0xb30   : > { %v7841_v11 = vadd.f32 %v7832_v4, %v7807_v12  ;;  %v7840_v22 = vadd.f32 %v7833_v6, %v7806_v31  ;;  %v8762_v28 = vld [vmem:[%s934_s30] ss:$0 sm:$0xff] }
 0xb31   : > { %v7777_v46 = vmul.f32 %v7755_v34, %v11760_v48  ;;  %v7776_v56 = vmul.f32 %v7748_v24, %v11758_v25  ;;  %v7778_v30 = vmul.f32 %v7762_v51, %v11762_v61  ;;  %v7842_v48 = vadd.f32 %v7834_v62, %v7808_v27  ;;  %v8743_v34 = vld [vmem:[%s919_s21] ss:$0 sm:$0xff] }
 0xb32   : > { %9099 = vmatpush3.bf16.msra.mxu0 %v9710_v53  ;;  %v7865_v25 = vrot.slane %v7841_v11, %v11947_v50  ;;  %v7854_v36 = vrot.slane %v7840_v22, %v11947_v50  ;;  %v7775_v0 = vmul.f32 %v7741_v3, %v11756_v16 }
 0xb33   : > { %v7811_v33 = vmul.f32 %v7798_v18, %v7777_v46  ;;  %v7810_v19 = vmul.f32 %v7799_v29, %v7776_v56  ;;  %v7812_v17 = vmul.f32 %v7800_v21, %v7778_v30  ;;  %v7876_v47 = vrot.slane %v7842_v48, %v11947_v50 }
 0xb34   : > { %v7809_v5 = vmul.f32 %v11814_v59, %v7775_v0 }
 0xb35   : > { %v7845_v43 = vadd.f32 %v7832_v4, %v7811_v33  ;;  %v7844_v14 = vadd.f32 %v7833_v6, %v7810_v19  ;;  %v7846_v32 = vadd.f32 %v7834_v62, %v7812_v17 }
 0xb36   : > { %v7843_v63 = vadd.f32 %v11824_v20, %v7809_v5 }
 0xb37   : > { %v7898_v61 = vrot.slane %v7845_v43, %v11947_v50  ;;  %v7887_v1 = vrot.slane %v7844_v14, %v11947_v50  ;;  %v7909_v57 = vrot.slane %v7846_v32, %v11947_v50  ;;  %v7713_v50 = vrot.slane %v11816_v7, %v11256_v10 }
 0xb39   : > { %v9552_v58 = vpack.i.bf16 %v7865_v25, %v7898_v61  ;;  %v9547_v40 = vpack.i.bf16 %v7854_v36, %v7887_v1  ;;  %v9557_v37 = vpack.i.bf16 %v7876_v47, %v7909_v57  ;;  %v7771_v8 = vmul.f32 %v7713_v50, %v11736_v41 }
 0xb3b   : > { %9553 = vrot.lane.b32.xlu0 %v9552_v58, %s9870_s27  ;;  %9548 = vrot.lane.b32.xlu1 %v9547_v40, %s9879_s3  ;;  %v7805_v45 = vmul.f32 %v11814_v59, %v7771_v8 }
 0xb3d   : > { %v7839_v29 = vadd.f32 %v11824_v20, %v7805_v45 }
 0xb3f   : > { %9558 = vrot.lane.b32.xlu1 %v9557_v37, %s11950_s4 }
 0xb4f   : > { %v8210_v39 = vpop.f32.mrf.mxu1 }
 0xb50   : > { %v8211_v2 = vadd.f32 %v8762_v28, %v8210_v39 }
 0xb51   : > { %v9520_v52 = vpop.f32.mrf.mxu1 }
 0xb52   : > { %v8216_v49 = vmax.f32 %v8211_v2, 0.0 }
 0xb53   : > { %v8213_v38 = vpop.f32.mrf.mxu1 }
 0xb54   : > { %8218 = vrot.lane.b32.xlu1 %v8216_v49, %s9879_s3 }
 0xb55   : > { %v9521_v42 = vpop.f32.mrf.mxu1 }
 0xbad   : > { %v9554_v18 = vpop.permute.xlu0 %9553  ;;  %v9549_v13 = vpop.permute.xlu1 %9548 }
 0xbae   : > { %v9551_v55 = vunpack.i.h.bf16 %v9549_v13  ;;  %v9550_v35 = vunpack.i.l.bf16 %v9549_v13  ;;  %v9556_v15 = vunpack.i.h.bf16 %v9554_v18  ;;  %v9555_v60 = vunpack.i.l.bf16 %v9554_v18 }
 0xbb0   : > { %v7913_v10 = vsel %vm1016_vm1, %v7839_v29, %v9551_v55  ;;  %v7918_v16 = vsel %vm1016_vm1, %v7843_v63, %v9550_v35 }
 0xbb1   : > { %v9559_v41 = vpop.permute.xlu1 %9558  ;;  %v7915_v4 = vsel %vm7914_vm10, %v7913_v10, %v9556_v15  ;;  %v7919_v9 = vsel %vm7914_vm10, %v7918_v16, %v9555_v60 }
 0xbb2   : > { %v9561_v7 = vunpack.i.h.bf16 %v9559_v41  ;;  %v9560_v59 = vunpack.i.l.bf16 %v9559_v41 }
 0xbb4   : > { %v7917_v12 = vsel %vm7916_vm11, %v7915_v4, %v9561_v7  ;;  %v7920_v6 = vsel %vm7916_vm11, %v7919_v9, %v9560_v59 }
 0xbb5   : > { %v7954_v54 = vpack.c.bf16 %v7917_v12, %v7917_v12  ;;  %v7955_v21 = vpack.c.bf16 %v7920_v6, %v7920_v6 }
 0xbb7   : > { %8090 = vmatprep.mubr.bf16.mxu0 %v7955_v21 }
 0xbb8   : > { %8091 = vmatmul.mubr.bf16.vlgmr.msra.gmra.mxu0 %v7954_v54 }
 0xbc6   : > { %v8219_v44 = vpop.permute.xlu1 %8218 }
 0xc78   : > { %v9100_v20 = vpop.f32.mrf.mxu0 }
 0xc7a   : > { %v9101_v24 = vpop.f32.mrf.mxu0 }
 0xc7b   : > { %v9102_v31 = vadd.f32 %v9101_v24, %v9100_v20 }
 0xc7c   : > { %v9103_v51 = vpop.f32.mrf.mxu0 }
 0xc7d   : > { %v8093_v23 = vadd.f32 %v9102_v31, %v8743_v34 }
 0xc7e   : > { %v9104_v46 = vpop.f32.mrf.mxu0 }
 0xc7f   : > { %v8221_v56 = vsel %vm1016_vm1, %v8093_v23, %v8219_v44 }
 0xc80   : > { %8223 = vst.msk [vmem:[%s938_s26] sm:$0x3] %vm8222_vm12, %v8221_v56 }
 0xc81 PF: > { %s30_s1 = sadd.s32 1, %s9861_s1  }
 0xc82   : > { %p27_p4 = scmp.ge.s32.totalorder %s30_s1, 4  }
 0xc84   :  { %29 = sbr.rel (!%p27_p4) target bundleno = 6 (0x6), region = 187 }

// kernel: score_model_forward.3
= control target key start
LH: loop header
LB: loop body
LE: loop exit
PB: predicated region body
PF: predicated region fallthrough
CT: control target
= control target key end

     0   :  { %s13346_s6 = smov 1   ;;  %s13347_s10 = smov 2   ;;  %s15791_s0 = inlined_call_operand.smem [shape: u32[33], index: -1, kind: input, shape index: {}] }
   0x1   :  { %s13405_s5 = sld [smem:[%s15791_s0]]   ;;  %s13348_s14 = smov 3  }
   0x2   :  { %s13410_s9 = sld [smem:[%s15791_s0 + %s13346_s6]]   ;;  %s13349_s18 = smov 4  }
   0x3   :  { %s13415_s13 = sld [smem:[%s15791_s0 + %s13347_s10]]   ;;  %s13350_s22 = smov 5  }
   0x4   :  { %s13420_s17 = sld [smem:[%s15791_s0 + %s13348_s14]]   ;;  %s13351_s26 = smov 6  }
   0x5   :  { %s13425_s21 = sld [smem:[%s15791_s0 + %s13349_s18]]   ;;  %s13352_s30 = smov 7  }
   0x6   :  { %s13430_s25 = sld [smem:[%s15791_s0 + %s13350_s22]]   ;;  %s13353_s4 = smov 8  }
   0x7   :  { %s13435_s29 = sld [smem:[%s15791_s0 + %s13351_s26]]   ;;  %s13354_s10 = smov 9  }
   0x8   :  { %s13440_s3 = sld [smem:[%s15791_s0 + %s13352_s30]]   ;;  %s13355_s15 = smov 10  }
   0x9   :  { %s13445_s8 = sld [smem:[%s15791_s0 + %s13353_s4]]   ;;  %s13356_s20 = smov 11  }
   0xa   :  { %s13450_s14 = sld [smem:[%s15791_s0 + %s13354_s10]]   ;;  %s13357_s26 = smov 12  }
   0xb   :  { %s13455_s19 = sld [smem:[%s15791_s0 + %s13355_s15]]   ;;  %s13358_s1 = smov 13  }
   0xc   :  { %s13460_s24 = sld [smem:[%s15791_s0 + %s13356_s20]]   ;;  %s13359_s7 = smov 14  }
   0xd   :  { %s13465_s30 = sld [smem:[%s15791_s0 + %s13357_s26]]   ;;  %s13360_s15 = smov 15  }
   0xe   :  { %s13470_s6 = sld [smem:[%s15791_s0 + %s13358_s1]]   ;;  %s13361_s22 = smov 16  }
   0xf   :  { %s13475_s12 = sld [smem:[%s15791_s0 + %s13359_s7]]   ;;  %s13362_s28 = smov 17  }
  0x10   :  { %s13480_s20 = sld [smem:[%s15791_s0 + %s13360_s15]]   ;;  %s13363_s7 = smov 18  }
  0x11   :  { %s13485_s27 = sld [smem:[%s15791_s0 + %s13361_s22]]   ;;  %s13364_s15 = smov 19  }
  0x12   :  { %s13490_s4 = sld [smem:[%s15791_s0 + %s13362_s28]]   ;;  %s13365_s22 = smov 20  }
  0x13   :  { %15806 = sst [smem:[#allocation2_spill]] %s13465_s30  ;;  %s13366_s28 = smov 21  }
  0x14   :  { %15807 = sst [smem:[#allocation3_spill]] %s13470_s6 }
  0x15   :  { %15808 = sst [smem:[#allocation4_spill]] %s13475_s12 }
  0x16   :  { %15809 = sst [smem:[#allocation5_spill]] %s13480_s20 }
  0x17   :  { %s13495_s6 = sld [smem:[%s15791_s0 + %s13363_s7]]   ;;  %s13367_s7 = smov 22  }
  0x18   :  { %s13500_s20 = sld [smem:[%s15791_s0 + %s13364_s15]]   ;;  %s13368_s15 = smov 23  }
  0x19   :  { %s13505_s30 = sld [smem:[%s15791_s0 + %s13365_s22]]   ;;  %s13369_s22 = smov 24  }
  0x1a   :  { %s13510_s12 = sld [smem:[%s15791_s0 + %s13366_s28]]   ;;  %s13370_s28 = smov 25  }
  0x1d   :  { %15810 = sst [smem:[#allocation6_spill]] %s13495_s6 }
  0x1e   :  { %15811 = sst [smem:[#allocation7_spill]] %s13500_s20 }
  0x1f   :  { %15812 = sst [smem:[#allocation8_spill]] %s13505_s30 }
  0x20   :  { %15813 = sst [smem:[#allocation9_spill]] %s13510_s12 }
  0x21   :  { %s13515_s6 = sld [smem:[%s15791_s0 + %s13367_s7]]   ;;  %s13371_s7 = smov 26  }
  0x22   :  { %s13520_s20 = sld [smem:[%s15791_s0 + %s13368_s15]]   ;;  %s13372_s15 = smov 27  }
  0x23   :  { %s13525_s30 = sld [smem:[%s15791_s0 + %s13369_s22]]   ;;  %s13373_s22 = smov 28  }
  0x24   :  { %s13530_s12 = sld [smem:[%s15791_s0 + %s13370_s28]]   ;;  %s13374_s28 = smov 29  }
  0x27   :  { %15814 = sst [smem:[#allocation10_spill]] %s13515_s6 }
  0x28   :  { %15815 = sst [smem:[#allocation11_spill]] %s13520_s20 }
  0x29   :  { %15816 = sst [smem:[#allocation12_spill]] %s13525_s30 }
  0x2a   :  { %15817 = sst [smem:[#allocation13_spill]] %s13530_s12 }
  0x2b   :  { %s13535_s6 = sld [smem:[%s15791_s0 + %s13371_s7]]   ;;  %s13375_s7 = smov 30  }
  0x2c   :  { %s13540_s20 = sld [smem:[%s15791_s0 + %s13372_s15]]   ;;  %s13376_s15 = smov 31  }
  0x2d   :  { %s13545_s30 = sld [smem:[%s15791_s0 + %s13373_s22]]   ;;  %s13377_s22 = smov 32  }
  0x2e   :  { %s13550_s12 = sld [smem:[%s15791_s0 + %s13374_s28]]   ;;  %s13567_s28 = smov 0  }
  0x31   :  { %15818 = sst [smem:[#allocation14_spill]] %s13535_s6 }
  0x32   :  { %15819 = sst [smem:[#allocation15_spill]] %s13540_s20 }
  0x33   :  { %15820 = sst [smem:[#allocation16_spill]] %s13545_s30 }
  0x34   :  { %s13555_s6 = sld [smem:[%s15791_s0 + %s13375_s7]]  }
  0x35   :  { %s13560_s20 = sld [smem:[%s15791_s0 + %s13376_s15]]  }
  0x36   :  { %s13565_s30 = sld [smem:[%s15791_s0 + %s13377_s22]]  }
  0x37 LB: > { %s11295_s1 = sadd.s32 4294967295, %s13344_s28   ;;  %p11299_p0 = scmp.ge.s32.totalorder %s13344_s28, 1  ;;  %s13344_s28 = sphi %s13567_s28, %s75_s28  }
  0x38   : > { %p904_p1 = scmp.lt.s32.totalorder %s13344_s28, 4 }
  0x3a   : > { %p905_p2 = pnand %p11299_p0, %p904_p1 }
  0x3c   : > { %908 = sbr.rel (%p905_p2) target bundleno = 5873 (0x16f1), region = 148 }
  0x41   : > { %v12881_v0 = vld [vmem:[%s13415_s13 + $0x8] sm:$0xff]   ;;  %v1029_v1 = vlaneseq  ;;  %v15798_v2 = vmov 0.0   ;;  %v12882_v3 = vld [vmem:[%s13415_s13] sm:$0xff]   ;;  %vm13379_vm0 = vmmov 0   ;;  %p989_p3 = scmp.lt.s32.totalorder %s11295_s1, 2  ;;  %vm1079_vm1 = vcmask 261120  }
  0x42   : > { %12335 = vmatprep.subr.bf16.mxu1 %v15798_v2  ;;  %12349 = vmatprep.subr.bf16.mxu0 %v15798_v2  ;;  %v13380_v4 = vmov 1983009808   ;;  %v11304_v28 = vld [vmem:[%s13420_s17] ss:$0 sm:$0xff]  ;;  %s13381_s7 = smov 120   ;;  %s13382_s10 = smov 96  }
  0x43   : > { %12336 = vmatpush3.bf16.msra.mxu1 %v12881_v0  ;;  %12339 = vmatprep.mubr.msk.bf16.mxu1 %vm13379_vm0, %v15798_v2  ;;  %v1027_v5 = vunpack.c.l.s4 %v13380_v4  ;;  %v13582_v6 = vshrl.u32 %v1029_v1, 7  ;;  %s15866_s1 = smov (!%p989_p3, %s11295_s1), 2  ;;  %s13383_s11 = smov 112   ;;  %vm1339_vm2 = vcmask 64512   ;;  %vm2905_vm3 = vcmask 9216  }
  0x44   : > { %12337 = vmatprep.subr.bf16.mxu1 %v15798_v2  ;;  %12351 = vmatprep.mubr.msk.bf16.mxu0 %vm13379_vm0, %v15798_v2  ;;  %s11801_s0 = sshll.u32 %s15866_s1, 4  ;;  %s13384_s15 = smov 104   ;;  %vm3296_vm4 = vcmask 1040384   ;;  %vm3292_vm5 = vcmask 15360   ;;  %vm4932_vm6 = vcmask 130048   ;;  %vm4941_vm7 = vcmask 195584  }
  0x45   : > { %15821 = vst [vmem:[#allocation17_spill] sm:$0xff] %v13582_v6  ;;  %v1028_v7 = vunpack.c.0.s8 %v1027_v5  ;;  %s13590_s2 = scalar_lea.vmem %s13405_s5, %s11801_s0  ;;  %s13385_s16 = smov 64   ;;  %vm7977_vm8 = vcmask 523264   ;;  %vm7979_vm9 = vcmask 785408   ;;  %vm8867_vm10 = vcmask 392192  }
  0x46   : > { %v1003_v9 = vld [vmem:[%s13590_s2] sm:$0x3]  ;;  %v1004_v10 = vld [vmem:[%s13590_s2 + $0x2] sm:$0x3]  ;;  %v1005_v11 = vld [vmem:[%s13590_s2 + $0x4] sm:$0x3] }
  0x47   : > { %12338 = vmatpush3.bf16.msra.mxu1 %v12882_v3  ;;  %v13593_v8 = vsub.s32 %v1028_v7, %v13582_v6  ;;  %v1006_v12 = vld [vmem:[%s13590_s2 + $0x6] sm:$0x3]  ;;  %v1007_v13 = vld [vmem:[%s13590_s2 + $0x8] sm:$0x3]  ;;  %v1008_v14 = vld [vmem:[%s13590_s2 + $0xa] sm:$0x3]  ;;  %v1024_v15 = vcombine.low %v1003_v9, %v1004_v10 }
  0x48   : > { %12343 = vmatprep.subr.bf16.mxu1 %v15798_v2  ;;  %v1009_v16 = vld [vmem:[%s13590_s2 + $0xc] sm:$0x3]  ;;  %v1010_v17 = vld [vmem:[%s13590_s2 + $0xe] sm:$0x3]  ;;  %v1025_v18 = vcombine.low %v1005_v11, %v1006_v12  ;;  %v1041_v19 = vcombine.low %v1007_v13, %v1008_v14  ;;  %s13386_s18 = smov 8   ;;  %s13387_s22 = smov 16  }
  0x49   : > { %15822 = vst [vmem:[#allocation18_spill] sm:$0xff] %v13593_v8  ;;  %v1032_v20 = vrot.slane %v1024_v15, %v13593_v8  ;;  %v1042_v21 = vcombine.low %v1009_v16, %v1010_v17  ;;  %s13388_s23 = smov 24   ;;  %s11302_s26 = sshll.u32 %s15866_s1, 1  ;;  %vm8955_vm11 = vcmask 517120  }
  0x4a   : > { %v1039_v22 = vrot.slane %v1025_v18, %v13593_v8  ;;  %v1049_v23 = vrot.slane %v1041_v19, %v13593_v8  ;;  %s997_s0 = scalar_lea.vmem %s13410_s9, %s11302_s26 }
  0x4b   : > { %v1056_v24 = vrot.slane %v1042_v21, %v13593_v8 }
  0x4c   : > { %v1040_v25 = vcombine.low %v1032_v20, %v1039_v22 }
  0x4d   : > { %v1057_v26 = vcombine.low %v1049_v23, %v1056_v24 }
  0x4f   : > { %v1060_v27 = vpack.c.bf16 %v1057_v26, %v1040_v25 }
  0x51   : > { %12340 = vmatmul.mubr.msk.bf16.vlgmr.msra.gmra.mxu1 %vm1079_vm1, %v1060_v27 }
  0x52   : > { %12345 = vmatprep.mubr.msk.bf16.mxu1 %vm13379_vm0, %v15798_v2 }
 0x111   : > { %v1117_v29 = vpop.f32.mrf.mxu1 }
 0x112   : > { %v1118_v30 = vadd.f32 %v11304_v28, %v1117_v29 }
 0x113   : > { %v12341_v31 = vpop.f32.mrf.mxu1 }
 0x114   : > { %v1126_v32 = vcombine.high %v1118_v30, %v1118_v30  ;;  %v13613_v33 = vrot.slane %v1118_v30, %v13593_v8 }
 0x115   : > { %v1120_v34 = vpop.f32.mrf.mxu1 }
 0x116   : > { %v13616_v35 = vrot.slane %v1126_v32, %v13593_v8  ;;  %v1121_v36 = vadd.f32 %v11304_v28, %v1120_v34  ;;  %1168 = vrot.lane.b32.xlu0 %v13613_v33, %s13381_s7  ;;  %v13622_v38 = vcombine.high %v13613_v33, %v13613_v33  ;;  %v13650_v45 = vpack.c.bf16 %v13613_v33, %v13613_v33 }
 0x117   : > { %v12342_v37 = vpop.f32.mrf.mxu1  ;;  %v1240_v9 = vmul.f32 0.35355338, %v13613_v33 }
 0x118   : > { %1172 = vrot.lane.b32.xlu1 %v13616_v35, %s13381_s7  ;;  %v1143_v39 = vcombine.high %v1121_v36, %v1121_v36  ;;  %v13625_v40 = vrot.slane %v1121_v36, %v13593_v8  ;;  %v13630_v41 = vcombine.high %v13616_v35, %v13616_v35  ;;  %v13656_v46 = vpack.c.bf16 %v13622_v38, %v13622_v38 }
 0x119   : > { %v13666_v47 = vpack.c.bf16 %v13616_v35, %v13616_v35  ;;  %v1241_v12 = vmul.f32 0.35355338, %v13622_v38  ;;  %v1272_v14 = vpack.c.bf16 %v1240_v9, %v1240_v9  ;;  %v1242_v21 = vmul.f32 0.35355338, %v13616_v35 }
 0x11a   : > { %1170 = vrot.lane.b32.xlu0 %v13622_v38, %s13381_s7  ;;  %v13634_v42 = vrot.slane %v1143_v39, %v13593_v8  ;;  %v13639_v43 = vcombine.high %v13625_v40, %v13625_v40  ;;  %v13672_v48 = vpack.c.bf16 %v13630_v41, %v13630_v41  ;;  %v13682_v49 = vpack.c.bf16 %v13625_v40, %v13625_v40 }
 0x11b   : > { %v1273_v18 = vpack.c.bf16 %v1241_v12, %v1241_v12  ;;  %v1243_v23 = vmul.f32 0.35355338, %v13630_v41  ;;  %v1274_v26 = vpack.c.bf16 %v1242_v21, %v1242_v21 }
 0x11c   : > { %1174 = vrot.lane.b32.xlu1 %v13630_v41, %s13381_s7  ;;  %v13645_v44 = vcombine.high %v13634_v42, %v13634_v42  ;;  %v13688_v50 = vpack.c.bf16 %v13639_v43, %v13639_v43  ;;  %v13698_v51 = vpack.c.bf16 %v13634_v42, %v13634_v42  ;;  %v1245_v36 = vmul.f32 0.35355338, %v13639_v43 }
 0x11d   : > { %v1275_v30 = vpack.c.bf16 %v1243_v23, %v1243_v23  ;;  %v1246_v9 = vmul.f32 0.35355338, %v13634_v42 }
 0x11e   : > { %1176 = vrot.lane.b32.xlu0 %v13625_v40, %s13381_s7  ;;  %v13704_v52 = vpack.c.bf16 %v13645_v44, %v13645_v44 }
 0x120   : > { %1178 = vrot.lane.b32.xlu1 %v13639_v43, %s13381_s7 }
 0x122   : > { %1180 = vrot.lane.b32.xlu0 %v13634_v42, %s13381_s7 }
 0x124   : > { %1182 = vrot.lane.b32.xlu1 %v13645_v44, %s13381_s7  ;;  %s15851_s7 = sld [smem:[#allocation4_spill]] }
 0x126   : > { %1337 = vrot.lane.b32.xlu0 %v13650_v45, %s13382_s10 }
 0x128   : > { %1387 = vrot.lane.b32.xlu1 %v13656_v46, %s13382_s10 }
 0x12a   : > { %1192 = vrot.lane.b32.xlu0 %v13613_v33, %s13383_s11 }
 0x12c   : > { %1194 = vrot.lane.b32.xlu1 %v13622_v38, %s13383_s11 }
 0x12e   : > { %1436 = vrot.lane.b32.xlu0 %v13666_v47, %s13382_s10 }
 0x130   : > { %1485 = vrot.lane.b32.xlu1 %v13672_v48, %s13382_s10 }
 0x132   : > { %1196 = vrot.lane.b32.xlu0 %v13616_v35, %s13383_s11 }
 0x134   : > { %1198 = vrot.lane.b32.xlu1 %v13630_v41, %s13383_s11 }
 0x136   : > { %1534 = vrot.lane.b32.xlu0 %v13682_v49, %s13382_s10 }
 0x138   : > { %1583 = vrot.lane.b32.xlu1 %v13688_v50, %s13382_s10 }
 0x13a   : > { %1200 = vrot.lane.b32.xlu0 %v13625_v40, %s13383_s11 }
 0x13c   : > { %1202 = vrot.lane.b32.xlu1 %v13639_v43, %s13383_s11 }
 0x13e   : > { %1632 = vrot.lane.b32.xlu0 %v13698_v51, %s13382_s10 }
 0x140   : > { %1681 = vrot.lane.b32.xlu1 %v13704_v52, %s13382_s10 }
 0x142   : > { %1204 = vrot.lane.b32.xlu0 %v13634_v42, %s13383_s11 }
 0x144   : > { %1206 = vrot.lane.b32.xlu1 %v13645_v44, %s13383_s11 }
 0x188   : > { %v13712_v53 = vpop.permute.xlu0 %1168 }
 0x189   : > { %v13716_v54 = vpack.c.bf16 %v13712_v53, %v13712_v53  ;;  %v1248_v23 = vmul.f32 0.35355338, %v13712_v53 }
 0x18a   : > { %v13718_v55 = vpop.permute.xlu1 %1172 }
 0x18b   : > { %1730 = vrot.lane.b32.xlu0 %v13716_v54, %s13382_s10  ;;  %v13738_v60 = vpack.c.bf16 %v13718_v55, %v13718_v55 }
 0x18c   : > { %v13722_v56 = vpop.permute.xlu0 %1170 }
 0x18d   : > { %v13726_v57 = vpack.c.bf16 %v13722_v56, %v13722_v56 }
 0x18e   : > { %v13728_v58 = vpop.permute.xlu1 %1174 }
 0x18f   : > { %1216 = vrot.lane.b32.xlu0 %v13613_v33, %s13384_s15  ;;  %1779 = vrot.lane.b32.xlu1 %v13726_v57, %s13382_s10  ;;  %v13750_v63 = vpack.c.bf16 %v13728_v58, %v13728_v58  ;;  %v1244_v33 = vmul.f32 0.35355338, %v13625_v40 }
 0x190   : > { %v13734_v59 = vpop.permute.xlu0 %1176 }
 0x191   : > { %v13760_v3 = vpack.c.bf16 %v13734_v59, %v13734_v59  ;;  %v1276_v39 = vpack.c.bf16 %v1244_v33, %v1244_v33 }
 0x192   : > { %v13740_v61 = vpop.permute.xlu1 %1178 }
 0x193   : > { %1828 = vrot.lane.b32.xlu0 %v13738_v60, %s13382_s10  ;;  %1218 = vrot.lane.b32.xlu1 %v13622_v38, %s13384_s15  ;;  %v13774_v11 = vpack.c.bf16 %v13740_v61, %v13740_v61 }
 0x194   : > { %v13746_v62 = vpop.permute.xlu0 %1180 }
 0x195   : > { %v13786_v16 = vpack.c.bf16 %v13746_v62, %v13746_v62 }
 0x196   : > { %v13752_v0 = vpop.permute.xlu1 %1182 }
 0x197   : > { %1220 = vrot.lane.b32.xlu0 %v13616_v35, %s13384_s15  ;;  %1877 = vrot.lane.b32.xlu1 %v13750_v63, %s13382_s10  ;;  %v13807_v24 = vpack.c.bf16 %v13752_v0, %v13752_v0 }
 0x198   : > { %v1338_v1 = vpop.permute.xlu0 %1337 }
 0x199   : > { %v1344_v4 = vsel %vm1339_vm2, %v1338_v1, 0  ;;  %v1277_v1 = vpack.c.bf16 %v1245_v36, %v1245_v36 }
 0x19a   : > { %12344 = vmatpush3.bf16.xpose.msra.mxu1 %v1344_v4  ;;  %v1388_v5 = vpop.permute.xlu1 %1387 }
 0x19b   : > { %1926 = vrot.lane.b32.xlu0 %v13760_v3, %s13382_s10  ;;  %1222 = vrot.lane.b32.xlu1 %v13630_v41, %s13384_s15  ;;  %v1393_v7 = vsel %vm1339_vm2, %v1388_v5, 0 }
 0x19c   : > { %v13769_v10 = vpop.permute.xlu0 %1192  ;;  %12350 = vmatpush3.bf16.xpose.msra.mxu0 %v1393_v7  ;;  %12355 = vmatprep.subr.bf16.mxu1 %v15798_v2 }
 0x19d   : > { %12361 = vmatprep.subr.bf16.mxu0 %v15798_v2  ;;  %v13818_v28 = vpack.c.bf16 %v13769_v10, %v13769_v10 }
 0x19e   : > { %v13778_v13 = vpop.permute.xlu1 %1194 }
 0x19f   : > { %1224 = vrot.lane.b32.xlu0 %v13625_v40, %s13384_s15  ;;  %1975 = vrot.lane.b32.xlu1 %v13774_v11, %s13382_s10  ;;  %v13843_v37 = vpack.c.bf16 %v13778_v13, %v13778_v13 }
 0x1a0   : > { %v1437_v15 = vpop.permute.xlu0 %1436 }
 0x1a1   : > { %v1442_v17 = vsel %vm1339_vm2, %v1437_v15, 0  ;;  %12346 = vmatmul.mubr.msk.bf16.vlgmr.msra.gmra.mxu1 %vm1339_vm2, %v1272_v14  ;;  %v1247_v15 = vmul.f32 0.35355338, %v13645_v44 }
 0x1a2   : > { %12356 = vmatpush3.bf16.xpose.msra.mxu1 %v1442_v17  ;;  %v1486_v19 = vpop.permute.xlu1 %1485  ;;  %12357 = vmatprep.mubr.msk.bf16.mxu1 %vm13379_vm0, %v15798_v2 }
 0x1a3   : > { %v1491_v20 = vsel %vm1339_vm2, %v1486_v19, 0  ;;  %2024 = vrot.lane.b32.xlu0 %v13786_v16, %s13382_s10  ;;  %12352 = vmatmul.mubr.msk.bf16.vlgmr.msra.gmra.mxu0 %vm1339_vm2, %v1273_v18  ;;  %v1278_v18 = vpack.c.bf16 %v1246_v9, %v1246_v9  ;;  %v1251_v9 = vmul.f32 0.35355338, %v13728_v58 }
 0x1a4   : > { %1226 = vrot.lane.b32.xlu1 %v13639_v43, %s13384_s15  ;;  %v13799_v22 = vpop.permute.xlu0 %1196  ;;  %12362 = vmatpush3.bf16.xpose.msra.mxu0 %v1491_v20 }
 0x1a5   : > { %12367 = vmatprep.subr.bf16.mxu1 %v15798_v2  ;;  %12363 = vmatprep.mubr.msk.bf16.mxu0 %vm13379_vm0, %v15798_v2  ;;  %v13835_v35 = vpack.c.bf16 %v13799_v22, %v13799_v22  ;;  %v1283_v58 = vpack.c.bf16 %v1251_v9, %v1251_v9 }
 0x1a6   : > { %v13809_v25 = vpop.permute.xlu1 %1198  ;;  %12373 = vmatprep.subr.bf16.mxu0 %v15798_v2 }
 0x1a7   : > { %1228 = vrot.lane.b32.xlu0 %v13634_v42, %s13384_s15  ;;  %v13860_v4 = vpack.c.bf16 %v13809_v25, %v13809_v25 }
 0x1a8   : > { %2073 = vrot.lane.b32.xlu1 %v13807_v24, %s13382_s10  ;;  %v1535_v27 = vpop.permute.xlu0 %1534 }
 0x1a9   : > { %v1540_v29 = vsel %vm1339_vm2, %v1535_v27, 0  ;;  %12358 = vmatmul.mubr.msk.bf16.vlgmr.msra.gmra.mxu1 %vm1339_vm2, %v1274_v26 }
 0x1aa   : > { %12368 = vmatpush3.bf16.xpose.msra.mxu1 %v1540_v29  ;;  %v1584_v31 = vpop.permute.xlu1 %1583  ;;  %12369 = vmatprep.mubr.msk.bf16.mxu1 %vm13379_vm0, %v15798_v2 }
 0x1ab   : > { %v1589_v32 = vsel %vm1339_vm2, %v1584_v31, 0  ;;  %2122 = vrot.lane.b32.xlu0 %v13818_v28, %s13382_s10  ;;  %12364 = vmatmul.mubr.msk.bf16.vlgmr.msra.gmra.mxu0 %vm1339_vm2, %v1275_v30  ;;  %v1280_v31 = vpack.c.bf16 %v1248_v23, %v1248_v23 }
 0x1ac   : > { %1230 = vrot.lane.b32.xlu1 %v13645_v44, %s13384_s15  ;;  %v13831_v34 = vpop.permute.xlu0 %1200  ;;  %12374 = vmatpush3.bf16.xpose.msra.mxu0 %v1589_v32  ;;  %v1279_v44 = vpack.c.bf16 %v1247_v15, %v1247_v15  ;;  %v1249_v32 = vmul.f32 0.35355338, %v13722_v56  ;;  %v1250_v56 = vmul.f32 0.35355338, %v13718_v55  ;;  %s15852_s15 = sld [smem:[#allocation2_spill]] }
 0x1ad   : > { %12379 = vmatprep.subr.bf16.mxu1 %v15798_v2  ;;  %12375 = vmatprep.mubr.msk.bf16.mxu0 %vm13379_vm0, %v15798_v2  ;;  %v13854_v41 = vpack.c.bf16 %v13831_v34, %v13831_v34 }
 0x1ae   : > { %v13845_v38 = vpop.permute.xlu1 %1202  ;;  %12385 = vmatprep.subr.bf16.mxu0 %v15798_v2  ;;  %v1282_v55 = vpack.c.bf16 %v1250_v56, %v1250_v56 }
 0x1af   : > { %2220 = vrot.lane.b32.xlu0 %v13835_v35, %s13382_s10  ;;  %v13883_v42 = vpack.c.bf16 %v13845_v38, %v13845_v38 }
 0x1b0   : > { %2171 = vrot.lane.b32.xlu1 %v13843_v37, %s13382_s10  ;;  %v1633_v40 = vpop.permute.xlu0 %1632 }
 0x1b1   : > { %v1638_v43 = vsel %vm1339_vm2, %v1633_v40, 0  ;;  %12370 = vmatmul.mubr.msk.bf16.vlgmr.msra.gmra.mxu1 %vm1339_vm2, %v1276_v39  ;;  %v1281_v40 = vpack.c.bf16 %v1249_v32, %v1249_v32  ;;  %v1253_v32 = vmul.f32 0.35355338, %v13740_v61 }
 0x1b2   : > { %12380 = vmatpush3.bf16.xpose.msra.mxu1 %v1638_v43  ;;  %v1682_v5 = vpop.permute.xlu1 %1681  ;;  %12381 = vmatprep.mubr.msk.bf16.mxu1 %vm13379_vm0, %v15798_v2 }
 0x1b3   : > { %v1687_v7 = vsel %vm1339_vm2, %v1682_v5, 0  ;;  %2318 = vrot.lane.b32.xlu0 %v13854_v41, %s13382_s10  ;;  %12376 = vmatmul.mubr.msk.bf16.vlgmr.msra.gmra.mxu0 %vm1339_vm2, %v1277_v1  ;;  %v1285_v61 = vpack.c.bf16 %v1253_v32, %v1253_v32 }
 0x1b4   : > { %2269 = vrot.lane.b32.xlu1 %v13860_v4, %s13382_s10  ;;  %v13871_v12 = vpop.permute.xlu0 %1204  ;;  %12386 = vmatpush3.bf16.xpose.msra.mxu0 %v1687_v7 }
 0x1b5   : > { %v13875_v14 = vpack.c.bf16 %v13871_v12, %v13871_v12  ;;  %12387 = vmatprep.mubr.msk.bf16.mxu0 %vm13379_vm0, %v15798_v2  ;;  %12391 = vmatprep.subr.bf16.mxu1 %v15798_v2 }
 0x1b6   : > { %12397 = vmatprep.subr.bf16.mxu0 %v15798_v2  ;;  %v13886_v17 = vpop.permute.xlu1 %1206 }
 0x1b7   : > { %2416 = vrot.lane.b32.xlu0 %v13875_v14, %s13382_s10  ;;  %v13895_v19 = vpack.c.bf16 %v13886_v17, %v13886_v17 }
 0x1b8   : > { %2367 = vrot.lane.b32.xlu1 %v13883_v42, %s13382_s10 }
 0x1b9   : > { %12382 = vmatmul.mubr.msk.bf16.vlgmr.msra.gmra.mxu1 %vm1339_vm2, %v1278_v18 }
 0x1ba   : > { %12393 = vmatprep.mubr.msk.bf16.mxu1 %vm13379_vm0, %v15798_v2 }
 0x1bb   : > { %12388 = vmatmul.mubr.msk.bf16.vlgmr.msra.gmra.mxu0 %vm1339_vm2, %v1279_v44 }
 0x1bc   : > { %2465 = vrot.lane.b32.xlu1 %v13895_v19, %s13382_s10  ;;  %12399 = vmatprep.mubr.msk.bf16.mxu0 %vm13379_vm0, %v15798_v2 }
 0x1fd   : > { %v1731_v20 = vpop.permute.xlu0 %1730 }
 0x1fe   : > { %v1736_v21 = vsel %vm1339_vm2, %v1731_v20, 0 }
 0x1ff   : > { %12392 = vmatpush3.bf16.xpose.msra.mxu1 %v1736_v21  ;;  %v1252_v21 = vmul.f32 0.35355338, %v13734_v59 }
 0x200   : > { %12403 = vmatprep.subr.bf16.mxu1 %v15798_v2 }
 0x201   : > { %v13907_v26 = vpop.permute.xlu0 %1216  ;;  %v1780_v27 = vpop.permute.xlu1 %1779  ;;  %v1284_v59 = vpack.c.bf16 %v1252_v21, %v1252_v21 }
 0x202   : > { %v13911_v29 = vpack.c.bf16 %v13907_v26, %v13907_v26  ;;  %v1785_v30 = vsel %vm1339_vm2, %v1780_v27, 0 }
 0x203   : > { %12398 = vmatpush3.bf16.xpose.msra.mxu0 %v1785_v30 }
 0x204   : > { %2514 = vrot.lane.b32.xlu0 %v13911_v29, %s13382_s10  ;;  %12409 = vmatprep.subr.bf16.mxu0 %v15798_v2 }
 0x205   : > { %v1829_v53 = vpop.permute.xlu0 %1828  ;;  %v13918_v33 = vpop.permute.xlu1 %1218 }
 0x206   : > { %v1834_v36 = vsel %vm1339_vm2, %v1829_v53, 0  ;;  %v13923_v39 = vpack.c.bf16 %v13918_v33, %v13918_v33  ;;  %12394 = vmatmul.mubr.msk.bf16.vlgmr.msra.gmra.mxu1 %vm1339_vm2, %v1280_v31 }
 0x207   : > { %12404 = vmatpush3.bf16.xpose.msra.mxu1 %v1834_v36  ;;  %12405 = vmatprep.mubr.msk.bf16.mxu1 %vm13379_vm0, %v15798_v2 }
 0x208   : > { %2563 = vrot.lane.b32.xlu1 %v13923_v39, %s13382_s10  ;;  %12415 = vmatprep.subr.bf16.mxu1 %v15798_v2 }
 0x209   : > { %v13932_v43 = vpop.permute.xlu0 %1220  ;;  %v1878_v1 = vpop.permute.xlu1 %1877 }
 0x20a   : > { %v13936_v5 = vpack.c.bf16 %v13932_v43, %v13932_v43  ;;  %v1883_v7 = vsel %vm1339_vm2, %v1878_v1, 0  ;;  %12400 = vmatmul.mubr.msk.bf16.vlgmr.msra.gmra.mxu0 %vm1339_vm2, %v1281_v40  ;;  %v1254_v1 = vmul.f32 0.35355338, %v13746_v62 }
 0x20b   : > { %12410 = vmatpush3.bf16.xpose.msra.mxu0 %v1883_v7  ;;  %12411 = vmatprep.mubr.msk.bf16.mxu0 %vm13379_vm0, %v15798_v2 }
 0x20c   : > { %2612 = vrot.lane.b32.xlu0 %v13936_v5, %s13382_s10  ;;  %12421 = vmatprep.subr.bf16.mxu0 %v15798_v2  ;;  %v1286_v62 = vpack.c.bf16 %v1254_v1, %v1254_v1 }
 0x20d   : > { %v1927_v15 = vpop.permute.xlu0 %1926  ;;  %v13946_v18 = vpop.permute.xlu1 %1222 }
 0x20e   : > { %v1932_v44 = vsel %vm1339_vm2, %v1927_v15, 0  ;;  %v13951_v20 = vpack.c.bf16 %v13946_v18, %v13946_v18  ;;  %12406 = vmatmul.mubr.msk.bf16.vlgmr.msra.gmra.mxu1 %vm1339_vm2, %v1282_v55 }
 0x20f   : > { %12416 = vmatpush3.bf16.xpose.msra.mxu1 %v1932_v44  ;;  %12417 = vmatprep.mubr.msk.bf16.mxu1 %vm13379_vm0, %v15798_v2  ;;  %v1255_v44 = vmul.f32 0.35355338, %v13752_v0 }
 0x210   : > { %2661 = vrot.lane.b32.xlu1 %v13951_v20, %s13382_s10  ;;  %12427 = vmatprep.subr.bf16.mxu1 %v15798_v2 }
 0x211   : > { %v13960_v23 = vpop.permute.xlu0 %1224  ;;  %v1976_v27 = vpop.permute.xlu1 %1975  ;;  %v1287_v0 = vpack.c.bf16 %v1255_v44, %v1255_v44 }
 0x212   : > { %v13964_v30 = vpack.c.bf16 %v13960_v23, %v13960_v23  ;;  %v1981_v31 = vsel %vm1339_vm2, %v1976_v27, 0  ;;  %12412 = vmatmul.mubr.msk.bf16.vlgmr.msra.gmra.mxu0 %vm1339_vm2, %v1283_v58 }
 0x213   : > { %12422 = vmatpush3.bf16.xpose.msra.mxu0 %v1981_v31  ;;  %12423 = vmatprep.mubr.msk.bf16.mxu0 %vm13379_vm0, %v15798_v2 }
 0x214   : > { %2710 = vrot.lane.b32.xlu0 %v13964_v30, %s13382_s10  ;;  %12433 = vmatprep.subr.bf16.mxu0 %v15798_v2 }
 0x215   : > { %v2025_v53 = vpop.permute.xlu0 %2024 }
 0x216   : > { %v2030_v36 = vsel %vm1339_vm2, %v2025_v53, 0  ;;  %v13975_v56 = vpop.permute.xlu1 %1226  ;;  %12418 = vmatmul.mubr.msk.bf16.vlgmr.msra.gmra.mxu1 %vm1339_vm2, %v1284_v59  ;;  %v1256_v59 = vmul.f32 0.35355338, %v13769_v10  ;;  %v1257_v10 = vmul.f32 0.35355338, %v13778_v13 }
 0x217   : > { %v13980_v40 = vpack.c.bf16 %v13975_v56, %v13975_v56  ;;  %12428 = vmatpush3.bf16.xpose.msra.mxu1 %v2030_v36  ;;  %12429 = vmatprep.mubr.msk.bf16.mxu1 %vm13379_vm0, %v15798_v2 }
 0x218   : > { %12439 = vmatprep.subr.bf16.mxu1 %v15798_v2 }
 0x219   : > { %2759 = vrot.lane.b32.xlu1 %v13980_v40, %s13382_s10  ;;  %v13988_v7 = vpop.permute.xlu0 %1228 }
 0x21a   : > { %v13992_v55 = vpack.c.bf16 %v13988_v7, %v13988_v7  ;;  %v2074_v9 = vpop.permute.xlu1 %2073  ;;  %12424 = vmatmul.mubr.msk.bf16.vlgmr.msra.gmra.mxu0 %vm1339_vm2, %v1285_v61  ;;  %v1288_v61 = vpack.c.bf16 %v1256_v59, %v1256_v59 }
 0x21b   : > { %v2079_v15 = vsel %vm1339_vm2, %v2074_v9, 0  ;;  %12435 = vmatprep.mubr.msk.bf16.mxu0 %vm13379_vm0, %v15798_v2 }
 0x21c   : > { %15823 = vst [vmem:[#allocation19_spill] sm:$0xff] %v13992_v55  ;;  %12434 = vmatpush3.bf16.xpose.msra.mxu0 %v2079_v15  ;;  %2808 = vrot.lane.b32.xlu0 %v13992_v55, %s13382_s10 }
 0x21d   : > { %v2123_v58 = vpop.permute.xlu0 %2122  ;;  %12445 = vmatprep.subr.bf16.mxu0 %v15798_v2 }
 0x21e   : > { %v2128_v21 = vsel %vm1339_vm2, %v2123_v58, 0  ;;  %v14003_v27 = vpop.permute.xlu1 %1230  ;;  %12430 = vmatmul.mubr.msk.bf16.vlgmr.msra.gmra.mxu1 %vm1339_vm2, %v1286_v62 }
 0x21f   : > { %v14008_v31 = vpack.c.bf16 %v14003_v27, %v14003_v27  ;;  %12440 = vmatpush3.bf16.xpose.msra.mxu1 %v2128_v21  ;;  %12441 = vmatprep.mubr.msk.bf16.mxu1 %vm13379_vm0, %v15798_v2 }
 0x220   : > { %3340 = vrot.lane.b32.xlu0 %v13656_v46, %s13385_s16  ;;  %12451 = vmatprep.subr.bf16.mxu1 %v15798_v2 }
 0x221   : > { %15824 = vst [vmem:[#allocation20_spill] sm:$0xff] %v14008_v31  ;;  %2857 = vrot.lane.b32.xlu1 %v14008_v31, %s13382_s10  ;;  %v2221_v53 = vpop.permute.xlu0 %2220 }
 0x222   : > { %v2172_v32 = vpop.permute.xlu1 %2171  ;;  %v2226_v46 = vsel %vm1339_vm2, %v2221_v53, 0 }
 0x223   : > { %v2177_v36 = vsel %vm1339_vm2, %v2172_v32, 0  ;;  %12436 = vmatmul.mubr.msk.bf16.vlgmr.msra.gmra.mxu0 %vm1339_vm2, %v1287_v0 }
 0x224   : > { %12446 = vmatpush3.bf16.xpose.msra.mxu0 %v2177_v36  ;;  %3436 = vrot.lane.b32.xlu0 %v13672_v48, %s13385_s16  ;;  %v1258_v48 = vmul.f32 0.35355338, %v13799_v22  ;;  %v1259_v22 = vmul.f32 0.35355338, %v13809_v25 }
 0x225   : > { %3290 = vrot.lane.b32.xlu1 %v13650_v45, %s13385_s16  ;;  %12447 = vmatprep.mubr.msk.bf16.mxu0 %vm13379_vm0, %v15798_v2  ;;  %v1289_v45 = vpack.c.bf16 %v1257_v10, %v1257_v10  ;;  %v2319_v13 = vpop.permute.xlu0 %2318 }
 0x226   : > { %12442 = vmatmul.mubr.msk.bf16.vlgmr.msra.gmra.mxu1 %vm1339_vm2, %v1288_v61  ;;  %12457 = vmatprep.subr.bf16.mxu0 %v15798_v2  ;;  %v2270_v1 = vpop.permute.xlu1 %2269  ;;  %v1290_v15 = vpack.c.bf16 %v1258_v48, %v1258_v48 }
 0x227   : > { %12452 = vmatpush3.bf16.xpose.msra.mxu1 %v2226_v46  ;;  %12453 = vmatprep.mubr.msk.bf16.mxu1 %vm13379_vm0, %v15798_v2  ;;  %v2275_v9 = vsel %vm1339_vm2, %v2270_v1, 0 }
 0x228   : > { %3532 = vrot.lane.b32.xlu0 %v13688_v50, %s13385_s16  ;;  %12463 = vmatprep.subr.bf16.mxu1 %v15798_v2  ;;  %v1260_v50 = vmul.f32 0.35355338, %v13831_v34  ;;  %v1261_v34 = vmul.f32 0.35355338, %v13845_v38 }
 0x229   : > { %3388 = vrot.lane.b32.xlu1 %v13666_v47, %s13385_s16  ;;  %v2324_v47 = vsel %vm1339_vm2, %v2319_v13, 0  ;;  %v2417_v25 = vpop.permute.xlu0 %2416 }
 0x22a   : > { %v1292_v44 = vpack.c.bf16 %v1260_v50, %v1260_v50 }
 0x22b   : > { %12448 = vmatmul.mubr.msk.bf16.vlgmr.msra.gmra.mxu0 %vm1339_vm2, %v1289_v45 }
 0x22c   : > { %12458 = vmatpush3.bf16.xpose.msra.mxu0 %v2275_v9  ;;  %3628 = vrot.lane.b32.xlu0 %v13704_v52, %s13385_s16  ;;  %v2368_v52 = vpop.permute.xlu1 %2367 }
 0x22d   : > { %3484 = vrot.lane.b32.xlu1 %v13682_v49, %s13385_s16  ;;  %12459 = vmatprep.mubr.msk.bf16.mxu0 %vm13379_vm0, %v15798_v2  ;;  %v1291_v49 = vpack.c.bf16 %v1259_v22, %v1259_v22  ;;  %v2373_v62 = vsel %vm1339_vm2, %v2368_v52, 0 }
 0x22e   : > { %12454 = vmatmul.mubr.msk.bf16.vlgmr.msra.gmra.mxu1 %vm1339_vm2, %v1290_v15  ;;  %12469 = vmatprep.subr.bf16.mxu0 %v15798_v2 }
 0x22f   : > { %12464 = vmatpush3.bf16.xpose.msra.mxu1 %v2324_v47  ;;  %12465 = vmatprep.mubr.msk.bf16.mxu1 %vm13379_vm0, %v15798_v2  ;;  %v1264_v47 = vmul.f32 0.35355338, %v13907_v26 }
 0x230   : > { %3724 = vrot.lane.b32.xlu0 %v13726_v57, %s13385_s16  ;;  %12475 = vmatprep.subr.bf16.mxu1 %v15798_v2  ;;  %v1262_v57 = vmul.f32 0.35355338, %v13871_v12  ;;  %v1263_v12 = vmul.f32 0.35355338, %v13886_v17 }
 0x231   : > { %3580 = vrot.lane.b32.xlu1 %v13698_v51, %s13385_s16  ;;  %v2422_v51 = vsel %vm1339_vm2, %v2417_v25, 0  ;;  %v1296_v26 = vpack.c.bf16 %v1264_v47, %v1264_v47 }
 0x232   : > { %v1294_v58 = vpack.c.bf16 %v1262_v57, %v1262_v57  ;;  %v1265_v57 = vmul.f32 0.35355338, %v13918_v33 }
 0x233   : > { %12460 = vmatmul.mubr.msk.bf16.vlgmr.msra.gmra.mxu0 %vm1339_vm2, %v1291_v49 }
 0x234   : > { %12470 = vmatpush3.bf16.xpose.msra.mxu0 %v2373_v62  ;;  %3820 = vrot.lane.b32.xlu0 %v13750_v63, %s13385_s16  ;;  %v2466_v63 = vpop.permute.xlu1 %2465  ;;  %v1297_v33 = vpack.c.bf16 %v1265_v57, %v1265_v57 }
 0x235   : > { %3676 = vrot.lane.b32.xlu1 %v13716_v54, %s13385_s16  ;;  %12471 = vmatprep.mubr.msk.bf16.mxu0 %vm13379_vm0, %v15798_v2  ;;  %v1293_v54 = vpack.c.bf16 %v1261_v34, %v1261_v34  ;;  %v2471_v38 = vsel %vm1339_vm2, %v2466_v63, 0 }
 0x236   : > { %12466 = vmatmul.mubr.msk.bf16.vlgmr.msra.gmra.mxu1 %vm1339_vm2, %v1292_v44  ;;  %12481 = vmatprep.subr.bf16.mxu0 %v15798_v2 }
 0x237   : > { %12476 = vmatpush3.bf16.xpose.msra.mxu1 %v2422_v51  ;;  %12477 = vmatprep.mubr.msk.bf16.mxu1 %vm13379_vm0, %v15798_v2 }
 0x238   : > { %3916 = vrot.lane.b32.xlu0 %v13774_v11, %s13385_s16  ;;  %12487 = vmatprep.subr.bf16.mxu1 %v15798_v2 }
 0x239   : > { %3772 = vrot.lane.b32.xlu1 %v13738_v60, %s13385_s16  ;;  %v1295_v60 = vpack.c.bf16 %v1263_v12, %v1263_v12 }
 0x23b   : > { %12472 = vmatmul.mubr.msk.bf16.vlgmr.msra.gmra.mxu0 %vm1339_vm2, %v1293_v54 }
 0x23c   : > { %12482 = vmatpush3.bf16.xpose.msra.mxu0 %v2471_v38  ;;  %4108 = vrot.lane.b32.xlu0 %v13843_v37, %s13385_s16 }
 0x23d   : > { %3868 = vrot.lane.b32.xlu1 %v13760_v3, %s13385_s16  ;;  %12483 = vmatprep.mubr.msk.bf16.mxu0 %vm13379_vm0, %v15798_v2 }
 0x23e   : > { %12478 = vmatmul.mubr.msk.bf16.vlgmr.msra.gmra.mxu1 %vm1339_vm2, %v1294_v58  ;;  %12493 = vmatprep.subr.bf16.mxu0 %v15798_v2 }
 0x23f   : > { %12489 = vmatprep.mubr.msk.bf16.mxu1 %vm13379_vm0, %v15798_v2 }
 0x240   : > { %4204 = vrot.lane.b32.xlu0 %v13860_v4, %s13385_s16 }
 0x241   : > { %3964 = vrot.lane.b32.xlu1 %v13786_v16, %s13385_s16 }
 0x243   : > { %12484 = vmatmul.mubr.msk.bf16.vlgmr.msra.gmra.mxu0 %vm1339_vm2, %v1295_v60 }
 0x244   : > { %4012 = vrot.lane.b32.xlu0 %v13807_v24, %s13385_s16  ;;  %12495 = vmatprep.mubr.msk.bf16.mxu0 %vm13379_vm0, %v15798_v2 }
 0x245   : > { %4060 = vrot.lane.b32.xlu1 %v13818_v28, %s13385_s16 }
 0x248   : > { %4300 = vrot.lane.b32.xlu0 %v13883_v42, %s13385_s16 }
 0x249   : > { %4156 = vrot.lane.b32.xlu1 %v13835_v35, %s13385_s16 }
 0x24c   : > { %4396 = vrot.lane.b32.xlu0 %v13895_v19, %s13385_s16 }
 0x24d   : > { %4252 = vrot.lane.b32.xlu1 %v13854_v41, %s13385_s16 }
 0x251   : > { %4348 = vrot.lane.b32.xlu1 %v13875_v14, %s13385_s16 }
 0x255   : > { %4444 = vrot.lane.b32.xlu1 %v13911_v29, %s13385_s16 }
 0x261   : > { %v14114_v3 = vpop.f32.mrf.mxu1 }
 0x262   : > { %v2906_v41 = vsel %vm2905_vm3, %v14114_v3, -inf }
 0x263   : > { %v12347_v11 = vpop.f32.mrf.mxu1  ;;  %v14116_v16 = vpop.f32.mrf.mxu0 }
 0x264   : > { %v2909_v22 = vsel %vm2905_vm3, %v14116_v16, -inf }
 0x265   : > { %v1383_v24 = vpop.f32.mrf.mxu1  ;;  %v12353_v28 = vpop.f32.mrf.mxu0 }
 0x266   : > { %v1266_v24 = vmul.f32 0.35355338, %v13932_v43 }
 0x267   : > { %v12348_v35 = vpop.f32.mrf.mxu1  ;;  %v1432_v37 = vpop.f32.mrf.mxu0 }
 0x269   : > { %v12354_v4 = vpop.f32.mrf.mxu0  ;;  %v14118_v42 = vpop.f32.mrf.mxu1 }
 0x26a   : > { %v2912_v21 = vsel %vm2905_vm3, %v14118_v42, -inf  ;;  %v1298_v4 = vpack.c.bf16 %v1266_v24, %v1266_v24 }
 0x26b   : > { %v14122_v14 = vpop.f32.mrf.mxu0  ;;  %2907 = vmax.xlane.f32.xlu0 %v2906_v41  ;;  %v12359_v17 = vpop.f32.mrf.mxu1  ;;  %v1267_v41 = vmul.f32 0.35355338, %v13946_v18 }
 0x26c   : > { %v2915_v36 = vsel %vm2905_vm3, %v14122_v14, -inf }
 0x26d   : > { %v1481_v19 = vpop.f32.mrf.mxu1  ;;  %v12365_v29 = vpop.f32.mrf.mxu0 }
 0x26e   : > { %v1299_v19 = vpack.c.bf16 %v1267_v41, %v1267_v41  ;;  %v1268_v29 = vmul.f32 0.35355338, %v13960_v23  ;;  %v1270_v23 = vmul.f32 0.35355338, %v13988_v7 }
 0x26f   : > { %v1530_v59 = vpop.f32.mrf.mxu0  ;;  %2913 = vmax.xlane.f32.xlu0 %v2912_v21  ;;  %v12360_v0 = vpop.f32.mrf.mxu1 }
 0x270   : > { %v1300_v59 = vpack.c.bf16 %v1268_v29, %v1268_v29  ;;  %v1269_v0 = vmul.f32 0.35355338, %v13975_v56  ;;  %v1302_v56 = vpack.c.bf16 %v1270_v23, %v1270_v23 }
 0x271   : > { %v12366_v32 = vpop.f32.mrf.mxu0  ;;  %v14126_v53 = vpop.f32.mrf.mxu1 }
 0x272   : > { %v2918_v34 = vsel %vm2905_vm3, %v14126_v53, -inf }
 0x273   : > { %v14130_v61 = vpop.f32.mrf.mxu0  ;;  %2916 = vmax.xlane.f32.xlu0 %v2915_v36  ;;  %v12371_v10 = vpop.f32.mrf.mxu1 }
 0x274   : > { %v2921_v45 = vsel %vm2905_vm3, %v14130_v61, -inf  ;;  %v1301_v10 = vpack.c.bf16 %v1269_v0, %v1269_v0 }
 0x275   : > { %v1579_v46 = vpop.f32.mrf.mxu1  ;;  %v12377_v48 = vpop.f32.mrf.mxu0 }
 0x276   : > { %v2515_v1 = vpop.permute.xlu0 %2514 }
 0x277   : > { %v2520_v13 = vsel %vm1339_vm2, %v2515_v1, 0  ;;  %v1628_v9 = vpop.f32.mrf.mxu0  ;;  %2922 = vmax.xlane.f32.xlu0 %v2921_v45  ;;  %v12372_v15 = vpop.f32.mrf.mxu1  ;;  %v1271_v1 = vmul.f32 0.35355338, %v14003_v27 }
 0x278   : > { %12488 = vmatpush3.bf16.xpose.msra.mxu1 %v2520_v13 }
 0x279   : > { %2910 = vmax.xlane.f32.xlu1 %v2909_v22  ;;  %v12378_v50 = vpop.f32.mrf.mxu0  ;;  %v14138_v52 = vpop.f32.mrf.mxu1  ;;  %12499 = vmatprep.subr.bf16.mxu1 %v15798_v2  ;;  %v1303_v9 = vpack.c.bf16 %v1271_v1, %v1271_v1 }
 0x27a   : > { %v2564_v49 = vpop.permute.xlu1 %2563  ;;  %v2924_v11 = vsel %vm2905_vm3, %v14138_v52, -inf }
 0x27b   : > { %v2569_v25 = vsel %vm1339_vm2, %v2564_v49, 0  ;;  %v12383_v62 = vpop.f32.mrf.mxu1  ;;  %v14142_v44 = vpop.f32.mrf.mxu0 }
 0x27c   : > { %12494 = vmatpush3.bf16.xpose.msra.mxu0 %v2569_v25  ;;  %v2927_v51 = vsel %vm2905_vm3, %v14142_v44, -inf }
 0x27d   : > { %2919 = vmax.xlane.f32.xlu1 %v2918_v34  ;;  %v12389_v63 = vpop.f32.mrf.mxu0  ;;  %2928 = vmax.xlane.f32.xlu0 %v2927_v51  ;;  %v1677_v54 = vpop.f32.mrf.mxu1 }
 0x27e   : > { %v2613_v38 = vpop.permute.xlu0 %2612  ;;  %12505 = vmatprep.subr.bf16.mxu0 %v15798_v2 }
 0x27f   : > { %v2618_v58 = vsel %vm1339_vm2, %v2613_v38, 0  ;;  %v12384_v12 = vpop.f32.mrf.mxu1  ;;  %v1726_v60 = vpop.f32.mrf.mxu0  ;;  %12490 = vmatmul.mubr.msk.bf16.vlgmr.msra.gmra.mxu1 %vm1339_vm2, %v1296_v26 }
 0x280   : > { %12500 = vmatpush3.bf16.xpose.msra.mxu1 %v2618_v58  ;;  %12501 = vmatprep.mubr.msk.bf16.mxu1 %vm13379_vm0, %v15798_v2 }
 0x281   : > { %2925 = vmax.xlane.f32.xlu1 %v2924_v11  ;;  %v12390_v28 = vpop.f32.mrf.mxu0  ;;  %12511 = vmatprep.subr.bf16.mxu1 %v15798_v2 }
 0x282   : > { %v2662_v35 = vpop.permute.xlu1 %2661 }
 0x283   : > { %v2667_v37 = vsel %vm1339_vm2, %v2662_v35, 0  ;;  %12496 = vmatmul.mubr.msk.bf16.vlgmr.msra.gmra.mxu0 %vm1339_vm2, %v1297_v33 }
 0x284   : > { %12506 = vmatpush3.bf16.xpose.msra.mxu0 %v2667_v37  ;;  %12507 = vmatprep.mubr.msk.bf16.mxu0 %vm13379_vm0, %v15798_v2 }
 0x285   : > { %12517 = vmatprep.subr.bf16.mxu0 %v15798_v2 }
 0x286   : > { %v2711_v17 = vpop.permute.xlu0 %2710 }
 0x287   : > { %v2716_v43 = vsel %vm1339_vm2, %v2711_v17, 0  ;;  %12502 = vmatmul.mubr.msk.bf16.vlgmr.msra.gmra.mxu1 %vm1339_vm2, %v1298_v4 }
 0x288   : > { %12512 = vmatpush3.bf16.xpose.msra.mxu1 %v2716_v43  ;;  %12513 = vmatprep.mubr.msk.bf16.mxu1 %vm13379_vm0, %v15798_v2 }
 0x289   : > { %12523 = vmatprep.subr.bf16.mxu1 %v15798_v2 }
 0x28b   : > { %v2760_v21 = vpop.permute.xlu1 %2759  ;;  %12508 = vmatmul.mubr.msk.bf16.vlgmr.msra.gmra.mxu0 %vm1339_vm2, %v1299_v19 }
 0x28c   : > { %v2765_v18 = vsel %vm1339_vm2, %v2760_v21, 0  ;;  %12519 = vmatprep.mubr.msk.bf16.mxu0 %vm13379_vm0, %v15798_v2 }
 0x28d   : > { %12518 = vmatpush3.bf16.xpose.msra.mxu0 %v2765_v18 }
 0x28e   : > { %v2809_v32 = vpop.permute.xlu0 %2808  ;;  %12529 = vmatprep.subr.bf16.mxu0 %v15798_v2 }
 0x28f   : > { %v2814_v36 = vsel %vm1339_vm2, %v2809_v32, 0  ;;  %12514 = vmatmul.mubr.msk.bf16.vlgmr.msra.gmra.mxu1 %vm1339_vm2, %v1300_v59 }
 0x290   : > { %12524 = vmatpush3.bf16.xpose.msra.mxu1 %v2814_v36  ;;  %12525 = vmatprep.mubr.msk.bf16.mxu1 %vm13379_vm0, %v15798_v2 }
 0x291   : > { %12535 = vmatprep.subr.bf16.mxu1 %v15798_v2 }
 0x292   : > { %v3341_v13 = vpop.permute.xlu0 %3340 }
 0x293   : > { %v2858_v46 = vpop.permute.xlu1 %2857  ;;  %v3346_v15 = vsel %vm3296_vm4, %v3341_v13, 0 }
 0x294   : > { %v2863_v48 = vsel %vm1339_vm2, %v2858_v46, 0  ;;  %12520 = vmatmul.mubr.msk.bf16.vlgmr.msra.gmra.mxu0 %vm1339_vm2, %v1301_v10 }
 0x295   : > { %12530 = vmatpush3.bf16.xpose.msra.mxu0 %v2863_v48  ;;  %12531 = vmatprep.mubr.msk.bf16.mxu0 %vm13379_vm0, %v15798_v2 }
 0x296   : > { %12541 = vmatprep.subr.bf16.mxu0 %v15798_v2  ;;  %v14200_v22 = vpop.permute.xlu0 %3436 }
 0x297   : > { %v3291_v45 = vpop.permute.xlu1 %3290  ;;  %12526 = vmatmul.mubr.msk.bf16.vlgmr.msra.gmra.mxu1 %vm1339_vm2, %v1302_v56 }
 0x298   : > { %v3298_v7 = vsel %vm3296_vm4, %v3291_v45, 0  ;;  %12537 = vmatprep.mubr.msk.bf16.mxu1 %vm13379_vm0, %v15798_v2 }
 0x299   : > { %12536 = vmatpush3.bf16.msra.mxu1 %v3298_v7 }
 0x29a   : > { %12547 = vmatprep.subr.bf16.mxu1 %v15798_v2  ;;  %v14206_v49 = vpop.permute.xlu0 %3532 }
 0x29b   : > { %v14198_v27 = vpop.permute.xlu1 %3388 }
 0x29c   : > { %12532 = vmatmul.mubr.msk.bf16.vlgmr.msra.gmra.mxu0 %vm1339_vm2, %v1303_v9 }
 0x29d   : > { %12542 = vmatpush3.bf16.msra.mxu0 %v3346_v15  ;;  %12543 = vmatprep.mubr.msk.bf16.mxu0 %vm13379_vm0, %v15798_v2 }
 0x29e   : > { %12553 = vmatprep.subr.bf16.mxu0 %v15798_v2  ;;  %v14216_v38 = vpop.permute.xlu0 %3628 }
 0x29f   : > { %v14202_v47 = vpop.permute.xlu1 %3484 }
 0x2a2   : > { %v14226_v37 = vpop.permute.xlu0 %3724 }
 0x2a3   : > { %v14212_v26 = vpop.permute.xlu1 %3580 }
 0x2a6   : > { %v14236_v0 = vpop.permute.xlu0 %3820 }
 0x2a7   : > { %v14222_v24 = vpop.permute.xlu1 %3676 }
 0x2aa   : > { %v14246_v45 = vpop.permute.xlu0 %3916 }
 0x2ab   : > { %v14232_v29 = vpop.permute.xlu1 %3772 }
 0x2af   : > { %v14242_v48 = vpop.permute.xlu1 %3868 }
 0x2c6   : > { %v14204_v50 = vpop.f32.mrf.mxu1 }
 0x2c7   : > { %v2930_v25 = vsel %vm2905_vm3, %v14204_v50, -inf }
 0x2c8   : > { %2931 = vmax.xlane.f32.xlu1 %v2930_v25  ;;  %v12395_v62 = vpop.f32.mrf.mxu1  ;;  %v14250_v25 = vpop.permute.xlu1 %3964 }
 0x2ca   : > { %v1775_v34 = vpop.f32.mrf.mxu1  ;;  %v14210_v51 = vpop.f32.mrf.mxu0 }
 0x2cb   : > { %v2933_v57 = vsel %vm2905_vm3, %v14210_v51, -inf }
 0x2cc   : > { %v12401_v63 = vpop.f32.mrf.mxu0  ;;  %2934 = vmax.xlane.f32.xlu0 %v2933_v57  ;;  %v12396_v54 = vpop.f32.mrf.mxu1 }
 0x2cd   : > { %v14256_v54 = vpop.permute.xlu0 %4108 }
 0x2ce   : > { %v1824_v58 = vpop.f32.mrf.mxu0  ;;  %v14218_v12 = vpop.f32.mrf.mxu1 }
 0x2cf   : > { %v2936_v60 = vsel %vm2905_vm3, %v14218_v12, -inf }
 0x2d0   : > { %v12402_v11 = vpop.f32.mrf.mxu0  ;;  %2937 = vmax.xlane.f32.xlu1 %v2936_v60  ;;  %v12407_v33 = vpop.f32.mrf.mxu1 }
 0x2d1   : > { %v14260_v33 = vpop.permute.xlu1 %4060 }
 0x2d2   : > { %v1873_v28 = vpop.f32.mrf.mxu1  ;;  %v14224_v35 = vpop.f32.mrf.mxu0 }
 0x2d3   : > { %v2939_v4 = vsel %vm2905_vm3, %v14224_v35, -inf }
 0x2d4   : > { %v12413_v41 = vpop.f32.mrf.mxu0  ;;  %2940 = vmax.xlane.f32.xlu0 %v2939_v4  ;;  %v12408_v17 = vpop.f32.mrf.mxu1 }
 0x2d5   : > { %v14264_v17 = vpop.permute.xlu0 %4204 }
 0x2d6   : > { %v1922_v43 = vpop.f32.mrf.mxu0  ;;  %v14230_v19 = vpop.f32.mrf.mxu1  ;;  %15825 = vst [vmem:[#allocation21_spill] sm:$0xff] %v14264_v17 }
 0x2d7   : > { %v2942_v21 = vsel %vm2905_vm3, %v14230_v19, -inf }
 0x2d8   : > { %v12414_v18 = vpop.f32.mrf.mxu0  ;;  %2943 = vmax.xlane.f32.xlu1 %v2942_v21  ;;  %v12419_v59 = vpop.f32.mrf.mxu1 }
 0x2d9   : > { %v14268_v59 = vpop.permute.xlu1 %4156 }
 0x2da   : > { %v1971_v32 = vpop.f32.mrf.mxu1  ;;  %v14238_v36 = vpop.f32.mrf.mxu0  ;;  %15826 = vst [vmem:[#allocation22_spill] sm:$0xff] %v14268_v59 }
 0x2db   : > { %v2945_v23 = vsel %vm2905_vm3, %v14238_v36, -inf }
 0x2dc   : > { %v12425_v10 = vpop.f32.mrf.mxu0  ;;  %2946 = vmax.xlane.f32.xlu0 %v2945_v23  ;;  %v12420_v46 = vpop.f32.mrf.mxu1 }
 0x2dd   : > { %v14272_v46 = vpop.permute.xlu0 %4012 }
 0x2de   : > { %v2020_v56 = vpop.f32.mrf.mxu0  ;;  %v14244_v1 = vpop.f32.mrf.mxu1 }
 0x2df   : > { %v2948_v7 = vsel %vm2905_vm3, %v14244_v1, -inf }
 0x2e0   : > { %v12426_v13 = vpop.f32.mrf.mxu0  ;;  %2949 = vmax.xlane.f32.xlu1 %v2948_v7  ;;  %v12431_v9 = vpop.f32.mrf.mxu1 }
 0x2e1   : > { %v14276_v9 = vpop.permute.xlu1 %4252 }
 0x2e2   : > { %v2069_v15 = vpop.f32.mrf.mxu1  ;;  %15827 = vst [vmem:[#allocation23_spill] sm:$0xff] %v14276_v9 }
 0x2e3   : > { %v14252_v62 = vpop.f32.mrf.mxu0 }
 0x2e4   : > { %v2951_v34 = vsel %vm2905_vm3, %v14252_v62, -inf  ;;  %v12432_v57 = vpop.f32.mrf.mxu1 }
 0x2e5   : > { %v12437_v63 = vpop.f32.mrf.mxu0  ;;  %2952 = vmax.xlane.f32.xlu0 %v2951_v34 }
 0x2e6   : > { %v14258_v58 = vpop.f32.mrf.mxu1  ;;  %v14282_v63 = vpop.permute.xlu0 %4300 }
 0x2e7   : > { %v2118_v60 = vpop.f32.mrf.mxu0  ;;  %15828 = vst [vmem:[#allocation24_spill] sm:$0xff] %v14282_v63 }
 0x2e8   : > { %v12443_v11 = vpop.f32.mrf.mxu1 }
 0x2e9   : > { %v12438_v28 = vpop.f32.mrf.mxu0 }
 0x2ea   : > { %v2167_v4 = vpop.f32.mrf.mxu1  ;;  %v14284_v28 = vpop.permute.xlu1 %4348 }
 0x2eb   : > { %v14262_v41 = vpop.f32.mrf.mxu0  ;;  %15829 = vst [vmem:[#allocation25_spill] sm:$0xff] %v14284_v28 }
 0x2ec   : > { %v12444_v43 = vpop.f32.mrf.mxu1 }
 0x2ed   : > { %v12449_v21 = vpop.f32.mrf.mxu0 }
 0x2ee   : > { %v14266_v18 = vpop.f32.mrf.mxu1 }
 0x2ef   : > { %v2216_v32 = vpop.f32.mrf.mxu0 }
 0x2f0   : > { %v12455_v23 = vpop.f32.mrf.mxu1  ;;  %v14290_v32 = vpop.permute.xlu0 %4396 }
 0x2f1   : > { %v12450_v10 = vpop.f32.mrf.mxu0  ;;  %4540 = vrot.lane.b32.xlu1 %v13936_v5, %s13385_s16  ;;  %15830 = vst [vmem:[#allocation26_spill] sm:$0xff] %v14290_v32 }
 0x2f2   : > { %v2265_v56 = vpop.f32.mrf.mxu1 }
 0x2f3   : > { %v14274_v7 = vpop.f32.mrf.mxu0  ;;  %v14294_v56 = vpop.permute.xlu1 %4444 }
 0x2f4   : > { %v12456_v13 = vpop.f32.mrf.mxu1  ;;  %15831 = vst [vmem:[#allocation27_spill] sm:$0xff] %v14294_v56 }
 0x2f5   : > { %v12461_v15 = vpop.f32.mrf.mxu0  ;;  %4588 = vrot.lane.b32.xlu1 %v13951_v20, %s13385_s16 }
 0x2f6   : > { %v14280_v34 = vpop.f32.mrf.mxu1  ;;  %v2908_v15 = vpop.xlane.xlu0 %2907 }
 0x2f7   : > { %v2314_v57 = vpop.f32.mrf.mxu0 }
 0x2f8   : > { %v12467_v60 = vpop.f32.mrf.mxu1 }
 0x2f9   : > { %v12462_v11 = vpop.f32.mrf.mxu0 }
 0x2fa   : > { %v2363_v5 = vpop.f32.mrf.mxu1 }
 0x2fb   : > { %v14286_v4 = vpop.f32.mrf.mxu0  ;;  %4492 = vrot.lane.b32.xlu0 %v13923_v39, %s13385_s16  ;;  %v3002_v39 = vsub.f32 %v14114_v3, %v2908_v15  ;;  %v2957_v3 = vsel %vm2905_vm3, %v14262_v41, -inf  ;;  %v2966_v15 = vsel %vm2905_vm3, %v14280_v34, -inf }
 0x2fc   : > { %v12468_v43 = vpop.f32.mrf.mxu1 }
 0x2fd   : > { %v12473_v21 = vpop.f32.mrf.mxu0  ;;  %v2914_v43 = vpop.xlane.xlu0 %2913  ;;  %v3034_v32 = vmul.f32 1.442695, %v3002_v39 }
 0x2fe   : > { %v14292_v20 = vpop.f32.mrf.mxu1 }
 0x2ff   : > { %v2412_v23 = vpop.f32.mrf.mxu0  ;;  %13174 = vpow2.f32 %v3034_v32 }
 0x300   : > { %v12479_v10 = vpop.f32.mrf.mxu1 }
 0x301   : > { %v12474_v13 = vpop.f32.mrf.mxu0  ;;  %v2917_v10 = vpop.xlane.xlu0 %2916 }
 0x302   : > { %v2461_v57 = vpop.f32.mrf.mxu1  ;;  %v2911_v2 = vpop.xlane.xlu1 %2910  ;;  %v3004_v13 = vsub.f32 %v14118_v42, %v2914_v43  ;;  %v2960_v42 = vsel %vm2905_vm3, %v14266_v18, -inf  ;;  %v2969_v43 = vsel %vm2905_vm3, %v14286_v4, -inf }
 0x303   : > { %v14296_v60 = vpop.f32.mrf.mxu0  ;;  %v3003_v21 = vsub.f32 %v14116_v16, %v2911_v2  ;;  %v3005_v57 = vsub.f32 %v14122_v14, %v2917_v10  ;;  %v2954_v2 = vsel %vm2905_vm3, %v14258_v58, -inf }
 0x304   : > { %v12480_v11 = vpop.f32.mrf.mxu1  ;;  %v3038_v56 = vmul.f32 1.442695, %v3004_v13 }
 0x305   : > { %v12485_v5 = vpop.f32.mrf.mxu0  ;;  %v3036_v23 = vmul.f32 1.442695, %v3003_v21  ;;  %v3040_v11 = vmul.f32 1.442695, %v3005_v57  ;;  %v2923_v28 = vpop.xlane.xlu0 %2922 }
 0x306   : > { %v2920_v5 = vpop.xlane.xlu1 %2919 }
 0x307   : > { %v2510_v6 = vpop.f32.mrf.mxu0  ;;  %13176 = vpow2.f32 %v3036_v23 }
 0x308   : > { %13178 = vpow2.f32 %v3038_v56  ;;  %v3006_v6 = vsub.f32 %v14126_v53, %v2920_v5  ;;  %v2963_v53 = vsel %vm2905_vm3, %v14274_v7, -inf }
 0x309   : > { %v12486_v8 = vpop.f32.mrf.mxu0  ;;  %13180 = vpow2.f32 %v3040_v11  ;;  %v2972_v11 = vsel %vm2905_vm3, %v14292_v20, -inf }
 0x30a   : > { %v3007_v8 = vsub.f32 %v14130_v61, %v2923_v28  ;;  %v3042_v16 = vmul.f32 1.442695, %v3006_v6  ;;  %v2926_v10 = vpop.xlane.xlu1 %2925  ;;  %v2929_v6 = vpop.xlane.xlu0 %2928 }
 0x30b   : > { %v3008_v57 = vsub.f32 %v14138_v52, %v2926_v10 }
 0x30c   : > { %v14310_v14 = vpop.eup %13174  ;;  %v3044_v32 = vmul.f32 1.442695, %v3007_v8  ;;  %13182 = vpow2.f32 %v3042_v16 }
 0x30d   : > { %v3098_v61 = vsel %vm2905_vm3, %v14310_v14, 0.0  ;;  %v3046_v16 = vmul.f32 1.442695, %v3008_v57 }
 0x30e   : > { %13184 = vpow2.f32 %v3044_v32 }
 0x30f   : > { %13186 = vpow2.f32 %v3046_v16 }
 0x314   : > { %v14314_v56 = vpop.eup %13176 }
 0x315   : > { %v3101_v28 = vsel %vm2905_vm3, %v14314_v56, 0.0  ;;  %v14322_v39 = vpop.eup %13178 }
 0x316   : > { %v14326_v21 = vpop.eup %13180  ;;  %v3104_v23 = vsel %vm2905_vm3, %v14322_v39, 0.0 }
 0x317   : > { %v3107_v13 = vsel %vm2905_vm3, %v14326_v21, 0.0 }
 0x319   : > { %2955 = vmax.xlane.f32.xlu1 %v2954_v2  ;;  %v14335_v5 = vpop.eup %13182  ;;  %v2975_v2 = vsel %vm2905_vm3, %v14296_v60, -inf }
 0x31a   : > { %2958 = vmax.xlane.f32.xlu0 %v2957_v3  ;;  %v3009_v3 = vsub.f32 %v14142_v44, %v2929_v6 }
 0x31b   : > { %v14339_v8 = vpop.eup %13184 }
 0x31c   : > { %v3113_v52 = vsel %vm2905_vm3, %v14339_v8, 0.0  ;;  %v3048_v32 = vmul.f32 1.442695, %v3009_v3 }
 0x31d   : > { %2961 = vmax.xlane.f32.xlu1 %v2960_v42  ;;  %v3110_v42 = vsel %vm2905_vm3, %v14335_v5, 0.0 }
 0x31e   : > { %2964 = vmax.xlane.f32.xlu0 %v2963_v53  ;;  %13188 = vpow2.f32 %v3048_v32 }
 0x321   : > { %3099 = vadd.xlane.f32.xlu1 %v3098_v61 }
 0x322   : > { %3102 = vadd.xlane.f32.xlu0 %v3101_v28  ;;  %v14350_v28 = vpop.eup %13186 }
 0x323   : > { %v3116_v10 = vsel %vm2905_vm3, %v14350_v28, 0.0 }
 0x325   : > { %2967 = vmax.xlane.f32.xlu1 %v2966_v15 }
 0x326   : > { %2970 = vmax.xlane.f32.xlu0 %v2969_v43 }
 0x329   : > { %3105 = vadd.xlane.f32.xlu1 %v3104_v23 }
 0x32a   : > { %3108 = vadd.xlane.f32.xlu0 %v3107_v13 }
 0x32b   : > { %v14358_v13 = vpop.eup %13188 }
 0x32c   : > { %v3119_v3 = vsel %vm2905_vm3, %v14358_v13, 0.0 }
 0x32d   : > { %2973 = vmax.xlane.f32.xlu1 %v2972_v11 }
 0x32e   : > { %2976 = vmax.xlane.f32.xlu0 %v2975_v2 }
 0x331   : > { %3111 = vadd.xlane.f32.xlu1 %v3110_v42 }
 0x332   : > { %3114 = vadd.xlane.f32.xlu0 %v3113_v52 }
 0x33f   : > { %v14346_v53 = vpop.f32.mrf.mxu1 }
 0x340   : > { %v2978_v61 = vsel %vm2905_vm3, %v14346_v53, -inf }
 0x341   : > { %2979 = vmax.xlane.f32.xlu1 %v2978_v61  ;;  %v12491_v44 = vpop.f32.mrf.mxu1 }
 0x343   : > { %v2559_v15 = vpop.f32.mrf.mxu1  ;;  %v14352_v43 = vpop.f32.mrf.mxu0 }
 0x344   : > { %v2981_v23 = vsel %vm2905_vm3, %v14352_v43, -inf }
 0x345   : > { %v12497_v57 = vpop.f32.mrf.mxu0  ;;  %2982 = vmax.xlane.f32.xlu0 %v2981_v23  ;;  %3117 = vadd.xlane.f32.xlu1 %v3116_v10  ;;  %v12492_v11 = vpop.f32.mrf.mxu1 }
 0x347   : > { %v2608_v6 = vpop.f32.mrf.mxu0  ;;  %v14360_v2 = vpop.f32.mrf.mxu1 }
 0x348   : > { %v2984_v16 = vsel %vm2905_vm3, %v14360_v2, -inf }
 0x349   : > { %v12498_v42 = vpop.f32.mrf.mxu0  ;;  %3120 = vadd.xlane.f32.xlu0 %v3119_v3  ;;  %2985 = vmax.xlane.f32.xlu1 %v2984_v16  ;;  %v12503_v52 = vpop.f32.mrf.mxu1 }
 0x34b   : > { %v2657_v32 = vpop.f32.mrf.mxu1  ;;  %v14366_v61 = vpop.f32.mrf.mxu0 }
 0x34c   : > { %v2987_v44 = vsel %vm2905_vm3, %v14366_v61, -inf }
 0x34d   : > { %v12509_v15 = vpop.f32.mrf.mxu0  ;;  %2988 = vmax.xlane.f32.xlu0 %v2987_v44  ;;  %v12504_v23 = vpop.f32.mrf.mxu1 }
 0x34f   : > { %v2706_v10 = vpop.f32.mrf.mxu0  ;;  %v14370_v57 = vpop.f32.mrf.mxu1 }
 0x350   : > { %v2990_v11 = vsel %vm2905_vm3, %v14370_v57, -inf }
 0x351   : > { %v12510_v6 = vpop.f32.mrf.mxu0  ;;  %v2932_v42 = vpop.xlane.xlu1 %2931  ;;  %2991 = vmax.xlane.f32.xlu1 %v2990_v11 }
 0x352   : > { %v3010_v3 = vsub.f32 %v14204_v50, %v2932_v42  ;;  %v12515_v16 = vpop.f32.mrf.mxu1 }
 0x354   : > { %v3050_v52 = vmul.f32 1.442695, %v3010_v3  ;;  %v2755_v32 = vpop.f32.mrf.mxu1  ;;  %v14375_v63 = vpop.f32.mrf.mxu0 }
 0x355   : > { %v2993_v44 = vsel %vm2905_vm3, %v14375_v63, -inf  ;;  %v2935_v15 = vpop.xlane.xlu0 %2934 }
 0x356   : > { %13190 = vpow2.f32 %v3050_v52  ;;  %v12521_v23 = vpop.f32.mrf.mxu0  ;;  %2994 = vmax.xlane.f32.xlu0 %v2993_v44  ;;  %v3011_v10 = vsub.f32 %v14210_v51, %v2935_v15  ;;  %v12516_v9 = vpop.f32.mrf.mxu1 }
 0x358   : > { %v3052_v6 = vmul.f32 1.442695, %v3011_v10  ;;  %v2804_v17 = vpop.f32.mrf.mxu0  ;;  %v14380_v11 = vpop.f32.mrf.mxu1 }
 0x359   : > { %v2938_v50 = vpop.xlane.xlu1 %2937  ;;  %v2996_v42 = vsel %vm2905_vm3, %v14380_v11, -inf }
 0x35a   : > { %13192 = vpow2.f32 %v3052_v6  ;;  %v12522_v3 = vpop.f32.mrf.mxu0  ;;  %v3012_v16 = vsub.f32 %v14218_v12, %v2938_v50  ;;  %2997 = vmax.xlane.f32.xlu1 %v2996_v42  ;;  %v12527_v32 = vpop.f32.mrf.mxu1 }
 0x35c   : > { %v3054_v52 = vmul.f32 1.442695, %v3012_v16  ;;  %v2853_v23 = vpop.f32.mrf.mxu1  ;;  %v14385_v44 = vpop.f32.mrf.mxu0 }
 0x35d   : > { %v2999_v51 = vsel %vm2905_vm3, %v14385_v44, -inf  ;;  %v2941_v17 = vpop.xlane.xlu0 %2940 }
 0x35e   : > { %13194 = vpow2.f32 %v3054_v52  ;;  %v12533_v9 = vpop.f32.mrf.mxu0  ;;  %3000 = vmax.xlane.f32.xlu0 %v2999_v51  ;;  %v3013_v15 = vsub.f32 %v14224_v35, %v2941_v17  ;;  %v12528_v10 = vpop.f32.mrf.mxu1 }
 0x360   : > { %v3056_v6 = vmul.f32 1.442695, %v3013_v15  ;;  %v2902_v3 = vpop.f32.mrf.mxu0 }
 0x361   : > { %v2944_v59 = vpop.xlane.xlu1 %2943 }
 0x362   : > { %13196 = vpow2.f32 %v3056_v6  ;;  %v12534_v12 = vpop.f32.mrf.mxu0  ;;  %v3014_v50 = vsub.f32 %v14230_v19, %v2944_v59 }
 0x363   : > { %v14391_v42 = vpop.eup %13190 }
 0x364   : > { %v3058_v16 = vmul.f32 1.442695, %v3014_v50  ;;  %v3122_v32 = vsel %vm2905_vm3, %v14391_v42, 0.0 }
 0x365   : > { %v2947_v23 = vpop.xlane.xlu0 %2946  ;;  %3123 = vadd.xlane.f32.xlu1 %v3122_v32 }
 0x366   : > { %13198 = vpow2.f32 %v3058_v16  ;;  %v3015_v52 = vsub.f32 %v14238_v36, %v2947_v23 }
 0x367   : > { %v14396_v35 = vpop.eup %13192 }
 0x368   : > { %v3060_v51 = vmul.f32 1.442695, %v3015_v52  ;;  %v3125_v17 = vsel %vm2905_vm3, %v14396_v35, 0.0 }
 0x369   : > { %3126 = vadd.xlane.f32.xlu0 %v3125_v17  ;;  %v2950_v9 = vpop.xlane.xlu1 %2949 }
 0x36a   : > { %13200 = vpow2.f32 %v3060_v51  ;;  %v3016_v19 = vsub.f32 %v14244_v1, %v2950_v9 }
 0x36b   : > { %v14401_v59 = vpop.eup %13194 }
 0x36c   : > { %v3062_v15 = vmul.f32 1.442695, %v3016_v19  ;;  %v3128_v10 = vsel %vm2905_vm3, %v14401_v59, 0.0 }
 0x36d   : > { %3129 = vadd.xlane.f32.xlu1 %v3128_v10  ;;  %v14426_v9 = vpop.permute.xlu1 %4540 }
 0x36e   : > { %13202 = vpow2.f32 %v3062_v15  ;;  %v2953_v36 = vpop.xlane.xlu0 %2952  ;;  %15832 = vst [vmem:[#allocation28_spill] sm:$0xff] %v14426_v9 }
 0x36f   : > { %v14405_v6 = vpop.eup %13196  ;;  %v3017_v3 = vsub.f32 %v14252_v62, %v2953_v36 }
 0x370   : > { %v3131_v12 = vsel %vm2905_vm3, %v14405_v6, 0.0 }
 0x371   : > { %v3064_v50 = vmul.f32 1.442695, %v3017_v3  ;;  %3132 = vadd.xlane.f32.xlu0 %v3131_v12  ;;  %v14428_v19 = vpop.permute.xlu1 %4588 }
 0x372   : > { %15833 = vst [vmem:[#allocation29_spill] sm:$0xff] %v14428_v19  ;;  %v14430_v15 = vpop.permute.xlu0 %4492 }
 0x373   : > { %v14410_v16 = vpop.eup %13198  ;;  %13204 = vpow2.f32 %v3064_v50  ;;  %15834 = vst [vmem:[#allocation30_spill] sm:$0xff] %v14430_v15 }
 0x374   : > { %v3134_v1 = vsel %vm2905_vm3, %v14410_v16, 0.0 }
 0x375   : > { %3135 = vadd.xlane.f32.xlu1 %v3134_v1 }
 0x377   : > { %v14414_v32 = vpop.eup %13200 }
 0x378   : > { %v3137_v23 = vsel %vm2905_vm3, %v14414_v32, 0.0 }
 0x379   : > { %3138 = vadd.xlane.f32.xlu0 %v3137_v23 }
 0x37b   : > { %v14418_v52 = vpop.eup %13202 }
 0x37c   : > { %v3140_v62 = vsel %vm2905_vm3, %v14418_v52, 0.0 }
 0x37d   : > { %3141 = vadd.xlane.f32.xlu1 %v3140_v62 }
 0x380   : > { %v14422_v51 = vpop.eup %13204 }
 0x381   : > { %v3143_v17 = vsel %vm2905_vm3, %v14422_v51, 0.0 }
 0x382   : > { %3144 = vadd.xlane.f32.xlu0 %v3143_v17 }
 0x3a2   : > { %v2956_v10 = vpop.xlane.xlu1 %2955 }
 0x3a3   : > { %v2959_v36 = vpop.xlane.xlu0 %2958  ;;  %v3018_v3 = vsub.f32 %v14258_v58, %v2956_v10 }
 0x3a4   : > { %v3019_v12 = vsub.f32 %v14262_v41, %v2959_v36 }
 0x3a5   : > { %v3066_v50 = vmul.f32 1.442695, %v3018_v3 }
 0x3a6   : > { %v3068_v1 = vmul.f32 1.442695, %v3019_v12  ;;  %v2962_v23 = vpop.xlane.xlu1 %2961 }
 0x3a7   : > { %13206 = vpow2.f32 %v3066_v50  ;;  %v2965_v62 = vpop.xlane.xlu0 %2964  ;;  %v3020_v55 = vsub.f32 %v14266_v18, %v2962_v23 }
 0x3a8   : > { %13208 = vpow2.f32 %v3068_v1  ;;  %v3021_v17 = vsub.f32 %v14274_v7, %v2965_v62 }
 0x3a9   : > { %v3070_v9 = vmul.f32 1.442695, %v3020_v55 }
 0x3aa   : > { %v3072_v19 = vmul.f32 1.442695, %v3021_v17  ;;  %v3100_v31 = vpop.xlane.xlu1 %3099 }
 0x3ab   : > { %13210 = vpow2.f32 %v3070_v9  ;;  %v3103_v15 = vpop.xlane.xlu0 %3102 }
 0x3ac   : > { %13212 = vpow2.f32 %v3072_v19 }
 0x3ad   : > { %13214 = vrcp.f32 %v3103_v15 }
 0x3ae   : > { %13216 = vrcp.f32 %v3100_v31  ;;  %v2968_v58 = vpop.xlane.xlu1 %2967 }
 0x3af   : > { %v2971_v41 = vpop.xlane.xlu0 %2970  ;;  %v3022_v10 = vsub.f32 %v14280_v34, %v2968_v58 }
 0x3b0   : > { %v3023_v36 = vsub.f32 %v14286_v4, %v2971_v41 }
 0x3b1   : > { %v3074_v3 = vmul.f32 1.442695, %v3022_v10 }
 0x3b2   : > { %v3076_v12 = vmul.f32 1.442695, %v3023_v36  ;;  %v3106_v18 = vpop.xlane.xlu1 %3105 }
 0x3b3   : > { %13218 = vpow2.f32 %v3074_v3  ;;  %v3109_v50 = vpop.xlane.xlu0 %3108 }
 0x3b4   : > { %v14438_v7 = vpop.eup %13206  ;;  %13220 = vpow2.f32 %v3076_v12 }
 0x3b5   : > { %v14440_v55 = vpop.eup %13208  ;;  %13222 = vrcp.f32 %v3109_v50  ;;  %v3146_v31 = vsel %vm2905_vm3, %v14438_v7, 0.0 }
 0x3b6   : > { %13224 = vrcp.f32 %v3106_v18  ;;  %v3149_v34 = vsel %vm2905_vm3, %v14440_v55, 0.0  ;;  %v2974_v9 = vpop.xlane.xlu1 %2973  ;;  %3147 = vadd.xlane.f32.xlu1 %v3146_v31  ;;  %v3442_v31 = vsel %vm3296_vm4, %v14200_v22, 0 }
 0x3b7   : > { %3150 = vadd.xlane.f32.xlu0 %v3149_v34  ;;  %v2977_v4 = vpop.xlane.xlu0 %2976  ;;  %v3024_v19 = vsub.f32 %v14292_v20, %v2974_v9  ;;  %v3394_v9 = vsel %vm3296_vm4, %v14198_v27, 0 }
 0x3b8   : > { %v14447_v15 = vpop.eup %13210  ;;  %v3025_v1 = vsub.f32 %v14296_v60, %v2977_v4  ;;  %v15835_v4 = vmov 0.0  }
 0x3b9   : > { %v14450_v23 = vpop.eup %13212  ;;  %v3078_v62 = vmul.f32 1.442695, %v3024_v19  ;;  %v3152_v17 = vsel %vm2905_vm3, %v14447_v15, 0.0 }
 0x3ba   : > { %v13215_v58 = vpop.eup %13214  ;;  %v3080_v41 = vmul.f32 1.442695, %v3025_v1  ;;  %v3155_v10 = vsel %vm2905_vm3, %v14450_v23, 0.0  ;;  %3153 = vadd.xlane.f32.xlu1 %v3152_v17  ;;  %v3112_v3 = vpop.xlane.xlu1 %3111 }
 0x3bb   : > { %v13217_v36 = vpop.eup %13216  ;;  %13226 = vpow2.f32 %v3078_v62  ;;  %3156 = vadd.xlane.f32.xlu0 %v3155_v10  ;;  %v3115_v20 = vpop.xlane.xlu0 %3114  ;;  %v3227_v12 = vmul.f32 %v13215_v58, %v14314_v56 }
 0x3bc   : > { %13228 = vpow2.f32 %v3080_v41  ;;  %v3226_v60 = vmul.f32 %v13217_v36, %v14310_v14  ;;  %v3538_v41 = vsel %vm3296_vm4, %v14206_v49, 0  ;;  %v3490_v36 = vsel %vm3296_vm4, %v14202_v47, 0 }
 0x3bd   : > { %13230 = vrcp.f32 %v3115_v20  ;;  %v3259_v18 = vpack.c.bf16 %v3227_v12, %v3227_v12 }
 0x3be   : > { %13232 = vrcp.f32 %v3112_v3  ;;  %v3258_v50 = vpack.c.bf16 %v3226_v60, %v3226_v60 }
 0x3bf   : > { %12544 = vmatmul.mubr.msk.bf16.vlgmr.msra.gmra.mxu0 %vm3292_vm5, %v3259_v18 }
 0x3c0   : > { %v14461_v34 = vpop.eup %13218  ;;  %12538 = vmatmul.mubr.msk.bf16.vlgmr.msra.gmra.mxu1 %vm3292_vm5, %v3258_v50  ;;  %12554 = vmatpush3.bf16.msra.mxu0 %v3442_v31 }
 0x3c1   : > { %v14466_v56 = vpop.eup %13220  ;;  %12548 = vmatpush3.bf16.msra.mxu1 %v3394_v9  ;;  %v3158_v14 = vsel %vm2905_vm3, %v14461_v34, 0.0  ;;  %12549 = vmatprep.mubr.msk.bf16.mxu1 %vm13379_vm0, %v15835_v4 }
 0x3c2   : > { %v13223_v22 = vpop.eup %13222  ;;  %v3161_v19 = vsel %vm2905_vm3, %v14466_v56, 0.0  ;;  %3159 = vadd.xlane.f32.xlu1 %v3158_v14  ;;  %12555 = vmatprep.mubr.msk.bf16.mxu0 %vm13379_vm0, %v15835_v4 }
 0x3c3   : > { %v13225_v27 = vpop.eup %13224  ;;  %3162 = vadd.xlane.f32.xlu0 %v3161_v19  ;;  %12559 = vmatprep.subr.bf16.mxu1 %v15835_v4  ;;  %v3229_v1 = vmul.f32 %v13223_v22, %v14326_v21  ;;  %v3634_v19 = vsel %vm3296_vm4, %v14216_v38, 0 }
 0x3c4   : > { %12565 = vmatprep.subr.bf16.mxu0 %v15835_v4  ;;  %v3228_v62 = vmul.f32 %v13225_v27, %v14322_v39 }
 0x3c5   : > { %v3261_v17 = vpack.c.bf16 %v3229_v1, %v3229_v1 }
 0x3c6   : > { %v3260_v58 = vpack.c.bf16 %v3228_v62, %v3228_v62 }
 0x3c7   : > { %12556 = vmatmul.mubr.msk.bf16.vlgmr.msra.gmra.mxu0 %vm3292_vm5, %v3261_v17 }
 0x3c8   : > { %v14483_v10 = vpop.eup %13226  ;;  %12550 = vmatmul.mubr.msk.bf16.vlgmr.msra.gmra.mxu1 %vm3292_vm5, %v3260_v58  ;;  %12566 = vmatpush3.bf16.msra.mxu0 %v3538_v41 }
 0x3c9   : > { %v14488_v21 = vpop.eup %13228  ;;  %12560 = vmatpush3.bf16.msra.mxu1 %v3490_v36  ;;  %v3164_v39 = vsel %vm2905_vm3, %v14483_v10, 0.0  ;;  %12561 = vmatprep.mubr.msk.bf16.mxu1 %vm13379_vm0, %v15835_v4 }
 0x3ca   : > { %v13231_v49 = vpop.eup %13230  ;;  %v3167_v20 = vsel %vm2905_vm3, %v14488_v21, 0.0  ;;  %v2980_v3 = vpop.xlane.xlu1 %2979  ;;  %3165 = vadd.xlane.f32.xlu1 %v3164_v39  ;;  %12567 = vmatprep.mubr.msk.bf16.mxu0 %vm13379_vm0, %v15835_v4 }
 0x3cb   : > { %v13233_v47 = vpop.eup %13232  ;;  %3168 = vadd.xlane.f32.xlu0 %v3167_v20  ;;  %v3026_v12 = vsub.f32 %v14346_v53, %v2980_v3  ;;  %12571 = vmatprep.subr.bf16.mxu1 %v15835_v4  ;;  %v3231_v60 = vmul.f32 %v13231_v49, %v14339_v8  ;;  %v3586_v8 = vsel %vm3296_vm4, %v14212_v26, 0 }
 0x3cc   : > { %12577 = vmatprep.subr.bf16.mxu0 %v15835_v4  ;;  %v3230_v18 = vmul.f32 %v13233_v47, %v14335_v5 }
 0x3cd   : > { %v3082_v50 = vmul.f32 1.442695, %v3026_v12  ;;  %v3263_v31 = vpack.c.bf16 %v3231_v60, %v3231_v60 }
 0x3ce   : > { %v3262_v9 = vpack.c.bf16 %v3230_v18, %v3230_v18  ;;  %v2983_v14 = vpop.xlane.xlu0 %2982  ;;  %v3118_v22 = vpop.xlane.xlu1 %3117 }
 0x3cf   : > { %13234 = vpow2.f32 %v3082_v50  ;;  %12568 = vmatmul.mubr.msk.bf16.vlgmr.msra.gmra.mxu0 %vm3292_vm5, %v3263_v31  ;;  %v3027_v53 = vsub.f32 %v14352_v43, %v2983_v14 }
 0x3d0   : > { %12562 = vmatmul.mubr.msk.bf16.vlgmr.msra.gmra.mxu1 %vm3292_vm5, %v3262_v9  ;;  %12578 = vmatpush3.bf16.msra.mxu0 %v3634_v19  ;;  %13236 = vrcp.f32 %v3118_v22 }
 0x3d1   : > { %12572 = vmatpush3.bf16.msra.mxu1 %v3586_v8  ;;  %v3084_v5 = vmul.f32 1.442695, %v3027_v53  ;;  %12573 = vmatprep.mubr.msk.bf16.mxu1 %vm13379_vm0, %v15835_v4 }
 0x3d2   : > { %v3121_v27 = vpop.xlane.xlu0 %3120  ;;  %v2986_v1 = vpop.xlane.xlu1 %2985  ;;  %12583 = vmatprep.subr.bf16.mxu1 %v15835_v4  ;;  %12579 = vmatprep.mubr.msk.bf16.mxu0 %vm13379_vm0, %v15835_v4 }
 0x3d3   : > { %13238 = vpow2.f32 %v3084_v5  ;;  %v3028_v38 = vsub.f32 %v14360_v2, %v2986_v1  ;;  %12589 = vmatprep.subr.bf16.mxu0 %v15835_v4 }
 0x3d4   : > { %13240 = vrcp.f32 %v3121_v27 }
 0x3d5   : > { %v3086_v26 = vmul.f32 1.442695, %v3028_v38 }
 0x3d6   : > { %v2989_v43 = vpop.xlane.xlu0 %2988 }
 0x3d7   : > { %13242 = vpow2.f32 %v3086_v26  ;;  %v3029_v62 = vsub.f32 %v14366_v61, %v2989_v43  ;;  %v3682_v61 = vsel %vm3296_vm4, %v14222_v24, 0  ;;  %v3730_v24 = vsel %vm3296_vm4, %v14226_v37, 0 }
 0x3d8   : > { %v3778_v26 = vsel %vm3296_vm4, %v14232_v29, 0 }
 0x3d9   : > { %v3088_v17 = vmul.f32 1.442695, %v3029_v62 }
 0x3da   : > { %v2992_v18 = vpop.xlane.xlu1 %2991 }
 0x3db   : > { %13244 = vpow2.f32 %v3088_v17 }
 0x3dc   : > { %v14518_v58 = vpop.eup %13234 }
 0x3dd   : > { %v13237_v41 = vpop.eup %13236  ;;  %v3170_v36 = vsel %vm2905_vm3, %v14518_v58, 0.0 }
 0x3de   : > { %3171 = vadd.xlane.f32.xlu1 %v3170_v36  ;;  %v3232_v39 = vmul.f32 %v13237_v41, %v14350_v28 }
 0x3df   : > { %v2995_v31 = vpop.xlane.xlu0 %2994 }
 0x3e0   : > { %v14523_v2 = vpop.eup %13238  ;;  %v3264_v49 = vpack.c.bf16 %v3232_v39, %v3232_v39 }
 0x3e1   : > { %v13241_v20 = vpop.eup %13240  ;;  %v3173_v3 = vsel %vm2905_vm3, %v14523_v2, 0.0 }
 0x3e2   : > { %12574 = vmatmul.mubr.msk.bf16.vlgmr.msra.gmra.mxu1 %vm3292_vm5, %v3264_v49  ;;  %3174 = vadd.xlane.f32.xlu0 %v3173_v3  ;;  %v3233_v47 = vmul.f32 %v13241_v20, %v14358_v13 }
 0x3e3   : > { %12584 = vmatpush3.bf16.msra.mxu1 %v3682_v61  ;;  %12585 = vmatprep.mubr.msk.bf16.mxu1 %vm13379_vm0, %v15835_v4  ;;  %v2998_v9 = vpop.xlane.xlu1 %2997 }
 0x3e4   : > { %v14533_v28 = vpop.eup %13242  ;;  %v3265_v12 = vpack.c.bf16 %v3233_v47, %v3233_v47  ;;  %12595 = vmatprep.subr.bf16.mxu1 %v15835_v4  ;;  %v3032_v36 = vsub.f32 %v14380_v11, %v2998_v9 }
 0x3e5   : > { %v3176_v60 = vsel %vm2905_vm3, %v14533_v28, 0.0 }
 0x3e6   : > { %12580 = vmatmul.mubr.msk.bf16.vlgmr.msra.gmra.mxu0 %vm3292_vm5, %v3265_v12  ;;  %3177 = vadd.xlane.f32.xlu1 %v3176_v60  ;;  %v3094_v11 = vmul.f32 1.442695, %v3032_v36 }
 0x3e7   : > { %12590 = vmatpush3.bf16.msra.mxu0 %v3730_v24  ;;  %12591 = vmatprep.mubr.msk.bf16.mxu0 %vm13379_vm0, %v15835_v4  ;;  %v3001_v14 = vpop.xlane.xlu0 %3000  ;;  %v3970_v24 = vsel %vm3296_vm4, %v14250_v25, 0 }
 0x3e8   : > { %v14543_v13 = vpop.eup %13244  ;;  %12601 = vmatprep.subr.bf16.mxu0 %v15835_v4  ;;  %v3033_v20 = vsub.f32 %v14385_v44, %v3001_v14  ;;  %v4066_v14 = vsel %vm3296_vm4, %v14260_v33, 0  ;;  %v4114_v33 = vsel %vm3296_vm4, %v14256_v54, 0 }
 0x3e9   : > { %v3179_v50 = vsel %vm2905_vm3, %v14543_v13, 0.0 }
 0x3ea   : > { %3180 = vadd.xlane.f32.xlu0 %v3179_v50  ;;  %v3096_v44 = vmul.f32 1.442695, %v3033_v20  ;;  %v4018_v50 = vsel %vm3296_vm4, %v14272_v46, 0 }
 0x3ee   : > { %v3124_v37 = vpop.xlane.xlu1 %3123 }
 0x3ef   : > { %13246 = vrcp.f32 %v3124_v37 }
 0x3f2   : > { %v3127_v22 = vpop.xlane.xlu0 %3126 }
 0x3f3   : > { %13248 = vrcp.f32 %v3127_v22 }
 0x3f6   : > { %v3130_v19 = vpop.xlane.xlu1 %3129 }
 0x3f7   : > { %13250 = vrcp.f32 %v3130_v19  ;;  %4684 = vrot.lane.b32.xlu1 %v13980_v40, %s13385_s16  ;;  %v3030_v40 = vsub.f32 %v14370_v57, %v2992_v18  ;;  %v3031_v57 = vsub.f32 %v14375_v63, %v2995_v31 }
 0x3f9   : > { %v3092_v63 = vmul.f32 1.442695, %v3031_v57 }
 0x3fa   : > { %v3133_v53 = vpop.xlane.xlu0 %3132 }
 0x3fb   : > { %13252 = vrcp.f32 %v3133_v53 }
 0x3fc   : > { %v13247_v8 = vpop.eup %13246 }
 0x3fd   : > { %v3234_v5 = vmul.f32 %v13247_v8, %v14391_v42 }
 0x3fe   : > { %v3136_v27 = vpop.xlane.xlu1 %3135 }
 0x3ff   : > { %13254 = vrcp.f32 %v3136_v27  ;;  %v3266_v1 = vpack.c.bf16 %v3234_v5, %v3234_v5  ;;  %v15836_v5 = vld [vmem:[#allocation20_spill] sm:$0xff]  ;;  %v15837_v27 = vld [vmem:[#allocation19_spill] sm:$0xff] }
 0x400   : > { %v13249_v38 = vpop.eup %13248  ;;  %4636 = vrot.lane.b32.xlu0 %v13964_v30, %s13385_s16  ;;  %v3826_v30 = vsel %vm3296_vm4, %v14236_v0, 0  ;;  %v3874_v0 = vsel %vm3296_vm4, %v14242_v48, 0  ;;  %v3922_v48 = vsel %vm3296_vm4, %v14246_v45, 0 }
 0x401   : > { %12586 = vmatmul.mubr.msk.bf16.vlgmr.msra.gmra.mxu1 %vm3292_vm5, %v3266_v1  ;;  %v3235_v43 = vmul.f32 %v13249_v38, %v14396_v35  ;;  %v3090_v35 = vmul.f32 1.442695, %v3030_v40 }
 0x402   : > { %12596 = vmatpush3.bf16.msra.mxu1 %v3778_v26  ;;  %v3139_v62 = vpop.xlane.xlu0 %3138  ;;  %12597 = vmatprep.mubr.msk.bf16.mxu1 %vm13379_vm0, %v15835_v4 }
 0x403   : > { %13256 = vrcp.f32 %v3139_v62  ;;  %v3267_v42 = vpack.c.bf16 %v3235_v43, %v3235_v43  ;;  %12607 = vmatprep.subr.bf16.mxu1 %v15835_v4 }
 0x404   : > { %v13251_v17 = vpop.eup %13250 }
 0x405   : > { %12592 = vmatmul.mubr.msk.bf16.vlgmr.msra.gmra.mxu0 %vm3292_vm5, %v3267_v42  ;;  %v3236_v29 = vmul.f32 %v13251_v17, %v14401_v59 }
 0x406   : > { %12602 = vmatpush3.bf16.msra.mxu0 %v3826_v30  ;;  %v3142_v41 = vpop.xlane.xlu1 %3141  ;;  %12603 = vmatprep.mubr.msk.bf16.mxu0 %vm13379_vm0, %v15835_v4 }
 0x407   : > { %13258 = vrcp.f32 %v3142_v41  ;;  %v3268_v39 = vpack.c.bf16 %v3236_v29, %v3236_v29  ;;  %12613 = vmatprep.subr.bf16.mxu0 %v15835_v4 }
 0x408   : > { %v13253_v49 = vpop.eup %13252  ;;  %13260 = vpow2.f32 %v3090_v35 }
 0x409   : > { %12598 = vmatmul.mubr.msk.bf16.vlgmr.msra.gmra.mxu1 %vm3292_vm5, %v3268_v39  ;;  %v3237_v59 = vmul.f32 %v13253_v49, %v14405_v6  ;;  %v15838_v39 = vld [vmem:[#allocation22_spill] sm:$0xff] }
 0x40a   : > { %12608 = vmatpush3.bf16.msra.mxu1 %v3874_v0  ;;  %12609 = vmatprep.mubr.msk.bf16.mxu1 %vm13379_vm0, %v15835_v4  ;;  %v4162_v49 = vsel %vm3296_vm4, %v15838_v39, 0  ;;  %v15839_v0 = vld [vmem:[#allocation21_spill] sm:$0xff] }
 0x40b   : > { %v3145_v3 = vpop.xlane.xlu0 %3144  ;;  %v3269_v61 = vpack.c.bf16 %v3237_v59, %v3237_v59  ;;  %12619 = vmatprep.subr.bf16.mxu1 %v15835_v4  ;;  %v4210_v59 = vsel %vm3296_vm4, %v15839_v0, 0 }
 0x40c   : > { %v13255_v47 = vpop.eup %13254  ;;  %13262 = vrcp.f32 %v3145_v3 }
 0x40d   : > { %12604 = vmatmul.mubr.msk.bf16.vlgmr.msra.gmra.mxu0 %vm3292_vm5, %v3269_v61  ;;  %v3238_v6 = vmul.f32 %v13255_v47, %v14410_v16  ;;  %13264 = vpow2.f32 %v3092_v63 }
 0x40e   : > { %12614 = vmatpush3.bf16.msra.mxu0 %v3922_v48  ;;  %12615 = vmatprep.mubr.msk.bf16.mxu0 %vm13379_vm0, %v15835_v4  ;;  %13266 = vpow2.f32 %v3094_v11  ;;  %v15840_v48 = vld [vmem:[#allocation23_spill] sm:$0xff] }
 0x40f   : > { %v3270_v12 = vpack.c.bf16 %v3238_v6, %v3238_v6  ;;  %12625 = vmatprep.subr.bf16.mxu0 %v15835_v4  ;;  %13268 = vpow2.f32 %v3096_v44  ;;  %v4258_v6 = vsel %vm3296_vm4, %v15840_v48, 0 }
 0x410   : > { %v13257_v60 = vpop.eup %13256 }
 0x411   : > { %12610 = vmatmul.mubr.msk.bf16.vlgmr.msra.gmra.mxu1 %vm3292_vm5, %v3270_v12  ;;  %v3239_v45 = vmul.f32 %v13257_v60, %v14414_v32 }
 0x412   : > { %12620 = vmatpush3.bf16.msra.mxu1 %v3970_v24  ;;  %12621 = vmatprep.mubr.msk.bf16.mxu1 %vm13379_vm0, %v15835_v4 }
 0x413   : > { %v3271_v16 = vpack.c.bf16 %v3239_v45, %v3239_v45  ;;  %12631 = vmatprep.subr.bf16.mxu1 %v15835_v4 }
 0x414   : > { %v13259_v18 = vpop.eup %13258 }
 0x415   : > { %12616 = vmatmul.mubr.msk.bf16.vlgmr.msra.gmra.mxu0 %vm3292_vm5, %v3271_v16  ;;  %v3240_v25 = vmul.f32 %v13259_v18, %v14418_v52  ;;  %v14598_v32 = vpop.eup %13260  ;;  %v15842_v18 = vld [vmem:[#allocation25_spill] sm:$0xff] }
 0x416   : > { %12626 = vmatpush3.bf16.msra.mxu0 %v4018_v50  ;;  %12627 = vmatprep.mubr.msk.bf16.mxu0 %vm13379_vm0, %v15835_v4  ;;  %v3182_v46 = vsel %vm2905_vm3, %v14598_v32, 0.0  ;;  %v4354_v50 = vsel %vm3296_vm4, %v15842_v18, 0 }
 0x417   : > { %v3272_v31 = vpack.c.bf16 %v3240_v25, %v3240_v25  ;;  %12637 = vmatprep.subr.bf16.mxu0 %v15835_v4  ;;  %v15843_v25 = vld [vmem:[#allocation26_spill] sm:$0xff] }
 0x419   : > { %v13263_v9 = vpop.eup %13262  ;;  %12622 = vmatmul.mubr.msk.bf16.vlgmr.msra.gmra.mxu1 %vm3292_vm5, %v3272_v31 }
 0x41a   : > { %12632 = vmatpush3.bf16.msra.mxu1 %v4066_v14  ;;  %v3241_v52 = vmul.f32 %v13263_v9, %v14422_v51  ;;  %12633 = vmatprep.mubr.msk.bf16.mxu1 %vm13379_vm0, %v15835_v4  ;;  %v14609_v37 = vpop.eup %13264 }
 0x41b   : > { %3183 = vadd.xlane.f32.xlu1 %v3182_v46  ;;  %12643 = vmatprep.subr.bf16.mxu1 %v15835_v4  ;;  %v14612_v22 = vpop.eup %13266  ;;  %v3185_v53 = vsel %vm2905_vm3, %v14609_v37, 0.0 }
 0x41c   : > { %v3273_v19 = vpack.c.bf16 %v3241_v52, %v3241_v52  ;;  %v14619_v51 = vpop.eup %13268  ;;  %v3188_v8 = vsel %vm2905_vm3, %v14612_v22, 0.0  ;;  %v15844_v52 = vld [vmem:[#allocation27_spill] sm:$0xff] }
 0x41d   : > { %v3191_v54 = vsel %vm2905_vm3, %v14619_v51, 0.0 }
 0x41e   : > { %12628 = vmatmul.mubr.msk.bf16.vlgmr.msra.gmra.mxu0 %vm3292_vm5, %v3273_v19  ;;  %v15845_v19 = vld [vmem:[#allocation30_spill] sm:$0xff] }
 0x41f   : > { %12638 = vmatpush3.bf16.msra.mxu0 %v4114_v33  ;;  %3186 = vadd.xlane.f32.xlu0 %v3185_v53  ;;  %v4498_v33 = vsel %vm3296_vm4, %v15845_v19, 0 }
 0x420   : > { %3189 = vadd.xlane.f32.xlu1 %v3188_v8  ;;  %12639 = vmatprep.mubr.msk.bf16.mxu0 %vm13379_vm0, %v15835_v4 }
 0x421   : > { %12649 = vmatprep.subr.bf16.mxu0 %v15835_v4 }
 0x423   : > { %3192 = vadd.xlane.f32.xlu0 %v3191_v54 }
 0x431   : > { %4780 = vrot.lane.b32.xlu1 %v15836_v5, %s13385_s16 }
 0x439   : > { %4732 = vrot.lane.b32.xlu0 %v15837_v27, %s13385_s16 }
 0x43f   : > { %v3148_v1 = vpop.xlane.xlu1 %3147 }
 0x440   : > { %v3151_v38 = vpop.xlane.xlu0 %3150  ;;  %13270 = vrcp.f32 %v3148_v1 }
 0x441   : > { %13272 = vrcp.f32 %v3151_v38  ;;  %v15846_v38 = vld [vmem:[#allocation28_spill] sm:$0xff] }
 0x443   : > { %v3154_v26 = vpop.xlane.xlu1 %3153 }
 0x444   : > { %v3157_v43 = vpop.xlane.xlu0 %3156  ;;  %13274 = vrcp.f32 %v3154_v26  ;;  %v4546_v26 = vsel %vm3296_vm4, %v15846_v38, 0 }
 0x445   : > { %13276 = vrcp.f32 %v3157_v43 }
 0x44b   : > { %v3160_v40 = vpop.xlane.xlu1 %3159 }
 0x44c   : > { %v3163_v62 = vpop.xlane.xlu0 %3162  ;;  %13278 = vrcp.f32 %v3160_v40 }
 0x44d   : > { %v13271_v42 = vpop.eup %13270  ;;  %13280 = vrcp.f32 %v3163_v62 }
 0x44e   : > { %v13273_v17 = vpop.eup %13272  ;;  %v3242_v30 = vmul.f32 %v13271_v42, %v14438_v7  ;;  %v15847_v42 = vld [vmem:[#allocation29_spill] sm:$0xff] }
 0x44f   : > { %v3243_v29 = vmul.f32 %v13273_v17, %v14440_v55 }
 0x450   : > { %v3274_v35 = vpack.c.bf16 %v3242_v30, %v3242_v30 }
 0x451   : > { %v13275_v57 = vpop.eup %13274  ;;  %v3275_v41 = vpack.c.bf16 %v3243_v29, %v3243_v29 }
 0x452   : > { %v13277_v36 = vpop.eup %13276  ;;  %12634 = vmatmul.mubr.msk.bf16.vlgmr.msra.gmra.mxu1 %vm3292_vm5, %v3274_v35  ;;  %v3244_v55 = vmul.f32 %v13275_v57, %v14447_v15  ;;  %v15841_v15 = vld [vmem:[#allocation24_spill] sm:$0xff] }
 0x453   : > { %12640 = vmatmul.mubr.msk.bf16.vlgmr.msra.gmra.mxu0 %vm3292_vm5, %v3275_v41  ;;  %12644 = vmatpush3.bf16.msra.mxu1 %v4162_v49  ;;  %v3166_v63 = vpop.xlane.xlu1 %3165  ;;  %v3245_v20 = vmul.f32 %v13277_v36, %v14450_v23  ;;  %v4306_v44 = vsel %vm3296_vm4, %v15841_v15, 0 }
 0x454   : > { %12650 = vmatpush3.bf16.msra.mxu0 %v4210_v59  ;;  %v3169_v7 = vpop.xlane.xlu0 %3168  ;;  %13282 = vrcp.f32 %v3166_v63  ;;  %12645 = vmatprep.mubr.msk.bf16.mxu1 %vm13379_vm0, %v15835_v4  ;;  %v3276_v11 = vpack.c.bf16 %v3244_v55, %v3244_v55 }
 0x455   : > { %13284 = vrcp.f32 %v3169_v7  ;;  %12651 = vmatprep.mubr.msk.bf16.mxu0 %vm13379_vm0, %v15835_v4  ;;  %12655 = vmatprep.subr.bf16.mxu1 %v15835_v4  ;;  %v3277_v61 = vpack.c.bf16 %v3245_v20, %v3245_v20 }
 0x456   : > { %12661 = vmatprep.subr.bf16.mxu0 %v15835_v4 }
 0x459   : > { %v13279_v3 = vpop.eup %13278 }
 0x45a   : > { %v13281_v47 = vpop.eup %13280  ;;  %12646 = vmatmul.mubr.msk.bf16.vlgmr.msra.gmra.mxu1 %vm3292_vm5, %v3276_v11  ;;  %v3246_v23 = vmul.f32 %v13279_v3, %v14461_v34  ;;  %v4402_v34 = vsel %vm3296_vm4, %v15843_v25, 0 }
 0x45b   : > { %12652 = vmatmul.mubr.msk.bf16.vlgmr.msra.gmra.mxu0 %vm3292_vm5, %v3277_v61  ;;  %12656 = vmatpush3.bf16.msra.mxu1 %v4258_v6  ;;  %v3247_v12 = vmul.f32 %v13281_v47, %v14466_v56 }
 0x45c   : > { %12662 = vmatpush3.bf16.msra.mxu0 %v4306_v44  ;;  %12657 = vmatprep.mubr.msk.bf16.mxu1 %vm13379_vm0, %v15835_v4  ;;  %v3278_v60 = vpack.c.bf16 %v3246_v23, %v3246_v23 }
 0x45d   : > { %12663 = vmatprep.mubr.msk.bf16.mxu0 %vm13379_vm0, %v15835_v4  ;;  %12667 = vmatprep.subr.bf16.mxu1 %v15835_v4  ;;  %v3279_v45 = vpack.c.bf16 %v3247_v12, %v3247_v12 }
 0x45e   : > { %12673 = vmatprep.subr.bf16.mxu0 %v15835_v4 }
 0x461   : > { %v13283_v24 = vpop.eup %13282 }
 0x462   : > { %v13285_v16 = vpop.eup %13284  ;;  %12658 = vmatmul.mubr.msk.bf16.vlgmr.msra.gmra.mxu1 %vm3292_vm5, %v3278_v60  ;;  %v3248_v31 = vmul.f32 %v13283_v24, %v14483_v10  ;;  %v4450_v10 = vsel %vm3296_vm4, %v15844_v52, 0 }
 0x463   : > { %12664 = vmatmul.mubr.msk.bf16.vlgmr.msra.gmra.mxu0 %vm3292_vm5, %v3279_v45  ;;  %12668 = vmatpush3.bf16.msra.mxu1 %v4354_v50  ;;  %v3249_v56 = vmul.f32 %v13285_v16, %v14488_v21 }
 0x464   : > { %12674 = vmatpush3.bf16.msra.mxu0 %v4402_v34  ;;  %12669 = vmatprep.mubr.msk.bf16.mxu1 %vm13379_vm0, %v15835_v4  ;;  %v3280_v14 = vpack.c.bf16 %v3248_v31, %v3248_v31 }
 0x465   : > { %12675 = vmatprep.mubr.msk.bf16.mxu0 %vm13379_vm0, %v15835_v4  ;;  %12679 = vmatprep.subr.bf16.mxu1 %v15835_v4  ;;  %v3281_v46 = vpack.c.bf16 %v3249_v56, %v3249_v56 }
 0x466   : > { %12685 = vmatprep.subr.bf16.mxu0 %v15835_v4 }
 0x467   : > { %v3172_v9 = vpop.xlane.xlu1 %3171 }
 0x468   : > { %13286 = vrcp.f32 %v3172_v9 }
 0x46a   : > { %12670 = vmatmul.mubr.msk.bf16.vlgmr.msra.gmra.mxu1 %vm3292_vm5, %v3280_v14 }
 0x46b   : > { %12676 = vmatmul.mubr.msk.bf16.vlgmr.msra.gmra.mxu0 %vm3292_vm5, %v3281_v46  ;;  %12680 = vmatpush3.bf16.msra.mxu1 %v4450_v10  ;;  %v3175_v53 = vpop.xlane.xlu0 %3174 }
 0x46c   : > { %12686 = vmatpush3.bf16.msra.mxu0 %v4498_v33  ;;  %13288 = vrcp.f32 %v3175_v53  ;;  %12681 = vmatprep.mubr.msk.bf16.mxu1 %vm13379_vm0, %v15835_v4 }
 0x46d   : > { %12691 = vmatprep.subr.bf16.mxu1 %v15835_v4  ;;  %12687 = vmatprep.mubr.msk.bf16.mxu0 %vm13379_vm0, %v15835_v4 }
 0x46e   : > { %12697 = vmatprep.subr.bf16.mxu0 %v15835_v4 }
 0x46f   : > { %v3178_v21 = vpop.xlane.xlu1 %3177 }
 0x470   : > { %13290 = vrcp.f32 %v3178_v21 }
 0x473   : > { %v3181_v8 = vpop.xlane.xlu0 %3180  ;;  %v4685_v49 = vpop.permute.xlu1 %4684 }
 0x474   : > { %13292 = vrcp.f32 %v3181_v8  ;;  %v4690_v55 = vsel %vm3296_vm4, %v4685_v49, 0 }
 0x475   : > { %v13287_v54 = vpop.eup %13286 }
 0x476   : > { %v3250_v5 = vmul.f32 %v13287_v54, %v14518_v58  ;;  %v4594_v58 = vsel %vm3296_vm4, %v15847_v42, 0 }
 0x477   : > { %v4637_v30 = vpop.permute.xlu0 %4636 }
 0x478   : > { %v3282_v27 = vpack.c.bf16 %v3250_v5, %v3250_v5 }
 0x479   : > { %v13289_v1 = vpop.eup %13288 }
 0x47a   : > { %v3251_v43 = vmul.f32 %v13289_v1, %v14523_v2  ;;  %12682 = vmatmul.mubr.msk.bf16.vlgmr.msra.gmra.mxu1 %vm3292_vm5, %v3282_v27 }
 0x47b   : > { %12692 = vmatpush3.bf16.msra.mxu1 %v4546_v26  ;;  %12693 = vmatprep.mubr.msk.bf16.mxu1 %vm13379_vm0, %v15835_v4 }
 0x47c   : > { %v3283_v40 = vpack.c.bf16 %v3251_v43, %v3251_v43  ;;  %12703 = vmatprep.subr.bf16.mxu1 %v15835_v4 }
 0x47d   : > { %v13291_v62 = vpop.eup %13290 }
 0x47e   : > { %v3252_v17 = vmul.f32 %v13291_v62, %v14533_v28  ;;  %12688 = vmatmul.mubr.msk.bf16.vlgmr.msra.gmra.mxu0 %vm3292_vm5, %v3283_v40  ;;  %v4642_v28 = vsel %vm3296_vm4, %v4637_v30, 0 }
 0x47f   : > { %v14700_v29 = vpop.f32.mrf.mxu0  ;;  %12698 = vmatpush3.bf16.msra.mxu0 %v4594_v58  ;;  %12699 = vmatprep.mubr.msk.bf16.mxu0 %vm13379_vm0, %v15835_v4 }
 0x480   : > { %v3284_v2 = vpack.c.bf16 %v3252_v17, %v3252_v17  ;;  %v14704_v35 = vpop.f32.mrf.mxu1  ;;  %12709 = vmatprep.subr.bf16.mxu0 %v15835_v4 }
 0x481   : > { %v13293_v57 = vpop.eup %13292  ;;  %v12545_v41 = vpop.f32.mrf.mxu0 }
 0x482   : > { %v3253_v36 = vmul.f32 %v13293_v57, %v14543_v13  ;;  %v12539_v39 = vpop.f32.mrf.mxu1  ;;  %12694 = vmatmul.mubr.msk.bf16.vlgmr.msra.gmra.mxu1 %vm3292_vm5, %v3284_v2 }
 0x483   : > { %v3385_v0 = vpop.f32.mrf.mxu0  ;;  %12704 = vmatpush3.bf16.msra.mxu1 %v4642_v28  ;;  %12705 = vmatprep.mubr.msk.bf16.mxu1 %vm13379_vm0, %v15835_v4 }
 0x484   : > { %v3285_v59 = vpack.c.bf16 %v3253_v36, %v3253_v36  ;;  %v3337_v63 = vpop.f32.mrf.mxu1  ;;  %12715 = vmatprep.subr.bf16.mxu1 %v15835_v4 }
 0x485   : > { %v12546_v7 = vpop.f32.mrf.mxu0 }
 0x486   : > { %v12540_v20 = vpop.f32.mrf.mxu1  ;;  %12700 = vmatmul.mubr.msk.bf16.vlgmr.msra.gmra.mxu0 %vm3292_vm5, %v3285_v59 }
 0x487   : > { %v14715_v13 = vpop.f32.mrf.mxu0  ;;  %12710 = vmatpush3.bf16.msra.mxu0 %v4690_v55  ;;  %12711 = vmatprep.mubr.msk.bf16.mxu0 %vm13379_vm0, %v15835_v4 }
 0x488   : > { %v14719_v11 = vpop.f32.mrf.mxu1  ;;  %12721 = vmatprep.subr.bf16.mxu0 %v15835_v4 }
 0x489   : > { %v12557_v3 = vpop.f32.mrf.mxu0 }
 0x48a   : > { %v12551_v61 = vpop.f32.mrf.mxu1 }
 0x48b   : > { %v3481_v47 = vpop.f32.mrf.mxu0 }
 0x48c   : > { %v3433_v48 = vpop.f32.mrf.mxu1 }
 0x48d   : > { %v12558_v6 = vpop.f32.mrf.mxu0 }
 0x48e   : > { %v12552_v15 = vpop.f32.mrf.mxu1 }
 0x48f   : > { %v14722_v44 = vpop.f32.mrf.mxu0 }
 0x490   : > { %v14724_v23 = vpop.f32.mrf.mxu1 }
 0x491   : > { %v12569_v12 = vpop.f32.mrf.mxu0 }
 0x492   : > { %v12563_v60 = vpop.f32.mrf.mxu1 }
 0x493   : > { %v3577_v24 = vpop.f32.mrf.mxu0 }
 0x494   : > { %v3529_v45 = vpop.f32.mrf.mxu1 }
 0x495   : > { %v12570_v16 = vpop.f32.mrf.mxu0 }
 0x496   : > { %v12564_v18 = vpop.f32.mrf.mxu1 }
 0x4a2   : > { %v14726_v50 = vpop.f32.mrf.mxu1 }
 0x4a4   : > { %v12575_v25 = vpop.f32.mrf.mxu1  ;;  %v3184_v34 = vpop.xlane.xlu1 %3183 }
 0x4a5   : > { %13294 = vrcp.f32 %v3184_v34 }
 0x4a6   : > { %v3625_v31 = vpop.f32.mrf.mxu1  ;;  %v14728_v56 = vpop.f32.mrf.mxu0 }
 0x4a8   : > { %v12576_v9 = vpop.f32.mrf.mxu1  ;;  %v12581_v14 = vpop.f32.mrf.mxu0 }
 0x4a9   : > { %v3187_v46 = vpop.xlane.xlu0 %3186  ;;  %v3190_v52 = vpop.xlane.xlu1 %3189 }
 0x4aa   : > { %13296 = vrcp.f32 %v3187_v46  ;;  %v3673_v10 = vpop.f32.mrf.mxu0 }
 0x4ab   : > { %13298 = vrcp.f32 %v3190_v52 }
 0x4ac   : > { %v12582_v19 = vpop.f32.mrf.mxu0 }
 0x4ad   : > { %v3193_v33 = vpop.xlane.xlu0 %3192  ;;  %v4781_v43 = vpop.permute.xlu1 %4780 }
 0x4ae   : > { %13300 = vrcp.f32 %v3193_v33  ;;  %v4786_v62 = vsel %vm3296_vm4, %v4781_v43, 0 }
 0x4b1   : > { %v4733_v8 = vpop.permute.xlu0 %4732 }
 0x4b2   : > { %v13295_v53 = vpop.eup %13294  ;;  %v4738_v27 = vsel %vm3296_vm4, %v4733_v8, 0 }
 0x4b3   : > { %v3254_v21 = vmul.f32 %v13295_v53, %v14598_v32 }
 0x4b5   : > { %v3286_v54 = vpack.c.bf16 %v3254_v21, %v3254_v21 }
 0x4b7   : > { %v13297_v5 = vpop.eup %13296  ;;  %12706 = vmatmul.mubr.msk.bf16.vlgmr.msra.gmra.mxu1 %vm3292_vm5, %v3286_v54 }
 0x4b8   : > { %v13299_v1 = vpop.eup %13298  ;;  %v3255_v38 = vmul.f32 %v13297_v5, %v14609_v37  ;;  %12716 = vmatpush3.bf16.msra.mxu1 %v4738_v27  ;;  %12717 = vmatprep.mubr.msk.bf16.mxu1 %vm13379_vm0, %v15835_v4 }
 0x4b9   : > { %v3256_v26 = vmul.f32 %v13299_v1, %v14612_v22  ;;  %12727 = vmatprep.subr.bf16.mxu1 %v15835_v4 }
 0x4ba   : > { %v3287_v32 = vpack.c.bf16 %v3255_v38, %v3255_v38 }
 0x4bb   : > { %v13301_v40 = vpop.eup %13300  ;;  %v3288_v42 = vpack.c.bf16 %v3256_v26, %v3256_v26 }
 0x4bc   : > { %12712 = vmatmul.mubr.msk.bf16.vlgmr.msra.gmra.mxu0 %vm3292_vm5, %v3287_v32  ;;  %v3257_v37 = vmul.f32 %v13301_v40, %v14619_v51 }
 0x4bd   : > { %12722 = vmatpush3.bf16.msra.mxu0 %v4786_v62  ;;  %12723 = vmatprep.mubr.msk.bf16.mxu0 %vm13379_vm0, %v15835_v4 }
 0x4be   : > { %v3289_v58 = vpack.c.bf16 %v3257_v37, %v3257_v37 }
 0x4bf   : > { %12718 = vmatmul.mubr.msk.bf16.vlgmr.msra.gmra.mxu1 %vm3292_vm5, %v3288_v42 }
 0x4c0   : > { %12731 = vmatprep.mubr.msk.bf16.mxu1 %vm13379_vm0, %v15835_v4 }
 0x4c1   : > { %v3718_v22 = vpop.f32.mrf.mxu1 }
 0x4c2   : > { %4836 = vrot.lane.b32.xlu0 %v3718_v22, %s13386_s18 }
 0x4c3   : > { %v12587_v17 = vpop.f32.mrf.mxu1 }
 0x4c4   : > { %12724 = vmatmul.mubr.msk.bf16.vlgmr.msra.gmra.mxu0 %vm3292_vm5, %v3289_v58 }
 0x4c5   : > { %v3721_v30 = vpop.f32.mrf.mxu1  ;;  %v3766_v2 = vpop.f32.mrf.mxu0 }
 0x4c6   : > { %4838 = vrot.lane.b32.xlu1 %v3766_v2, %s13386_s18 }
 0x4c7   : > { %v12588_v57 = vpop.f32.mrf.mxu1  ;;  %v12593_v41 = vpop.f32.mrf.mxu0 }
 0x4c9   : > { %v3769_v51 = vpop.f32.mrf.mxu0  ;;  %v3814_v36 = vpop.f32.mrf.mxu1 }
 0x4ca   : > { %4840 = vrot.lane.b32.xlu0 %v3814_v36, %s13386_s18 }
 0x4cb   : > { %v12594_v28 = vpop.f32.mrf.mxu0  ;;  %v12599_v39 = vpop.f32.mrf.mxu1 }
 0x4cd   : > { %v3817_v49 = vpop.f32.mrf.mxu1  ;;  %v3862_v0 = vpop.f32.mrf.mxu0 }
 0x4ce   : > { %4842 = vrot.lane.b32.xlu1 %v3862_v0, %s13386_s18 }
 0x4cf   : > { %v12600_v59 = vpop.f32.mrf.mxu1  ;;  %v12605_v63 = vpop.f32.mrf.mxu0 }
 0x4d1   : > { %v3865_v7 = vpop.f32.mrf.mxu0  ;;  %v3910_v55 = vpop.f32.mrf.mxu1 }
 0x4d2   : > { %4844 = vrot.lane.b32.xlu0 %v3910_v55, %s13386_s18 }
 0x4d3   : > { %v12606_v20 = vpop.f32.mrf.mxu0  ;;  %v12611_v3 = vpop.f32.mrf.mxu1 }
 0x4d5   : > { %v3913_v61 = vpop.f32.mrf.mxu1  ;;  %v3958_v47 = vpop.f32.mrf.mxu0 }
 0x4d6   : > { %4846 = vrot.lane.b32.xlu1 %v3958_v47, %s13386_s18 }
 0x4d7   : > { %v12612_v48 = vpop.f32.mrf.mxu1  ;;  %v12617_v6 = vpop.f32.mrf.mxu0 }
 0x4d9   : > { %v3961_v15 = vpop.f32.mrf.mxu0  ;;  %v4006_v12 = vpop.f32.mrf.mxu1 }
 0x4da   : > { %4848 = vrot.lane.b32.xlu0 %v4006_v12, %s13386_s18 }
 0x4db   : > { %v12618_v60 = vpop.f32.mrf.mxu0  ;;  %v12623_v24 = vpop.f32.mrf.mxu1 }
 0x4dd   : > { %v4009_v45 = vpop.f32.mrf.mxu1 }
 0x4de   : > { %v4054_v16 = vpop.f32.mrf.mxu0 }
 0x4df   : > { %4850 = vrot.lane.b32.xlu1 %v4054_v16, %s13386_s18  ;;  %v12624_v18 = vpop.f32.mrf.mxu1  ;;  %s15853_s18 = sld [smem:[#allocation3_spill]] }
 0x4e0   : > { %v12629_v25 = vpop.f32.mrf.mxu0  ;;  %v12883_v18 = vld [vmem:[%s13425_s21 + $0x8] sm:$0xff]  }
 0x4e1   : > { %12728 = vmatpush3.bf16.msra.mxu1 %v12883_v18 }
 0x4e2   : > { %v4057_v34 = vpop.f32.mrf.mxu0  ;;  %12729 = vmatprep.subr.bf16.mxu1 %v15835_v4 }
 0x4e4   : > { %v12630_v31 = vpop.f32.mrf.mxu0 }
 0x512   : > { %v4102_v9 = vpop.f32.mrf.mxu1 }
 0x513   : > { %v4150_v14 = vpop.f32.mrf.mxu0  ;;  %4868 = vrot.lane.b32.xlu0 %v4102_v9, %s13387_s22 }
 0x514   : > { %4870 = vrot.lane.b32.xlu1 %v4150_v14, %s13387_s22  ;;  %v12635_v46 = vpop.f32.mrf.mxu1  ;;  %v12884_v14 = vld [vmem:[%s13425_s21] sm:$0xff]  }
 0x515   : > { %v12641_v52 = vpop.f32.mrf.mxu0  ;;  %12730 = vmatpush3.bf16.msra.mxu1 %v12884_v14 }
 0x516   : > { %v4105_v10 = vpop.f32.mrf.mxu1 }
 0x517   : > { %v4153_v19 = vpop.f32.mrf.mxu0 }
 0x518   : > { %v12636_v33 = vpop.f32.mrf.mxu1 }
 0x519   : > { %v12642_v53 = vpop.f32.mrf.mxu0 }
 0x51a   : > { %v4198_v21 = vpop.f32.mrf.mxu1 }
 0x51b   : > { %v4246_v8 = vpop.f32.mrf.mxu0  ;;  %4872 = vrot.lane.b32.xlu0 %v4198_v21, %s13387_s22 }
 0x51c   : > { %4874 = vrot.lane.b32.xlu1 %v4246_v8, %s13387_s22  ;;  %v12647_v54 = vpop.f32.mrf.mxu1 }
 0x51d   : > { %v12653_v5 = vpop.f32.mrf.mxu0 }
 0x51e   : > { %v4201_v27 = vpop.f32.mrf.mxu1 }
 0x51f   : > { %v4249_v1 = vpop.f32.mrf.mxu0 }
 0x520   : > { %v12648_v38 = vpop.f32.mrf.mxu1 }
 0x521   : > { %v12654_v26 = vpop.f32.mrf.mxu0 }
 0x522   : > { %v4294_v43 = vpop.f32.mrf.mxu1 }
 0x523   : > { %v4342_v32 = vpop.f32.mrf.mxu0  ;;  %4876 = vrot.lane.b32.xlu0 %v4294_v43, %s13387_s22 }
 0x524   : > { %4878 = vrot.lane.b32.xlu1 %v4342_v32, %s13387_s22  ;;  %v12659_v40 = vpop.f32.mrf.mxu1 }
 0x525   : > { %v12665_v62 = vpop.f32.mrf.mxu0 }
 0x526   : > { %v4297_v42 = vpop.f32.mrf.mxu1 }
 0x527   : > { %v4345_v37 = vpop.f32.mrf.mxu0 }
 0x528   : > { %v12660_v22 = vpop.f32.mrf.mxu1 }
 0x529   : > { %v12666_v58 = vpop.f32.mrf.mxu0 }
 0x52a   : > { %v4390_v17 = vpop.f32.mrf.mxu1 }
 0x52b   : > { %v4438_v30 = vpop.f32.mrf.mxu0  ;;  %4880 = vrot.lane.b32.xlu0 %v4390_v17, %s13387_s22 }
 0x52c   : > { %4882 = vrot.lane.b32.xlu1 %v4438_v30, %s13387_s22  ;;  %v12671_v2 = vpop.f32.mrf.mxu1 }
 0x52d   : > { %v12677_v57 = vpop.f32.mrf.mxu0 }
 0x52e   : > { %v4393_v41 = vpop.f32.mrf.mxu1 }
 0x52f   : > { %v4441_v51 = vpop.f32.mrf.mxu0 }
 0x530   : > { %v12672_v36 = vpop.f32.mrf.mxu1 }
 0x531   : > { %v12678_v28 = vpop.f32.mrf.mxu0 }
 0x534   : > { %v4837_v5 = vpop.permute.xlu0 %4836 }
 0x538   : > { %v4839_v27 = vpop.permute.xlu1 %4838 }
 0x53a   : > { %v4486_v39 = vpop.f32.mrf.mxu1 }
 0x53b   : > { %4900 = vrot.lane.b32.xlu0 %v4486_v39, %s13388_s23 }
 0x53c   : > { %v12683_v49 = vpop.f32.mrf.mxu1  ;;  %v4841_v1 = vpop.permute.xlu0 %4840 }
 0x53e   : > { %v4489_v0 = vpop.f32.mrf.mxu1  ;;  %v4534_v59 = vpop.f32.mrf.mxu0 }
 0x53f   : > { %4902 = vrot.lane.b32.xlu1 %v4534_v59, %s13388_s23  ;;  %v4925_v59 = vsel %vm1339_vm2, %v14700_v29, %v4839_v27 }
 0x540   : > { %v12689_v63 = vpop.f32.mrf.mxu0  ;;  %v12684_v7 = vpop.f32.mrf.mxu1 }
 0x541   : > { %v4843_v38 = vpop.permute.xlu1 %4842  ;;  %v4926_v63 = vsel %vm1339_vm2, %v14719_v11, %v4841_v1 }
 0x542   : > { %v4537_v55 = vpop.f32.mrf.mxu0  ;;  %v4582_v20 = vpop.f32.mrf.mxu1  ;;  %v4927_v28 = vsel %vm1339_vm2, %v14715_v13, %v4843_v38  ;;  %v4924_v13 = vsel %vm1339_vm2, %v14704_v35, %v4837_v5 }
 0x543   : > { %4904 = vrot.lane.b32.xlu0 %v4582_v20, %s13388_s23 }
 0x544   : > { %v12690_v3 = vpop.f32.mrf.mxu0  ;;  %v12695_v61 = vpop.f32.mrf.mxu1 }
 0x545   : > { %v4845_v26 = vpop.permute.xlu0 %4844 }
 0x546   : > { %v4630_v47 = vpop.f32.mrf.mxu0  ;;  %v4585_v48 = vpop.f32.mrf.mxu1  ;;  %v4928_v29 = vsel %vm1339_vm2, %v14724_v23, %v4845_v26 }
 0x547   : > { %4906 = vrot.lane.b32.xlu1 %v4630_v47, %s13388_s23 }
 0x548   : > { %v12701_v6 = vpop.f32.mrf.mxu0  ;;  %v12696_v15 = vpop.f32.mrf.mxu1 }
 0x549   : > { %v4847_v43 = vpop.permute.xlu1 %4846 }
 0x54a   : > { %v4633_v12 = vpop.f32.mrf.mxu0  ;;  %v4929_v7 = vsel %vm1339_vm2, %v14722_v44, %v4847_v43 }
 0x54c   : > { %v12702_v60 = vpop.f32.mrf.mxu0  ;;  %v4849_v32 = vpop.permute.xlu0 %4848 }
 0x54d   : > { %v4930_v12 = vsel %vm1339_vm2, %v14726_v50, %v4849_v32  ;;  %v15848_v50 = vld [vmem:[#allocation18_spill] sm:$0xff] }
 0x551   : > { %v4851_v40 = vpop.permute.xlu1 %4850 }
 0x552   : > { %v4931_v60 = vsel %vm1339_vm2, %v14728_v56, %v4851_v40 }
 0x577   : > { %v4678_v24 = vpop.f32.mrf.mxu1 }
 0x578   : > { %4908 = vrot.lane.b32.xlu0 %v4678_v24, %s13388_s23 }
 0x579   : > { %v12707_v45 = vpop.f32.mrf.mxu1 }
 0x57b   : > { %v4681_v16 = vpop.f32.mrf.mxu1 }
 0x57c   : > { %v4726_v25 = vpop.f32.mrf.mxu0 }
 0x57d   : > { %4910 = vrot.lane.b32.xlu1 %v4726_v25, %s13388_s23  ;;  %v12708_v34 = vpop.f32.mrf.mxu1 }
 0x57e   : > { %v12713_v31 = vpop.f32.mrf.mxu0 }
 0x57f   : > { %v4774_v9 = vpop.f32.mrf.mxu1 }
 0x580   : > { %v4729_v46 = vpop.f32.mrf.mxu0  ;;  %4912 = vrot.lane.b32.xlu0 %v4774_v9, %s13388_s23 }
 0x581   : > { %v12719_v52 = vpop.f32.mrf.mxu1 }
 0x582   : > { %v12714_v10 = vpop.f32.mrf.mxu0 }
 0x583   : > { %v4777_v19 = vpop.f32.mrf.mxu1 }
 0x584   : > { %v4822_v33 = vpop.f32.mrf.mxu0 }
 0x585   : > { %4914 = vrot.lane.b32.xlu1 %v4822_v33, %s13388_s23  ;;  %v12720_v53 = vpop.f32.mrf.mxu1  ;;  %v4869_v42 = vpop.permute.xlu0 %4868  ;;  %s15854_s23 = sld [smem:[#allocation8_spill]] }
 0x586   : > { %v12725_v21 = vpop.f32.mrf.mxu0  ;;  %v4871_v62 = vpop.permute.xlu1 %4870  ;;  %v4933_v48 = vsel %vm4932_vm6, %v4924_v13, %v4869_v42  ;;  %v13330_v42 = vld [vmem:[%s13590_s2] sm:$0x3]  ;;  %v13336_v13 = vld [vmem:[%s13590_s2 + $0xc] sm:$0x3] }
 0x587   : > { %v4934_v20 = vsel %vm4932_vm6, %v4925_v59, %v4871_v62  ;;  %v11372_v21 = vld [vmem:[%s13430_s25] ss:$0 sm:$0xff]  ;;  %v13334_v59 = vld [vmem:[%s13590_s2 + $0x8] sm:$0x3] }
 0x588   : > { %v4825_v8 = vpop.f32.mrf.mxu0 }
 0x58a   : > { %v12726_v54 = vpop.f32.mrf.mxu0 }
 0x58d   : > { %v4873_v22 = vpop.permute.xlu0 %4872 }
 0x58e   : > { %v4875_v37 = vpop.permute.xlu1 %4874  ;;  %v4935_v3 = vsel %vm4932_vm6, %v4926_v63, %v4873_v22  ;;  %v13331_v22 = vld [vmem:[%s13590_s2 + $0x2] sm:$0x3] }
 0x58f   : > { %v4936_v39 = vsel %vm4932_vm6, %v4927_v28, %v4875_v37 }
 0x595   : > { %v4877_v17 = vpop.permute.xlu0 %4876 }
 0x596   : > { %v4879_v58 = vpop.permute.xlu1 %4878  ;;  %v4937_v6 = vsel %vm4932_vm6, %v4928_v29, %v4877_v17 }
 0x597   : > { %v4938_v61 = vsel %vm4932_vm6, %v4929_v7, %v4879_v58  ;;  %v13335_v7 = vld [vmem:[%s13590_s2 + $0xa] sm:$0x3] }
 0x59d   : > { %v4881_v2 = vpop.permute.xlu0 %4880 }
 0x59e   : > { %v4883_v30 = vpop.permute.xlu1 %4882  ;;  %v4939_v16 = vsel %vm4932_vm6, %v4930_v12, %v4881_v2  ;;  %v13332_v2 = vld [vmem:[%s13590_s2 + $0x4] sm:$0x3] }
 0x59f   : > { %v4940_v45 = vsel %vm4932_vm6, %v4931_v60, %v4883_v30 }
 0x5ad   : > { %v4901_v57 = vpop.permute.xlu0 %4900 }
 0x5ae   : > { %v4942_v23 = vsel %vm4941_vm7, %v4933_v48, %v4901_v57 }
 0x5b1   : > { %v4903_v41 = vpop.permute.xlu1 %4902 }
 0x5b2   : > { %v4943_v47 = vsel %vm4941_vm7, %v4934_v20, %v4903_v41  ;;  %v13333_v41 = vld [vmem:[%s13590_s2 + $0x6] sm:$0x3] }
 0x5b3   : > { %v4963_v18 = vcombine.low %v4942_v23, %v4943_v47  ;;  %v13389_v23 = vmov 269488144  }
 0x5b5   : > { %v4905_v51 = vpop.permute.xlu0 %4904  ;;  %v4971_v56 = vrot.slane %v4963_v18, %v15848_v50  ;;  %v13391_v18 = vmov 1414812756  }
 0x5b6   : > { %v4944_v11 = vsel %vm4941_vm7, %v4935_v3, %v4905_v51  ;;  %v13337_v3 = vld [vmem:[%s13590_s2 + $0xe] sm:$0x3]  ;;  %s15850_s2 = sld [smem:[#allocation6_spill]] }
 0x5b9   : > { %v4907_v36 = vpop.permute.xlu1 %4906 }
 0x5ba   : > { %v4945_v55 = vsel %vm4941_vm7, %v4936_v39, %v4907_v36 }
 0x5bb   : > { %v4964_v35 = vcombine.low %v4944_v11, %v4945_v55 }
 0x5bd   : > { %v4978_v14 = vrot.slane %v4964_v35, %v15848_v50 }
 0x5bf   : > { %v4979_v19 = vcombine.low %v4971_v56, %v4978_v14 }
 0x5ea   : > { %v4909_v49 = vpop.permute.xlu0 %4908 }
 0x5eb   : > { %v4946_v24 = vsel %vm4941_vm7, %v4937_v6, %v4909_v49 }
 0x5ef   : > { %v4911_v0 = vpop.permute.xlu1 %4910 }
 0x5f0   : > { %v4947_v44 = vsel %vm4941_vm7, %v4938_v61, %v4911_v0 }
 0x5f1   : > { %v4980_v25 = vcombine.low %v4946_v24, %v4947_v44  ;;  %v5172_v24 = vunpack.c.l.s4 %v13389_v23  ;;  %v5474_v23 = vld [vmem:[%s13435_s29 + $0xc8] sm:$0xff] }
 0x5f2   : > { %v4913_v15 = vpop.permute.xlu0 %4912 }
 0x5f3   : > { %v4948_v31 = vsel %vm4941_vm7, %v4939_v16, %v4913_v15  ;;  %v4988_v52 = vrot.slane %v4980_v25, %v15848_v50  ;;  %v5186_v25 = vunpack.c.l.s4 %v13391_v18 }
 0x5f7   : > { %v4915_v34 = vpop.permute.xlu1 %4914 }
 0x5f8   : > { %v4949_v9 = vsel %vm4941_vm7, %v4940_v45, %v4915_v34  ;;  %v13390_v45 = vmov 842150450   ;;  %v13392_v34 = vmov 1987475062  }
 0x5f9   : > { %v4981_v46 = vcombine.low %v4948_v31, %v4949_v9  ;;  %v5179_v16 = vunpack.c.l.s4 %v13390_v45  ;;  %v5193_v31 = vunpack.c.l.s4 %v13392_v34  ;;  %v5173_v9 = vunpack.c.0.s8 %v5172_v24  ;;  %v5449_v24 = vld [vmem:[%s13435_s29] sm:$0xff] }
 0x5fa   : > { %v5457_v45 = vld [vmem:[%s13435_s29 + $0x40] sm:$0xff] }
 0x5fb   : > { %v4995_v10 = vrot.slane %v4981_v46, %v15848_v50  ;;  %v5180_v14 = vunpack.c.0.s8 %v5179_v16  ;;  %v5187_v46 = vunpack.c.0.s8 %v5186_v25  ;;  %v5194_v56 = vunpack.c.0.s8 %v5193_v31  ;;  %v5450_v31 = vld [vmem:[%s13435_s29 + $0x8] sm:$0xff] }
 0x5fc   : > { %v13393_v16 = vmov 0   ;;  %v11379_v34 = vcombine.high %v5449_v24, %v5457_v45 }
 0x5fd   : > { %v4996_v33 = vcombine.low %v4988_v52, %v4995_v10  ;;  %v15849_v52 = vld [vmem:[#allocation17_spill] sm:$0xff]  ;;  %5805 = vmatprep.mubr.bf16.mxu0 %v13393_v16 }
 0x5fe   : > { %v14831_v10 = vsub.s32 %v5173_v9, %v15849_v52  ;;  %v5458_v9 = vld [vmem:[%s13435_s29 + $0x48] sm:$0xff] }
 0x5ff   : > { %v4999_v53 = vpack.c.bf16 %v4996_v33, %v4979_v19  ;;  %v14834_v19 = vsub.s32 %v5180_v14, %v15849_v52  ;;  %v14837_v33 = vsub.s32 %v5187_v46, %v15849_v52  ;;  %v11381_v14 = vcombine.high %v5450_v31, %v5458_v9 }
 0x600   : > { %v11378_v46 = vcombine.low %v5449_v24, %v5457_v45 }
 0x601   : > { %12732 = vmatmul.mubr.msk.bf16.vlgmr.msra.gmra.mxu1 %vm1079_vm1, %v4999_v53  ;;  %v14840_v53 = vsub.s32 %v5194_v56, %v15849_v52  ;;  %v11380_v56 = vcombine.low %v5450_v31, %v5458_v9 }
 0x602   : > { %5848 = vmatprep.mubr.bf16.mxu1 %v13393_v16 }
 0x6c1   : > { %v5055_v8 = vpop.f32.mrf.mxu1 }
 0x6c2   : > { %v5056_v54 = vadd.f32 %v11372_v21, %v5055_v8 }
 0x6c3   : > { %v12733_v5 = vpop.f32.mrf.mxu1 }
 0x6c4   : > { %v5064_v27 = vcombine.high %v5056_v54, %v5056_v54  ;;  %v5071_v1 = vrot.slane %v5056_v54, %v15848_v50 }
 0x6c5   : > { %v5058_v38 = vpop.f32.mrf.mxu1 }
 0x6c6   : > { %v5078_v26 = vrot.slane %v5064_v27, %v15848_v50  ;;  %v5079_v43 = vcombine.high %v5071_v1, %v5071_v1  ;;  %v5059_v32 = vadd.f32 %v11372_v21, %v5058_v38  ;;  %v5106_v37 = vadd.f32 %v13330_v42, %v5071_v1 }
 0x6c7   : > { %v12734_v40 = vpop.f32.mrf.mxu1 }
 0x6c8   : > { %v5080_v62 = vcombine.high %v5078_v26, %v5078_v26  ;;  %v5107_v58 = vadd.f32 %v13331_v22, %v5079_v43  ;;  %v5081_v17 = vcombine.high %v5059_v32, %v5059_v32  ;;  %v5088_v30 = vrot.slane %v5059_v32, %v15848_v50 }
 0x6c9   : > { %v5108_v57 = vadd.f32 %v13332_v2, %v5078_v26 }
 0x6ca   : > { %v5109_v51 = vadd.f32 %v13333_v41, %v5080_v62  ;;  %v5124_v36 = vcombine.low %v5106_v37, %v5107_v58  ;;  %v5095_v28 = vrot.slane %v5081_v17, %v15848_v50  ;;  %v5096_v39 = vcombine.high %v5088_v30, %v5088_v30 }
 0x6cb   : > { %v5110_v63 = vadd.f32 %v13334_v59, %v5088_v30 }
 0x6cc   : > { %v5097_v49 = vcombine.high %v5095_v28, %v5095_v28  ;;  %v5125_v0 = vcombine.low %v5108_v57, %v5109_v51  ;;  %v5111_v55 = vadd.f32 %v13335_v7, %v5096_v39  ;;  %v5112_v20 = vadd.f32 %v13336_v13, %v5095_v28 }
 0x6cd   : > { %v5132_v29 = vrot.slane %v5124_v36, %v15848_v50 }
 0x6ce   : > { %v5113_v61 = vadd.f32 %v13337_v3, %v5097_v49  ;;  %v5139_v47 = vrot.slane %v5125_v0, %v15848_v50  ;;  %v5141_v11 = vcombine.low %v5110_v63, %v5111_v55 }
 0x6d0   : > { %v5140_v44 = vcombine.low %v5132_v29, %v5139_v47  ;;  %v5142_v48 = vcombine.low %v5112_v20, %v5113_v61  ;;  %v5149_v35 = vrot.slane %v5141_v11, %v15848_v50 }
 0x6d2   : > { %v5160_v6 = vsel %vm1079_vm1, %v5140_v44, 0.0  ;;  %v5156_v15 = vrot.slane %v5142_v48, %v15848_v50 }
 0x6d3   : > { %5161 = vadd.xlane.f32.xlu0 %v5160_v6  ;;  %v5465_v6 = vld [vmem:[%s13435_s29 + $0x80] sm:$0xff] }
 0x6d4   : > { %v5157_v12 = vcombine.low %v5149_v35, %v5156_v15  ;;  %v5473_v35 = vld [vmem:[%s13435_s29 + $0xc0] sm:$0xff]  ;;  %v5466_v15 = vld [vmem:[%s13435_s29 + $0x88] sm:$0xff] }
 0x6d5   : > { %v11396_v18 = vcombine.low %v5466_v15, %v5474_v23  ;;  %v11397_v25 = vcombine.high %v5466_v15, %v5474_v23 }
 0x6d6   : > { %v5163_v60 = vsel %vm1079_vm1, %v5157_v12, 0.0  ;;  %v11394_v12 = vcombine.low %v5465_v6, %v5473_v35 }
 0x6d7   : > { %5164 = vadd.xlane.f32.xlu1 %v5163_v60  ;;  %v11395_v60 = vcombine.high %v5465_v6, %v5473_v35  ;;  %5828 = vmatprep.subr.bf16.mxu1 %v11397_v25 }
 0x6d8   : > { %5829 = vmatpush1.bf16.msra.mxu1 %v11396_v18 }
 0x6d9   : > { %5785 = vmatprep.subr.bf16.mxu0 %v11395_v60  ;;  %5830 = vmatprep.subr.bf16.mxu1 %v11381_v14 }
 0x6da   : > { %5786 = vmatpush1.bf16.msra.mxu0 %v11394_v12 }
 0x6db   : > { %5787 = vmatprep.subr.bf16.mxu0 %v11379_v34 }
 0x6dc   : > { %5831 = vmatpush1.bf16.msra.mxu1 %v11380_v56 }
 0x6de   : > { %5788 = vmatpush1.bf16.msra.mxu0 %v11378_v46 }
 0x75c   : > { %v5162_v21 = vpop.xlane.xlu0 %5161 }
 0x75d   : > { %v5167_v8 = vmul.f32 0.03125, %v5162_v21  ;;  %v14899_v21 = vld [vmem:[%s13435_s29 + $0x90] sm:$0xff] }
 0x75f   : > { %v5177_v54 = vrot.slane %v5167_v8, %v14831_v10  ;;  %v5184_v5 = vrot.slane %v5167_v8, %v14834_v19  ;;  %v5191_v27 = vrot.slane %v5167_v8, %v14837_v33  ;;  %v5198_v1 = vrot.slane %v5167_v8, %v14840_v53  ;;  %v14902_v8 = vld [vmem:[%s13435_s29 + $0xd0] sm:$0xff] }
 0x760   : > { %v5165_v38 = vpop.xlane.xlu1 %5164 }
 0x761   : > { %v14846_v26 = vsub.f32 %v5106_v37, %v5177_v54  ;;  %v14848_v43 = vsub.f32 %v5107_v58, %v5184_v5  ;;  %v14850_v32 = vsub.f32 %v5108_v57, %v5191_v27  ;;  %v14852_v40 = vsub.f32 %v5109_v51, %v5198_v1  ;;  %v14905_v54 = vld [vmem:[%s13435_s29 + $0x98] sm:$0xff] }
 0x762   : > { %v5168_v62 = vmul.f32 0.03125, %v5165_v38  ;;  %v11398_v5 = vcombine.low %v14899_v21, %v14902_v8  ;;  %v11399_v27 = vcombine.high %v14899_v21, %v14902_v8  ;;  %v14912_v1 = vld [vmem:[%s13435_s29 + $0xd8] sm:$0xff]  ;;  %v5461_v21 = vld [vmem:[%s13435_s29 + $0x60] sm:$0xff]  ;;  %v5454_v8 = vld [vmem:[%s13435_s29 + $0x28] sm:$0xff] }
 0x763   : > { %v5243_v42 = vmul.f32 %v14846_v26, %v14846_v26  ;;  %v5244_v22 = vmul.f32 %v14848_v43, %v14848_v43  ;;  %v5245_v17 = vmul.f32 %v14850_v32, %v14850_v32  ;;  %v5246_v37 = vmul.f32 %v14852_v40, %v14852_v40 }
 0x764   : > { %v5205_v58 = vrot.slane %v5168_v62, %v14831_v10  ;;  %v5212_v30 = vrot.slane %v5168_v62, %v14834_v19  ;;  %v5219_v2 = vrot.slane %v5168_v62, %v14837_v33  ;;  %v5226_v57 = vrot.slane %v5168_v62, %v14840_v53  ;;  %5871 = vmatprep.subr.bf16.mxu0 %v11399_v27 }
 0x765   : > { %v5259_v41 = vcombine.low %v5243_v42, %v5244_v22  ;;  %v5260_v51 = vcombine.low %v5245_v17, %v5246_v37  ;;  %v11400_v38 = vcombine.low %v14905_v54, %v14912_v1  ;;  %v11401_v62 = vcombine.high %v14905_v54, %v14912_v1 }
 0x766   : > { %v14866_v36 = vsub.f32 %v5110_v63, %v5205_v58  ;;  %v14868_v28 = vsub.f32 %v5111_v55, %v5212_v30  ;;  %v14870_v39 = vsub.f32 %v5112_v20, %v5219_v2  ;;  %v14872_v49 = vsub.f32 %v5113_v61, %v5226_v57  ;;  %v11376_v30 = vld [vmem:[%s13455_s19] ss:$0 sm:$0xff] }
 0x767   : > { %v5267_v0 = vrot.slane %v5259_v41, %v15848_v50  ;;  %v5274_v59 = vrot.slane %v5260_v51, %v15848_v50  ;;  %5914 = vmatprep.subr.bf16.mxu1 %v11401_v62  ;;  %v11377_v57 = vld [vmem:[%s13460_s24] ss:$0 sm:$0xff]  ;;  %v5386_v41 = vcombine.high %v11376_v30, %v11376_v30 }
 0x768   : > { %v5247_v7 = vmul.f32 %v14866_v36, %v14866_v36  ;;  %v5248_v63 = vmul.f32 %v14868_v28, %v14868_v28  ;;  %v5249_v55 = vmul.f32 %v14870_v39, %v14870_v39  ;;  %v5250_v13 = vmul.f32 %v14872_v49, %v14872_v49 }
 0x769   : > { %v5275_v20 = vcombine.low %v5267_v0, %v5274_v59  ;;  %v5420_v51 = vcombine.high %v11377_v57, %v11377_v57  ;;  %v5393_v0 = vrot.slane %v11376_v30, %v15848_v50  ;;  %v5400_v59 = vrot.slane %v5386_v41, %v15848_v50 }
 0x76a   : > { %v5276_v3 = vcombine.low %v5247_v7, %v5248_v63  ;;  %v5277_v61 = vcombine.low %v5249_v55, %v5250_v13  ;;  %v5427_v7 = vrot.slane %v11377_v57, %v15848_v50 }
 0x76b   : > { %v5295_v29 = vsel %vm1079_vm1, %v5275_v20, 0.0  ;;  %v5434_v63 = vrot.slane %v5420_v51, %v15848_v50  ;;  %v5401_v13 = vcombine.high %v5393_v0, %v5393_v0  ;;  %v5402_v20 = vcombine.high %v5400_v59, %v5400_v59 }
 0x76c   : > { %5296 = vadd.xlane.f32.xlu0 %v5295_v29  ;;  %v5284_v47 = vrot.slane %v5276_v3, %v15848_v50  ;;  %v5291_v11 = vrot.slane %v5277_v61, %v15848_v50 }
 0x76e   : > { %v5292_v44 = vcombine.low %v5284_v47, %v5291_v11  ;;  %v5435_v11 = vcombine.high %v5427_v7, %v5427_v7 }
 0x770   : > { %v5298_v48 = vsel %vm1079_vm1, %v5292_v44, 0.0  ;;  %v5436_v44 = vcombine.high %v5434_v63, %v5434_v63 }
 0x771   : > { %5299 = vadd.xlane.f32.xlu0 %v5298_v48 }
 0x7f5   : > { %v5297_v42 = vpop.xlane.xlu0 %5296 }
 0x7f6   : > { %v5301_v22 = vmul.f32 0.03125, %v5297_v42 }
 0x7f8   : > { %v5303_v17 = vadd.f32 1e-05, %v5301_v22 }
 0x7fa   : > { %13302 = vrsqrt.f32 %v5303_v17  ;;  %v5300_v37 = vpop.xlane.xlu0 %5299 }
 0x7fb   : > { %v5302_v58 = vmul.f32 0.03125, %v5300_v37 }
 0x7fd   : > { %v5304_v2 = vadd.f32 1e-05, %v5302_v58 }
 0x7ff   : > { %13304 = vrsqrt.f32 %v5304_v2 }
 0x807   : > { %v13303_v55 = vpop.eup %13302 }
 0x808   : > { %v5315_v3 = vrot.slane %v13303_v55, %v14831_v10  ;;  %v5322_v61 = vrot.slane %v13303_v55, %v14834_v19  ;;  %v5329_v29 = vrot.slane %v13303_v55, %v14837_v33  ;;  %v5336_v47 = vrot.slane %v13303_v55, %v14840_v53 }
 0x80a   : > { %v5373_v48 = vmul.f32 %v5315_v3, %v14846_v26  ;;  %v5374_v6 = vmul.f32 %v5322_v61, %v14848_v43  ;;  %v5375_v35 = vmul.f32 %v5329_v29, %v14850_v32  ;;  %v5376_v15 = vmul.f32 %v5336_v47, %v14852_v40  ;;  %v5469_v29 = vld [vmem:[%s13435_s29 + $0xa0] sm:$0xff] }
 0x80b   : > { %v5477_v47 = vld [vmem:[%s13435_s29 + $0xe0] sm:$0xff] }
 0x80c   : > { %v13305_v12 = vpop.eup %13304  ;;  %v5407_v60 = vmul.f32 %v5393_v0, %v5373_v48  ;;  %v5408_v23 = vmul.f32 %v5401_v13, %v5374_v6  ;;  %v5409_v24 = vmul.f32 %v5400_v59, %v5375_v35  ;;  %v5410_v45 = vmul.f32 %v5402_v20, %v5376_v15 }
 0x80d   : > { %v5343_v18 = vrot.slane %v13305_v12, %v14831_v10  ;;  %v5350_v25 = vrot.slane %v13305_v12, %v14834_v19  ;;  %v5357_v34 = vrot.slane %v13305_v12, %v14837_v33  ;;  %v5364_v31 = vrot.slane %v13305_v12, %v14840_v53  ;;  %v5453_v12 = vld [vmem:[%s13435_s29 + $0x20] sm:$0xff] }
 0x80e   : > { %v14936_v26 = vadd.f32 %v5427_v7, %v5407_v60  ;;  %v14938_v43 = vadd.f32 %v5435_v11, %v5408_v23  ;;  %v14940_v32 = vadd.f32 %v5434_v63, %v5409_v24  ;;  %v14942_v40 = vadd.f32 %v5436_v44, %v5410_v45  ;;  %v5471_v23 = vld [vmem:[%s13435_s29 + $0xb0] sm:$0xff]  ;;  %v5472_v45 = vld [vmem:[%s13435_s29 + $0xb8] sm:$0xff] }
 0x80f   : > { %v5377_v9 = vmul.f32 %v5343_v18, %v14866_v36  ;;  %v5378_v14 = vmul.f32 %v5350_v25, %v14868_v28  ;;  %v5379_v46 = vmul.f32 %v5357_v34, %v14870_v39  ;;  %v5380_v56 = vmul.f32 %v5364_v31, %v14872_v49  ;;  %v5479_v24 = vld [vmem:[%s13435_s29 + $0xf0] sm:$0xff]  ;;  %v5480_v18 = vld [vmem:[%s13435_s29 + $0xf8] sm:$0xff] }
 0x810   : > { %v5491_v27 = vcombine.low %v14936_v26, %v14938_v43  ;;  %v5492_v62 = vcombine.low %v14940_v32, %v14942_v40  ;;  %v11403_v35 = vcombine.high %v5469_v29, %v5477_v47  ;;  %v11402_v54 = vcombine.low %v5469_v29, %v5477_v47  ;;  %v12899_v29 = vld [vmem:[%s13445_s8 + $0x20] sm:$0xff]  }
 0x811   : > { %v5411_v42 = vmul.f32 %v5393_v0, %v5377_v9  ;;  %v5412_v22 = vmul.f32 %v5401_v13, %v5378_v14  ;;  %v5413_v17 = vmul.f32 %v5400_v59, %v5379_v46  ;;  %v5414_v36 = vmul.f32 %v5402_v20, %v5380_v56  ;;  %v5451_v0 = vld [vmem:[%s13435_s29 + $0x10] sm:$0xff]  ;;  %v5456_v56 = vld [vmem:[%s13435_s29 + $0x38] sm:$0xff]  ;;  %v12900_v47 = vld [vmem:[%s13445_s8 + $0xa0] sm:$0xff]  }
 0x812   : > { %v5499_v58 = vrot.slane %v5491_v27, %v15848_v50  ;;  %v5506_v30 = vrot.slane %v5492_v62, %v15848_v50  ;;  %v5459_v59 = vld [vmem:[%s13435_s29 + $0x50] sm:$0xff]  ;;  %v11386_v25 = vcombine.low %v5453_v12, %v5461_v21  ;;  %v11407_v31 = vcombine.high %v5471_v23, %v5479_v24  ;;  %v5464_v27 = vld [vmem:[%s13435_s29 + $0x78] sm:$0xff] }
 0x813   : > { %v14952_v37 = vadd.f32 %v5427_v7, %v5411_v42  ;;  %v14954_v28 = vadd.f32 %v5435_v11, %v5412_v22  ;;  %v14956_v39 = vadd.f32 %v5434_v63, %v5413_v17  ;;  %v14958_v49 = vadd.f32 %v5436_v44, %v5414_v36  ;;  %v5452_v7 = vld [vmem:[%s13435_s29 + $0x18] sm:$0xff]  ;;  %v5470_v11 = vld [vmem:[%s13435_s29 + $0xa8] sm:$0xff]  ;;  %v5455_v14 = vld [vmem:[%s13435_s29 + $0x30] sm:$0xff] }
 0x814   : > { %v5460_v63 = vld [vmem:[%s13435_s29 + $0x58] sm:$0xff]  ;;  %v5507_v55 = vcombine.low %v5499_v58, %v5506_v30  ;;  %v11383_v3 = vcombine.high %v5451_v0, %v5459_v59  ;;  %v5478_v44 = vld [vmem:[%s13435_s29 + $0xe8] sm:$0xff]  ;;  %v11382_v48 = vcombine.low %v5451_v0, %v5459_v59  ;;  %v11409_v9 = vcombine.high %v5472_v45, %v5480_v18  ;;  %v5463_v46 = vld [vmem:[%s13435_s29 + $0x70] sm:$0xff] }
 0x815   : > { %v5508_v2 = vcombine.low %v14952_v37, %v14954_v28  ;;  %v5509_v57 = vcombine.low %v14956_v39, %v14958_v49  ;;  %v11385_v61 = vcombine.high %v5452_v7, %v5460_v63  ;;  %v11384_v6 = vcombine.low %v5452_v7, %v5460_v63  ;;  %v12885_v30 = vld [vmem:[%s13445_s8 + $0x78] sm:$0xff]   ;;  %v12890_v0 = vld [vmem:[%s13445_s8 + $0xf0] sm:$0xff]   ;;  %v12893_v63 = vld [vmem:[%s13445_s8 + $0x68] sm:$0xff]  }
 0x816   : > { %v11405_v15 = vcombine.high %v5470_v11, %v5478_v44  ;;  %v11404_v1 = vcombine.low %v5470_v11, %v5478_v44  ;;  %v11406_v62 = vcombine.low %v5471_v23, %v5479_v24  ;;  %v11408_v42 = vcombine.low %v5472_v45, %v5480_v18  ;;  %v12891_v59 = vld [vmem:[%s13445_s8 + $0x30] sm:$0xff]   ;;  %v12901_v11 = vld [vmem:[%s13445_s8 + $0x58] sm:$0xff]   ;;  %v12915_v23 = vld [vmem:[%s13445_s8] sm:$0xff]  }
 0x817   : > { %v5516_v41 = vrot.slane %v5508_v2, %v15848_v50  ;;  %v5523_v51 = vrot.slane %v5509_v57, %v15848_v50  ;;  %v11391_v22 = vcombine.high %v5455_v14, %v5463_v46  ;;  %v11393_v17 = vcombine.high %v5456_v56, %v5464_v27  ;;  %v12886_v2 = vld [vmem:[%s13445_s8 + $0xf8] sm:$0xff]   ;;  %v12892_v7 = vld [vmem:[%s13445_s8 + $0xb0] sm:$0xff]   ;;  %v12916_v24 = vld [vmem:[%s13445_s8 + $0x80] sm:$0xff]  }
 0x818   : > { %v11390_v36 = vcombine.low %v5455_v14, %v5463_v46  ;;  %v11392_v58 = vcombine.low %v5456_v56, %v5464_v27  ;;  %v12887_v57 = vld [vmem:[%s13445_s8 + $0x38] sm:$0xff]   ;;  %v15065_v14 = vld [vmem:[%s13440_s3] sm:$0xff] }
 0x819   : > { %v5524_v13 = vcombine.low %v5516_v41, %v5523_v51  ;;  %v12888_v41 = vld [vmem:[%s13445_s8 + $0xb8] sm:$0xff]   ;;  %v12889_v51 = vld [vmem:[%s13445_s8 + $0x70] sm:$0xff]  }
 0x81a   : > { %v12902_v44 = vld [vmem:[%s13445_s8 + $0xd8] sm:$0xff]  }
 0x81b   : > { %v14972_v20 = vpack.c.bf16 %v5524_v13, %v5507_v55  ;;  %v12894_v55 = vld [vmem:[%s13445_s8 + $0xe8] sm:$0xff]   ;;  %v12917_v45 = vld [vmem:[%s13445_s8 + $0x178] sm:$0xff]  }
 0x81c   : > { %v12895_v13 = vld [vmem:[%s13445_s8 + $0x28] sm:$0xff]   ;;  %v12918_v18 = vld [vmem:[%s13445_s8 + $0x1f8] sm:$0xff]  }
 0x81d   : > { %11410 = vmatmul.mubr.msk.bf16.vlgmr.msra.gmra.mxu0 %vm1079_vm1, %v14972_v20  ;;  %11411 = vmatmul.mubr.msk.bf16.vlgmr.msra.gmra.mxu1 %vm1079_vm1, %v14972_v20 }
 0x81e   : > { %5872 = vmatpush1.bf16.msra.mxu0 %v11398_v5  ;;  %5915 = vmatpush1.bf16.msra.mxu1 %v11400_v38  ;;  %v5462_v5 = vld [vmem:[%s13435_s29 + $0x68] sm:$0xff]  ;;  %v11387_v38 = vcombine.high %v5453_v12, %v5461_v21  ;;  %v12907_v12 = vld [vmem:[%s13445_s8 + $0x10] sm:$0xff]  }
 0x81f   : > { %5873 = vmatprep.subr.bf16.mxu0 %v11383_v3  ;;  %5916 = vmatprep.subr.bf16.mxu1 %v11385_v61  ;;  %v11389_v60 = vcombine.high %v5454_v8, %v5462_v5  ;;  %v11388_v34 = vcombine.low %v5454_v8, %v5462_v5  ;;  %v12896_v3 = vld [vmem:[%s13445_s8 + $0xa8] sm:$0xff]   ;;  %v12898_v61 = vld [vmem:[%s13445_s8 + $0xe0] sm:$0xff]   ;;  %v12908_v21 = vld [vmem:[%s13445_s8 + $0x90] sm:$0xff]  }
 0x820   : > { %5891 = vmatprep.mubr.bf16.mxu0 %v13393_v16  ;;  %5934 = vmatprep.mubr.bf16.mxu1 %v13393_v16  ;;  %v12909_v8 = vld [vmem:[%s13445_s8 + $0x48] sm:$0xff]  }
 0x821   : > { %v12910_v5 = vld [vmem:[%s13445_s8 + $0xc8] sm:$0xff]  }
 0x822   : > { %5874 = vmatpush1.bf16.msra.mxu0 %v11382_v48  ;;  %5917 = vmatpush1.bf16.msra.mxu1 %v11384_v6  ;;  %v12903_v48 = vld [vmem:[%s13445_s8 + $0x18] sm:$0xff]  }
 0x823   : > { %5957 = vmatprep.subr.bf16.mxu0 %v11403_v35  ;;  %6000 = vmatprep.subr.bf16.mxu1 %v11405_v15  ;;  %v12904_v6 = vld [vmem:[%s13445_s8 + $0x98] sm:$0xff]   ;;  %v12905_v35 = vld [vmem:[%s13445_s8 + $0x50] sm:$0xff]  }
 0x824   : > { %v12906_v15 = vld [vmem:[%s13445_s8 + $0xd0] sm:$0xff]  }
 0x825   : > { %11412 = vmatmul.mubr.msk.bf16.vlgmr.msra.gmra.mxu0 %vm1079_vm1, %v14972_v20  ;;  %11413 = vmatmul.mubr.msk.bf16.vlgmr.msra.gmra.mxu1 %vm1079_vm1, %v14972_v20 }
 0x826   : > { %5958 = vmatpush1.bf16.msra.mxu0 %v11402_v54  ;;  %6001 = vmatpush1.bf16.msra.mxu1 %v11404_v1  ;;  %v12911_v54 = vld [vmem:[%s13445_s8 + $0x8] sm:$0xff]  }
 0x827   : > { %5959 = vmatprep.subr.bf16.mxu0 %v11387_v38  ;;  %6002 = vmatprep.subr.bf16.mxu1 %v11389_v60  ;;  %v12912_v1 = vld [vmem:[%s13445_s8 + $0x88] sm:$0xff]   ;;  %v12913_v38 = vld [vmem:[%s13445_s8 + $0x40] sm:$0xff]  }
 0x828   : > { %5977 = vmatprep.mubr.bf16.mxu0 %v13393_v16  ;;  %6020 = vmatprep.mubr.bf16.mxu1 %v13393_v16  ;;  %v12914_v60 = vld [vmem:[%s13445_s8 + $0xc0] sm:$0xff]  }
 0x82a   : > { %5960 = vmatpush1.bf16.msra.mxu0 %v11386_v25  ;;  %6003 = vmatpush1.bf16.msra.mxu1 %v11388_v34  ;;  %v15053_v25 = vsub.s32 1, %v15849_v52  ;;  %v15056_v34 = vsub.s32 3, %v15849_v52 }
 0x82b   : > { %6043 = vmatprep.subr.bf16.mxu0 %v11407_v31  ;;  %6086 = vmatprep.subr.bf16.mxu1 %v11409_v9  ;;  %v15059_v31 = vsub.s32 0, %v15849_v52  ;;  %v15062_v9 = vsub.s32 2, %v15849_v52 }
 0x82c   : > { %v5537_v27 = vrot.slane %v15065_v14, %v15053_v25 }
 0x82d   : > { %11414 = vmatmul.mubr.msk.bf16.vlgmr.msra.gmra.mxu0 %vm1079_vm1, %v14972_v20  ;;  %11415 = vmatmul.mubr.msk.bf16.vlgmr.msra.gmra.mxu1 %vm1079_vm1, %v14972_v20 }
 0x82e   : > { %6044 = vmatpush1.bf16.msra.mxu0 %v11406_v62  ;;  %6087 = vmatpush1.bf16.msra.mxu1 %v11408_v42  ;;  %v5545_v62 = vrot.slane %v15065_v14, %v15056_v34  ;;  %v5533_v42 = vrot.slane %v15065_v14, %v15059_v31 }
 0x82f   : > { %6045 = vmatprep.subr.bf16.mxu0 %v11391_v22  ;;  %6088 = vmatprep.subr.bf16.mxu1 %v11393_v17  ;;  %v5541_v22 = vrot.slane %v15065_v14, %v15062_v9 }
 0x830   : > { %6063 = vmatprep.mubr.bf16.mxu0 %v13393_v16  ;;  %6106 = vmatprep.mubr.bf16.mxu1 %v13393_v16 }
 0x832   : > { %6046 = vmatpush1.bf16.msra.mxu0 %v11390_v36  ;;  %6089 = vmatpush1.bf16.msra.mxu1 %v11392_v58 }
 0x833   : > { %11936 = vmatprep.subr.bf16.mxu0 %v12885_v30  ;;  %11958 = vmatprep.subr.bf16.mxu1 %v12886_v2  ;;  %v15076_v2 = vsub.s32 5, %v15849_v52 }
 0x835   : > { %11416 = vmatmul.mubr.msk.bf16.vlgmr.msra.gmra.mxu0 %vm1079_vm1, %v14972_v20  ;;  %11417 = vmatmul.mubr.msk.bf16.vlgmr.msra.gmra.mxu1 %vm1079_vm1, %v14972_v20  ;;  %v12897_v20 = vld [vmem:[%s13445_s8 + $0x60] sm:$0xff]  }
 0x836   : > { %11937 = vmatpush3.bf16.msra.mxu0 %v12887_v57  ;;  %11959 = vmatpush3.bf16.msra.mxu1 %v12888_v41  ;;  %v15079_v57 = vsub.s32 7, %v15849_v52 }
 0x837   : > { %11938 = vmatprep.subr.bf16.mxu0 %v12889_v51  ;;  %11960 = vmatprep.subr.bf16.mxu1 %v12890_v0 }
 0x83a   : > { %11939 = vmatpush3.bf16.msra.mxu0 %v12891_v59  ;;  %11961 = vmatpush3.bf16.msra.mxu1 %v12892_v7 }
 0x83b   : > { %11940 = vmatprep.subr.bf16.mxu0 %v12893_v63  ;;  %11962 = vmatprep.subr.bf16.mxu1 %v12894_v55 }
 0x83e   : > { %11941 = vmatpush3.bf16.msra.mxu0 %v12895_v13  ;;  %11963 = vmatpush3.bf16.msra.mxu1 %v12896_v3 }
 0x83f   : > { %11942 = vmatprep.subr.bf16.mxu0 %v12897_v20  ;;  %11964 = vmatprep.subr.bf16.mxu1 %v12898_v61 }
 0x842   : > { %11943 = vmatpush3.bf16.msra.mxu0 %v12899_v29  ;;  %11965 = vmatpush3.bf16.msra.mxu1 %v12900_v47 }
 0x843   : > { %11944 = vmatprep.subr.bf16.mxu0 %v12901_v11  ;;  %11966 = vmatprep.subr.bf16.mxu1 %v12902_v44  ;;  %v5553_v44 = vrot.slane %v15065_v14, %v15076_v2 }
 0x846   : > { %11945 = vmatpush3.bf16.msra.mxu0 %v12903_v48  ;;  %11967 = vmatpush3.bf16.msra.mxu1 %v12904_v6  ;;  %v5561_v48 = vrot.slane %v15065_v14, %v15079_v57 }
 0x847   : > { %11946 = vmatprep.subr.bf16.mxu0 %v12905_v35  ;;  %11968 = vmatprep.subr.bf16.mxu1 %v12906_v15 }
 0x84a   : > { %11947 = vmatpush3.bf16.msra.mxu0 %v12907_v12  ;;  %11969 = vmatpush3.bf16.msra.mxu1 %v12908_v21 }
 0x84b   : > { %11948 = vmatprep.subr.bf16.mxu0 %v12909_v8  ;;  %11970 = vmatprep.subr.bf16.mxu1 %v12910_v5 }
 0x84e   : > { %11949 = vmatpush3.bf16.msra.mxu0 %v12911_v54  ;;  %11971 = vmatpush3.bf16.msra.mxu1 %v12912_v1 }
 0x84f   : > { %11950 = vmatprep.subr.bf16.mxu0 %v12913_v38  ;;  %11972 = vmatprep.subr.bf16.mxu1 %v12914_v60  ;;  %v12919_v60 = vld [vmem:[%s13445_s8 + $0x138] sm:$0xff]  }
 0x852   : > { %11951 = vmatpush3.bf16.msra.mxu0 %v12915_v23  ;;  %11973 = vmatpush3.bf16.msra.mxu1 %v12916_v24  ;;  %v12920_v23 = vld [vmem:[%s13445_s8 + $0x1b8] sm:$0xff]  }
 0x853   : > { %11980 = vmatprep.subr.bf16.mxu0 %v12917_v45  ;;  %12002 = vmatprep.subr.bf16.mxu1 %v12918_v18 }
 0x8dd   : > { %v5807_v46 = vpop.f32.mrf.mxu0  ;;  %v5850_v56 = vpop.f32.mrf.mxu1 }
 0x8de   : > { %v5808_v7 = vadd.f32 %v5807_v46, %v5533_v42  ;;  %v5851_v63 = vadd.f32 %v5850_v56, %v5541_v22  ;;  %v12921_v56 = vld [vmem:[%s13445_s8 + $0x170] sm:$0xff]  }
 0x8df   : > { %v5809_v17 = vpop.f32.mrf.mxu0  ;;  %v5852_v36 = vpop.f32.mrf.mxu1 }
 0x8e0   : > { %v5810_v41 = vadd.f32 %v5809_v17, %v5537_v27  ;;  %v5853_v51 = vadd.f32 %v5852_v36, %v5545_v62  ;;  %v6117_v21 = vmax.f32 %v5808_v7, 0.0  ;;  %v6119_v8 = vmax.f32 %v5851_v63, 0.0 }
 0x8e1   : > { %v5811_v58 = vpop.f32.mrf.mxu0  ;;  %v5854_v30 = vpop.f32.mrf.mxu1 }
 0x8e2   : > { %v5812_v0 = vadd.f32 %v5811_v58, %v5533_v42  ;;  %v5855_v59 = vadd.f32 %v5854_v30, %v5541_v22  ;;  %v6118_v6 = vmax.f32 %v5810_v41, 0.0  ;;  %v6120_v35 = vmax.f32 %v5853_v51, 0.0  ;;  %v12923_v30 = vld [vmem:[%s13445_s8 + $0x130] sm:$0xff]   ;;  %v12925_v51 = vld [vmem:[%s13445_s8 + $0x168] sm:$0xff]  }
 0x8e3   : > { %v5813_v55 = vpop.f32.mrf.mxu0  ;;  %v5856_v13 = vpop.f32.mrf.mxu1  ;;  %v12924_v41 = vld [vmem:[%s13445_s8 + $0x1b0] sm:$0xff]  }
 0x8e4   : > { %v5814_v3 = vadd.f32 %v5813_v55, %v5537_v27  ;;  %v5857_v20 = vadd.f32 %v5856_v13, %v5545_v62  ;;  %v6133_v61 = vmax.f32 %v5812_v0, 0.0  ;;  %v6135_v29 = vmax.f32 %v5855_v59, 0.0  ;;  %v12922_v27 = vld [vmem:[%s13445_s8 + $0x1f0] sm:$0xff]   ;;  %v12926_v55 = vld [vmem:[%s13445_s8 + $0x1e8] sm:$0xff]  }
 0x8e5   : > { %v15081_v47 = vpop.f32.mrf.mxu0  ;;  %v15083_v11 = vpop.f32.mrf.mxu1 }
 0x8e6   : > { %v6134_v15 = vmax.f32 %v5814_v3, 0.0  ;;  %v6136_v12 = vmax.f32 %v5857_v20, 0.0  ;;  %v6406_v24 = vpack.c.bf16 %v6133_v61, %v6117_v21  ;;  %v6408_v45 = vpack.c.bf16 %v6135_v29, %v6119_v8  ;;  %v12927_v20 = vld [vmem:[%s13445_s8 + $0x128] sm:$0xff]   ;;  %v12929_v29 = vld [vmem:[%s13445_s8 + $0x160] sm:$0xff]   ;;  %v12934_v21 = vld [vmem:[%s13445_s8 + $0x1d8] sm:$0xff]  }
 0x8e7   : > { %v5895_v5 = vpop.f32.mrf.mxu0  ;;  %v5938_v54 = vpop.f32.mrf.mxu1  ;;  %v12928_v61 = vld [vmem:[%s13445_s8 + $0x1a8] sm:$0xff]  }
 0x8e8   : > { %v6407_v1 = vpack.c.bf16 %v6134_v15, %v6118_v6  ;;  %v6409_v38 = vpack.c.bf16 %v6136_v12, %v6120_v35  ;;  %v5896_v62 = vadd.f32 %v5895_v5, %v5553_v44  ;;  %v5939_v42 = vadd.f32 %v5938_v54, %v5561_v48  ;;  %v12931_v6 = vld [vmem:[%s13445_s8 + $0x120] sm:$0xff]   ;;  %v12933_v12 = vld [vmem:[%s13445_s8 + $0x158] sm:$0xff]  }
 0x8e9   : > { %v15091_v18 = vpop.f32.mrf.mxu0  ;;  %v15093_v46 = vpop.f32.mrf.mxu1  ;;  %v12932_v15 = vld [vmem:[%s13445_s8 + $0x1a0] sm:$0xff]   ;;  %v12935_v5 = vld [vmem:[%s13445_s8 + $0x118] sm:$0xff]  }
 0x8ea   : > { %7228 = vmatprep.mubr.bf16.mxu0 %v6407_v1  ;;  %7269 = vmatprep.mubr.bf16.mxu1 %v6409_v38  ;;  %v6122_v0 = vmax.f32 %v5896_v62, 0.0  ;;  %v6124_v59 = vmax.f32 %v5939_v42, 0.0  ;;  %v12936_v1 = vld [vmem:[%s13445_s8 + $0x198] sm:$0xff]   ;;  %v12937_v38 = vld [vmem:[%s13445_s8 + $0x150] sm:$0xff]   ;;  %v12941_v42 = vld [vmem:[%s13445_s8 + $0x148] sm:$0xff]  }
 0x8eb   : > { %v5899_v22 = vpop.f32.mrf.mxu0  ;;  %v5942_v17 = vpop.f32.mrf.mxu1  ;;  %7229 = vmatmul.mubr.bf16.vlgmr.msra.gmra.mxu0 %v6406_v24  ;;  %7270 = vmatmul.mubr.bf16.vlgmr.msra.gmra.mxu1 %v6408_v45  ;;  %v15121_v24 = vsub.s32 6, %v15849_v52  ;;  %v12940_v62 = vld [vmem:[%s13445_s8 + $0x190] sm:$0xff]  }
 0x8ec   : > { %v5900_v36 = vadd.f32 %v5899_v22, %v5553_v44  ;;  %v5943_v58 = vadd.f32 %v5942_v17, %v5561_v48  ;;  %11981 = vmatpush3.bf16.msra.mxu0 %v12919_v60  ;;  %12003 = vmatpush3.bf16.msra.mxu1 %v12920_v23  ;;  %v12930_v44 = vld [vmem:[%s13445_s8 + $0x1e0] sm:$0xff]   ;;  %v12938_v60 = vld [vmem:[%s13445_s8 + $0x1d0] sm:$0xff]   ;;  %v15118_v23 = vsub.s32 4, %v15849_v52  ;;  %v12942_v22 = vld [vmem:[%s13445_s8 + $0x1c8] sm:$0xff]  }
 0x8ed   : > { %11982 = vmatprep.subr.bf16.mxu0 %v12921_v56  ;;  %12004 = vmatprep.subr.bf16.mxu1 %v12922_v27  ;;  %v15105_v48 = vpop.f32.mrf.mxu0  ;;  %v15108_v35 = vpop.f32.mrf.mxu1  ;;  %v12939_v56 = vld [vmem:[%s13445_s8 + $0x110] sm:$0xff]   ;;  %v5557_v52 = vrot.slane %v15065_v14, %v15121_v24 }
 0x8ee   : > { %v6138_v7 = vmax.f32 %v5900_v36, 0.0  ;;  %v6140_v63 = vmax.f32 %v5943_v58, 0.0  ;;  %v5549_v17 = vrot.slane %v15065_v14, %v15118_v23  ;;  %v15136_v36 = vld [vmem:[%s13440_s3 + $0x8] sm:$0xff] }
 0x8ef   : > { %v5981_v8 = vpop.f32.mrf.mxu0  ;;  %v6024_v54 = vpop.f32.mrf.mxu1  ;;  %v5941_v14 = vadd.f32 %v15093_v46, %v5557_v52  ;;  %v12948_v46 = vld [vmem:[%s13445_s8 + $0x180] sm:$0xff]  }
 0x8f0   : > { %v6411_v13 = vpack.c.bf16 %v6138_v7, %v6122_v0  ;;  %v6413_v3 = vpack.c.bf16 %v6140_v63, %v6124_v59  ;;  %11983 = vmatpush3.bf16.msra.mxu0 %v12923_v30  ;;  %12005 = vmatpush3.bf16.msra.mxu1 %v12924_v41  ;;  %v12943_v30 = vld [vmem:[%s13445_s8 + $0x108] sm:$0xff]   ;;  %v5898_v41 = vadd.f32 %v15091_v18, %v5549_v17  ;;  %v12945_v7 = vld [vmem:[%s13445_s8 + $0x140] sm:$0xff]  }
 0x8f1   : > { %11984 = vmatprep.subr.bf16.mxu0 %v12925_v51  ;;  %12006 = vmatprep.subr.bf16.mxu1 %v12926_v55  ;;  %v15123_v45 = vpop.f32.mrf.mxu0  ;;  %v15126_v27 = vpop.f32.mrf.mxu1  ;;  %v5569_v51 = vrot.slane %v15136_v36, %v15053_v25  ;;  %v12944_v59 = vld [vmem:[%s13445_s8 + $0x188] sm:$0xff]   ;;  %v5577_v63 = vrot.slane %v15136_v36, %v15056_v34  ;;  %v12946_v55 = vld [vmem:[%s13445_s8 + $0x1c0] sm:$0xff]   ;;  %v5894_v18 = vadd.f32 %v15081_v47, %v5549_v17  ;;  %v12954_v17 = vld [vmem:[%s13445_s8 + $0x2f0] sm:$0xff]  }
 0x8f2   : > { %7310 = vmatprep.mubr.bf16.mxu0 %v6411_v13  ;;  %7351 = vmatprep.mubr.bf16.mxu1 %v6413_v3  ;;  %v5937_v3 = vadd.f32 %v15083_v11, %v5557_v52 }
 0x8f3   : > { %v5985_v58 = vpop.f32.mrf.mxu0  ;;  %v6028_v0 = vpop.f32.mrf.mxu1  ;;  %v6121_v47 = vmax.f32 %v5894_v18, 0.0 }
 0x8f4   : > { %11985 = vmatpush3.bf16.msra.mxu0 %v12927_v20  ;;  %12007 = vmatpush3.bf16.msra.mxu1 %v12928_v61  ;;  %v5986_v13 = vadd.f32 %v5985_v58, %v5569_v51  ;;  %v6029_v20 = vadd.f32 %v6028_v0, %v5577_v63  ;;  %v12947_v61 = vld [vmem:[%s13445_s8 + $0x100] sm:$0xff]   ;;  %v6123_v11 = vmax.f32 %v5937_v3, 0.0  ;;  %v12955_v58 = vld [vmem:[%s13445_s8 + $0x230] sm:$0xff]   ;;  %v12959_v0 = vld [vmem:[%s13445_s8 + $0x228] sm:$0xff]  }
 0x8f5   : > { %11986 = vmatprep.subr.bf16.mxu0 %v12929_v29  ;;  %12008 = vmatprep.subr.bf16.mxu1 %v12930_v44  ;;  %v6137_v29 = vmax.f32 %v5898_v41, 0.0  ;;  %v5982_v44 = vadd.f32 %v5981_v8, %v5569_v51  ;;  %v12957_v41 = vld [vmem:[%s13445_s8 + $0x268] sm:$0xff]   ;;  %v15169_v18 = vpop.f32.mrf.mxu1  ;;  %v12965_v3 = vld [vmem:[%s13445_s8 + $0x258] sm:$0xff]  }
 0x8f6   : > { %v12958_v51 = vld [vmem:[%s13445_s8 + $0x2e8] sm:$0xff]  }
 0x8f7   : > { %v6126_v8 = vmax.f32 %v5982_v44, 0.0  ;;  %v6110_v44 = vpop.f32.mrf.mxu1 }
 0x8f8   : > { %11987 = vmatpush3.bf16.msra.mxu0 %v12931_v6  ;;  %12009 = vmatpush3.bf16.msra.mxu1 %v12932_v15  ;;  %v12949_v6 = vld [vmem:[%s13445_s8 + $0x278] sm:$0xff]   ;;  %v6139_v15 = vmax.f32 %v5941_v14, 0.0  ;;  %v12962_v14 = vld [vmem:[%s13445_s8 + $0x2e0] sm:$0xff]  }
 0x8f9   : > { %11988 = vmatprep.subr.bf16.mxu0 %v12933_v12  ;;  %12010 = vmatprep.subr.bf16.mxu1 %v12934_v21  ;;  %v6025_v12 = vadd.f32 %v6024_v54, %v5577_v63  ;;  %v12950_v21 = vld [vmem:[%s13445_s8 + $0x2f8] sm:$0xff]   ;;  %v15166_v63 = vpop.f32.mrf.mxu0 }
 0x8fb   : > { %v6128_v54 = vmax.f32 %v6025_v12, 0.0 }
 0x8fc   : > { %11989 = vmatpush3.bf16.msra.mxu0 %v12935_v5  ;;  %12011 = vmatpush3.bf16.msra.mxu1 %v12936_v1  ;;  %v6142_v5 = vmax.f32 %v5986_v13, 0.0  ;;  %v6144_v1 = vmax.f32 %v6029_v20, 0.0  ;;  %v12964_v13 = vld [vmem:[%s13445_s8 + $0x2a0] sm:$0xff]   ;;  %v12966_v20 = vld [vmem:[%s13445_s8 + $0x2d8] sm:$0xff]  }
 0x8fd   : > { %11990 = vmatprep.subr.bf16.mxu0 %v12937_v38  ;;  %12012 = vmatprep.subr.bf16.mxu1 %v12938_v60  ;;  %v12951_v38 = vld [vmem:[%s13445_s8 + $0x238] sm:$0xff]   ;;  %v6410_v60 = vpack.c.bf16 %v6137_v29, %v6121_v47  ;;  %v15181_v47 = vpop.f32.mrf.mxu1 }
 0x8fe   : > { %v6417_v52 = vpack.c.bf16 %v6144_v1, %v6128_v54  ;;  %v12967_v29 = vld [vmem:[%s13445_s8 + $0x218] sm:$0xff]   ;;  %v12974_v1 = vld [vmem:[%s13445_s8 + $0x2c8] sm:$0xff]   ;;  %v5585_v54 = vrot.slane %v15136_v36, %v15076_v2 }
 0x900   : > { %11991 = vmatpush3.bf16.msra.mxu0 %v12939_v56  ;;  %12013 = vmatpush3.bf16.msra.mxu1 %v12940_v62  ;;  %v12952_v56 = vld [vmem:[%s13445_s8 + $0x2b8] sm:$0xff]   ;;  %v6412_v62 = vpack.c.bf16 %v6139_v15, %v6123_v11  ;;  %v12970_v15 = vld [vmem:[%s13445_s8 + $0x2d0] sm:$0xff]   ;;  %v12973_v11 = vld [vmem:[%s13445_s8 + $0x248] sm:$0xff]  }
 0x901   : > { %11992 = vmatprep.subr.bf16.mxu0 %v12941_v42  ;;  %12014 = vmatprep.subr.bf16.mxu1 %v12942_v22  ;;  %v12953_v42 = vld [vmem:[%s13445_s8 + $0x270] sm:$0xff]   ;;  %v6415_v22 = vpack.c.bf16 %v6142_v5, %v6126_v8 }
 0x902   : > { %v12972_v5 = vld [vmem:[%s13445_s8 + $0x290] sm:$0xff]  }
 0x904   : > { %11993 = vmatpush3.bf16.msra.mxu0 %v12943_v30  ;;  %12015 = vmatpush3.bf16.msra.mxu1 %v12944_v59  ;;  %v12956_v30 = vld [vmem:[%s13445_s8 + $0x2b0] sm:$0xff]   ;;  %v12960_v59 = vld [vmem:[%s13445_s8 + $0x2a8] sm:$0xff]  }
 0x905   : > { %11994 = vmatprep.subr.bf16.mxu0 %v12945_v7  ;;  %12016 = vmatprep.subr.bf16.mxu1 %v12946_v55  ;;  %v12961_v7 = vld [vmem:[%s13445_s8 + $0x260] sm:$0xff]  }
 0x906   : > { %v12963_v55 = vld [vmem:[%s13445_s8 + $0x220] sm:$0xff]  }
 0x908   : > { %11995 = vmatpush3.bf16.msra.mxu0 %v12947_v61  ;;  %12017 = vmatpush3.bf16.msra.mxu1 %v12948_v46  ;;  %v6067_v61 = vpop.f32.mrf.mxu0  ;;  %v12968_v46 = vld [vmem:[%s13445_s8 + $0x298] sm:$0xff]  }
 0x909   : > { %12024 = vmatprep.subr.bf16.mxu0 %v12949_v6  ;;  %12046 = vmatprep.subr.bf16.mxu1 %v12950_v21  ;;  %v12969_v6 = vld [vmem:[%s13445_s8 + $0x250] sm:$0xff]  }
 0x90a   : > { %v15178_v12 = vpop.f32.mrf.mxu0  ;;  %v12971_v21 = vld [vmem:[%s13445_s8 + $0x210] sm:$0xff]  }
 0x90b   : > { %7311 = vmatmul.mubr.bf16.vlgmr.msra.gmra.mxu0 %v6410_v60  ;;  %7352 = vmatmul.mubr.bf16.vlgmr.msra.gmra.mxu1 %v6412_v62  ;;  %v5573_v60 = vrot.slane %v15136_v36, %v15062_v9 }
 0x90c   : > { %12025 = vmatpush3.bf16.msra.mxu0 %v12951_v38  ;;  %7392 = vmatprep.mubr.bf16.mxu0 %v6415_v22  ;;  %v5565_v38 = vrot.slane %v15136_v36, %v15059_v31  ;;  %v6071_v8 = vpop.f32.mrf.mxu0  ;;  %v12976_v22 = vld [vmem:[%s13445_s8 + $0x288] sm:$0xff]  }
 0x90d   : > { %12047 = vmatpush3.bf16.msra.mxu1 %v12952_v56  ;;  %7433 = vmatprep.mubr.bf16.mxu1 %v6417_v52  ;;  %v12975_v56 = vld [vmem:[%s13445_s8 + $0x208] sm:$0xff]   ;;  %v6027_v52 = vadd.f32 %v15126_v27, %v5573_v60  ;;  %v12980_v27 = vld [vmem:[%s13445_s8 + $0x280] sm:$0xff]  }
 0x90e   : > { %12026 = vmatprep.subr.bf16.mxu0 %v12953_v42  ;;  %12048 = vmatprep.subr.bf16.mxu1 %v12954_v17  ;;  %v5984_v62 = vadd.f32 %v15123_v45, %v5565_v38  ;;  %v6114_v42 = vpop.f32.mrf.mxu1  ;;  %v12977_v17 = vld [vmem:[%s13445_s8 + $0x240] sm:$0xff]   ;;  %v5980_v45 = vadd.f32 %v15105_v48, %v5565_v38  ;;  %v12986_v38 = vld [vmem:[%s13445_s8 + $0x3f0] sm:$0xff]  }
 0x910   : > { %12027 = vmatpush3.bf16.msra.mxu0 %v12955_v58  ;;  %v5593_v58 = vrot.slane %v15136_v36, %v15079_v57  ;;  %v6125_v48 = vmax.f32 %v5980_v45, 0.0  ;;  %v12997_v45 = vld [vmem:[%s13445_s8 + $0x358] sm:$0xff]  }
 0x911   : > { %12049 = vmatpush3.bf16.msra.mxu1 %v12956_v30  ;;  %12028 = vmatprep.subr.bf16.mxu0 %v12957_v41  ;;  %v12978_v30 = vld [vmem:[%s13445_s8 + $0x2c0] sm:$0xff]   ;;  %v6072_v41 = vadd.f32 %v6071_v8, %v5585_v54  ;;  %v12987_v8 = vld [vmem:[%s13445_s8 + $0x330] sm:$0xff]  }
 0x912   : > { %12050 = vmatprep.subr.bf16.mxu1 %v12958_v51  ;;  %v6023_v51 = vadd.f32 %v15108_v35, %v5573_v60 }
 0x914   : > { %12029 = vmatpush3.bf16.msra.mxu0 %v12959_v0  ;;  %v6115_v0 = vadd.f32 %v6114_v42, %v5593_v58  ;;  %v6127_v35 = vmax.f32 %v6023_v51, 0.0  ;;  %v12991_v42 = vld [vmem:[%s13445_s8 + $0x328] sm:$0xff]   ;;  %v12999_v51 = vld [vmem:[%s13445_s8 + $0x318] sm:$0xff]  }
 0x915   : > { %12051 = vmatpush3.bf16.msra.mxu1 %v12960_v59  ;;  %12030 = vmatprep.subr.bf16.mxu0 %v12961_v7  ;;  %v12979_v59 = vld [vmem:[%s13445_s8 + $0x200] sm:$0xff]   ;;  %v6141_v7 = vmax.f32 %v5984_v62, 0.0  ;;  %v12989_v62 = vld [vmem:[%s13445_s8 + $0x368] sm:$0xff]  }
 0x916   : > { %12052 = vmatprep.subr.bf16.mxu1 %v12962_v14  ;;  %v6068_v14 = vadd.f32 %v6067_v61, %v5585_v54  ;;  %v12990_v54 = vld [vmem:[%s13445_s8 + $0x3e8] sm:$0xff]  }
 0x918   : > { %12031 = vmatpush3.bf16.msra.mxu0 %v12963_v55  ;;  %v12981_v55 = vld [vmem:[%s13445_s8 + $0x378] sm:$0xff]   ;;  %v6130_v61 = vmax.f32 %v6068_v14, 0.0  ;;  %v13003_v14 = vld [vmem:[%s13445_s8 + $0x310] sm:$0xff]  }
 0x919   : > { %12053 = vmatpush3.bf16.msra.mxu1 %v12964_v13  ;;  %12032 = vmatprep.subr.bf16.mxu0 %v12965_v3  ;;  %v6143_v13 = vmax.f32 %v6027_v52, 0.0  ;;  %v6111_v3 = vadd.f32 %v6110_v44, %v5593_v58  ;;  %v12994_v52 = vld [vmem:[%s13445_s8 + $0x3e0] sm:$0xff]  }
 0x91a   : > { %12054 = vmatprep.subr.bf16.mxu1 %v12966_v20  ;;  %v12982_v20 = vld [vmem:[%s13445_s8 + $0x3f8] sm:$0xff]   ;;  %v12995_v58 = vld [vmem:[%s13445_s8 + $0x320] sm:$0xff]  }
 0x91b   : > { %v6132_v44 = vmax.f32 %v6111_v3, 0.0  ;;  %v5581_v3 = vrot.slane %v15136_v36, %v15118_v23 }
 0x91c   : > { %12033 = vmatpush3.bf16.msra.mxu0 %v12967_v29  ;;  %v6146_v29 = vmax.f32 %v6072_v41, 0.0  ;;  %v12998_v41 = vld [vmem:[%s13445_s8 + $0x3d8] sm:$0xff]  }
 0x91d   : > { %12055 = vmatpush3.bf16.msra.mxu1 %v12968_v46  ;;  %12034 = vmatprep.subr.bf16.mxu0 %v12969_v6  ;;  %v6148_v46 = vmax.f32 %v6115_v0, 0.0  ;;  %v12983_v6 = vld [vmem:[%s13445_s8 + $0x338] sm:$0xff]  }
 0x91e   : > { %12056 = vmatprep.subr.bf16.mxu1 %v12970_v15  ;;  %v6414_v15 = vpack.c.bf16 %v6141_v7, %v6125_v48  ;;  %v13000_v0 = vld [vmem:[%s13445_s8 + $0x398] sm:$0xff]   ;;  %v13002_v7 = vld [vmem:[%s13445_s8 + $0x3d0] sm:$0xff]   ;;  %v13007_v48 = vld [vmem:[%s13445_s8 + $0x308] sm:$0xff]  }
 0x91f   : > { %v6421_v60 = vpack.c.bf16 %v6148_v46, %v6132_v44  ;;  %v13009_v46 = vld [vmem:[%s13445_s8 + $0x340] sm:$0xff]  }
 0x920   : > { %12035 = vmatpush3.bf16.msra.mxu0 %v12971_v21  ;;  %v12984_v21 = vld [vmem:[%s13445_s8 + $0x3b8] sm:$0xff]  }
 0x921   : > { %12057 = vmatpush3.bf16.msra.mxu1 %v12972_v5  ;;  %12036 = vmatprep.subr.bf16.mxu0 %v12973_v11  ;;  %v6416_v5 = vpack.c.bf16 %v6143_v13, %v6127_v35  ;;  %v12985_v11 = vld [vmem:[%s13445_s8 + $0x370] sm:$0xff]   ;;  %v13006_v13 = vld [vmem:[%s13445_s8 + $0x3c8] sm:$0xff]  }
 0x922   : > { %12058 = vmatprep.subr.bf16.mxu1 %v12974_v1  ;;  %v6419_v1 = vpack.c.bf16 %v6146_v29, %v6130_v61  ;;  %v6070_v29 = vadd.f32 %v15178_v12, %v5581_v3  ;;  %v13008_v35 = vld [vmem:[%s13445_s8 + $0x388] sm:$0xff]   ;;  %v6066_v61 = vadd.f32 %v15166_v63, %v5581_v3  ;;  %v13012_v12 = vld [vmem:[%s13445_s8 + $0x380] sm:$0xff]  }
 0x924   : > { %12037 = vmatpush3.bf16.msra.mxu0 %v12975_v56  ;;  %v12988_v56 = vld [vmem:[%s13445_s8 + $0x3b0] sm:$0xff]  }
 0x925   : > { %12059 = vmatpush3.bf16.msra.mxu1 %v12976_v22  ;;  %12038 = vmatprep.subr.bf16.mxu0 %v12977_v17  ;;  %v12992_v22 = vld [vmem:[%s13445_s8 + $0x3a8] sm:$0xff]   ;;  %v12993_v17 = vld [vmem:[%s13445_s8 + $0x360] sm:$0xff]  }
 0x926   : > { %12060 = vmatprep.subr.bf16.mxu1 %v12978_v30  ;;  %v12996_v30 = vld [vmem:[%s13445_s8 + $0x3a0] sm:$0xff]  }
 0x928   : > { %12039 = vmatpush3.bf16.msra.mxu0 %v12979_v59  ;;  %v13001_v59 = vld [vmem:[%s13445_s8 + $0x350] sm:$0xff]  }
 0x929   : > { %12061 = vmatpush3.bf16.msra.mxu1 %v12980_v27  ;;  %12068 = vmatprep.subr.bf16.mxu0 %v12981_v55  ;;  %v13004_v27 = vld [vmem:[%s13445_s8 + $0x390] sm:$0xff]   ;;  %v13005_v55 = vld [vmem:[%s13445_s8 + $0x348] sm:$0xff]  }
 0x92a   : > { %12090 = vmatprep.subr.bf16.mxu1 %v12982_v20  ;;  %v5589_v20 = vrot.slane %v15136_v36, %v15121_v24  ;;  %v6145_v36 = vmax.f32 %v6070_v29, 0.0 }
 0x92b   : > { %7393 = vmatmul.mubr.bf16.vlgmr.msra.gmra.mxu0 %v6414_v15  ;;  %v13010_v15 = vld [vmem:[%s13445_s8 + $0x3c0] sm:$0xff]  }
 0x92c   : > { %7434 = vmatmul.mubr.bf16.vlgmr.msra.gmra.mxu1 %v6416_v5  ;;  %12069 = vmatpush3.bf16.msra.mxu0 %v12983_v6  ;;  %v6113_v6 = vadd.f32 %v15181_v47, %v5589_v20  ;;  %v13011_v5 = vld [vmem:[%s13445_s8 + $0x300] sm:$0xff]  }
 0x92d   : > { %7474 = vmatprep.mubr.bf16.mxu0 %v6419_v1  ;;  %12091 = vmatpush3.bf16.msra.mxu1 %v12984_v21  ;;  %v6109_v21 = vadd.f32 %v15169_v18, %v5589_v20  ;;  %v8163_v18 = vld [vmem:[%s13485_s27] sm:$0x1] }
 0x92e   : > { %7515 = vmatprep.mubr.bf16.mxu1 %v6421_v60  ;;  %12070 = vmatprep.subr.bf16.mxu0 %v12985_v11  ;;  %v6147_v44 = vmax.f32 %v6113_v6, 0.0  ;;  %v6129_v11 = vmax.f32 %v6066_v61, 0.0  ;;  %v8162_v60 = vld [vmem:[%s997_s0] sm:$0x3]  ;;  %s15855_s0 = sld [smem:[#allocation7_spill]] }
 0x92f   : > { %12092 = vmatprep.subr.bf16.mxu1 %v12986_v38  ;;  %v6131_v47 = vmax.f32 %v6109_v21, 0.0  ;;  %v8176_v38 = vsel %vm3296_vm4, %v8163_v18, 0 }
 0x930   : > { %12071 = vmatpush3.bf16.msra.mxu0 %v12987_v8  ;;  %v6418_v1 = vpack.c.bf16 %v6145_v36, %v6129_v11  ;;  %v8165_v8 = vpack.c.bf16 %v8162_v60, %v8162_v60 }
 0x931   : > { %12093 = vmatpush3.bf16.msra.mxu1 %v12988_v56  ;;  %12072 = vmatprep.subr.bf16.mxu0 %v12989_v62  ;;  %v6420_v63 = vpack.c.bf16 %v6147_v44, %v6131_v47 }
 0x932   : > { %12094 = vmatprep.subr.bf16.mxu1 %v12990_v54 }
 0x934   : > { %12073 = vmatpush3.bf16.msra.mxu0 %v12991_v42 }
 0x935   : > { %12095 = vmatpush3.bf16.msra.mxu1 %v12992_v22  ;;  %12074 = vmatprep.subr.bf16.mxu0 %v12993_v17 }
 0x936   : > { %12096 = vmatprep.subr.bf16.mxu1 %v12994_v52 }
 0x938   : > { %12075 = vmatpush3.bf16.msra.mxu0 %v12995_v58 }
 0x939   : > { %12097 = vmatpush3.bf16.msra.mxu1 %v12996_v30  ;;  %12076 = vmatprep.subr.bf16.mxu0 %v12997_v45 }
 0x93a   : > { %12098 = vmatprep.subr.bf16.mxu1 %v12998_v41 }
 0x93c   : > { %12077 = vmatpush3.bf16.msra.mxu0 %v12999_v51 }
 0x93d   : > { %12099 = vmatpush3.bf16.msra.mxu1 %v13000_v0  ;;  %12078 = vmatprep.subr.bf16.mxu0 %v13001_v59 }
 0x93e   : > { %12100 = vmatprep.subr.bf16.mxu1 %v13002_v7 }
 0x940   : > { %12079 = vmatpush3.bf16.msra.mxu0 %v13003_v14 }
 0x941   : > { %12101 = vmatpush3.bf16.msra.mxu1 %v13004_v27  ;;  %12080 = vmatprep.subr.bf16.mxu0 %v13005_v55  ;;  %v11418_v27 = vld [vmem:[%s13450_s14] ss:$0 sm:$0xff] }
 0x942   : > { %12102 = vmatprep.subr.bf16.mxu1 %v13006_v13 }
 0x944   : > { %12081 = vmatpush3.bf16.msra.mxu0 %v13007_v48 }
 0x945   : > { %12103 = vmatpush3.bf16.msra.mxu1 %v13008_v35  ;;  %12082 = vmatprep.subr.bf16.mxu0 %v13009_v46 }
 0x946   : > { %12104 = vmatprep.subr.bf16.mxu1 %v13010_v15 }
 0x948   : > { %12083 = vmatpush3.bf16.msra.mxu0 %v13011_v5 }
 0x949   : > { %12105 = vmatpush3.bf16.msra.mxu1 %v13012_v12 }
 0x94a   : > { %12735 = vmatprep.subr.bf16.mxu1 %v15835_v4 }
 0x94b   : > { %7475 = vmatmul.mubr.bf16.vlgmr.msra.gmra.mxu0 %v6418_v1 }
 0x94c   : > { %7516 = vmatmul.mubr.bf16.vlgmr.msra.gmra.mxu1 %v6420_v63 }
 0x94d   : > { %12737 = vmatprep.mubr.msk.bf16.mxu1 %vm13379_vm0, %v15835_v4  ;;  %12736 = vmatpush3.bf16.msra.mxu1 %v8176_v38 }
 0x94e   : > { %12741 = vmatprep.subr.bf16.mxu1 %v15835_v4 }
 0x954   : > { %12738 = vmatmul.mubr.msk.bf16.vlgmr.msra.gmra.mxu1 %vm3292_vm5, %v8165_v8 }
 0x955   : > { %12743 = vmatprep.mubr.msk.bf16.mxu1 %vm13379_vm0, %v15835_v4 }
 0x9ab   : > { %v11952_v56 = vpop.f32.mrf.mxu0  ;;  %v11974_v62 = vpop.f32.mrf.mxu1 }
 0x9ad   : > { %v11953_v54 = vpop.f32.mrf.mxu0  ;;  %v11975_v42 = vpop.f32.mrf.mxu1 }
 0x9ae   : > { %v11954_v14 = vadd.f32 %v11953_v54, %v11952_v56  ;;  %v11976_v35 = vadd.f32 %v11975_v42, %v11974_v62 }
 0x9af   : > { %v11955_v22 = vpop.f32.mrf.mxu0  ;;  %v11977_v17 = vpop.f32.mrf.mxu1 }
 0x9b0   : > { %v7231_v3 = vadd.f32 %v11954_v14, %v11418_v27 }
 0x9b1   : > { %v11956_v52 = vpop.f32.mrf.mxu0  ;;  %v11978_v30 = vpop.f32.mrf.mxu1 }
 0x9b2   : > { %v11957_v20 = vadd.f32 %v11956_v52, %v11955_v22  ;;  %v7272_v6 = vadd.f32 %v11976_v35, %v7231_v3  ;;  %v11979_v5 = vadd.f32 %v11978_v30, %v11977_v17 }
 0x9b4   : > { %v7234_v15 = vadd.f32 %v11957_v20, %v11418_v27 }
 0x9b6   : > { %v7275_v44 = vadd.f32 %v11979_v5, %v7234_v15 }
 0x9cb   : > { %v11996_v58 = vpop.f32.mrf.mxu0  ;;  %v12018_v45 = vpop.f32.mrf.mxu1 }
 0x9cd   : > { %v11997_v41 = vpop.f32.mrf.mxu0  ;;  %v12019_v51 = vpop.f32.mrf.mxu1 }
 0x9ce   : > { %v11998_v46 = vadd.f32 %v11997_v41, %v11996_v58  ;;  %v12020_v11 = vadd.f32 %v12019_v51, %v12018_v45 }
 0x9cf   : > { %v11999_v0 = vpop.f32.mrf.mxu0  ;;  %v12021_v59 = vpop.f32.mrf.mxu1 }
 0x9d0   : > { %v7313_v36 = vadd.f32 %v11998_v46, %v7272_v6 }
 0x9d1   : > { %v12000_v7 = vpop.f32.mrf.mxu0  ;;  %v12022_v13 = vpop.f32.mrf.mxu1 }
 0x9d2   : > { %v12001_v12 = vadd.f32 %v12000_v7, %v11999_v0  ;;  %v7354_v18 = vadd.f32 %v12020_v11, %v7313_v36  ;;  %v12023_v60 = vadd.f32 %v12022_v13, %v12021_v59 }
 0x9d4   : > { %v7316_v38 = vadd.f32 %v12001_v12, %v7275_v44 }
 0x9d6   : > { %v7357_v42 = vadd.f32 %v12023_v60, %v7316_v38 }
 0x9eb   : > { %v12040_v55 = vpop.f32.mrf.mxu0 }
 0x9ec   : > { %v12062_v48 = vpop.f32.mrf.mxu1 }
 0x9ed   : > { %v12041_v29 = vpop.f32.mrf.mxu0 }
 0x9ee   : > { %v12063_v61 = vpop.f32.mrf.mxu1  ;;  %v12042_v47 = vadd.f32 %v12041_v29, %v12040_v55 }
 0x9ef   : > { %v12043_v21 = vpop.f32.mrf.mxu0  ;;  %v12064_v22 = vadd.f32 %v12063_v61, %v12062_v48 }
 0x9f0   : > { %v12065_v1 = vpop.f32.mrf.mxu1  ;;  %v7395_v8 = vadd.f32 %v12042_v47, %v7354_v18 }
 0x9f1   : > { %v12044_v63 = vpop.f32.mrf.mxu0 }
 0x9f2   : > { %v12045_v56 = vadd.f32 %v12044_v63, %v12043_v21  ;;  %v12066_v54 = vpop.f32.mrf.mxu1  ;;  %v7436_v41 = vadd.f32 %v12064_v22, %v7395_v8 }
 0x9f3   : > { %v12067_v45 = vadd.f32 %v12066_v54, %v12065_v1 }
 0x9f4   : > { %v7398_v17 = vadd.f32 %v12045_v56, %v7357_v42 }
 0x9f6   : > { %v7439_v3 = vadd.f32 %v12067_v45, %v7398_v17 }
 0xa0b   : > { %v12084_v62 = vpop.f32.mrf.mxu0 }
 0xa0c   : > { %v12106_v52 = vpop.f32.mrf.mxu1 }
 0xa0d   : > { %v12085_v58 = vpop.f32.mrf.mxu0 }
 0xa0e   : > { %v12086_v30 = vadd.f32 %v12085_v58, %v12084_v62  ;;  %v12107_v0 = vpop.f32.mrf.mxu1 }
 0xa0f   : > { %v12087_v7 = vpop.f32.mrf.mxu0  ;;  %v12108_v14 = vadd.f32 %v12107_v0, %v12106_v52 }
 0xa10   : > { %v7477_v51 = vadd.f32 %v12086_v30, %v7436_v41  ;;  %v12109_v27 = vpop.f32.mrf.mxu1 }
 0xa11   : > { %v12088_v55 = vpop.f32.mrf.mxu0 }
 0xa12   : > { %v7518_v59 = vadd.f32 %v12108_v14, %v7477_v51  ;;  %v12089_v13 = vadd.f32 %v12088_v55, %v12087_v7  ;;  %v12110_v20 = vpop.f32.mrf.mxu1 }
 0xa13   : > { %v12111_v46 = vadd.f32 %v12110_v20, %v12109_v27 }
 0xa14   : > { %v7526_v29 = vcombine.high %v7518_v59, %v7518_v59  ;;  %v7533_v35 = vrot.slane %v7518_v59, %v15848_v50  ;;  %v7480_v48 = vadd.f32 %v12089_v13, %v7439_v3 }
 0xa16   : > { %v7540_v6 = vrot.slane %v7526_v29, %v15848_v50  ;;  %v7541_v15 = vcombine.high %v7533_v35, %v7533_v35  ;;  %v7521_v61 = vadd.f32 %v12111_v46, %v7480_v48  ;;  %v7568_v5 = vadd.f32 %v7533_v35, %v14936_v26 }
 0xa18   : > { %v7542_v21 = vcombine.high %v7540_v6, %v7540_v6  ;;  %v7569_v36 = vadd.f32 %v7541_v15, %v14938_v43  ;;  %v7543_v12 = vcombine.high %v7521_v61, %v7521_v61  ;;  %v7550_v44 = vrot.slane %v7521_v61, %v15848_v50 }
 0xa19   : > { %v7570_v11 = vadd.f32 %v7540_v6, %v14940_v32 }
 0xa1a   : > { %v7557_v47 = vrot.slane %v7543_v12, %v15848_v50  ;;  %v7571_v1 = vadd.f32 %v7542_v21, %v14942_v40  ;;  %v7586_v63 = vcombine.low %v7568_v5, %v7569_v36  ;;  %v7558_v18 = vcombine.high %v7550_v44, %v7550_v44 }
 0xa1b   : > { %v7572_v8 = vadd.f32 %v7550_v44, %v14952_v37 }
 0xa1c   : > { %v7559_v38 = vcombine.high %v7557_v47, %v7557_v47  ;;  %v7587_v60 = vcombine.low %v7570_v11, %v7571_v1  ;;  %v7573_v56 = vadd.f32 %v7558_v18, %v14954_v28  ;;  %v7574_v26 = vadd.f32 %v7557_v47, %v14956_v39 }
 0xa1d   : > { %v7594_v43 = vrot.slane %v7586_v63, %v15848_v50 }
 0xa1e   : > { %v7601_v54 = vrot.slane %v7587_v60, %v15848_v50  ;;  %v7575_v32 = vadd.f32 %v7559_v38, %v14958_v49  ;;  %v7603_v62 = vcombine.low %v7572_v8, %v7573_v56 }
 0xa20   : > { %v7602_v42 = vcombine.low %v7594_v43, %v7601_v54  ;;  %v7604_v22 = vcombine.low %v7574_v26, %v7575_v32  ;;  %v7611_v52 = vrot.slane %v7603_v62, %v15848_v50  ;;  %v8212_v62 = vpop.f32.mrf.mxu1 }
 0xa22   : > { %v7622_v40 = vsel %vm1079_vm1, %v7602_v42, 0.0  ;;  %v7618_v58 = vrot.slane %v7604_v22, %v15848_v50  ;;  %v12739_v22 = vpop.f32.mrf.mxu1 }
 0xa23   : > { %7623 = vadd.xlane.f32.xlu0 %v7622_v40 }
 0xa24   : > { %v7619_v37 = vcombine.low %v7611_v52, %v7618_v58  ;;  %v8215_v52 = vpop.f32.mrf.mxu1  ;;  %v13013_v58 = vld [vmem:[%s15850_s2] sm:$0xff]   ;;  %s13394_s2 = smov 32  }
 0xa25   : > { %12742 = vmatpush3.bf16.msra.mxu1 %v13013_v58 }
 0xa26   : > { %v7625_v28 = vsel %vm1079_vm1, %v7619_v37, 0.0  ;;  %v13014_v37 = vld [vmem:[%s15851_s7 + $0x78] sm:$0xff]  }
 0xa27   : > { %7626 = vadd.xlane.f32.xlu1 %v7625_v28  ;;  %v13015_v28 = vld [vmem:[%s15851_s7 + $0x38] sm:$0xff]   ;;  %12112 = vmatprep.subr.bf16.mxu0 %v13014_v37 }
 0xa28   : > { %12113 = vmatpush3.bf16.msra.mxu0 %v13015_v28 }
 0xaac   : > { %v7624_v39 = vpop.xlane.xlu0 %7623 }
 0xaad   : > { %v7628_v41 = vmul.f32 0.03125, %v7624_v39 }
 0xaaf   : > { %v7638_v17 = vrot.slane %v7628_v41, %v14831_v10  ;;  %v7645_v49 = vrot.slane %v7628_v41, %v14834_v19  ;;  %v7652_v30 = vrot.slane %v7628_v41, %v14837_v33  ;;  %v7659_v0 = vrot.slane %v7628_v41, %v14840_v53  ;;  %v13016_v41 = vld [vmem:[%s15851_s7 + $0x70] sm:$0xff]  }
 0xab0   : > { %v7627_v7 = vpop.xlane.xlu1 %7626  ;;  %12114 = vmatprep.subr.bf16.mxu0 %v13016_v41 }
 0xab1   : > { %v15280_v45 = vsub.f32 %v7568_v5, %v7638_v17  ;;  %v15282_v51 = vsub.f32 %v7569_v36, %v7645_v49  ;;  %v15284_v14 = vsub.f32 %v7570_v11, %v7652_v30  ;;  %v15286_v27 = vsub.f32 %v7571_v1, %v7659_v0  ;;  %v12740_v17 = vpop.f32.mrf.mxu1  ;;  %v13017_v49 = vld [vmem:[%s15851_s7 + $0x30] sm:$0xff]   ;;  %v13018_v30 = vld [vmem:[%s15851_s7 + $0x68] sm:$0xff]  }
 0xab2   : > { %v7629_v55 = vmul.f32 0.03125, %v7627_v7  ;;  %12115 = vmatpush3.bf16.msra.mxu0 %v13017_v49  ;;  %v13019_v0 = vld [vmem:[%s15851_s7 + $0x28] sm:$0xff]   ;;  %v13020_v7 = vld [vmem:[%s15851_s7 + $0x60] sm:$0xff]  }
 0xab3   : > { %v7704_v3 = vmul.f32 %v15280_v45, %v15280_v45  ;;  %v7705_v59 = vmul.f32 %v15282_v51, %v15282_v51  ;;  %v7706_v13 = vmul.f32 %v15284_v14, %v15284_v14  ;;  %v7707_v20 = vmul.f32 %v15286_v27, %v15286_v27  ;;  %12116 = vmatprep.subr.bf16.mxu0 %v13018_v30 }
 0xab4   : > { %v7666_v29 = vrot.slane %v7629_v55, %v14831_v10  ;;  %v7673_v35 = vrot.slane %v7629_v55, %v14834_v19  ;;  %v7680_v48 = vrot.slane %v7629_v55, %v14837_v33  ;;  %v7687_v46 = vrot.slane %v7629_v55, %v14840_v53  ;;  %v13021_v55 = vld [vmem:[%s15851_s7 + $0x20] sm:$0xff]  }
 0xab5   : > { %v7720_v6 = vcombine.low %v7704_v3, %v7705_v59  ;;  %v7721_v15 = vcombine.low %v7706_v13, %v7707_v20  ;;  %v13022_v3 = vld [vmem:[%s15851_s7 + $0x58] sm:$0xff]   ;;  %v13024_v13 = vld [vmem:[%s15851_s7 + $0x50] sm:$0xff]  }
 0xab6   : > { %v15300_v61 = vsub.f32 %v7572_v8, %v7666_v29  ;;  %v15302_v21 = vsub.f32 %v7573_v56, %v7673_v35  ;;  %v15304_v5 = vsub.f32 %v7574_v26, %v7680_v48  ;;  %v15306_v36 = vsub.f32 %v7575_v32, %v7687_v46  ;;  %v11566_v32 = vld [vmem:[%s13490_s4] ss:$0 sm:$0xff]  ;;  %12117 = vmatpush3.bf16.msra.mxu0 %v13019_v0  ;;  %v13023_v59 = vld [vmem:[%s15851_s7 + $0x18] sm:$0xff]   ;;  %v13025_v20 = vld [vmem:[%s15851_s7 + $0x10] sm:$0xff]  }
 0xab7   : > { %v7728_v12 = vrot.slane %v7720_v6, %v15848_v50  ;;  %v7735_v44 = vrot.slane %v7721_v15, %v15848_v50  ;;  %v8213_v42 = vadd.f32 %v11566_v32, %v8212_v62  ;;  %12118 = vmatprep.subr.bf16.mxu0 %v13020_v7 }
 0xab8   : > { %v7708_v11 = vmul.f32 %v15300_v61, %v15300_v61  ;;  %v7709_v47 = vmul.f32 %v15302_v21, %v15302_v21  ;;  %v7710_v1 = vmul.f32 %v15304_v5, %v15304_v5  ;;  %v7711_v63 = vmul.f32 %v15306_v36, %v15306_v36 }
 0xab9   : > { %v7736_v18 = vcombine.low %v7728_v12, %v7735_v44  ;;  %v8218_v40 = vmax.f32 %v8213_v42, 0.0  ;;  %v11547_v12 = vld [vmem:[%s15852_s15] ss:$0 sm:$0xff]  ;;  %s15856_s15 = sld [smem:[#allocation5_spill]] }
 0xaba   : > { %v7737_v38 = vcombine.low %v7708_v11, %v7709_v47  ;;  %v7738_v60 = vcombine.low %v7710_v1, %v7711_v63  ;;  %12119 = vmatpush3.bf16.msra.mxu0 %v13021_v55  ;;  %v7847_v44 = vcombine.high %v11547_v12, %v11547_v12  ;;  %v11548_v11 = vld [vmem:[%s15853_s18] ss:$0 sm:$0xff]  ;;  %v15341_v47 = vrot.slane %v11547_v12, %v15848_v50  ;;  %s15857_s18 = sld [smem:[#allocation9_spill]] }
 0xabb   : > { %v7756_v8 = vsel %vm1079_vm1, %v7736_v18, 0.0  ;;  %v8222_v39 = vpack.c.bf16 %v8218_v40, %v8218_v40  ;;  %12120 = vmatprep.subr.bf16.mxu0 %v13022_v3  ;;  %v7881_v18 = vcombine.high %v11548_v11, %v11548_v11  ;;  %v13028_v55 = vld [vmem:[%s15851_s7 + $0x40] sm:$0xff]  }
 0xabc   : > { %7757 = vadd.xlane.f32.xlu0 %v7756_v8  ;;  %v7745_v56 = vrot.slane %v7737_v38, %v15848_v50  ;;  %v7752_v26 = vrot.slane %v7738_v60, %v15848_v50  ;;  %v7861_v63 = vrot.slane %v7847_v44, %v15848_v50  ;;  %v15351_v8 = vrot.slane %v11548_v11, %v15848_v50  ;;  %v13029_v3 = vld [vmem:[%s15851_s7] sm:$0xff]  }
 0xabd   : > { %12744 = vmatmul.mubr.msk.bf16.vlgmr.msra.gmra.mxu1 %vm4932_vm6, %v8222_v39  ;;  %v7895_v32 = vrot.slane %v7881_v18, %v15848_v50  ;;  %v13027_v39 = vld [vmem:[%s15851_s7 + $0x8] sm:$0xff]  }
 0xabe   : > { %v7753_v43 = vcombine.low %v7745_v56, %v7752_v26  ;;  %8380 = vmatprep.mubr.bf16.mxu1 %v13393_v16  ;;  %12121 = vmatpush3.bf16.msra.mxu0 %v13023_v59  ;;  %v7862_v26 = vcombine.high %v15341_v47, %v15341_v47  ;;  %v7896_v22 = vcombine.high %v15351_v8, %v15351_v8 }
 0xabf   : > { %12122 = vmatprep.subr.bf16.mxu0 %v13024_v13  ;;  %v7863_v52 = vcombine.high %v7861_v63, %v7861_v63  ;;  %v7897_v0 = vcombine.high %v7895_v32, %v7895_v32 }
 0xac0   : > { %v7759_v54 = vsel %vm1079_vm1, %v7753_v43, 0.0 }
 0xac1   : > { %7760 = vadd.xlane.f32.xlu1 %v7759_v54 }
 0xac2   : > { %12123 = vmatpush3.bf16.msra.mxu0 %v13025_v20 }
 0xb45   : > { %v7758_v29 = vpop.xlane.xlu0 %7757 }
 0xb46   : > { %v7762_v35 = vmul.f32 0.03125, %v7758_v29 }
 0xb48   : > { %v7764_v48 = vadd.f32 1e-05, %v7762_v35 }
 0xb4a   : > { %13306 = vrsqrt.f32 %v7764_v48  ;;  %v7761_v46 = vpop.xlane.xlu1 %7760  ;;  %v13030_v48 = vld [vmem:[%s15854_s23 + $0x30] ss:$8 sps:$4 sm:$0xff]  }
 0xb4b   : > { %v7763_v6 = vmul.f32 0.03125, %v7761_v46  ;;  %v13032_v46 = vld [vmem:[%s15854_s23 + $0x34] ss:$8 sps:$4 sm:$0xff]  }
 0xb4c   : > { %8356 = vmatprep.subr.bf16.mxu1 %v13032_v46 }
 0xb4d   : > { %v7765_v15 = vadd.f32 1e-05, %v7763_v6  ;;  %8357 = vmatpush1.bf16.msra.mxu1 %v13030_v48 }
 0xb4f   : > { %13308 = vrsqrt.f32 %v7765_v15 }
 0xb57   : > { %v15343_v1 = vpop.eup %13306 }
 0xb58   : > { %v7790_v38 = vrot.slane %v15343_v1, %v14837_v33  ;;  %v7783_v60 = vrot.slane %v15343_v1, %v14834_v19  ;;  %v7797_v56 = vrot.slane %v15343_v1, %v14840_v53 }
 0xb5a   : > { %v7836_v43 = vmul.f32 %v7790_v38, %v15284_v14  ;;  %v7835_v54 = vmul.f32 %v7783_v60, %v15282_v51  ;;  %v7837_v40 = vmul.f32 %v7797_v56, %v15286_v27  ;;  %v13026_v51 = vld [vmem:[%s15851_s7 + $0x48] sm:$0xff]  }
 0xb5b   : > { %12124 = vmatprep.subr.bf16.mxu0 %v13026_v51 }
 0xb5c   : > { %v13309_v62 = vpop.eup %13308  ;;  %v7870_v42 = vmul.f32 %v7861_v63, %v7836_v43  ;;  %v7869_v28 = vmul.f32 %v7862_v26, %v7835_v54  ;;  %v7871_v30 = vmul.f32 %v7863_v52, %v7837_v40  ;;  %12125 = vmatpush3.bf16.msra.mxu0 %v13027_v39 }
 0xb5d   : > { %v7818_v58 = vrot.slane %v13309_v62, %v14837_v33  ;;  %v7811_v37 = vrot.slane %v13309_v62, %v14834_v19  ;;  %v7825_v14 = vrot.slane %v13309_v62, %v14840_v53  ;;  %12126 = vmatprep.subr.bf16.mxu0 %v13028_v55  ;;  %v7804_v54 = vrot.slane %v13309_v62, %v14831_v10  ;;  %v13041_v55 = vld [vmem:[%s15854_s23 + $0x4] ss:$8 sps:$4 sm:$0xff]  }
 0xb5e   : > { %v7904_v27 = vadd.f32 %v7895_v32, %v7870_v42  ;;  %v7903_v7 = vadd.f32 %v7896_v22, %v7869_v28 }
 0xb5f   : > { %v7840_v41 = vmul.f32 %v7818_v58, %v15304_v5  ;;  %v7839_v17 = vmul.f32 %v7811_v37, %v15302_v21  ;;  %v7841_v49 = vmul.f32 %v7825_v14, %v15306_v36  ;;  %v7905_v21 = vadd.f32 %v7897_v0, %v7871_v30 }
 0xb60   : > { %12127 = vmatpush3.bf16.msra.mxu0 %v13029_v3  ;;  %v7928_v36 = vrot.slane %v7904_v27, %v15848_v50  ;;  %v7917_v29 = vrot.slane %v7903_v7, %v15848_v50  ;;  %v13036_v7 = vld [vmem:[%s15854_s23 + $0x10] ss:$8 sps:$4 sm:$0xff]  }
 0xb61   : > { %v7874_v33 = vmul.f32 %v7861_v63, %v7840_v41  ;;  %v7873_v19 = vmul.f32 %v7862_v26, %v7839_v17  ;;  %v7875_v53 = vmul.f32 %v7863_v52, %v7841_v49  ;;  %12747 = vmatprep.subr.bf16.mxu0 %v15835_v4  ;;  %v7939_v44 = vrot.slane %v7905_v21, %v15848_v50  ;;  %v11568_v63 = vld [vmem:[%s15855_s0] ss:$0 sm:$0xff]  ;;  %s13395_s0 = smov 80  }
 0xb63   : > { %v7908_v59 = vadd.f32 %v7895_v32, %v7874_v33  ;;  %v7907_v13 = vadd.f32 %v7896_v22, %v7873_v19  ;;  %v7909_v5 = vadd.f32 %v7897_v0, %v7875_v53  ;;  %v7776_v32 = vrot.slane %v15343_v1, %v14831_v10  ;;  %v13035_v0 = vld [vmem:[%s15854_s23 + $0x24] ss:$8 sps:$4 sm:$0xff]   ;;  %v13033_v33 = vld [vmem:[%s15854_s23 + $0x20] ss:$8 sps:$4 sm:$0xff]   ;;  %v13038_v19 = vld [vmem:[%s15854_s23 + $0x14] ss:$8 sps:$4 sm:$0xff]  }
 0xb64   : > { %8358 = vmatprep.subr.bf16.mxu1 %v13035_v0  ;;  %v13039_v53 = vld [vmem:[%s15854_s23] ss:$8 sps:$4 sm:$0xff]  }
 0xb65   : > { %v7961_v20 = vrot.slane %v7908_v59, %v15848_v50  ;;  %v7950_v35 = vrot.slane %v7907_v13, %v15848_v50  ;;  %v7972_v12 = vrot.slane %v7909_v5, %v15848_v50  ;;  %v7838_v50 = vmul.f32 %v7804_v54, %v15300_v61  ;;  %8359 = vmatpush1.bf16.msra.mxu1 %v13033_v33  ;;  %v11549_v59 = vld [vmem:[%s15856_s15] ss:$0 sm:$0xff]  ;;  %s15862_s15 = sld [smem:[#allocation14_spill]] }
 0xb66   : > { %v7834_v42 = vmul.f32 %v7776_v32, %v15280_v45  ;;  %8360 = vmatprep.subr.bf16.mxu1 %v13038_v19 }
 0xb67   : > { %v12871_v6 = vpack.i.bf16 %v7928_v36, %v7961_v20  ;;  %v12866_v15 = vpack.i.bf16 %v7917_v29, %v7950_v35  ;;  %v12876_v11 = vpack.i.bf16 %v7939_v44, %v7972_v12  ;;  %v7872_v22 = vmul.f32 %v15341_v47, %v7838_v50 }
 0xb68   : > { %v7868_v40 = vmul.f32 %v15341_v47, %v7834_v42 }
 0xb69   : > { %12872 = vrot.lane.b32.xlu0 %v12871_v6, %s13385_s16  ;;  %12867 = vrot.lane.b32.xlu1 %v12866_v15, %s13394_s2  ;;  %v7906_v37 = vadd.f32 %v15351_v8, %v7872_v22  ;;  %v8292_v6 = vld [vmem:[%s15857_s18] sm:$0x3]  ;;  %s15863_s18 = sld [smem:[#allocation13_spill]] }
 0xb6a   : > { %v7902_v51 = vadd.f32 %v15351_v8, %v7868_v40  ;;  %8361 = vmatpush1.bf16.msra.mxu1 %v13036_v7  ;;  %v8298_v15 = vrot.slane %v8292_v6, %v15059_v31 }
 0xb6b   : > { %8362 = vmatprep.subr.bf16.mxu1 %v13041_v55 }
 0xb6d   : > { %12877 = vrot.lane.b32.xlu1 %v12876_v11, %s13382_s10 }
 0xb6e   : > { %8363 = vmatpush1.bf16.msra.mxu1 %v13039_v53 }
 0xb6f   : > { %12753 = vmatprep.subr.bf16.mxu1 %v15835_v4 }
 0xb7d   : > { %v8272_v18 = vpop.f32.mrf.mxu1 }
 0xb7e   : > { %v8273_v38 = vadd.f32 %v11568_v63, %v8272_v18 }
 0xb7f   : > { %v12745_v60 = vpop.f32.mrf.mxu1 }
 0xb80   : > { %v8278_v56 = vmax.f32 %v8273_v38, 0.0 }
 0xb81   : > { %v8275_v26 = vpop.f32.mrf.mxu1 }
 0xb82   : > { %8280 = vrot.lane.b32.xlu1 %v8278_v56, %s13394_s2 }
 0xb83   : > { %v12746_v43 = vpop.f32.mrf.mxu1 }
 0xbdb   : > { %v12873_v52 = vpop.permute.xlu0 %12872  ;;  %v12868_v58 = vpop.permute.xlu1 %12867 }
 0xbdc   : > { %v12870_v28 = vunpack.i.h.bf16 %v12868_v58  ;;  %v12869_v14 = vunpack.i.l.bf16 %v12868_v58  ;;  %v12875_v62 = vunpack.i.h.bf16 %v12873_v52  ;;  %v12874_v39 = vunpack.i.l.bf16 %v12873_v52 }
 0xbdd   : > { %v8302_v52 = vrot.slane %v8292_v6, %v15053_v25 }
 0xbde   : > { %v7976_v10 = vsel %vm1079_vm1, %v7902_v51, %v12870_v28  ;;  %v7981_v61 = vsel %vm1079_vm1, %v7906_v37, %v12869_v14 }
 0xbdf   : > { %v12878_v45 = vpop.permute.xlu1 %12877  ;;  %v7978_v41 = vsel %vm7977_vm8, %v7976_v10, %v12875_v62  ;;  %v7982_v17 = vsel %vm7977_vm8, %v7981_v61, %v12874_v39 }
 0xbe0   : > { %v12880_v47 = vunpack.i.h.bf16 %v12878_v45  ;;  %v12879_v1 = vunpack.i.l.bf16 %v12878_v45 }
 0xbe2   : > { %v7980_v8 = vsel %vm7979_vm9, %v7978_v41, %v12880_v47  ;;  %v7983_v49 = vsel %vm7979_vm9, %v7982_v17, %v12879_v1 }
 0xbe3   : > { %v8017_v27 = vpack.c.bf16 %v7980_v8, %v7980_v8  ;;  %v8018_v30 = vpack.c.bf16 %v7983_v49, %v7983_v49 }
 0xbe5   : > { %8153 = vmatprep.mubr.bf16.mxu0 %v8018_v30 }
 0xbe6   : > { %8154 = vmatmul.mubr.bf16.vlgmr.msra.gmra.mxu0 %v8017_v27 }
 0xbe7   : > { %12749 = vmatprep.mubr.msk.bf16.mxu0 %vm13379_vm0, %v15835_v4 }
 0xbf4   : > { %v8281_v29 = vpop.permute.xlu1 %8280 }
 0xca6   : > { %v12128_v3 = vpop.f32.mrf.mxu0 }
 0xca8   : > { %v12129_v13 = vpop.f32.mrf.mxu0 }
 0xca9   : > { %v12130_v5 = vadd.f32 %v12129_v13, %v12128_v3 }
 0xcaa   : > { %v12131_v21 = vpop.f32.mrf.mxu0 }
 0xcab   : > { %v8156_v36 = vadd.f32 %v12130_v5, %v11549_v59 }
 0xcac   : > { %v12132_v20 = vpop.f32.mrf.mxu0 }
 0xcad   : > { %v8161_v35 = vmax.f32 %v8156_v36, 0.0 }
 0xcaf   : > { %v15411_v48 = vsel %vm1079_vm1, %v8161_v35, %v8281_v29 }
 0xcb0   : > { %v8293_v46 = vpack.c.bf16 %v15411_v48, %v15411_v48 }
 0xcb2   : > { %11579 = vmatmul.mubr.msk.bf16.vlgmr.msra.gmra.mxu1 %vm7977_vm8, %v8293_v46 }
 0xcb3   : > { %12755 = vmatprep.mubr.msk.bf16.mxu1 %vm13379_vm0, %v15835_v4 }
 0xd72   : > { %v8382_v12 = vpop.f32.mrf.mxu1 }
 0xd73   : > { %v8383_v44 = vadd.f32 %v8382_v12, %v8298_v15 }
 0xd74   : > { %v8384_v11 = vpop.f32.mrf.mxu1 }
 0xd75   : > { %8393 = vrot.lane.b32.xlu1 %v8383_v44, %s13382_s10  ;;  %8390 = vrot.lane.b32.xlu0 %v8383_v44, %s13383_s11  ;;  %v8417_v18 = vpack.c.bf16 %v8383_v44, %v8383_v44  ;;  %v8399_v22 = vmul.f32 0.25, %v8383_v44  ;;  %v15433_v28 = vadd.f32 %v8384_v11, %v8302_v52 }
 0xd76   : > { %v8386_v63 = vpop.f32.mrf.mxu1 }
 0xd77   : > { %v8413_v40 = vpack.c.bf16 %v8399_v22, %v8399_v22  ;;  %v8665_v10 = vpack.c.bf16 %v15433_v28, %v15433_v28 }
 0xd78   : > { %v8387_v38 = vpop.f32.mrf.mxu1 }
 0xd79   : > { %8396 = vrot.lane.b32.xlu0 %v8383_v44, %s13395_s0  ;;  %8422 = vrot.lane.b32.xlu1 %v8417_v18, %s13385_s16  ;;  %v8673_v41 = vsel %vm3296_vm4, %v8665_v10, 0 }
 0xde7   : > { %v8394_v60 = vpop.permute.xlu1 %8393  ;;  %v8391_v56 = vpop.permute.xlu0 %8390 }
 0xde8   : > { %v8419_v26 = vpack.c.bf16 %v8394_v60, %v8394_v60  ;;  %v8418_v43 = vpack.c.bf16 %v8391_v56, %v8391_v56  ;;  %v8401_v62 = vmul.f32 0.25, %v8394_v60  ;;  %v8400_v39 = vmul.f32 0.25, %v8391_v56 }
 0xdea   : > { %8471 = vrot.lane.b32.xlu0 %v8418_v43, %s13385_s16  ;;  %8520 = vrot.lane.b32.xlu1 %v8419_v26, %s13385_s16  ;;  %v8415_v45 = vpack.c.bf16 %v8401_v62, %v8401_v62  ;;  %v8414_v47 = vpack.c.bf16 %v8400_v39, %v8400_v39 }
 0xdeb   : > { %v8397_v54 = vpop.permute.xlu0 %8396  ;;  %v8423_v32 = vpop.permute.xlu1 %8422 }
 0xdec   : > { %v8420_v50 = vpack.c.bf16 %v8397_v54, %v8397_v54  ;;  %v8428_v42 = vsel %vm4932_vm6, %v8423_v32, 0  ;;  %v8402_v17 = vmul.f32 0.25, %v8397_v54 }
 0xded   : > { %12748 = vmatpush3.bf16.xpose.msra.mxu0 %v8428_v42 }
 0xdee   : > { %8569 = vrot.lane.b32.xlu0 %v8420_v50, %s13385_s16  ;;  %12759 = vmatprep.subr.bf16.mxu0 %v15835_v4  ;;  %v8416_v8 = vpack.c.bf16 %v8402_v17, %v8402_v17  ;;  %s13396_s16 = smov 48  }
 0xdf4   : > { %12750 = vmatmul.mubr.msk.bf16.vlgmr.msra.gmra.mxu0 %vm4932_vm6, %v8413_v40 }
 0xdf5   : > { %12761 = vmatprep.mubr.msk.bf16.mxu0 %vm13379_vm0, %v15835_v4 }
 0xe5c   : > { %v8472_v58 = vpop.permute.xlu0 %8471  ;;  %v8521_v37 = vpop.permute.xlu1 %8520 }
 0xe5d   : > { %v8477_v14 = vsel %vm4932_vm6, %v8472_v58, 0  ;;  %v8526_v51 = vsel %vm4932_vm6, %v8521_v37, 0 }
 0xe5e   : > { %12754 = vmatpush3.bf16.xpose.msra.mxu1 %v8477_v14  ;;  %12760 = vmatpush3.bf16.xpose.msra.mxu0 %v8526_v51 }
 0xe5f   : > { %12765 = vmatprep.subr.bf16.mxu1 %v15835_v4  ;;  %12771 = vmatprep.subr.bf16.mxu0 %v15835_v4 }
 0xe60   : > { %v8570_v61 = vpop.permute.xlu0 %8569 }
 0xe61   : > { %v8575_v1 = vsel %vm4932_vm6, %v8570_v61, 0 }
 0xe65   : > { %12756 = vmatmul.mubr.msk.bf16.vlgmr.msra.gmra.mxu1 %vm4932_vm6, %v8414_v47  ;;  %12762 = vmatmul.mubr.msk.bf16.vlgmr.msra.gmra.mxu0 %vm4932_vm6, %v8415_v45 }
 0xe66   : > { %12766 = vmatpush3.bf16.xpose.msra.mxu1 %v8575_v1  ;;  %12772 = vmatpush3.bf16.msra.mxu0 %v8673_v41 }
 0xe67   : > { %12767 = vmatprep.mubr.msk.bf16.mxu1 %vm13379_vm0, %v15835_v4  ;;  %12773 = vmatprep.mubr.msk.bf16.mxu0 %vm13379_vm0, %v15835_v4 }
 0xe68   : > { %12783 = vmatprep.subr.bf16.mxu0 %v15835_v4  ;;  %12777 = vmatprep.subr.bf16.mxu1 %v15835_v4 }
 0xe6d   : > { %12768 = vmatmul.mubr.msk.bf16.vlgmr.msra.gmra.mxu1 %vm4932_vm6, %v8416_v8 }
 0xe6e   : > { %12779 = vmatprep.mubr.msk.bf16.mxu1 %vm13379_vm0, %v15835_v4 }
 0xeb4   : > { %v8464_v49 = vpop.f32.mrf.mxu0 }
 0xeb5   : > { %v8617_v27 = vsel %vm2905_vm3, %v8464_v49, -inf }
 0xeb6   : > { %8618 = vmax.xlane.f32.xlu1 %v8617_v27  ;;  %v12751_v30 = vpop.f32.mrf.mxu0 }
 0xeb8   : > { %v8467_v0 = vpop.f32.mrf.mxu0 }
 0xeba   : > { %v12752_v33 = vpop.f32.mrf.mxu0 }
 0xf25   : > { %v8513_v19 = vpop.f32.mrf.mxu1  ;;  %v8562_v7 = vpop.f32.mrf.mxu0 }
 0xf26   : > { %v8620_v53 = vsel %vm2905_vm3, %v8513_v19, -inf  ;;  %v8623_v5 = vsel %vm2905_vm3, %v8562_v7, -inf }
 0xf27   : > { %8621 = vmax.xlane.f32.xlu0 %v8620_v53  ;;  %v12757_v55 = vpop.f32.mrf.mxu1  ;;  %v12763_v3 = vpop.f32.mrf.mxu0 }
 0xf29   : > { %v8516_v59 = vpop.f32.mrf.mxu1  ;;  %v8565_v13 = vpop.f32.mrf.mxu0 }
 0xf2b   : > { %v12758_v21 = vpop.f32.mrf.mxu1  ;;  %8624 = vmax.xlane.f32.xlu0 %v8623_v5  ;;  %v12764_v36 = vpop.f32.mrf.mxu0 }
 0xf2d   : > { %v8611_v20 = vpop.f32.mrf.mxu1 }
 0xf2e   : > { %v8626_v29 = vsel %vm2905_vm3, %v8611_v20, -inf }
 0xf2f   : > { %v12769_v35 = vpop.f32.mrf.mxu1  ;;  %8627 = vmax.xlane.f32.xlu1 %v8626_v29 }
 0xf31   : > { %v8614_v46 = vpop.f32.mrf.mxu1 }
 0xf33   : > { %v12770_v6 = vpop.f32.mrf.mxu1 }
 0xf3f   : > { %v8619_v15 = vpop.xlane.xlu1 %8618 }
 0xf40   : > { %v8629_v12 = vsub.f32 %v8464_v49, %v8619_v15 }
 0xf42   : > { %v8633_v44 = vmul.f32 1.442695, %v8629_v12 }
 0xf44   : > { %13310 = vpow2.f32 %v8633_v44 }
 0xf51   : > { %v13311_v11 = vpop.eup %13310 }
 0xf52   : > { %v8641_v63 = vsel %vm2905_vm3, %v13311_v11, 0.0 }
 0xf53   : > { %8642 = vadd.xlane.f32.xlu0 %v8641_v63 }
 0xfb0   : > { %v8622_v18 = vpop.xlane.xlu0 %8621 }
 0xfb1   : > { %v8630_v38 = vsub.f32 %v8513_v19, %v8622_v18 }
 0xfb3   : > { %v8635_v60 = vmul.f32 1.442695, %v8630_v38 }
 0xfb4   : > { %v8625_v56 = vpop.xlane.xlu0 %8624 }
 0xfb5   : > { %13312 = vpow2.f32 %v8635_v60  ;;  %v8631_v26 = vsub.f32 %v8562_v7, %v8625_v56 }
 0xfb7   : > { %v8637_v43 = vmul.f32 1.442695, %v8631_v26 }
 0xfb8   : > { %v8628_v40 = vpop.xlane.xlu1 %8627 }
 0xfb9   : > { %13314 = vpow2.f32 %v8637_v43  ;;  %v8632_v52 = vsub.f32 %v8611_v20, %v8628_v40 }
 0xfbb   : > { %v8639_v58 = vmul.f32 1.442695, %v8632_v52 }
 0xfc2   : > { %v13313_v54 = vpop.eup %13312 }
 0xfc3   : > { %v8644_v32 = vsel %vm2905_vm3, %v13313_v54, 0.0 }
 0xfc4   : > { %8645 = vadd.xlane.f32.xlu1 %v8644_v32 }
 0xfc6   : > { %v13315_v50 = vpop.eup %13314 }
 0xfc7   : > { %v8647_v42 = vsel %vm2905_vm3, %v13315_v50, 0.0 }
 0xfc8   : > { %8648 = vadd.xlane.f32.xlu0 %v8647_v42 }
 0xfd5   : > { %8407 = vrot.lane.b32.xlu1 %v15433_v28, %s13382_s10  ;;  %s15858_s10 = sld [smem:[#allocation10_spill]] }
 0xfdb   : > { %v13042_v29 = vld [vmem:[%s15858_s10 + $0x18] sm:$0xff]   ;;  %v13043_v35 = vld [vmem:[%s15858_s10 + $0x10] sm:$0xff]   ;;  %v13044_v46 = vld [vmem:[%s15858_s10 + $0x8] sm:$0xff]  }
 0xfdc   : > { %v8643_v22 = vpop.xlane.xlu0 %8642  ;;  %v13045_v60 = vld [vmem:[%s15858_s10] sm:$0xff]  }
 0xfdd   : > { %13316 = vrcp.f32 %v8643_v22 }
 0xfde   : > { %8404 = vrot.lane.b32.xlu0 %v15433_v28, %s13383_s11  ;;  %13318 = vpow2.f32 %v8639_v58  ;;  %s15859_s11 = sld [smem:[#allocation11_spill]] }
 0xfe4   : > { %v11588_v58 = vld [vmem:[%s15859_s11] ss:$0 sm:$0xff]  ;;  %s1001_s11 = scalar_lea.vmem %s13565_s30, %s11302_s26 }
 0xfea   : > { %v13317_v37 = vpop.eup %13316 }
 0xfeb   : > { %v8657_v14 = vmul.f32 %v13317_v37, %v13311_v11  ;;  %v13319_v62 = vpop.eup %13318 }
 0xfec   : > { %v8650_v39 = vsel %vm2905_vm3, %v13319_v62, 0.0 }
 0xfed   : > { %v8661_v51 = vpack.c.bf16 %v8657_v14, %v8657_v14 }
 0xfef   : > { %12774 = vmatmul.mubr.msk.bf16.vlgmr.msra.gmra.mxu0 %vm3292_vm5, %v8661_v51 }
 0xff0   : > { %12785 = vmatprep.mubr.msk.bf16.mxu0 %vm13379_vm0, %v15835_v4 }
 0xff9   : > { %8651 = vadd.xlane.f32.xlu1 %v8650_v39 }
0x100a   : > { %8410 = vrot.lane.b32.xlu1 %v15433_v28, %s13395_s0  ;;  %s15864_s0 = sld [smem:[#allocation15_spill]] }
0x104d   : > { %v8646_v10 = vpop.xlane.xlu1 %8645 }
0x104e   : > { %13320 = vrcp.f32 %v8646_v10 }
0x1051   : > { %v8408_v61 = vpop.permute.xlu1 %8407  ;;  %v8649_v45 = vpop.xlane.xlu0 %8648 }
0x1052   : > { %v8667_v47 = vpack.c.bf16 %v8408_v61, %v8408_v61  ;;  %13322 = vrcp.f32 %v8649_v45 }
0x1054   : > { %v8765_v1 = vsel %vm3296_vm4, %v8667_v47, 0 }
0x1055   : > { %12784 = vmatpush3.bf16.msra.mxu0 %v8765_v1  ;;  %v8405_v41 = vpop.permute.xlu0 %8404 }
0x1056   : > { %v8666_v17 = vpack.c.bf16 %v8405_v41, %v8405_v41  ;;  %12795 = vmatprep.subr.bf16.mxu0 %v15835_v4 }
0x1058   : > { %v8719_v8 = vsel %vm3296_vm4, %v8666_v17, 0 }
0x1059   : > { %12778 = vmatpush3.bf16.msra.mxu1 %v8719_v8 }
0x105a   : > { %12789 = vmatprep.subr.bf16.mxu1 %v15835_v4 }
0x105b   : > { %v13321_v49 = vpop.eup %13320 }
0x105c   : > { %v8658_v28 = vmul.f32 %v13321_v49, %v13313_v54 }
0x105e   : > { %v8662_v27 = vpack.c.bf16 %v8658_v28, %v8658_v28 }
0x105f   : > { %v13323_v30 = vpop.eup %13322 }
0x1060   : > { %v8659_v0 = vmul.f32 %v13323_v30, %v13315_v50  ;;  %12780 = vmatmul.mubr.msk.bf16.vlgmr.msra.gmra.mxu1 %vm3292_vm5, %v8662_v27 }
0x1061   : > { %12791 = vmatprep.mubr.msk.bf16.mxu1 %vm13379_vm0, %v15835_v4 }
0x1062   : > { %v8663_v33 = vpack.c.bf16 %v8659_v0, %v8659_v0 }
0x1064   : > { %12786 = vmatmul.mubr.msk.bf16.vlgmr.msra.gmra.mxu0 %vm3292_vm5, %v8663_v33 }
0x1065   : > { %12803 = vmatprep.mubr.msk.bf16.mxu0 %vm13379_vm0, %v15835_v4  ;;  %12796 = vmatpush3.bf16.msra.mxu0 %v13042_v29 }
0x1066   : > { %12797 = vmatprep.subr.bf16.mxu0 %v15835_v4 }
0x1069   : > { %12798 = vmatpush3.bf16.msra.mxu0 %v13043_v35 }
0x106a   : > { %12799 = vmatprep.subr.bf16.mxu0 %v15835_v4 }
0x106d   : > { %12800 = vmatpush3.bf16.msra.mxu0 %v13044_v46 }
0x106e   : > { %12801 = vmatprep.subr.bf16.mxu0 %v15835_v4 }
0x1071   : > { %12802 = vmatpush3.bf16.msra.mxu0 %v13045_v60 }
0x1082   : > { %v8652_v19 = vpop.xlane.xlu1 %8651 }
0x1083   : > { %13324 = vrcp.f32 %v8652_v19 }
0x1086   : > { %v8411_v7 = vpop.permute.xlu1 %8410 }
0x1087   : > { %v8668_v53 = vpack.c.bf16 %v8411_v7, %v8411_v7 }
0x1089   : > { %v8811_v55 = vsel %vm3296_vm4, %v8668_v53, 0 }
0x108a   : > { %12790 = vmatpush3.bf16.msra.mxu1 %v8811_v55 }
0x1090   : > { %v13325_v3 = vpop.eup %13324 }
0x1091   : > { %v8660_v59 = vmul.f32 %v13325_v3, %v13319_v62 }
0x1093   : > { %v8664_v13 = vpack.c.bf16 %v8660_v59, %v8660_v59 }
0x1095   : > { %12792 = vmatmul.mubr.msk.bf16.vlgmr.msra.gmra.mxu1 %vm3292_vm5, %v8664_v13 }
0x1096   : > { %9488 = vmatprep.mubr.bf16.mxu1 %v13393_v16 }
0x10af   : > { %v8709_v5 = vpop.f32.mrf.mxu0 }
0x10b1   : > { %v12775_v21 = vpop.f32.mrf.mxu0 }
0x10b3   : > { %v8712_v36 = vpop.f32.mrf.mxu0 }
0x10b5   : > { %v12776_v20 = vpop.f32.mrf.mxu0 }
0x1120   : > { %v8755_v6 = vpop.f32.mrf.mxu1 }
0x1121   : > { %8854 = vrot.lane.b32.xlu0 %v8755_v6, %s13387_s22  ;;  %s15860_s22 = sld [smem:[#allocation12_spill]] }
0x1122   : > { %v12781_v15 = vpop.f32.mrf.mxu1 }
0x1124   : > { %v8758_v12 = vpop.f32.mrf.mxu1  ;;  %v8801_v44 = vpop.f32.mrf.mxu0 }
0x1125   : > { %8858 = vrot.lane.b32.xlu1 %v8801_v44, %s13394_s2  ;;  %s15861_s2 = sld [smem:[#allocation16_spill]] }
0x1126   : > { %v12782_v11 = vpop.f32.mrf.mxu1  ;;  %v12787_v63 = vpop.f32.mrf.mxu0 }
0x1127   : > { %v9032_v8 = vld [vmem:[%s15860_s22 + $0x180] sm:$0xff]  ;;  %v9033_v49 = vld [vmem:[%s15860_s22 + $0x188] sm:$0xff] }
0x1128   : > { %v8804_v18 = vpop.f32.mrf.mxu0  ;;  %v9041_v27 = vld [vmem:[%s15860_s22 + $0x1c8] sm:$0xff]  ;;  %v9016_v19 = vld [vmem:[%s15860_s22 + $0x100] sm:$0xff] }
0x1129   : > { %v11646_v0 = vcombine.low %v9033_v49, %v9041_v27  ;;  %v11647_v33 = vcombine.high %v9033_v49, %v9041_v27  ;;  %v9024_v7 = vld [vmem:[%s15860_s22 + $0x140] sm:$0xff]  ;;  %v9017_v53 = vld [vmem:[%s15860_s22 + $0x108] sm:$0xff]  ;;  %v9002_v49 = vld [vmem:[%s15860_s22 + $0x90] sm:$0xff] }
0x112a   : > { %v12788_v38 = vpop.f32.mrf.mxu0  ;;  %v11629_v55 = vcombine.high %v9016_v19, %v9024_v7  ;;  %v9025_v3 = vld [vmem:[%s15860_s22 + $0x148] sm:$0xff]  ;;  %v11628_v59 = vcombine.low %v9016_v19, %v9024_v7  ;;  %v9000_v21 = vld [vmem:[%s15860_s22 + $0x80] sm:$0xff]  ;;  %v9011_v27 = vld [vmem:[%s15860_s22 + $0xd8] sm:$0xff] }
0x112b   : > { %9505 = vmatprep.subr.bf16.mxu0 %v11647_v33  ;;  %v11630_v13 = vcombine.low %v9017_v53, %v9025_v3  ;;  %v9008_v36 = vld [vmem:[%s15860_s22 + $0xc0] sm:$0xff]  ;;  %v9001_v20 = vld [vmem:[%s15860_s22 + $0x88] sm:$0xff]  ;;  %v8986_v7 = vld [vmem:[%s15860_s22 + $0x10] sm:$0xff] }
0x112c   : > { %v11613_v29 = vcombine.high %v9000_v21, %v9008_v36  ;;  %v9009_v35 = vld [vmem:[%s15860_s22 + $0xc8] sm:$0xff]  ;;  %v11612_v46 = vcombine.low %v9000_v21, %v9008_v36  ;;  %v8984_v12 = vld [vmem:[%s15860_s22] sm:$0xff] }
0x112d   : > { %v11614_v6 = vcombine.low %v9001_v20, %v9009_v35  ;;  %v11615_v15 = vcombine.high %v9001_v20, %v9009_v35  ;;  %v8992_v44 = vld [vmem:[%s15860_s22 + $0x40] sm:$0xff]  ;;  %v8985_v11 = vld [vmem:[%s15860_s22 + $0x8] sm:$0xff] }
0x112e   : > { %v11597_v63 = vcombine.high %v8984_v12, %v8992_v44  ;;  %v8993_v18 = vld [vmem:[%s15860_s22 + $0x48] sm:$0xff]  ;;  %v11596_v38 = vcombine.low %v8984_v12, %v8992_v44  ;;  %v9036_v36 = vld [vmem:[%s15860_s22 + $0x1a0] sm:$0xff] }
0x112f   : > { %v11598_v60 = vcombine.low %v8985_v11, %v8993_v18  ;;  %v9044_v20 = vld [vmem:[%s15860_s22 + $0x1e0] sm:$0xff]  ;;  %v9045_v35 = vld [vmem:[%s15860_s22 + $0x1e8] sm:$0xff] }
0x1130   : > { %v9020_v44 = vld [vmem:[%s15860_s22 + $0x120] sm:$0xff] }
0x1155   : > { %v8847_v56 = vpop.f32.mrf.mxu1 }
0x1156   : > { %8862 = vrot.lane.b32.xlu0 %v8847_v56, %s13396_s16  ;;  %v11599_v56 = vcombine.high %v8985_v11, %v8993_v18  ;;  %v9028_v11 = vld [vmem:[%s15860_s22 + $0x160] sm:$0xff]  ;;  %v9029_v18 = vld [vmem:[%s15860_s22 + $0x168] sm:$0xff] }
0x1157   : > { %v12793_v26 = vpop.f32.mrf.mxu1 }
0x1158   : > { %v9034_v26 = vld [vmem:[%s15860_s22 + $0x190] sm:$0xff] }
0x1159   : > { %v8850_v43 = vpop.f32.mrf.mxu1 }
0x115a   : > { %v9042_v43 = vld [vmem:[%s15860_s22 + $0x1d0] sm:$0xff] }
0x115b   : > { %v12794_v54 = vpop.f32.mrf.mxu1 }
0x115c   : > { %v9035_v54 = vld [vmem:[%s15860_s22 + $0x198] sm:$0xff] }
0x1193   : > { %v8855_v32 = vpop.permute.xlu0 %8854 }
0x1194   : > { %v8865_v4 = vsel %vm4932_vm6, %v8709_v5, %v8855_v32  ;;  %v11631_v5 = vcombine.high %v9017_v53, %v9025_v3  ;;  %v11648_v32 = vcombine.low %v9034_v26, %v9042_v43  ;;  %v8994_v53 = vld [vmem:[%s15860_s22 + $0x50] sm:$0xff]  ;;  %v8995_v3 = vld [vmem:[%s15860_s22 + $0x58] sm:$0xff] }
0x1197   : > { %v8859_v50 = vpop.permute.xlu1 %8858 }
0x1198   : > { %v8866_v42 = vsel %vm1079_vm1, %v8865_v4, %v8859_v50  ;;  %v11649_v50 = vcombine.high %v9034_v26, %v9042_v43  ;;  %v9043_v4 = vld [vmem:[%s15860_s22 + $0x1d8] sm:$0xff]  ;;  %v9004_v43 = vld [vmem:[%s15860_s22 + $0xa0] sm:$0xff] }
0x11c8   : > { %v8863_v22 = vpop.permute.xlu0 %8862 }
0x11c9   : > { %v8868_v40 = vsel %vm8867_vm10, %v8866_v42, %v8863_v22  ;;  %v11650_v42 = vcombine.low %v9035_v54, %v9043_v4  ;;  %v11651_v22 = vcombine.high %v9035_v54, %v9043_v4  ;;  %v9012_v54 = vld [vmem:[%s15860_s22 + $0xe0] sm:$0xff]  ;;  %v11636_v4 = vcombine.low %v9020_v44, %v9028_v11 }
0x11ca   : > { %v8878_v52 = vpack.c.bf16 %v8868_v40, %v8868_v40 }
0x11cc   : > { %12804 = vmatmul.mubr.msk.bf16.vlgmr.msra.gmra.mxu0 %vm7977_vm8, %v8878_v52 }
0x11cd   : > { %9529 = vmatprep.mubr.bf16.mxu0 %v13393_v16  ;;  %9506 = vmatpush1.bf16.msra.mxu0 %v11646_v0 }
0x11ce   : > { %9507 = vmatprep.subr.bf16.mxu0 %v11631_v5  ;;  %v11601_v5 = vcombine.high %v8986_v7, %v8994_v53 }
0x11d1   : > { %9508 = vmatpush1.bf16.msra.mxu0 %v11630_v13 }
0x11d2   : > { %9509 = vmatprep.subr.bf16.mxu0 %v11615_v15  ;;  %v11653_v15 = vcombine.high %v9036_v36, %v9044_v20 }
0x11d5   : > { %9510 = vmatpush1.bf16.msra.mxu0 %v11614_v6 }
0x11d6   : > { %9511 = vmatprep.subr.bf16.mxu0 %v11599_v56  ;;  %v11637_v56 = vcombine.high %v9020_v44, %v9028_v11 }
0x11d9   : > { %9512 = vmatpush1.bf16.msra.mxu0 %v11598_v60 }
0x11da   : > { %9587 = vmatprep.subr.bf16.mxu0 %v11651_v22  ;;  %v11621_v22 = vcombine.high %v9004_v43, %v9012_v54 }
0x128c   : > { %v8946_v37 = vpop.f32.mrf.mxu0 }
0x128d   : > { %v8947_v14 = vadd.f32 %v11588_v58, %v8946_v37 }
0x128e   : > { %v12805_v51 = vpop.f32.mrf.mxu0 }
0x128f   : > { %v8952_v62 = vadd.f32 %v8947_v14, %v15411_v48  ;;  %v9040_v48 = vld [vmem:[%s15860_s22 + $0x1c0] sm:$0xff] }
0x1290   : > { %v8949_v39 = vpop.f32.mrf.mxu0  ;;  %v11645_v28 = vcombine.high %v9032_v8, %v9040_v48  ;;  %v11644_v30 = vcombine.low %v9032_v8, %v9040_v48  ;;  %v11594_v14 = vld [vmem:[%s15861_s2] ss:$0 sm:$0xff] }
0x1291   : > { %v8956_v10 = vsel %vm8955_vm11, %v8952_v62, 0.0 }
0x1292   : > { %8957 = vadd.xlane.f32.xlu1 %v8956_v10  ;;  %v12806_v61 = vpop.f32.mrf.mxu0  ;;  %9464 = vmatprep.subr.bf16.mxu1 %v11645_v28  ;;  %v9018_v10 = vld [vmem:[%s15860_s22 + $0x110] sm:$0xff] }
0x1293   : > { %9465 = vmatpush1.bf16.msra.mxu1 %v11644_v30  ;;  %v9026_v61 = vld [vmem:[%s15860_s22 + $0x150] sm:$0xff] }
0x1294   : > { %9466 = vmatprep.subr.bf16.mxu1 %v11629_v55  ;;  %v11633_v8 = vcombine.high %v9018_v10, %v9026_v61  ;;  %v9010_v28 = vld [vmem:[%s15860_s22 + $0xd0] sm:$0xff]  ;;  %v11632_v30 = vcombine.low %v9018_v10, %v9026_v61  ;;  %v8987_v55 = vld [vmem:[%s15860_s22 + $0x18] sm:$0xff] }
0x1295   : > { %v11617_v33 = vcombine.high %v9002_v49, %v9010_v28  ;;  %v11603_v21 = vcombine.high %v8987_v55, %v8995_v3  ;;  %v11602_v6 = vcombine.low %v8987_v55, %v8995_v3  ;;  %v9038_v61 = vld [vmem:[%s15860_s22 + $0x1b0] sm:$0xff] }
0x1296   : > { %v9006_v3 = vld [vmem:[%s15860_s22 + $0xb0] sm:$0xff] }
0x1297   : > { %9467 = vmatpush1.bf16.msra.mxu1 %v11628_v59  ;;  %v11616_v59 = vcombine.low %v9002_v49, %v9010_v28 }
0x1298   : > { %9468 = vmatprep.subr.bf16.mxu1 %v11613_v29  ;;  %v9037_v29 = vld [vmem:[%s15860_s22 + $0x1a8] sm:$0xff] }
0x1299   : > { %v11655_v12 = vcombine.high %v9037_v29, %v9045_v35  ;;  %v11654_v60 = vcombine.low %v9037_v29, %v9045_v35  ;;  %v8990_v35 = vld [vmem:[%s15860_s22 + $0x30] sm:$0xff] }
0x129b   : > { %9469 = vmatpush1.bf16.msra.mxu1 %v11612_v46  ;;  %v11600_v46 = vcombine.low %v8986_v7, %v8994_v53 }
0x129c   : > { %9470 = vmatprep.subr.bf16.mxu1 %v11597_v63  ;;  %v9021_v63 = vld [vmem:[%s15860_s22 + $0x128] sm:$0xff] }
0x129d   : > { %v11639_v26 = vcombine.high %v9021_v63, %v9029_v18 }
0x129f   : > { %9471 = vmatpush1.bf16.msra.mxu1 %v11596_v38  ;;  %v11652_v38 = vcombine.low %v9036_v36, %v9044_v20 }
0x12a0   : > { %9546 = vmatprep.subr.bf16.mxu1 %v11649_v50  ;;  %v9013_v50 = vld [vmem:[%s15860_s22 + $0xe8] sm:$0xff] }
0x131b   : > { %v8958_v45 = vpop.xlane.xlu1 %8957 }
0x131c   : > { %v8960_v47 = vmul.f32 0.015625, %v8958_v45  ;;  %v9019_v45 = vld [vmem:[%s15860_s22 + $0x118] sm:$0xff] }
0x131e   : > { %v15500_v1 = vsub.f32 %v8952_v62, %v8960_v47  ;;  %v11595_v62 = vld [vmem:[%s13550_s12] ss:$0 sm:$0xff]  ;;  %v9027_v47 = vld [vmem:[%s15860_s22 + $0x158] sm:$0xff] }
0x131f   : > { %v11635_v48 = vcombine.high %v9019_v45, %v9027_v47  ;;  %v11634_v0 = vcombine.low %v9019_v45, %v9027_v47  ;;  %v9046_v45 = vld [vmem:[%s15860_s22 + $0x1f0] sm:$0xff]  ;;  %v9039_v47 = vld [vmem:[%s15860_s22 + $0x1b8] sm:$0xff] }
0x1320   : > { %v8962_v41 = vmul.f32 %v15500_v1, %v15500_v1  ;;  %v11657_v28 = vcombine.high %v9038_v61, %v9046_v45 }
0x1322   : > { %v8963_v17 = vsel %vm8955_vm11, %v8962_v41, 0.0 }
0x1323   : > { %8964 = vadd.xlane.f32.xlu0 %v8963_v17 }
0x13ac   : > { %v8965_v40 = vpop.xlane.xlu0 %8964 }
0x13ad   : > { %v8966_v52 = vmul.f32 0.015625, %v8965_v40 }
0x13af   : > { %v8967_v58 = vadd.f32 1e-05, %v8966_v52  ;;  %v8988_v52 = vld [vmem:[%s15860_s22 + $0x20] sm:$0xff] }
0x13b1   : > { %13326 = vrsqrt.f32 %v8967_v58  ;;  %v8996_v58 = vld [vmem:[%s15860_s22 + $0x60] sm:$0xff] }
0x13be   : > { %v13327_v37 = vpop.eup %13326 }
0x13bf   : > { %v8969_v51 = vmul.f32 %v13327_v37, %v15500_v1  ;;  %v9003_v1 = vld [vmem:[%s15860_s22 + $0x98] sm:$0xff]  ;;  %v8989_v37 = vld [vmem:[%s15860_s22 + $0x28] sm:$0xff] }
0x13c0   : > { %v11619_v19 = vcombine.high %v9003_v1, %v9011_v27  ;;  %v11618_v13 = vcombine.low %v9003_v1, %v9011_v27  ;;  %v9022_v27 = vld [vmem:[%s15860_s22 + $0x130] sm:$0xff] }
0x13c1   : > { %v8976_v39 = vmul.f32 %v11594_v14, %v8969_v51  ;;  %v8997_v14 = vld [vmem:[%s15860_s22 + $0x68] sm:$0xff]  ;;  %v11620_v51 = vcombine.low %v9004_v43, %v9012_v54  ;;  %v13050_v43 = vld [vmem:[%s15862_s15 + $0x70] sm:$0xff]  }
0x13c2   : > { %v11607_v10 = vcombine.high %v8989_v37, %v8997_v14  ;;  %v11606_v49 = vcombine.low %v8989_v37, %v8997_v14  ;;  %v13051_v54 = vld [vmem:[%s15862_s15 + $0xf0] sm:$0xff]   ;;  %v13061_v37 = vld [vmem:[%s15862_s15 + $0xa0] sm:$0xff]   ;;  %v13062_v14 = vld [vmem:[%s15862_s15 + $0x58] sm:$0xff]  }
0x13c3   : > { %v15532_v41 = vadd.f32 %v11595_v62, %v8976_v39  ;;  %v11605_v39 = vcombine.high %v8988_v52, %v8996_v58 }
0x13c5   : > { %v15536_v17 = vpack.c.bf16 %v15532_v41, %v15532_v41 }
0x13c7   : > { %11660 = vmatmul.mubr.msk.bf16.vlgmr.msra.gmra.mxu1 %vm7977_vm8, %v15536_v17  ;;  %11661 = vmatmul.mubr.msk.bf16.vlgmr.msra.gmra.mxu0 %vm7977_vm8, %v15536_v17 }
0x13c8   : > { %9547 = vmatpush1.bf16.msra.mxu1 %v11648_v32  ;;  %9588 = vmatpush1.bf16.msra.mxu0 %v11650_v42  ;;  %v9005_v32 = vld [vmem:[%s15860_s22 + $0xa8] sm:$0xff]  ;;  %v11638_v42 = vcombine.low %v9021_v63, %v9029_v18 }
0x13c9   : > { %9548 = vmatprep.subr.bf16.mxu1 %v11633_v8  ;;  %9589 = vmatprep.subr.bf16.mxu0 %v11635_v48  ;;  %v11623_v40 = vcombine.high %v9005_v32, %v9013_v50  ;;  %v11622_v62 = vcombine.low %v9005_v32, %v9013_v50  ;;  %v9047_v8 = vld [vmem:[%s15860_s22 + $0x1f8] sm:$0xff]  ;;  %v11604_v48 = vcombine.low %v8988_v52, %v8996_v58  ;;  %v13052_v32 = vld [vmem:[%s15862_s15 + $0x30] sm:$0xff]   ;;  %v13059_v52 = vld [vmem:[%s15862_s15 + $0xe0] sm:$0xff]  }
0x13ca   : > { %9570 = vmatprep.mubr.bf16.mxu1 %v13393_v16  ;;  %9611 = vmatprep.mubr.bf16.mxu0 %v13393_v16  ;;  %v11659_v1 = vcombine.high %v9039_v47, %v9047_v8  ;;  %v11658_v7 = vcombine.low %v9039_v47, %v9047_v8  ;;  %v13053_v50 = vld [vmem:[%s15862_s15 + $0xb0] sm:$0xff]   ;;  %v13060_v58 = vld [vmem:[%s15862_s15 + $0x20] sm:$0xff]   ;;  %v13070_v8 = vld [vmem:[%s15862_s15 + $0x48] sm:$0xff]  }
0x13cb   : > { %v13069_v47 = vld [vmem:[%s15862_s15 + $0x90] sm:$0xff]  }
0x13cc   : > { %9549 = vmatpush1.bf16.msra.mxu1 %v11632_v30  ;;  %9590 = vmatpush1.bf16.msra.mxu0 %v11634_v0  ;;  %v9030_v30 = vld [vmem:[%s15860_s22 + $0x170] sm:$0xff]  ;;  %v9023_v0 = vld [vmem:[%s15860_s22 + $0x138] sm:$0xff] }
0x13cd   : > { %9550 = vmatprep.subr.bf16.mxu1 %v11617_v33  ;;  %9591 = vmatprep.subr.bf16.mxu0 %v11619_v19  ;;  %v9031_v33 = vld [vmem:[%s15860_s22 + $0x178] sm:$0xff]  ;;  %v11656_v19 = vcombine.low %v9038_v61, %v9046_v45  ;;  %v11641_v53 = vcombine.high %v9022_v27, %v9030_v30  ;;  %v13067_v61 = vld [vmem:[%s15862_s15 + $0xd0] sm:$0xff]  }
0x13ce   : > { %v11643_v55 = vcombine.high %v9023_v0, %v9031_v33  ;;  %v11642_v36 = vcombine.low %v9023_v0, %v9031_v33  ;;  %v13068_v45 = vld [vmem:[%s15862_s15 + $0x10] sm:$0xff]   ;;  %v13077_v0 = vld [vmem:[%s15862_s15 + $0x80] sm:$0xff]   ;;  %v13078_v33 = vld [vmem:[%s15862_s15 + $0x178] sm:$0xff]  }
0x13d0   : > { %9551 = vmatpush1.bf16.msra.mxu1 %v11616_v59  ;;  %9592 = vmatpush1.bf16.msra.mxu0 %v11618_v13  ;;  %v9014_v59 = vld [vmem:[%s15860_s22 + $0xf0] sm:$0xff]  ;;  %v9007_v13 = vld [vmem:[%s15860_s22 + $0xb8] sm:$0xff] }
0x13d1   : > { %9552 = vmatprep.subr.bf16.mxu1 %v11601_v5  ;;  %9593 = vmatprep.subr.bf16.mxu0 %v11603_v21  ;;  %v9015_v5 = vld [vmem:[%s15860_s22 + $0xf8] sm:$0xff]  ;;  %v11640_v21 = vcombine.low %v9022_v27, %v9030_v30  ;;  %v11625_v20 = vcombine.high %v9006_v3, %v9014_v59  ;;  %v13075_v27 = vld [vmem:[%s15862_s15 + $0xc0] sm:$0xff]  }
0x13d2   : > { %v11627_v29 = vcombine.high %v9007_v13, %v9015_v5  ;;  %v11626_v44 = vcombine.low %v9007_v13, %v9015_v5  ;;  %v13076_v30 = vld [vmem:[%s15862_s15] sm:$0xff]  }
0x13d4   : > { %9553 = vmatpush1.bf16.msra.mxu1 %v11600_v46  ;;  %9594 = vmatpush1.bf16.msra.mxu0 %v11602_v6  ;;  %v8998_v46 = vld [vmem:[%s15860_s22 + $0x70] sm:$0xff]  ;;  %v8991_v6 = vld [vmem:[%s15860_s22 + $0x38] sm:$0xff] }
0x13d5   : > { %9628 = vmatprep.subr.bf16.mxu1 %v11653_v15  ;;  %9669 = vmatprep.subr.bf16.mxu0 %v11655_v12  ;;  %v8999_v15 = vld [vmem:[%s15860_s22 + $0x78] sm:$0xff]  ;;  %v11624_v12 = vcombine.low %v9006_v3, %v9014_v59  ;;  %v11609_v11 = vcombine.high %v8990_v35, %v8998_v46  ;;  %v11608_v18 = vcombine.low %v8990_v35, %v8998_v46 }
0x13d6   : > { %v11611_v63 = vcombine.high %v8991_v6, %v8999_v15 }
0x13d7   : > { %11662 = vmatmul.mubr.msk.bf16.vlgmr.msra.gmra.mxu1 %vm7977_vm8, %v15536_v17  ;;  %11663 = vmatmul.mubr.msk.bf16.vlgmr.msra.gmra.mxu0 %vm7977_vm8, %v15536_v17 }
0x13d8   : > { %9629 = vmatpush1.bf16.msra.mxu1 %v11652_v38  ;;  %9670 = vmatpush1.bf16.msra.mxu0 %v11654_v60  ;;  %v11610_v38 = vcombine.low %v8991_v6, %v8999_v15  ;;  %v13047_v60 = vld [vmem:[%s15862_s15 + $0xf8] sm:$0xff]  }
0x13d9   : > { %9630 = vmatprep.subr.bf16.mxu1 %v11637_v56  ;;  %9671 = vmatprep.subr.bf16.mxu0 %v11639_v26  ;;  %v13048_v56 = vld [vmem:[%s15862_s15 + $0x38] sm:$0xff]  }
0x13da   : > { %9652 = vmatprep.mubr.bf16.mxu1 %v13393_v16  ;;  %9693 = vmatprep.mubr.bf16.mxu0 %v13393_v16  ;;  %v13049_v26 = vld [vmem:[%s15862_s15 + $0xb8] sm:$0xff]  }
0x13dc   : > { %9631 = vmatpush1.bf16.msra.mxu1 %v11636_v4  ;;  %9672 = vmatpush1.bf16.msra.mxu0 %v11638_v42  ;;  %v13054_v4 = vld [vmem:[%s15862_s15 + $0x68] sm:$0xff]  }
0x13dd   : > { %9632 = vmatprep.subr.bf16.mxu1 %v11621_v22  ;;  %9673 = vmatprep.subr.bf16.mxu0 %v11623_v40  ;;  %v13055_v42 = vld [vmem:[%s15862_s15 + $0xe8] sm:$0xff]  }
0x13de   : > { %v13056_v22 = vld [vmem:[%s15862_s15 + $0x28] sm:$0xff]  }
0x13df   : > { %v13057_v40 = vld [vmem:[%s15862_s15 + $0xa8] sm:$0xff]  }
0x13e0   : > { %9633 = vmatpush1.bf16.msra.mxu1 %v11620_v51  ;;  %9674 = vmatpush1.bf16.msra.mxu0 %v11622_v62  ;;  %v13063_v51 = vld [vmem:[%s15862_s15 + $0xd8] sm:$0xff]  }
0x13e1   : > { %9634 = vmatprep.subr.bf16.mxu1 %v11605_v39  ;;  %9675 = vmatprep.subr.bf16.mxu0 %v11607_v10  ;;  %v13064_v62 = vld [vmem:[%s15862_s15 + $0x18] sm:$0xff]   ;;  %v13066_v10 = vld [vmem:[%s15862_s15 + $0x50] sm:$0xff]  }
0x13e2   : > { %v13065_v39 = vld [vmem:[%s15862_s15 + $0x98] sm:$0xff]  }
0x13e4   : > { %9635 = vmatpush1.bf16.msra.mxu1 %v11604_v48  ;;  %9676 = vmatpush1.bf16.msra.mxu0 %v11606_v49  ;;  %v13071_v48 = vld [vmem:[%s15862_s15 + $0xc8] sm:$0xff]  }
0x13e5   : > { %9710 = vmatprep.subr.bf16.mxu1 %v11657_v28  ;;  %9751 = vmatprep.subr.bf16.mxu0 %v11659_v1  ;;  %v13072_v49 = vld [vmem:[%s15862_s15 + $0x8] sm:$0xff]   ;;  %v13074_v1 = vld [vmem:[%s15862_s15 + $0x40] sm:$0xff]  }
0x13e6   : > { %v13073_v28 = vld [vmem:[%s15862_s15 + $0x88] sm:$0xff]  }
0x13e7   : > { %11664 = vmatmul.mubr.msk.bf16.vlgmr.msra.gmra.mxu1 %vm7977_vm8, %v15536_v17  ;;  %11665 = vmatmul.mubr.msk.bf16.vlgmr.msra.gmra.mxu0 %vm7977_vm8, %v15536_v17 }
0x13e8   : > { %9711 = vmatpush1.bf16.msra.mxu1 %v11656_v19  ;;  %9752 = vmatpush1.bf16.msra.mxu0 %v11658_v7  ;;  %v13079_v19 = vld [vmem:[%s15862_s15 + $0x1f8] sm:$0xff]   ;;  %v15635_v7 = vld [vmem:[%s15863_s18] sm:$0xff] }
0x13e9   : > { %9712 = vmatprep.subr.bf16.mxu1 %v11641_v53  ;;  %9753 = vmatprep.subr.bf16.mxu0 %v11643_v55  ;;  %v9056_v53 = vrot.slane %v15635_v7, %v15059_v31  ;;  %v9064_v55 = vrot.slane %v15635_v7, %v15062_v9  ;;  %v9060_v3 = vrot.slane %v15635_v7, %v15053_v25 }
0x13ea   : > { %9734 = vmatprep.mubr.bf16.mxu1 %v13393_v16  ;;  %9775 = vmatprep.mubr.bf16.mxu0 %v13393_v16  ;;  %v13046_v16 = vld [vmem:[%s15862_s15 + $0x78] sm:$0xff]   ;;  %v9068_v59 = vrot.slane %v15635_v7, %v15056_v34 }
0x13ec   : > { %9713 = vmatpush1.bf16.msra.mxu1 %v11640_v21  ;;  %9754 = vmatpush1.bf16.msra.mxu0 %v11642_v36 }
0x13ed   : > { %9714 = vmatprep.subr.bf16.mxu1 %v11625_v20  ;;  %9755 = vmatprep.subr.bf16.mxu0 %v11627_v29 }
0x13f0   : > { %9715 = vmatpush1.bf16.msra.mxu1 %v11624_v12  ;;  %9756 = vmatpush1.bf16.msra.mxu0 %v11626_v44 }
0x13f1   : > { %9716 = vmatprep.subr.bf16.mxu1 %v11609_v11  ;;  %9757 = vmatprep.subr.bf16.mxu0 %v11611_v63 }
0x13f4   : > { %9717 = vmatpush1.bf16.msra.mxu1 %v11608_v18  ;;  %9758 = vmatpush1.bf16.msra.mxu0 %v11610_v38 }
0x13f5   : > { %12159 = vmatprep.subr.bf16.mxu1 %v13046_v16  ;;  %12181 = vmatprep.subr.bf16.mxu0 %v13047_v60 }
0x13f7   : > { %11666 = vmatmul.mubr.msk.bf16.vlgmr.msra.gmra.mxu1 %vm7977_vm8, %v15536_v17  ;;  %11667 = vmatmul.mubr.msk.bf16.vlgmr.msra.gmra.mxu0 %vm7977_vm8, %v15536_v17  ;;  %v13058_v17 = vld [vmem:[%s15862_s15 + $0x60] sm:$0xff]  }
0x13f8   : > { %12160 = vmatpush3.bf16.msra.mxu1 %v13048_v56  ;;  %12182 = vmatpush3.bf16.msra.mxu0 %v13049_v26  ;;  %v13080_v56 = vld [vmem:[%s15862_s15 + $0x138] sm:$0xff]  }
0x13f9   : > { %12161 = vmatprep.subr.bf16.mxu1 %v13050_v43  ;;  %12183 = vmatprep.subr.bf16.mxu0 %v13051_v54  ;;  %v13081_v26 = vld [vmem:[%s15862_s15 + $0x1b8] sm:$0xff]  }
0x13fc   : > { %12162 = vmatpush3.bf16.msra.mxu1 %v13052_v32  ;;  %12184 = vmatpush3.bf16.msra.mxu0 %v13053_v50  ;;  %v13082_v32 = vld [vmem:[%s15862_s15 + $0x170] sm:$0xff]  }
0x13fd   : > { %12163 = vmatprep.subr.bf16.mxu1 %v13054_v4  ;;  %12185 = vmatprep.subr.bf16.mxu0 %v13055_v42  ;;  %v13083_v50 = vld [vmem:[%s15862_s15 + $0x1f0] sm:$0xff]  }
0x13fe   : > { %v13084_v4 = vld [vmem:[%s15862_s15 + $0x130] sm:$0xff]  }
0x13ff   : > { %v13085_v42 = vld [vmem:[%s15862_s15 + $0x1b0] sm:$0xff]  }
0x1400   : > { %12164 = vmatpush3.bf16.msra.mxu1 %v13056_v22  ;;  %12186 = vmatpush3.bf16.msra.mxu0 %v13057_v40  ;;  %v13086_v22 = vld [vmem:[%s15862_s15 + $0x168] sm:$0xff]  }
0x1401   : > { %12165 = vmatprep.subr.bf16.mxu1 %v13058_v17  ;;  %12187 = vmatprep.subr.bf16.mxu0 %v13059_v52  ;;  %v13087_v40 = vld [vmem:[%s15862_s15 + $0x1e8] sm:$0xff]   ;;  %v9076_v17 = vrot.slane %v15635_v7, %v15076_v2  ;;  %v9084_v52 = vrot.slane %v15635_v7, %v15079_v57 }
0x1404   : > { %12166 = vmatpush3.bf16.msra.mxu1 %v13060_v58  ;;  %12188 = vmatpush3.bf16.msra.mxu0 %v13061_v37  ;;  %v13088_v58 = vld [vmem:[%s15862_s15 + $0x128] sm:$0xff]  }
0x1405   : > { %12167 = vmatprep.subr.bf16.mxu1 %v13062_v14  ;;  %12189 = vmatprep.subr.bf16.mxu0 %v13063_v51  ;;  %v13089_v37 = vld [vmem:[%s15862_s15 + $0x1a8] sm:$0xff]  }
0x1408   : > { %12168 = vmatpush3.bf16.msra.mxu1 %v13064_v62  ;;  %12190 = vmatpush3.bf16.msra.mxu0 %v13065_v39  ;;  %v13090_v62 = vld [vmem:[%s15862_s15 + $0x160] sm:$0xff]  }
0x1409   : > { %12169 = vmatprep.subr.bf16.mxu1 %v13066_v10  ;;  %12191 = vmatprep.subr.bf16.mxu0 %v13067_v61  ;;  %v13091_v39 = vld [vmem:[%s15862_s15 + $0x1e0] sm:$0xff]  }
0x140c   : > { %12170 = vmatpush3.bf16.msra.mxu1 %v13068_v45  ;;  %12192 = vmatpush3.bf16.msra.mxu0 %v13069_v47 }
0x140d   : > { %12171 = vmatprep.subr.bf16.mxu1 %v13070_v8  ;;  %12193 = vmatprep.subr.bf16.mxu0 %v13071_v48  ;;  %v13092_v8 = vld [vmem:[%s15862_s15 + $0x120] sm:$0xff]  }
0x140e   : > { %v13093_v48 = vld [vmem:[%s15862_s15 + $0x1a0] sm:$0xff]  }
0x1410   : > { %12172 = vmatpush3.bf16.msra.mxu1 %v13072_v49  ;;  %12194 = vmatpush3.bf16.msra.mxu0 %v13073_v28 }
0x1411   : > { %12173 = vmatprep.subr.bf16.mxu1 %v13074_v1  ;;  %12195 = vmatprep.subr.bf16.mxu0 %v13075_v27  ;;  %v13094_v1 = vld [vmem:[%s15862_s15 + $0x158] sm:$0xff]  }
0x1412   : > { %v13095_v27 = vld [vmem:[%s15862_s15 + $0x1d8] sm:$0xff]  }
0x1414   : > { %12174 = vmatpush3.bf16.msra.mxu1 %v13076_v30  ;;  %12196 = vmatpush3.bf16.msra.mxu0 %v13077_v0 }
0x1415   : > { %12203 = vmatprep.subr.bf16.mxu1 %v13078_v33  ;;  %12225 = vmatprep.subr.bf16.mxu0 %v13079_v19 }
0x1487   : > { %v9490_v13 = vpop.f32.mrf.mxu1  ;;  %v9531_v5 = vpop.f32.mrf.mxu0 }
0x1488   : > { %v9491_v21 = vadd.f32 %v9490_v13, %v9056_v53  ;;  %v9532_v36 = vadd.f32 %v9531_v5, %v9064_v55  ;;  %v13098_v13 = vld [vmem:[%s15862_s15 + $0x150] sm:$0xff]  }
0x1489   : > { %v9492_v20 = vpop.f32.mrf.mxu1  ;;  %v9533_v29 = vpop.f32.mrf.mxu0  ;;  %v13099_v5 = vld [vmem:[%s15862_s15 + $0x1d0] sm:$0xff]  }
0x148a   : > { %v9493_v35 = vadd.f32 %v9492_v20, %v9060_v3  ;;  %v9534_v46 = vadd.f32 %v9533_v29, %v9068_v59  ;;  %v9784_v6 = vmax.f32 %v9491_v21, 0.0  ;;  %v9786_v15 = vmax.f32 %v9532_v36, 0.0  ;;  %v13096_v3 = vld [vmem:[%s15862_s15 + $0x118] sm:$0xff]   ;;  %v13100_v21 = vld [vmem:[%s15862_s15 + $0x110] sm:$0xff]  }
0x148b   : > { %v9494_v12 = vpop.f32.mrf.mxu1  ;;  %v9535_v44 = vpop.f32.mrf.mxu0  ;;  %v13097_v59 = vld [vmem:[%s15862_s15 + $0x198] sm:$0xff]   ;;  %v13101_v36 = vld [vmem:[%s15862_s15 + $0x190] sm:$0xff]   ;;  %v9072_v20 = vrot.slane %v15635_v7, %v15118_v23  ;;  %v9080_v29 = vrot.slane %v15635_v7, %v15121_v24 }
0x148c   : > { %v9785_v11 = vmax.f32 %v9493_v35, 0.0  ;;  %v9787_v63 = vmax.f32 %v9534_v46, 0.0  ;;  %v10057_v43 = vpack.c.bf16 %v9784_v6, %v9784_v6  ;;  %v10059_v54 = vpack.c.bf16 %v9786_v15, %v9786_v15  ;;  %v13102_v35 = vld [vmem:[%s15862_s15 + $0x148] sm:$0xff]  }
0x148d   : > { %v9495_v18 = vpop.f32.mrf.mxu1  ;;  %v9536_v38 = vpop.f32.mrf.mxu0  ;;  %v13103_v46 = vld [vmem:[%s15862_s15 + $0x1c8] sm:$0xff]  }
0x148e   : > { %v10058_v16 = vpack.c.bf16 %v9785_v11, %v9785_v11  ;;  %v10060_v60 = vpack.c.bf16 %v9787_v63, %v9787_v63  ;;  %v15678_v6 = vld [vmem:[%s15863_s18 + $0x8] sm:$0xff] }
0x148f   : > { %v9092_v15 = vrot.slane %v15678_v6, %v15053_v25  ;;  %v9100_v12 = vrot.slane %v15678_v6, %v15056_v34  ;;  %v13104_v44 = vld [vmem:[%s15862_s15 + $0x108] sm:$0xff]  }
0x1490   : > { %10879 = vmatprep.mubr.bf16.mxu1 %v10058_v16  ;;  %10919 = vmatprep.mubr.bf16.mxu0 %v10060_v60  ;;  %v13105_v11 = vld [vmem:[%s15862_s15 + $0x188] sm:$0xff]   ;;  %v13106_v16 = vld [vmem:[%s15862_s15 + $0x140] sm:$0xff]  }
0x1491   : > { %10880 = vmatmul.mubr.bf16.vlgmr.msra.gmra.mxu1 %v10057_v43  ;;  %10920 = vmatmul.mubr.bf16.vlgmr.msra.gmra.mxu0 %v10059_v54  ;;  %v13107_v60 = vld [vmem:[%s15862_s15 + $0x1c0] sm:$0xff]  }
0x1492   : > { %12204 = vmatpush3.bf16.msra.mxu1 %v13080_v56  ;;  %12226 = vmatpush3.bf16.msra.mxu0 %v13081_v26  ;;  %v13108_v43 = vld [vmem:[%s15862_s15 + $0x100] sm:$0xff]  }
0x1493   : > { %12205 = vmatprep.subr.bf16.mxu1 %v13082_v32  ;;  %12227 = vmatprep.subr.bf16.mxu0 %v13083_v50  ;;  %v13109_v54 = vld [vmem:[%s15862_s15 + $0x180] sm:$0xff]  }
0x1496   : > { %12206 = vmatpush3.bf16.msra.mxu1 %v13084_v4  ;;  %12228 = vmatpush3.bf16.msra.mxu0 %v13085_v42 }
0x1497   : > { %v9572_v14 = vpop.f32.mrf.mxu1  ;;  %v9613_v51 = vpop.f32.mrf.mxu0  ;;  %12207 = vmatprep.subr.bf16.mxu1 %v13086_v22  ;;  %12229 = vmatprep.subr.bf16.mxu0 %v13087_v40  ;;  %v13110_v22 = vld [vmem:[%s15862_s15 + $0x278] sm:$0xff]  }
0x1498   : > { %v9573_v7 = vadd.f32 %v9572_v14, %v9072_v20  ;;  %v9614_v63 = vadd.f32 %v9613_v51, %v9080_v29  ;;  %v13111_v40 = vld [vmem:[%s15862_s15 + $0x2f8] sm:$0xff]  }
0x1499   : > { %v9574_v10 = vpop.f32.mrf.mxu1  ;;  %v9615_v61 = vpop.f32.mrf.mxu0  ;;  %v13112_v14 = vld [vmem:[%s15862_s15 + $0x238] sm:$0xff]  }
0x149a   : > { %v9575_v45 = vadd.f32 %v9574_v10, %v9076_v17  ;;  %v9616_v47 = vadd.f32 %v9615_v61, %v9084_v52  ;;  %12208 = vmatpush3.bf16.msra.mxu1 %v13088_v58  ;;  %12230 = vmatpush3.bf16.msra.mxu0 %v13089_v37  ;;  %v9788_v32 = vmax.f32 %v9573_v7, 0.0  ;;  %v9790_v50 = vmax.f32 %v9614_v63, 0.0  ;;  %v13114_v61 = vld [vmem:[%s15862_s15 + $0x270] sm:$0xff]   ;;  %v13134_v63 = vld [vmem:[%s15862_s15 + $0x248] sm:$0xff]  }
0x149b   : > { %v9576_v49 = vpop.f32.mrf.mxu1  ;;  %v9617_v28 = vpop.f32.mrf.mxu0  ;;  %12209 = vmatprep.subr.bf16.mxu1 %v13090_v62  ;;  %12231 = vmatprep.subr.bf16.mxu0 %v13091_v39  ;;  %v13113_v39 = vld [vmem:[%s15862_s15 + $0x2b8] sm:$0xff]   ;;  %v13133_v7 = vld [vmem:[%s15862_s15 + $0x290] sm:$0xff]  }
0x149c   : > { %v9789_v30 = vmax.f32 %v9575_v45, 0.0  ;;  %v9791_v0 = vmax.f32 %v9616_v47, 0.0  ;;  %v10061_v51 = vpack.c.bf16 %v9788_v32, %v9788_v32  ;;  %v10063_v62 = vpack.c.bf16 %v9790_v50, %v9790_v50  ;;  %v13115_v45 = vld [vmem:[%s15862_s15 + $0x2f0] sm:$0xff]   ;;  %v13118_v49 = vld [vmem:[%s15862_s15 + $0x268] sm:$0xff]  }
0x149d   : > { %v9577_v33 = vpop.f32.mrf.mxu1  ;;  %v9618_v19 = vpop.f32.mrf.mxu0  ;;  %v13119_v28 = vld [vmem:[%s15862_s15 + $0x2e8] sm:$0xff]  }
0x149e   : > { %v10062_v53 = vpack.c.bf16 %v9789_v30, %v9789_v30  ;;  %v10064_v55 = vpack.c.bf16 %v9791_v0, %v9791_v0  ;;  %12210 = vmatpush3.bf16.msra.mxu1 %v13092_v8  ;;  %12232 = vmatpush3.bf16.msra.mxu0 %v13093_v48  ;;  %v13116_v8 = vld [vmem:[%s15862_s15 + $0x230] sm:$0xff]   ;;  %v13121_v0 = vld [vmem:[%s15862_s15 + $0x2a8] sm:$0xff]   ;;  %v13122_v33 = vld [vmem:[%s15862_s15 + $0x260] sm:$0xff]  }
0x149f   : > { %12211 = vmatprep.subr.bf16.mxu1 %v13094_v1  ;;  %12233 = vmatprep.subr.bf16.mxu0 %v13095_v27  ;;  %v13117_v48 = vld [vmem:[%s15862_s15 + $0x2b0] sm:$0xff]   ;;  %v13120_v1 = vld [vmem:[%s15862_s15 + $0x228] sm:$0xff]   ;;  %v13123_v19 = vld [vmem:[%s15862_s15 + $0x2e0] sm:$0xff]  }
0x14a0   : > { %10959 = vmatprep.mubr.bf16.mxu1 %v10062_v53  ;;  %10999 = vmatprep.mubr.bf16.mxu0 %v10064_v55 }
0x14a2   : > { %12212 = vmatpush3.bf16.msra.mxu1 %v13096_v3  ;;  %12234 = vmatpush3.bf16.msra.mxu0 %v13097_v59  ;;  %v13124_v3 = vld [vmem:[%s15862_s15 + $0x220] sm:$0xff]  }
0x14a3   : > { %12213 = vmatprep.subr.bf16.mxu1 %v13098_v13  ;;  %12235 = vmatprep.subr.bf16.mxu0 %v13099_v5  ;;  %v13125_v5 = vld [vmem:[%s15862_s15 + $0x2a0] sm:$0xff]  }
0x14a6   : > { %12214 = vmatpush3.bf16.msra.mxu1 %v13100_v21  ;;  %12236 = vmatpush3.bf16.msra.mxu0 %v13101_v36  ;;  %v13126_v21 = vld [vmem:[%s15862_s15 + $0x258] sm:$0xff]  }
0x14a7   : > { %v15686_v18 = vpop.f32.mrf.mxu1  ;;  %v15688_v38 = vpop.f32.mrf.mxu0  ;;  %12215 = vmatprep.subr.bf16.mxu1 %v13102_v35  ;;  %12237 = vmatprep.subr.bf16.mxu0 %v13103_v46  ;;  %v13127_v36 = vld [vmem:[%s15862_s15 + $0x2d8] sm:$0xff]  }
0x14a8   : > { %v13128_v35 = vld [vmem:[%s15862_s15 + $0x218] sm:$0xff]  }
0x14a9   : > { %v9656_v25 = vpop.f32.mrf.mxu1  ;;  %v9697_v56 = vpop.f32.mrf.mxu0  ;;  %v13129_v46 = vld [vmem:[%s15862_s15 + $0x298] sm:$0xff]  }
0x14aa   : > { %v9657_v26 = vadd.f32 %v9656_v25, %v9092_v15  ;;  %v9698_v34 = vadd.f32 %v9697_v56, %v9100_v12  ;;  %12216 = vmatpush3.bf16.msra.mxu1 %v13104_v44  ;;  %12238 = vmatpush3.bf16.msra.mxu0 %v13105_v11  ;;  %v13130_v15 = vld [vmem:[%s15862_s15 + $0x250] sm:$0xff]   ;;  %v9088_v11 = vrot.slane %v15678_v6, %v15059_v31  ;;  %v13136_v31 = vld [vmem:[%s15862_s15 + $0x208] sm:$0xff]  }
0x14ab   : > { %v9658_v4 = vpop.f32.mrf.mxu1  ;;  %v9699_v42 = vpop.f32.mrf.mxu0  ;;  %12217 = vmatprep.subr.bf16.mxu1 %v13106_v16  ;;  %12239 = vmatprep.subr.bf16.mxu0 %v13107_v60  ;;  %v13131_v12 = vld [vmem:[%s15862_s15 + $0x2d0] sm:$0xff]   ;;  %v9096_v16 = vrot.slane %v15678_v6, %v15062_v9  ;;  %v13135_v60 = vld [vmem:[%s15862_s15 + $0x2c8] sm:$0xff]   ;;  %v9108_v25 = vrot.slane %v15678_v6, %v15076_v2  ;;  %v9116_v56 = vrot.slane %v15678_v6, %v15079_v57  ;;  %v13138_v9 = vld [vmem:[%s15862_s15 + $0x240] sm:$0xff]  }
0x14ac   : > { %v9793_v17 = vmax.f32 %v9657_v26, 0.0  ;;  %v9795_v52 = vmax.f32 %v9698_v34, 0.0  ;;  %v13132_v44 = vld [vmem:[%s15862_s15 + $0x210] sm:$0xff]   ;;  %v9655_v26 = vadd.f32 %v15686_v18, %v9088_v11  ;;  %v13137_v34 = vld [vmem:[%s15862_s15 + $0x288] sm:$0xff]   ;;  %v13140_v57 = vld [vmem:[%s15862_s15 + $0x200] sm:$0xff]  }
0x14ad   : > { %v9659_v58 = vpop.f32.mrf.mxu1  ;;  %v9700_v37 = vpop.f32.mrf.mxu0  ;;  %v13141_v18 = vld [vmem:[%s15862_s15 + $0x280] sm:$0xff]   ;;  %v13142_v4 = vld [vmem:[%s15862_s15 + $0x378] sm:$0xff]  }
0x14ae   : > { %12218 = vmatpush3.bf16.msra.mxu1 %v13108_v43  ;;  %12240 = vmatpush3.bf16.msra.mxu0 %v13109_v54  ;;  %v10066_v10 = vpack.c.bf16 %v9793_v17, %v9793_v17  ;;  %v10068_v47 = vpack.c.bf16 %v9795_v52, %v9795_v52  ;;  %v9696_v43 = vadd.f32 %v15688_v38, %v9096_v16  ;;  %v13139_v54 = vld [vmem:[%s15862_s15 + $0x2c0] sm:$0xff]   ;;  %v9792_v50 = vmax.f32 %v9655_v26, 0.0  ;;  %v13144_v17 = vld [vmem:[%s15862_s15 + $0x338] sm:$0xff]  }
0x14af   : > { %12247 = vmatprep.subr.bf16.mxu1 %v13110_v22  ;;  %12269 = vmatprep.subr.bf16.mxu0 %v13111_v40  ;;  %v13143_v22 = vld [vmem:[%s15862_s15 + $0x3f8] sm:$0xff]   ;;  %v13172_v11 = vld [vmem:[%s15862_s15 + $0x300] sm:$0xff]  }
0x14b0   : > { %v9794_v42 = vmax.f32 %v9696_v43, 0.0  ;;  %v10065_v52 = vpack.c.bf16 %v9792_v50, %v9792_v50  ;;  %v13145_v58 = vld [vmem:[%s15862_s15 + $0x3b8] sm:$0xff]  }
0x14b1   : > { %10960 = vmatmul.mubr.bf16.vlgmr.msra.gmra.mxu1 %v10061_v51  ;;  %11000 = vmatmul.mubr.bf16.vlgmr.msra.gmra.mxu0 %v10063_v62  ;;  %v13147_v62 = vld [vmem:[%s15862_s15 + $0x3f0] sm:$0xff]  }
0x14b2   : > { %12248 = vmatpush3.bf16.msra.mxu1 %v13112_v14  ;;  %11039 = vmatprep.mubr.bf16.mxu1 %v10066_v10  ;;  %v10067_v37 = vpack.c.bf16 %v9794_v42, %v9794_v42  ;;  %v13146_v14 = vld [vmem:[%s15862_s15 + $0x370] sm:$0xff]  }
0x14b3   : > { %12270 = vmatpush3.bf16.msra.mxu0 %v13113_v39  ;;  %11079 = vmatprep.mubr.bf16.mxu0 %v10068_v47  ;;  %v13148_v10 = vld [vmem:[%s15862_s15 + $0x330] sm:$0xff]   ;;  %v13151_v47 = vld [vmem:[%s15862_s15 + $0x3e8] sm:$0xff]  }
0x14b4   : > { %12249 = vmatprep.subr.bf16.mxu1 %v13114_v61  ;;  %12271 = vmatprep.subr.bf16.mxu0 %v13115_v45  ;;  %v13149_v61 = vld [vmem:[%s15862_s15 + $0x3b0] sm:$0xff]   ;;  %v13150_v45 = vld [vmem:[%s15862_s15 + $0x368] sm:$0xff]  }
0x14b6   : > { %12250 = vmatpush3.bf16.msra.mxu1 %v13116_v8  ;;  %v13152_v8 = vld [vmem:[%s15862_s15 + $0x328] sm:$0xff]  }
0x14b7   : > { %12272 = vmatpush3.bf16.msra.mxu0 %v13117_v48  ;;  %v15705_v27 = vpop.f32.mrf.mxu1  ;;  %v15707_v30 = vpop.f32.mrf.mxu0  ;;  %12251 = vmatprep.subr.bf16.mxu1 %v13118_v49  ;;  %v13153_v48 = vld [vmem:[%s15862_s15 + $0x3a8] sm:$0xff]   ;;  %v13154_v49 = vld [vmem:[%s15862_s15 + $0x360] sm:$0xff]  }
0x14b8   : > { %12273 = vmatprep.subr.bf16.mxu0 %v13119_v28  ;;  %v13155_v28 = vld [vmem:[%s15862_s15 + $0x3e0] sm:$0xff]  }
0x14b9   : > { %v9738_v53 = vpop.f32.mrf.mxu1  ;;  %v9779_v55 = vpop.f32.mrf.mxu0 }
0x14ba   : > { %12252 = vmatpush3.bf16.msra.mxu1 %v13120_v1  ;;  %v9739_v2 = vadd.f32 %v9738_v53, %v9108_v25  ;;  %v9780_v32 = vadd.f32 %v9779_v55, %v9116_v56  ;;  %v13156_v1 = vld [vmem:[%s15862_s15 + $0x320] sm:$0xff]   ;;  %v13160_v53 = vld [vmem:[%s15862_s15 + $0x318] sm:$0xff]  }
0x14bb   : > { %12274 = vmatpush3.bf16.msra.mxu0 %v13121_v0  ;;  %v9740_v59 = vpop.f32.mrf.mxu1  ;;  %v9781_v13 = vpop.f32.mrf.mxu0  ;;  %12253 = vmatprep.subr.bf16.mxu1 %v13122_v33  ;;  %v13157_v0 = vld [vmem:[%s15862_s15 + $0x3a0] sm:$0xff]   ;;  %v13158_v33 = vld [vmem:[%s15862_s15 + $0x358] sm:$0xff]  }
0x14bc   : > { %12275 = vmatprep.subr.bf16.mxu0 %v13123_v19  ;;  %v9797_v40 = vmax.f32 %v9739_v2, 0.0  ;;  %v9799_v38 = vmax.f32 %v9780_v32, 0.0  ;;  %v13159_v19 = vld [vmem:[%s15862_s15 + $0x3d8] sm:$0xff]   ;;  %v13163_v59 = vld [vmem:[%s15862_s15 + $0x3d0] sm:$0xff]  }
0x14bd   : > { %v9741_v20 = vpop.f32.mrf.mxu1  ;;  %v9782_v29 = vpop.f32.mrf.mxu0  ;;  %v13161_v55 = vld [vmem:[%s15862_s15 + $0x398] sm:$0xff]   ;;  %v13164_v13 = vld [vmem:[%s15862_s15 + $0x310] sm:$0xff]  }
0x14be   : > { %12254 = vmatpush3.bf16.msra.mxu1 %v13124_v3  ;;  %v10070_v51 = vpack.c.bf16 %v9797_v40, %v9797_v40  ;;  %v10072_v39 = vpack.c.bf16 %v9799_v38, %v9799_v38  ;;  %v13162_v3 = vld [vmem:[%s15862_s15 + $0x350] sm:$0xff]   ;;  %v9112_v20 = vrot.slane %v15678_v6, %v15121_v24  ;;  %v13167_v29 = vld [vmem:[%s15862_s15 + $0x3c8] sm:$0xff]   ;;  %v13173_v24 = vld [vmem:[%s15862_s15 + $0x380] sm:$0xff]  }
0x14bf   : > { %12276 = vmatpush3.bf16.msra.mxu0 %v13125_v5  ;;  %12255 = vmatprep.subr.bf16.mxu1 %v13126_v21  ;;  %v9104_v5 = vrot.slane %v15678_v6, %v15118_v23  ;;  %v13165_v21 = vld [vmem:[%s15862_s15 + $0x390] sm:$0xff]   ;;  %v13170_v23 = vld [vmem:[%s15862_s15 + $0x340] sm:$0xff]  }
0x14c0   : > { %12277 = vmatprep.subr.bf16.mxu0 %v13127_v36  ;;  %v13166_v36 = vld [vmem:[%s15862_s15 + $0x348] sm:$0xff]  }
0x14c2   : > { %12256 = vmatpush3.bf16.msra.mxu1 %v13128_v35  ;;  %v13168_v35 = vld [vmem:[%s15862_s15 + $0x308] sm:$0xff]  }
0x14c3   : > { %12278 = vmatpush3.bf16.msra.mxu0 %v13129_v46  ;;  %12257 = vmatprep.subr.bf16.mxu1 %v13130_v15  ;;  %v9737_v46 = vadd.f32 %v15705_v27, %v9104_v5  ;;  %v13169_v15 = vld [vmem:[%s15862_s15 + $0x388] sm:$0xff]  }
0x14c4   : > { %12279 = vmatprep.subr.bf16.mxu0 %v13131_v12  ;;  %v9778_v12 = vadd.f32 %v15707_v30, %v9112_v20  ;;  %v11668_v30 = vld [vmem:[%s15864_s0] ss:$0 sm:$0xff] }
0x14c6   : > { %12258 = vmatpush3.bf16.msra.mxu1 %v13132_v44  ;;  %v13171_v44 = vld [vmem:[%s15862_s15 + $0x3c0] sm:$0xff]   ;;  %v9798_v6 = vmax.f32 %v9778_v12, 0.0 }
0x14c7   : > { %12280 = vmatpush3.bf16.msra.mxu0 %v13133_v7  ;;  %12259 = vmatprep.subr.bf16.mxu1 %v13134_v63  ;;  %v9796_v7 = vmax.f32 %v9737_v46, 0.0 }
0x14c8   : > { %12281 = vmatprep.subr.bf16.mxu0 %v13135_v60  ;;  %v10071_v27 = vpack.c.bf16 %v9798_v6, %v9798_v6  ;;  %v11797_v6 = vld [vmem:[%s13555_s6] ss:$0 sm:$0xff] }
0x14c9   : > { %v10069_v63 = vpack.c.bf16 %v9796_v7, %v9796_v7 }
0x14ca   : > { %12260 = vmatpush3.bf16.msra.mxu1 %v13136_v31 }
0x14cb   : > { %12282 = vmatpush3.bf16.msra.mxu0 %v13137_v34  ;;  %12261 = vmatprep.subr.bf16.mxu1 %v13138_v9 }
0x14cc   : > { %12283 = vmatprep.subr.bf16.mxu0 %v13139_v54 }
0x14ce   : > { %12262 = vmatpush3.bf16.msra.mxu1 %v13140_v57 }
0x14cf   : > { %12284 = vmatpush3.bf16.msra.mxu0 %v13141_v18  ;;  %12291 = vmatprep.subr.bf16.mxu1 %v13142_v4 }
0x14d0   : > { %12313 = vmatprep.subr.bf16.mxu0 %v13143_v22 }
0x14d1   : > { %11040 = vmatmul.mubr.bf16.vlgmr.msra.gmra.mxu1 %v10065_v52 }
0x14d2   : > { %11080 = vmatmul.mubr.bf16.vlgmr.msra.gmra.mxu0 %v10067_v37  ;;  %12292 = vmatpush3.bf16.msra.mxu1 %v13144_v17 }
0x14d3   : > { %11119 = vmatprep.mubr.bf16.mxu1 %v10070_v51  ;;  %12314 = vmatpush3.bf16.msra.mxu0 %v13145_v58 }
0x14d4   : > { %11159 = vmatprep.mubr.bf16.mxu0 %v10072_v39  ;;  %12293 = vmatprep.subr.bf16.mxu1 %v13146_v14 }
0x14d5   : > { %12315 = vmatprep.subr.bf16.mxu0 %v13147_v62 }
0x14d6   : > { %12294 = vmatpush3.bf16.msra.mxu1 %v13148_v10 }
0x14d7   : > { %12316 = vmatpush3.bf16.msra.mxu0 %v13149_v61  ;;  %12295 = vmatprep.subr.bf16.mxu1 %v13150_v45 }
0x14d8   : > { %12317 = vmatprep.subr.bf16.mxu0 %v13151_v47 }
0x14da   : > { %12296 = vmatpush3.bf16.msra.mxu1 %v13152_v8 }
0x14db   : > { %12318 = vmatpush3.bf16.msra.mxu0 %v13153_v48  ;;  %12297 = vmatprep.subr.bf16.mxu1 %v13154_v49 }
0x14dc   : > { %12319 = vmatprep.subr.bf16.mxu0 %v13155_v28 }
0x14de   : > { %12298 = vmatpush3.bf16.msra.mxu1 %v13156_v1 }
0x14df   : > { %12320 = vmatpush3.bf16.msra.mxu0 %v13157_v0  ;;  %12299 = vmatprep.subr.bf16.mxu1 %v13158_v33 }
0x14e0   : > { %12321 = vmatprep.subr.bf16.mxu0 %v13159_v19 }
0x14e2   : > { %12300 = vmatpush3.bf16.msra.mxu1 %v13160_v53 }
0x14e3   : > { %12322 = vmatpush3.bf16.msra.mxu0 %v13161_v55  ;;  %12301 = vmatprep.subr.bf16.mxu1 %v13162_v3 }
0x14e4   : > { %12323 = vmatprep.subr.bf16.mxu0 %v13163_v59 }
0x14e6   : > { %12302 = vmatpush3.bf16.msra.mxu1 %v13164_v13 }
0x14e7   : > { %12324 = vmatpush3.bf16.msra.mxu0 %v13165_v21  ;;  %12303 = vmatprep.subr.bf16.mxu1 %v13166_v36 }
0x14e8   : > { %12325 = vmatprep.subr.bf16.mxu0 %v13167_v29 }
0x14ea   : > { %12304 = vmatpush3.bf16.msra.mxu1 %v13168_v35 }
0x14eb   : > { %12326 = vmatpush3.bf16.msra.mxu0 %v13169_v15  ;;  %12305 = vmatprep.subr.bf16.mxu1 %v13170_v23 }
0x14ec   : > { %12327 = vmatprep.subr.bf16.mxu0 %v13171_v44 }
0x14ee   : > { %12306 = vmatpush3.bf16.msra.mxu1 %v13172_v11 }
0x14ef   : > { %12328 = vmatpush3.bf16.msra.mxu0 %v13173_v24 }
0x14f1   : > { %11120 = vmatmul.mubr.bf16.vlgmr.msra.gmra.mxu1 %v10069_v63  ;;  %v11798_v63 = vld [vmem:[%s13560_s20] ss:$0 sm:$0xff] }
0x14f2   : > { %11160 = vmatmul.mubr.bf16.vlgmr.msra.gmra.mxu0 %v10071_v27 }
0x1551   : > { %v12175_v16 = vpop.f32.mrf.mxu1  ;;  %v12197_v60 = vpop.f32.mrf.mxu0 }
0x1553   : > { %v12176_v25 = vpop.f32.mrf.mxu1  ;;  %v12198_v56 = vpop.f32.mrf.mxu0 }
0x1554   : > { %v12177_v31 = vadd.f32 %v12176_v25, %v12175_v16  ;;  %v12199_v26 = vadd.f32 %v12198_v56, %v12197_v60 }
0x1555   : > { %v12178_v34 = vpop.f32.mrf.mxu1  ;;  %v12200_v9 = vpop.f32.mrf.mxu0 }
0x1556   : > { %v10882_v43 = vadd.f32 %v12177_v31, %v11668_v30 }
0x1557   : > { %v12179_v54 = vpop.f32.mrf.mxu1  ;;  %v12201_v2 = vpop.f32.mrf.mxu0 }
0x1558   : > { %v10922_v32 = vadd.f32 %v12199_v26, %v10882_v43 }
0x1571   : > { %v12219_v57 = vpop.f32.mrf.mxu1  ;;  %v12241_v50 = vpop.f32.mrf.mxu0 }
0x1573   : > { %v12220_v18 = vpop.f32.mrf.mxu1  ;;  %v12242_v4 = vpop.f32.mrf.mxu0 }
0x1574   : > { %v12221_v10 = vadd.f32 %v12220_v18, %v12219_v57  ;;  %v12243_v45 = vadd.f32 %v12242_v4, %v12241_v50 }
0x1575   : > { %v12222_v42 = vpop.f32.mrf.mxu1  ;;  %v12244_v22 = vpop.f32.mrf.mxu0 }
0x1576   : > { %v10962_v61 = vadd.f32 %v12221_v10, %v10922_v32 }
0x1577   : > { %v12223_v40 = vpop.f32.mrf.mxu1  ;;  %v12245_v38 = vpop.f32.mrf.mxu0 }
0x1578   : > { %v11002_v8 = vadd.f32 %v12243_v45, %v10962_v61 }
0x1591   : > { %v12263_v17 = vpop.f32.mrf.mxu1 }
0x1592   : > { %v12285_v52 = vpop.f32.mrf.mxu0 }
0x1593   : > { %v12264_v58 = vpop.f32.mrf.mxu1 }
0x1594   : > { %v12286_v37 = vpop.f32.mrf.mxu0  ;;  %v12265_v47 = vadd.f32 %v12264_v58, %v12263_v17 }
0x1595   : > { %v12266_v14 = vpop.f32.mrf.mxu1  ;;  %v12287_v28 = vadd.f32 %v12286_v37, %v12285_v52 }
0x1596   : > { %v12288_v51 = vpop.f32.mrf.mxu0  ;;  %v11042_v48 = vadd.f32 %v12265_v47, %v11002_v8 }
0x1597   : > { %v12267_v62 = vpop.f32.mrf.mxu1 }
0x1598   : > { %v12289_v39 = vpop.f32.mrf.mxu0  ;;  %v11082_v33 = vadd.f32 %v12287_v28, %v11042_v48 }
0x15b1   : > { %v12307_v49 = vpop.f32.mrf.mxu1 }
0x15b2   : > { %v12329_v1 = vpop.f32.mrf.mxu0 }
0x15b3   : > { %v12308_v0 = vpop.f32.mrf.mxu1 }
0x15b4   : > { %v12309_v19 = vadd.f32 %v12308_v0, %v12307_v49  ;;  %v12330_v53 = vpop.f32.mrf.mxu0 }
0x15b5   : > { %v12310_v55 = vpop.f32.mrf.mxu1  ;;  %v12331_v59 = vadd.f32 %v12330_v53, %v12329_v1 }
0x15b6   : > { %v11122_v3 = vadd.f32 %v12309_v19, %v11082_v33  ;;  %v12332_v13 = vpop.f32.mrf.mxu0 }
0x15b7   : > { %v12311_v5 = vpop.f32.mrf.mxu1 }
0x15b8   : > { %v11162_v21 = vadd.f32 %v12331_v59, %v11122_v3  ;;  %v12333_v36 = vpop.f32.mrf.mxu0 }
0x15ba   : > { %v11167_v20 = vadd.f32 %v11162_v21, %v15532_v41 }
0x15bc   : > { %v11170_v29 = vsel %vm8955_vm11, %v11167_v20, 0.0 }
0x15bd   : > { %11171 = vadd.xlane.f32.xlu0 %v11170_v29 }
0x1646   : > { %v11172_v35 = vpop.xlane.xlu0 %11171 }
0x1647   : > { %v11173_v46 = vmul.f32 0.015625, %v11172_v35 }
0x1649   : > { %v11174_v15 = vsub.f32 %v11167_v20, %v11173_v46 }
0x164b   : > { %v11175_v23 = vmul.f32 %v11174_v15, %v11174_v15 }
0x164d   : > { %v11176_v12 = vsel %vm8955_vm11, %v11175_v23, 0.0 }
0x164e   : > { %11177 = vadd.xlane.f32.xlu1 %v11176_v12 }
0x16d7   : > { %v11178_v44 = vpop.xlane.xlu1 %11177 }
0x16d8   : > { %v11179_v11 = vmul.f32 0.015625, %v11178_v44 }
0x16da   : > { %v11180_v7 = vadd.f32 1e-05, %v11179_v11 }
0x16dc   : > { %13328 = vrsqrt.f32 %v11180_v7 }
0x16e9   : > { %v13329_v24 = vpop.eup %13328 }
0x16ea   : > { %v11182_v41 = vmul.f32 %v13329_v24, %v11174_v15 }
0x16ec   : > { %v11189_v27 = vmul.f32 %v11797_v6, %v11182_v41 }
0x16ee   : > { %v11196_v16 = vadd.f32 %v11798_v63, %v11189_v27 }
0x16f0   : > { %11197 = vst.msk [vmem:[%s1001_s11] sm:$0x3] %vm8955_vm11, %v11196_v16 }
0x16f1 PF: > { %s75_s28 = sadd.s32 1, %s13344_s28  }
0x16f2   : > { %p72_p4 = scmp.ge.s32.totalorder %s75_s28, 5  }
0x16f4   :  { %74 = sbr.rel (!%p72_p4) target bundleno = 55 (0x37), region = 213 }

</bundles_post_ra>
